<compile_context>
chip_gen: v7x
topology: tpu7x:2x2x1
jax: 0.10.0
libtpu: 0.0.40
codegen_flags: <defaults>
</compile_context>

<pallas_src>
import functools

import jax
import jax.numpy as jnp
from jax.experimental import pallas as pl
from jax.experimental.pallas import tpu as pltpu


# ------------------------------- Pallas kernel -------------------------------

def _inception_c_kernel(x_ref,
                        w0_ref, s0_ref, b0_ref, s4_ref, b4_ref,
                        w2a_ref, s2a_ref, b2a_ref,
                        w2b_ref, s2b_ref, b2b_ref,
                        w3a_ref, s3a_ref, b3a_ref,
                        w3b_ref, s3b_ref, b3b_ref,
                        w3c_ref, s3c_ref, b3c_ref,
                        w3d_ref, s3d_ref, b3d_ref,
                        o_ref, pad_ref, pool_ref,
                        *, H, W, mid):
    # x_ref:    (1, H, W, Cin) bf16 input tile (one image)
    # w0_ref:   (Cin, 2*mid + 384) bf16  shared 1x1 slab [b2_0 | b3_0 | b1 | b4]
    # s0/b0:    (1, 2*mid + 192) f32     folded BN affine for [b2_0 | b3_0 | b1]
    # s4/b4:    (1, 192) f32             branch4 affine (applied after pooling)
    # w*(7,Ci,Co) bf16, s*/b* (1,Co) f32: the six 1x7 / 7x1 Conv+BN layers
    # o_ref:    (1, 4, H, W, 192)        branch-major output slab
    # pad_ref:  (H+16, W+16, mid) bf16   shared zero-halo scratch for 7-tap convs
    # pool_ref: (H+2,  W+16, 192) f32    zero-halo scratch for the avg pool
    R0 = C0 = 8                      # interior origin (8 => sublane-aligned store)
    Cin = x_ref.shape[-1]
    out_dt = o_ref.dtype

    # Dense zeroing every grid step (megacore-safe under "parallel"): only the
    # interiors are rewritten below, so the halos stay zero for all six convs.
    pad_ref[...] = jnp.zeros_like(pad_ref)
    pool_ref[...] = jnp.zeros_like(pool_ref)

    # --------- one shared MXU pass over x for all four x-consumers -----------
    x = x_ref[0].reshape(H * W, Cin)                               # bf16
    u = jnp.dot(x, w0_ref[...], preferred_element_type=jnp.float32)
    a = jnp.maximum(u[:, :2 * mid + 192] * s0_ref[0] + b0_ref[0], 0.0)

    # branch1 (1x1 Conv+BN+ReLU): lane-dense store into its 192-wide slab.
    o_ref[0, 0] = a[:, 2 * mid:2 * mid + 192].reshape(H, W, 192).astype(out_dt)

    # branch4: pool(conv1x1(x)) == conv1x1(pool(x)); separable 3x3 box sum in f32,
    # count_include_pad=True -> divide by 9, then BN affine + ReLU.
    pool_ref[1:1 + H, C0:C0 + W, :] = u[:, 2 * mid + 192:].reshape(H, W, 192)
    hs = (pool_ref[:, C0 - 1:C0 - 1 + W, :]
          + pool_ref[:, C0:C0 + W, :]
          + pool_ref[:, C0 + 1:C0 + 1 + W, :])                     # (H+2, W, 192)
    p = (hs[0:H] + hs[1:1 + H] + hs[2:2 + H]) * (1.0 / 9.0)        # (H, W, 192)
    b4 = jnp.maximum(p.reshape(H * W, 192) * s4_ref[0] + b4_ref[0], 0.0)
    o_ref[0, 3] = b4.reshape(H, W, 192).astype(out_dt)

    # --------- in-VMEM 1x7 / 7x1 Conv + folded BN + ReLU ----------------------
    def conv7(y, w_ref, s_ref, b_ref, along_w):
        # y: (H, W, mid) bf16. Per-tap MXU matmuls with f32 accumulation.
        co = w_ref.shape[-1]
        pad_ref[R0:R0 + H, C0:C0 + W, :] = y          # interior only; halo stays 0
        acc = jnp.zeros((H * W, co), jnp.float32)
        for d in range(7):                             # unrolled at trace time
            if along_w:                                # 1x7: shift along W
                tap = pad_ref[R0:R0 + H, C0 - 3 + d:C0 - 3 + d + W, :]
            else:                                      # 7x1: shift along H
                tap = pad_ref[R0 - 3 + d:R0 - 3 + d + H, C0:C0 + W, :]
            acc = acc + jnp.dot(tap.reshape(H * W, mid), w_ref[d],
                                preferred_element_type=jnp.float32)
        return jnp.maximum(acc * s_ref[0] + b_ref[0], 0.0)         # (H*W, co) f32

    # branch2: 1x1 -> (1,7) -> (7,1)
    y = a[:, 0:mid].reshape(H, W, mid).astype(jnp.bfloat16)
    y = conv7(y, w2a_ref, s2a_ref, b2a_ref, along_w=True)
    y = y.reshape(H, W, mid).astype(jnp.bfloat16)
    b2 = conv7(y, w2b_ref, s2b_ref, b2b_ref, along_w=False)
    o_ref[0, 1] = b2.reshape(H, W, 192).astype(out_dt)

    # branch3: 1x1 -> (7,1) -> (1,7) -> (7,1) -> (1,7)
    y = a[:, mid:2 * mid].reshape(H, W, mid).astype(jnp.bfloat16)
    y = conv7(y, w3a_ref, s3a_ref, b3a_ref, along_w=False)
    y = y.reshape(H, W, mid).astype(jnp.bfloat16)
    y = conv7(y, w3b_ref, s3b_ref, b3b_ref, along_w=True)
    y = y.reshape(H, W, mid).astype(jnp.bfloat16)
    y = conv7(y, w3c_ref, s3c_ref, b3c_ref, along_w=False)
    y = y.reshape(H, W, mid).astype(jnp.bfloat16)
    b3 = conv7(y, w3d_ref, s3d_ref, b3d_ref, along_w=True)
    o_ref[0, 2] = b3.reshape(H, W, 192).astype(out_dt)


# --------------------------------- wrapper ------------------------------------

def inception_c_forward(x_nchw, params):
    # NCHW -> NHWC and cast to bf16 at the transpose (it touches every element
    # anyway): the kernel DMAs half the bytes of x and skips an in-kernel cast.
    x = jnp.transpose(x_nchw, (0, 2, 3, 1)).astype(jnp.bfloat16)
    N, H, W, Cin = x.shape
    out_dt = x_nchw.dtype
    mid = params["b2"][0]["w"].shape[-1]

    def w1x1(l):
        w = l["w"]
        return w.reshape(w.shape[-2], w.shape[-1])              # (Cin, Cout) bf16

    def w7(l):
        w = l["w"]
        kh, kw, ci, co = w.shape
        return w.reshape(kh * kw, ci, co)                       # (7, Ci, Co) bf16

    def aff(l):
        return l["scale"].reshape(1, -1), l["bias"].reshape(1, -1)

    # Shared 1x1 slab: mids first so activation slices start lane-aligned.
    w0 = jnp.concatenate([w1x1(params["b2"][0]), w1x1(params["b3"][0]),
                          w1x1(params["b1"][0]), w1x1(params["b4"][0])], axis=-1)
    s0 = jnp.concatenate([params["b2"][0]["scale"], params["b3"][0]["scale"],
                          params["b1"][0]["scale"]]).reshape(1, -1)
    b0 = jnp.concatenate([params["b2"][0]["bias"], params["b3"][0]["bias"],
                          params["b1"][0]["bias"]]).reshape(1, -1)
    s4, b4 = aff(params["b4"][0])

    w2a, (s2a, b2a) = w7(params["b2"][1]), aff(params["b2"][1])
    w2b, (s2b, b2b) = w7(params["b2"][2]), aff(params["b2"][2])
    w3a, (s3a, b3a) = w7(params["b3"][1]), aff(params["b3"][1])
    w3b, (s3b, b3b) = w7(params["b3"][2]), aff(params["b3"][2])
    w3c, (s3c, b3c) = w7(params["b3"][3]), aff(params["b3"][3])
    w3d, (s3d, b3d) = w7(params["b3"][4]), aff(params["b3"][4])

    operands = [w0, s0, b0, s4, b4,
                w2a, s2a, b2a, w2b, s2b, b2b,
                w3a, s3a, b3a, w3b, s3b, b3b,
                w3c, s3c, b3c, w3d, s3d, b3d]

    in_specs = [pl.BlockSpec((1, H, W, Cin), lambda n: (n, 0, 0, 0))]
    for op in operands:
        in_specs.append(pl.BlockSpec(op.shape, lambda n, _nd=op.ndim: (0,) * _nd))

    kernel = functools.partial(_inception_c_kernel, H=H, W=W, mid=mid)

    out5 = pl.pallas_call(
        kernel,
        out_shape=jax.ShapeDtypeStruct((N, 4, H, W, 192), out_dt),
        grid=(N,),
        in_specs=in_specs,
        out_specs=pl.BlockSpec((1, 4, H, W, 192), lambda n: (n, 0, 0, 0, 0)),
        scratch_shapes=[
            pltpu.VMEM((H + 16, W + 16, mid), jnp.bfloat16),   # 7-tap halo scratch
            pltpu.VMEM((H + 2, W + 16, 192), jnp.float32),     # branch4 pool scratch
        ],
        compiler_params=pltpu.CompilerParams(
            dimension_semantics=("parallel",),
            vmem_limit_bytes=32 * 1024 * 1024,                 # explicit VMEM budget
        ),
    )(x, *operands)

    # branch-major (N,4,H,W,192) -> NCHW (N, 4*192, H, W); the branch->channel
    # merge rides the NHWC->NCHW transpose that is needed anyway (no XLA concat).
    return jnp.transpose(out5, (0, 1, 4, 2, 3)).reshape(N, 4 * 192, H, W)


# ----------------------------- parameter creation ------------------------------

def make_conv_bn_params(key, cin, cout, kh, kw):
    kw_, kg, kb, km, kv = jax.random.split(key, 5)
    w = jax.random.normal(kw_, (kh, kw, cin, cout), jnp.float32) * 0.05
    gamma = 1.0 + 0.1 * jax.random.normal(kg, (cout,), jnp.float32)
    beta = 0.1 * jax.random.normal(kb, (cout,), jnp.float32)
    running_mean = 0.1 * jax.random.normal(km, (cout,), jnp.float32)
    running_var = jax.random.uniform(kv, (cout,), jnp.float32, 0.5, 1.5)
    eps = 1e-5
    scale = gamma / jnp.sqrt(running_var + eps)
    bias = beta - running_mean * scale
    # Weights in bf16 (MXU-native); folded BN affine stays f32.
    return {"w": w.astype(jnp.bfloat16), "scale": scale, "bias": bias}


def make_inception_c_params(key, in_channels, mid_channels):
    keys = jax.random.split(key, 10)
    p = {}
    p["b1"] = [make_conv_bn_params(keys[0], in_channels, 192, 1, 1)]
    p["b2"] = [
        make_conv_bn_params(keys[1], in_channels, mid_channels, 1, 1),
        make_conv_bn_params(keys[2], mid_channels, mid_channels, 1, 7),
        make_conv_bn_params(keys[3], mid_channels, 192, 7, 1),
    ]
    p["b3"] = [
        make_conv_bn_params(keys[4], in_channels, mid_channels, 1, 1),
        make_conv_bn_params(keys[5], mid_channels, mid_channels, 7, 1),
        make_conv_bn_params(keys[6], mid_channels, mid_channels, 1, 7),
        make_conv_bn_params(keys[7], mid_channels, mid_channels, 7, 1),
        make_conv_bn_params(keys[8], mid_channels, 192, 1, 7),
    ]
    p["b4"] = [make_conv_bn_params(keys[9], in_channels, 192, 1, 1)]
    return p


# ----------------------------- pure-JAX reference ------------------------------

def _ref_conv_bn_relu(x, layer):
    w = layer["w"].astype(jnp.float32)
    y = jax.lax.conv_general_dilated(x, w, (1, 1), "SAME",
                                     dimension_numbers=("NHWC", "HWIO", "NHWC"))
    return jnp.maximum(y * layer["scale"] + layer["bias"], 0.0)


def _reference_forward(x_nchw, params):
    x = jnp.transpose(x_nchw, (0, 2, 3, 1))
    H, W = x.shape[1], x.shape[2]
    b1 = _ref_conv_bn_relu(x, params["b1"][0])
    b2 = x
    for lp in params["b2"]:
        b2 = _ref_conv_bn_relu(b2, lp)
    b3 = x
    for lp in params["b3"]:
        b3 = _ref_conv_bn_relu(b3, lp)
    xp = jnp.pad(x, ((0, 0), (1, 1), (1, 1), (0, 0)))
    pooled = sum(xp[:, dy:dy + H, dx:dx + W, :]
                 for dy in range(3) for dx in range(3)) / 9.0
    b4 = _ref_conv_bn_relu(pooled, params["b4"][0])
    out = jnp.concatenate([b1, b2, b3, b4], axis=-1)
    return jnp.transpose(out, (0, 3, 1, 2))


# ------------------------------------ main --------------------------------------

if __name__ == "__main__":
    key = jax.random.PRNGKey(0)
    k_x, k_p = jax.random.split(key)

    N, C_in, H, W = 2, 32, 8, 8
    mid_channels = 32

    x = jax.random.normal(k_x, (N, C_in, H, W), jnp.float32)   # NCHW, like PyTorch
    params = make_inception_c_params(k_p, C_in, mid_channels)

    out = jax.jit(inception_c_forward)(x, params)
    out = jax.block_until_ready(out)
    assert out.shape == (N, 192 * 4, H, W), out.shape

    # Numerical sanity vs a pure-JAX f32 reference (bf16 MXU inputs / bf16
    # intermediate activations introduce small rounding differences).
    ref = _reference_forward(x, params)
    max_err = float(jnp.max(jnp.abs(out.astype(jnp.float32) - ref)))
    assert max_err < 1e-1, max_err

    print("KERNEL_OK")
</pallas_src>

<mosaic_0001>
module attributes {stable_mosaic.version = 11 : i64} {
  func.func @_inception_c_kernel(%arg0: i32, %arg1: memref<1x8x8x32xbf16, #tpu.memory_space<vmem>>, %arg2: memref<32x448xbf16, #tpu.memory_space<vmem>>, %arg3: memref<1x256xf32, #tpu.memory_space<vmem>>, %arg4: memref<1x256xf32, #tpu.memory_space<vmem>>, %arg5: memref<1x192xf32, #tpu.memory_space<vmem>>, %arg6: memref<1x192xf32, #tpu.memory_space<vmem>>, %arg7: memref<7x32x32xbf16, #tpu.memory_space<vmem>>, %arg8: memref<1x32xf32, #tpu.memory_space<vmem>>, %arg9: memref<1x32xf32, #tpu.memory_space<vmem>>, %arg10: memref<7x32x192xbf16, #tpu.memory_space<vmem>>, %arg11: memref<1x192xf32, #tpu.memory_space<vmem>>, %arg12: memref<1x192xf32, #tpu.memory_space<vmem>>, %arg13: memref<7x32x32xbf16, #tpu.memory_space<vmem>>, %arg14: memref<1x32xf32, #tpu.memory_space<vmem>>, %arg15: memref<1x32xf32, #tpu.memory_space<vmem>>, %arg16: memref<7x32x32xbf16, #tpu.memory_space<vmem>>, %arg17: memref<1x32xf32, #tpu.memory_space<vmem>>, %arg18: memref<1x32xf32, #tpu.memory_space<vmem>>, %arg19: memref<7x32x32xbf16, #tpu.memory_space<vmem>>, %arg20: memref<1x32xf32, #tpu.memory_space<vmem>>, %arg21: memref<1x32xf32, #tpu.memory_space<vmem>>, %arg22: memref<7x32x192xbf16, #tpu.memory_space<vmem>>, %arg23: memref<1x192xf32, #tpu.memory_space<vmem>>, %arg24: memref<1x192xf32, #tpu.memory_space<vmem>>, %arg25: memref<1x4x8x8x192xf32, #tpu.memory_space<vmem>>, %arg26: memref<24x24x32xbf16, #tpu.memory_space<vmem>>, %arg27: memref<10x24x192xf32, #tpu.memory_space<vmem>>) attributes {dimension_semantics = [#tpu.dimension_semantics<parallel>], iteration_bounds = array<i64: 2>, scalar_prefetch = 0 : i64, scratch_operands = 2 : i64, tpu.core_type = #tpu.core_type<tc>, window_params = [{transform_indices = @transform_0, window_bounds = array<i64: 1, 8, 8, 32>}, {pipeline_mode = #tpu.pipeline_mode<synchronous>, transform_indices = @transform_1, window_bounds = array<i64: 32, 448>}, {pipeline_mode = #tpu.pipeline_mode<synchronous>, transform_indices = @transform_2, window_bounds = array<i64: 1, 256>}, {pipeline_mode = #tpu.pipeline_mode<synchronous>, transform_indices = @transform_3, window_bounds = array<i64: 1, 256>}, {pipeline_mode = #tpu.pipeline_mode<synchronous>, transform_indices = @transform_4, window_bounds = array<i64: 1, 192>}, {pipeline_mode = #tpu.pipeline_mode<synchronous>, transform_indices = @transform_5, window_bounds = array<i64: 1, 192>}, {pipeline_mode = #tpu.pipeline_mode<synchronous>, transform_indices = @transform_6, window_bounds = array<i64: 7, 32, 32>}, {pipeline_mode = #tpu.pipeline_mode<synchronous>, transform_indices = @transform_7, window_bounds = array<i64: 1, 32>}, {pipeline_mode = #tpu.pipeline_mode<synchronous>, transform_indices = @transform_8, window_bounds = array<i64: 1, 32>}, {pipeline_mode = #tpu.pipeline_mode<synchronous>, transform_indices = @transform_9, window_bounds = array<i64: 7, 32, 192>}, {pipeline_mode = #tpu.pipeline_mode<synchronous>, transform_indices = @transform_10, window_bounds = array<i64: 1, 192>}, {pipeline_mode = #tpu.pipeline_mode<synchronous>, transform_indices = @transform_11, window_bounds = array<i64: 1, 192>}, {pipeline_mode = #tpu.pipeline_mode<synchronous>, transform_indices = @transform_12, window_bounds = array<i64: 7, 32, 32>}, {pipeline_mode = #tpu.pipeline_mode<synchronous>, transform_indices = @transform_13, window_bounds = array<i64: 1, 32>}, {pipeline_mode = #tpu.pipeline_mode<synchronous>, transform_indices = @transform_14, window_bounds = array<i64: 1, 32>}, {pipeline_mode = #tpu.pipeline_mode<synchronous>, transform_indices = @transform_15, window_bounds = array<i64: 7, 32, 32>}, {pipeline_mode = #tpu.pipeline_mode<synchronous>, transform_indices = @transform_16, window_bounds = array<i64: 1, 32>}, {pipeline_mode = #tpu.pipeline_mode<synchronous>, transform_indices = @transform_17, window_bounds = array<i64: 1, 32>}, {pipeline_mode = #tpu.pipeline_mode<synchronous>, transform_indices = @transform_18, window_bounds = array<i64: 7, 32, 32>}, {pipeline_mode = #tpu.pipeline_mode<synchronous>, transform_indices = @transform_19, window_bounds = array<i64: 1, 32>}, {pipeline_mode = #tpu.pipeline_mode<synchronous>, transform_indices = @transform_20, window_bounds = array<i64: 1, 32>}, {pipeline_mode = #tpu.pipeline_mode<synchronous>, transform_indices = @transform_21, window_bounds = array<i64: 7, 32, 192>}, {pipeline_mode = #tpu.pipeline_mode<synchronous>, transform_indices = @transform_22, window_bounds = array<i64: 1, 192>}, {pipeline_mode = #tpu.pipeline_mode<synchronous>, transform_indices = @transform_23, window_bounds = array<i64: 1, 192>}, {transform_indices = @transform_24, window_bounds = array<i64: 1, 4, 8, 8, 192>}]} {
    %cst = arith.constant 0.000000e+00 : bf16
    %0 = vector.broadcast %cst : bf16 to vector<24x24x32xbf16>
    %c0 = arith.constant 0 : index
    %c0_0 = arith.constant 0 : index
    %c0_1 = arith.constant 0 : index
    %1 = vector.load %arg26[%c0, %c0_0, %c0_1] : memref<24x24x32xbf16, #tpu.memory_space<vmem>>, vector<24x24x32xbf16>
    tpu.vector_store %arg26[%c0, %c0_0, %c0_1], %0 {strides = array<i32>} : memref<24x24x32xbf16, #tpu.memory_space<vmem>>, vector<24x24x32xbf16>,
    %cst_2 = arith.constant 0.000000e+00 : f32
    %2 = vector.broadcast %cst_2 : f32 to vector<10x24x192xf32>
    %c0_3 = arith.constant 0 : index
    %c0_4 = arith.constant 0 : index
    %c0_5 = arith.constant 0 : index
    %3 = vector.load %arg27[%c0_3, %c0_4, %c0_5] : memref<10x24x192xf32, #tpu.memory_space<vmem>>, vector<10x24x192xf32>
    tpu.vector_store %arg27[%c0_3, %c0_4, %c0_5], %2 {strides = array<i32>} : memref<10x24x192xf32, #tpu.memory_space<vmem>>, vector<10x24x192xf32>,
    %c0_6 = arith.constant 0 : index
    %c0_7 = arith.constant 0 : index
    %c0_8 = arith.constant 0 : index
    %c0_9 = arith.constant 0 : index
    %4 = vector.load %arg1[%c0_6, %c0_7, %c0_8, %c0_9] : memref<1x8x8x32xbf16, #tpu.memory_space<vmem>>, vector<1x8x8x32xbf16>
    %5 = vector.shape_cast %4 : vector<1x8x8x32xbf16> to vector<8x8x32xbf16>
    %6 = vector.shape_cast %5 : vector<8x8x32xbf16> to vector<64x32xbf16>
    %c0_10 = arith.constant 0 : index
    %c0_11 = arith.constant 0 : index
    %7 = vector.load %arg2[%c0_10, %c0_11] : memref<32x448xbf16, #tpu.memory_space<vmem>>, vector<32x448xbf16>
    %cst_12 = arith.constant dense<0.000000e+00> : vector<64x448xf32>
    %8 = tpu.matmul %6, %7, %cst_12 {dimension_numbers = #tpu.dot_dimension_numbers<[1], [0], [0], [1], [0, 0, 1, 1], [], []>} : vector<64x32xbf16>, vector<32x448xbf16>, vector<64x448xf32> -> vector<64x448xf32>
    %9 = vector.extract_strided_slice %8 {offsets = [0, 0], sizes = [64, 256], strides = [1, 1]} : vector<64x448xf32> to vector<64x256xf32>
    %c0_13 = arith.constant 0 : index
    %c0_14 = arith.constant 0 : index
    %10 = vector.load %arg3[%c0_13, %c0_14] : memref<1x256xf32, #tpu.memory_space<vmem>>, vector<1x256xf32>
    %11 = vector.shape_cast %10 : vector<1x256xf32> to vector<256xf32>
    %12 = vector.shape_cast %11 : vector<256xf32> to vector<1x256xf32>
    %13 = vector.broadcast %12 : vector<1x256xf32> to vector<64x256xf32>
    %14 = arith.mulf %9, %13 : vector<64x256xf32>
    %c0_15 = arith.constant 0 : index
    %c0_16 = arith.constant 0 : index
    %15 = vector.load %arg4[%c0_15, %c0_16] : memref<1x256xf32, #tpu.memory_space<vmem>>, vector<1x256xf32>
    %16 = vector.shape_cast %15 : vector<1x256xf32> to vector<256xf32>
    %17 = vector.shape_cast %16 : vector<256xf32> to vector<1x256xf32>
    %18 = vector.broadcast %17 : vector<1x256xf32> to vector<64x256xf32>
    %19 = arith.addf %14, %18 : vector<64x256xf32>
    %cst_17 = arith.constant 0.000000e+00 : f32
    %20 = vector.broadcast %cst_17 : f32 to vector<64x256xf32>
    %21 = arith.maximumf %19, %20 : vector<64x256xf32>
    %22 = vector.extract_strided_slice %21 {offsets = [0, 64], sizes = [64, 192], strides = [1, 1]} : vector<64x256xf32> to vector<64x192xf32>
    %23 = vector.shape_cast %22 : vector<64x192xf32> to vector<8x8x192xf32>
    %c0_18 = arith.constant 0 : index
    %c0_19 = arith.constant 0 : index
    %c0_20 = arith.constant 0 : index
    %c0_21 = arith.constant 0 : index
    %c0_22 = arith.constant 0 : index
    %24 = vector.load %arg25[%c0_18, %c0_19, %c0_20, %c0_21, %c0_22] : memref<1x4x8x8x192xf32, #tpu.memory_space<vmem>>, vector<1x1x8x8x192xf32>
    %25 = vector.shape_cast %24 : vector<1x1x8x8x192xf32> to vector<8x8x192xf32>
    %26 = vector.shape_cast %23 : vector<8x8x192xf32> to vector<1x1x8x8x192xf32>
    tpu.vector_store %arg25[%c0_18, %c0_19, %c0_20, %c0_21, %c0_22], %26 {strides = array<i32>} : memref<1x4x8x8x192xf32, #tpu.memory_space<vmem>>, vector<1x1x8x8x192xf32>,
    %27 = vector.extract_strided_slice %8 {offsets = [0, 256], sizes = [64, 192], strides = [1, 1]} : vector<64x448xf32> to vector<64x192xf32>
    %28 = vector.shape_cast %27 : vector<64x192xf32> to vector<8x8x192xf32>
    %c1 = arith.constant 1 : index
    %c8 = arith.constant 8 : index
    %c0_23 = arith.constant 0 : index
    %29 = vector.load %arg27[%c1, %c8, %c0_23] : memref<10x24x192xf32, #tpu.memory_space<vmem>>, vector<8x8x192xf32>
    tpu.vector_store %arg27[%c1, %c8, %c0_23], %28 {strides = array<i32>} : memref<10x24x192xf32, #tpu.memory_space<vmem>>, vector<8x8x192xf32>,
    %c0_24 = arith.constant 0 : index
    %c7 = arith.constant 7 : index
    %c0_25 = arith.constant 0 : index
    %30 = vector.load %arg27[%c0_24, %c7, %c0_25] : memref<10x24x192xf32, #tpu.memory_space<vmem>>, vector<10x8x192xf32>
    %c0_26 = arith.constant 0 : index
    %c8_27 = arith.constant 8 : index
    %c0_28 = arith.constant 0 : index
    %31 = vector.load %arg27[%c0_26, %c8_27, %c0_28] : memref<10x24x192xf32, #tpu.memory_space<vmem>>, vector<10x8x192xf32>
    %32 = arith.addf %30, %31 : vector<10x8x192xf32>
    %c0_29 = arith.constant 0 : index
    %c9 = arith.constant 9 : index
    %c0_30 = arith.constant 0 : index
    %33 = vector.load %arg27[%c0_29, %c9, %c0_30] : memref<10x24x192xf32, #tpu.memory_space<vmem>>, vector<10x8x192xf32>
    %34 = arith.addf %32, %33 : vector<10x8x192xf32>
    %35 = vector.extract_strided_slice %34 {offsets = [0, 0, 0], sizes = [8, 8, 192], strides = [1, 1, 1]} : vector<10x8x192xf32> to vector<8x8x192xf32>
    %36 = vector.extract_strided_slice %34 {offsets = [1, 0, 0], sizes = [8, 8, 192], strides = [1, 1, 1]} : vector<10x8x192xf32> to vector<8x8x192xf32>
    %37 = arith.addf %35, %36 : vector<8x8x192xf32>
    %38 = vector.extract_strided_slice %34 {offsets = [2, 0, 0], sizes = [8, 8, 192], strides = [1, 1, 1]} : vector<10x8x192xf32> to vector<8x8x192xf32>
    %39 = arith.addf %37, %38 : vector<8x8x192xf32>
    %cst_31 = arith.constant 0.111111112 : f32
    %40 = vector.broadcast %cst_31 : f32 to vector<8x8x192xf32>
    %41 = arith.mulf %39, %40 : vector<8x8x192xf32>
    %42 = vector.shape_cast %41 : vector<8x8x192xf32> to vector<64x192xf32>
    %c0_32 = arith.constant 0 : index
    %c0_33 = arith.constant 0 : index
    %43 = vector.load %arg5[%c0_32, %c0_33] : memref<1x192xf32, #tpu.memory_space<vmem>>, vector<1x192xf32>
    %44 = vector.shape_cast %43 : vector<1x192xf32> to vector<192xf32>
    %45 = vector.shape_cast %44 : vector<192xf32> to vector<1x192xf32>
    %46 = vector.broadcast %45 : vector<1x192xf32> to vector<64x192xf32>
    %47 = arith.mulf %42, %46 : vector<64x192xf32>
    %c0_34 = arith.constant 0 : index
    %c0_35 = arith.constant 0 : index
    %48 = vector.load %arg6[%c0_34, %c0_35] : memref<1x192xf32, #tpu.memory_space<vmem>>, vector<1x192xf32>
    %49 = vector.shape_cast %48 : vector<1x192xf32> to vector<192xf32>
    %50 = vector.shape_cast %49 : vector<192xf32> to vector<1x192xf32>
    %51 = vector.broadcast %50 : vector<1x192xf32> to vector<64x192xf32>
    %52 = arith.addf %47, %51 : vector<64x192xf32>
    %cst_36 = arith.constant 0.000000e+00 : f32
    %53 = vector.broadcast %cst_36 : f32 to vector<64x192xf32>
    %54 = arith.maximumf %52, %53 : vector<64x192xf32>
    %55 = vector.shape_cast %54 : vector<64x192xf32> to vector<8x8x192xf32>
    %c0_37 = arith.constant 0 : index
    %c3 = arith.constant 3 : index
    %c0_38 = arith.constant 0 : index
    %c0_39 = arith.constant 0 : index
    %c0_40 = arith.constant 0 : index
    %56 = vector.load %arg25[%c0_37, %c3, %c0_38, %c0_39, %c0_40] : memref<1x4x8x8x192xf32, #tpu.memory_space<vmem>>, vector<1x1x8x8x192xf32>
    %57 = vector.shape_cast %56 : vector<1x1x8x8x192xf32> to vector<8x8x192xf32>
    %58 = vector.shape_cast %55 : vector<8x8x192xf32> to vector<1x1x8x8x192xf32>
    tpu.vector_store %arg25[%c0_37, %c3, %c0_38, %c0_39, %c0_40], %58 {strides = array<i32>} : memref<1x4x8x8x192xf32, #tpu.memory_space<vmem>>, vector<1x1x8x8x192xf32>,
    %59 = vector.extract_strided_slice %21 {offsets = [0, 0], sizes = [64, 32], strides = [1, 1]} : vector<64x256xf32> to vector<64x32xf32>
    %60 = vector.shape_cast %59 : vector<64x32xf32> to vector<8x8x32xf32>
    %61 = arith.truncf %60 : vector<8x8x32xf32> to vector<8x8x32xbf16>
    %c8_41 = arith.constant 8 : index
    %c8_42 = arith.constant 8 : index
    %c0_43 = arith.constant 0 : index
    %62 = vector.load %arg26[%c8_41, %c8_42, %c0_43] : memref<24x24x32xbf16, #tpu.memory_space<vmem>>, vector<8x8x32xbf16>
    tpu.vector_store %arg26[%c8_41, %c8_42, %c0_43], %61 {strides = array<i32>} : memref<24x24x32xbf16, #tpu.memory_space<vmem>>, vector<8x8x32xbf16>,
    %cst_44 = arith.constant 0.000000e+00 : f32
    %63 = vector.broadcast %cst_44 : f32 to vector<64x32xf32>
    %c8_45 = arith.constant 8 : index
    %c5 = arith.constant 5 : index
    %c0_46 = arith.constant 0 : index
    %64 = vector.load %arg26[%c8_45, %c5, %c0_46] : memref<24x24x32xbf16, #tpu.memory_space<vmem>>, vector<8x8x32xbf16>
    %65 = vector.shape_cast %64 : vector<8x8x32xbf16> to vector<64x32xbf16>
    %c0_47 = arith.constant 0 : index
    %c0_48 = arith.constant 0 : index
    %c0_49 = arith.constant 0 : index
    %66 = vector.load %arg7[%c0_47, %c0_48, %c0_49] : memref<7x32x32xbf16, #tpu.memory_space<vmem>>, vector<1x32x32xbf16>
    %67 = vector.shape_cast %66 : vector<1x32x32xbf16> to vector<32x32xbf16>
    %cst_50 = arith.constant dense<0.000000e+00> : vector<64x32xf32>
    %68 = tpu.matmul %65, %67, %cst_50 {dimension_numbers = #tpu.dot_dimension_numbers<[1], [0], [0], [1], [0, 0, 1, 1], [], []>} : vector<64x32xbf16>, vector<32x32xbf16>, vector<64x32xf32> -> vector<64x32xf32>
    %69 = arith.addf %63, %68 : vector<64x32xf32>
    %c8_51 = arith.constant 8 : index
    %c6 = arith.constant 6 : index
    %c0_52 = arith.constant 0 : index
    %70 = vector.load %arg26[%c8_51, %c6, %c0_52] : memref<24x24x32xbf16, #tpu.memory_space<vmem>>, vector<8x8x32xbf16>
    %71 = vector.shape_cast %70 : vector<8x8x32xbf16> to vector<64x32xbf16>
    %c1_53 = arith.constant 1 : index
    %c0_54 = arith.constant 0 : index
    %c0_55 = arith.constant 0 : index
    %72 = vector.load %arg7[%c1_53, %c0_54, %c0_55] : memref<7x32x32xbf16, #tpu.memory_space<vmem>>, vector<1x32x32xbf16>
    %73 = vector.shape_cast %72 : vector<1x32x32xbf16> to vector<32x32xbf16>
    %cst_56 = arith.constant dense<0.000000e+00> : vector<64x32xf32>
    %74 = tpu.matmul %71, %73, %cst_56 {dimension_numbers = #tpu.dot_dimension_numbers<[1], [0], [0], [1], [0, 0, 1, 1], [], []>} : vector<64x32xbf16>, vector<32x32xbf16>, vector<64x32xf32> -> vector<64x32xf32>
    %75 = arith.addf %69, %74 : vector<64x32xf32>
    %c8_57 = arith.constant 8 : index
    %c7_58 = arith.constant 7 : index
    %c0_59 = arith.constant 0 : index
    %76 = vector.load %arg26[%c8_57, %c7_58, %c0_59] : memref<24x24x32xbf16, #tpu.memory_space<vmem>>, vector<8x8x32xbf16>
    %77 = vector.shape_cast %76 : vector<8x8x32xbf16> to vector<64x32xbf16>
    %c2 = arith.constant 2 : index
    %c0_60 = arith.constant 0 : index
    %c0_61 = arith.constant 0 : index
    %78 = vector.load %arg7[%c2, %c0_60, %c0_61] : memref<7x32x32xbf16, #tpu.memory_space<vmem>>, vector<1x32x32xbf16>
    %79 = vector.shape_cast %78 : vector<1x32x32xbf16> to vector<32x32xbf16>
    %cst_62 = arith.constant dense<0.000000e+00> : vector<64x32xf32>
    %80 = tpu.matmul %77, %79, %cst_62 {dimension_numbers = #tpu.dot_dimension_numbers<[1], [0], [0], [1], [0, 0, 1, 1], [], []>} : vector<64x32xbf16>, vector<32x32xbf16>, vector<64x32xf32> -> vector<64x32xf32>
    %81 = arith.addf %75, %80 : vector<64x32xf32>
    %c8_63 = arith.constant 8 : index
    %c8_64 = arith.constant 8 : index
    %c0_65 = arith.constant 0 : index
    %82 = vector.load %arg26[%c8_63, %c8_64, %c0_65] : memref<24x24x32xbf16, #tpu.memory_space<vmem>>, vector<8x8x32xbf16>
    %83 = vector.shape_cast %82 : vector<8x8x32xbf16> to vector<64x32xbf16>
    %c3_66 = arith.constant 3 : index
    %c0_67 = arith.constant 0 : index
    %c0_68 = arith.constant 0 : index
    %84 = vector.load %arg7[%c3_66, %c0_67, %c0_68] : memref<7x32x32xbf16, #tpu.memory_space<vmem>>, vector<1x32x32xbf16>
    %85 = vector.shape_cast %84 : vector<1x32x32xbf16> to vector<32x32xbf16>
    %cst_69 = arith.constant dense<0.000000e+00> : vector<64x32xf32>
    %86 = tpu.matmul %83, %85, %cst_69 {dimension_numbers = #tpu.dot_dimension_numbers<[1], [0], [0], [1], [0, 0, 1, 1], [], []>} : vector<64x32xbf16>, vector<32x32xbf16>, vector<64x32xf32> -> vector<64x32xf32>
    %87 = arith.addf %81, %86 : vector<64x32xf32>
    %c8_70 = arith.constant 8 : index
    %c9_71 = arith.constant 9 : index
    %c0_72 = arith.constant 0 : index
    %88 = vector.load %arg26[%c8_70, %c9_71, %c0_72] : memref<24x24x32xbf16, #tpu.memory_space<vmem>>, vector<8x8x32xbf16>
    %89 = vector.shape_cast %88 : vector<8x8x32xbf16> to vector<64x32xbf16>
    %c4 = arith.constant 4 : index
    %c0_73 = arith.constant 0 : index
    %c0_74 = arith.constant 0 : index
    %90 = vector.load %arg7[%c4, %c0_73, %c0_74] : memref<7x32x32xbf16, #tpu.memory_space<vmem>>, vector<1x32x32xbf16>
    %91 = vector.shape_cast %90 : vector<1x32x32xbf16> to vector<32x32xbf16>
    %cst_75 = arith.constant dense<0.000000e+00> : vector<64x32xf32>
    %92 = tpu.matmul %89, %91, %cst_75 {dimension_numbers = #tpu.dot_dimension_numbers<[1], [0], [0], [1], [0, 0, 1, 1], [], []>} : vector<64x32xbf16>, vector<32x32xbf16>, vector<64x32xf32> -> vector<64x32xf32>
    %93 = arith.addf %87, %92 : vector<64x32xf32>
    %c8_76 = arith.constant 8 : index
    %c10 = arith.constant 10 : index
    %c0_77 = arith.constant 0 : index
    %94 = vector.load %arg26[%c8_76, %c10, %c0_77] : memref<24x24x32xbf16, #tpu.memory_space<vmem>>, vector<8x8x32xbf16>
    %95 = vector.shape_cast %94 : vector<8x8x32xbf16> to vector<64x32xbf16>
    %c5_78 = arith.constant 5 : index
    %c0_79 = arith.constant 0 : index
    %c0_80 = arith.constant 0 : index
    %96 = vector.load %arg7[%c5_78, %c0_79, %c0_80] : memref<7x32x32xbf16, #tpu.memory_space<vmem>>, vector<1x32x32xbf16>
    %97 = vector.shape_cast %96 : vector<1x32x32xbf16> to vector<32x32xbf16>
    %cst_81 = arith.constant dense<0.000000e+00> : vector<64x32xf32>
    %98 = tpu.matmul %95, %97, %cst_81 {dimension_numbers = #tpu.dot_dimension_numbers<[1], [0], [0], [1], [0, 0, 1, 1], [], []>} : vector<64x32xbf16>, vector<32x32xbf16>, vector<64x32xf32> -> vector<64x32xf32>
    %99 = arith.addf %93, %98 : vector<64x32xf32>
    %c8_82 = arith.constant 8 : index
    %c11 = arith.constant 11 : index
    %c0_83 = arith.constant 0 : index
    %100 = vector.load %arg26[%c8_82, %c11, %c0_83] : memref<24x24x32xbf16, #tpu.memory_space<vmem>>, vector<8x8x32xbf16>
    %101 = vector.shape_cast %100 : vector<8x8x32xbf16> to vector<64x32xbf16>
    %c6_84 = arith.constant 6 : index
    %c0_85 = arith.constant 0 : index
    %c0_86 = arith.constant 0 : index
    %102 = vector.load %arg7[%c6_84, %c0_85, %c0_86] : memref<7x32x32xbf16, #tpu.memory_space<vmem>>, vector<1x32x32xbf16>
    %103 = vector.shape_cast %102 : vector<1x32x32xbf16> to vector<32x32xbf16>
    %cst_87 = arith.constant dense<0.000000e+00> : vector<64x32xf32>
    %104 = tpu.matmul %101, %103, %cst_87 {dimension_numbers = #tpu.dot_dimension_numbers<[1], [0], [0], [1], [0, 0, 1, 1], [], []>} : vector<64x32xbf16>, vector<32x32xbf16>, vector<64x32xf32> -> vector<64x32xf32>
    %105 = arith.addf %99, %104 : vector<64x32xf32>
    %c0_88 = arith.constant 0 : index
    %c0_89 = arith.constant 0 : index
    %106 = vector.load %arg8[%c0_88, %c0_89] : memref<1x32xf32, #tpu.memory_space<vmem>>, vector<1x32xf32>
    %107 = vector.shape_cast %106 : vector<1x32xf32> to vector<32xf32>
    %108 = vector.shape_cast %107 : vector<32xf32> to vector<1x32xf32>
    %109 = vector.broadcast %108 : vector<1x32xf32> to vector<64x32xf32>
    %110 = arith.mulf %105, %109 : vector<64x32xf32>
    %c0_90 = arith.constant 0 : index
    %c0_91 = arith.constant 0 : index
    %111 = vector.load %arg9[%c0_90, %c0_91] : memref<1x32xf32, #tpu.memory_space<vmem>>, vector<1x32xf32>
    %112 = vector.shape_cast %111 : vector<1x32xf32> to vector<32xf32>
    %113 = vector.shape_cast %112 : vector<32xf32> to vector<1x32xf32>
    %114 = vector.broadcast %113 : vector<1x32xf32> to vector<64x32xf32>
    %115 = arith.addf %110, %114 : vector<64x32xf32>
    %cst_92 = arith.constant 0.000000e+00 : f32
    %116 = vector.broadcast %cst_92 : f32 to vector<64x32xf32>
    %117 = arith.maximumf %115, %116 : vector<64x32xf32>
    %118 = vector.shape_cast %117 : vector<64x32xf32> to vector<8x8x32xf32>
    %119 = arith.truncf %118 : vector<8x8x32xf32> to vector<8x8x32xbf16>
    %c8_93 = arith.constant 8 : index
    %c8_94 = arith.constant 8 : index
    %c0_95 = arith.constant 0 : index
    %120 = vector.load %arg26[%c8_93, %c8_94, %c0_95] : memref<24x24x32xbf16, #tpu.memory_space<vmem>>, vector<8x8x32xbf16>
    tpu.vector_store %arg26[%c8_93, %c8_94, %c0_95], %119 {strides = array<i32>} : memref<24x24x32xbf16, #tpu.memory_space<vmem>>, vector<8x8x32xbf16>,
    %cst_96 = arith.constant 0.000000e+00 : f32
    %121 = vector.broadcast %cst_96 : f32 to vector<64x192xf32>
    %c5_97 = arith.constant 5 : index
    %c8_98 = arith.constant 8 : index
    %c0_99 = arith.constant 0 : index
    %122 = vector.load %arg26[%c5_97, %c8_98, %c0_99] : memref<24x24x32xbf16, #tpu.memory_space<vmem>>, vector<8x8x32xbf16>
    %123 = vector.shape_cast %122 : vector<8x8x32xbf16> to vector<64x32xbf16>
    %c0_100 = arith.constant 0 : index
    %c0_101 = arith.constant 0 : index
    %c0_102 = arith.constant 0 : index
    %124 = vector.load %arg10[%c0_100, %c0_101, %c0_102] : memref<7x32x192xbf16, #tpu.memory_space<vmem>>, vector<1x32x192xbf16>
    %125 = vector.shape_cast %124 : vector<1x32x192xbf16> to vector<32x192xbf16>
    %cst_103 = arith.constant dense<0.000000e+00> : vector<64x192xf32>
    %126 = tpu.matmul %123, %125, %cst_103 {dimension_numbers = #tpu.dot_dimension_numbers<[1], [0], [0], [1], [0, 0, 1, 1], [], []>} : vector<64x32xbf16>, vector<32x192xbf16>, vector<64x192xf32> -> vector<64x192xf32>
    %127 = arith.addf %121, %126 : vector<64x192xf32>
    %c6_104 = arith.constant 6 : index
    %c8_105 = arith.constant 8 : index
    %c0_106 = arith.constant 0 : index
    %128 = vector.load %arg26[%c6_104, %c8_105, %c0_106] : memref<24x24x32xbf16, #tpu.memory_space<vmem>>, vector<8x8x32xbf16>
    %129 = vector.shape_cast %128 : vector<8x8x32xbf16> to vector<64x32xbf16>
    %c1_107 = arith.constant 1 : index
    %c0_108 = arith.constant 0 : index
    %c0_109 = arith.constant 0 : index
    %130 = vector.load %arg10[%c1_107, %c0_108, %c0_109] : memref<7x32x192xbf16, #tpu.memory_space<vmem>>, vector<1x32x192xbf16>
    %131 = vector.shape_cast %130 : vector<1x32x192xbf16> to vector<32x192xbf16>
    %cst_110 = arith.constant dense<0.000000e+00> : vector<64x192xf32>
    %132 = tpu.matmul %129, %131, %cst_110 {dimension_numbers = #tpu.dot_dimension_numbers<[1], [0], [0], [1], [0, 0, 1, 1], [], []>} : vector<64x32xbf16>, vector<32x192xbf16>, vector<64x192xf32> -> vector<64x192xf32>
    %133 = arith.addf %127, %132 : vector<64x192xf32>
    %c7_111 = arith.constant 7 : index
    %c8_112 = arith.constant 8 : index
    %c0_113 = arith.constant 0 : index
    %134 = vector.load %arg26[%c7_111, %c8_112, %c0_113] : memref<24x24x32xbf16, #tpu.memory_space<vmem>>, vector<8x8x32xbf16>
    %135 = vector.shape_cast %134 : vector<8x8x32xbf16> to vector<64x32xbf16>
    %c2_114 = arith.constant 2 : index
    %c0_115 = arith.constant 0 : index
    %c0_116 = arith.constant 0 : index
    %136 = vector.load %arg10[%c2_114, %c0_115, %c0_116] : memref<7x32x192xbf16, #tpu.memory_space<vmem>>, vector<1x32x192xbf16>
    %137 = vector.shape_cast %136 : vector<1x32x192xbf16> to vector<32x192xbf16>
    %cst_117 = arith.constant dense<0.000000e+00> : vector<64x192xf32>
    %138 = tpu.matmul %135, %137, %cst_117 {dimension_numbers = #tpu.dot_dimension_numbers<[1], [0], [0], [1], [0, 0, 1, 1], [], []>} : vector<64x32xbf16>, vector<32x192xbf16>, vector<64x192xf32> -> vector<64x192xf32>
    %139 = arith.addf %133, %138 : vector<64x192xf32>
    %c8_118 = arith.constant 8 : index
    %c8_119 = arith.constant 8 : index
    %c0_120 = arith.constant 0 : index
    %140 = vector.load %arg26[%c8_118, %c8_119, %c0_120] : memref<24x24x32xbf16, #tpu.memory_space<vmem>>, vector<8x8x32xbf16>
    %141 = vector.shape_cast %140 : vector<8x8x32xbf16> to vector<64x32xbf16>
    %c3_121 = arith.constant 3 : index
    %c0_122 = arith.constant 0 : index
    %c0_123 = arith.constant 0 : index
    %142 = vector.load %arg10[%c3_121, %c0_122, %c0_123] : memref<7x32x192xbf16, #tpu.memory_space<vmem>>, vector<1x32x192xbf16>
    %143 = vector.shape_cast %142 : vector<1x32x192xbf16> to vector<32x192xbf16>
    %cst_124 = arith.constant dense<0.000000e+00> : vector<64x192xf32>
    %144 = tpu.matmul %141, %143, %cst_124 {dimension_numbers = #tpu.dot_dimension_numbers<[1], [0], [0], [1], [0, 0, 1, 1], [], []>} : vector<64x32xbf16>, vector<32x192xbf16>, vector<64x192xf32> -> vector<64x192xf32>
    %145 = arith.addf %139, %144 : vector<64x192xf32>
    %c9_125 = arith.constant 9 : index
    %c8_126 = arith.constant 8 : index
    %c0_127 = arith.constant 0 : index
    %146 = vector.load %arg26[%c9_125, %c8_126, %c0_127] : memref<24x24x32xbf16, #tpu.memory_space<vmem>>, vector<8x8x32xbf16>
    %147 = vector.shape_cast %146 : vector<8x8x32xbf16> to vector<64x32xbf16>
    %c4_128 = arith.constant 4 : index
    %c0_129 = arith.constant 0 : index
    %c0_130 = arith.constant 0 : index
    %148 = vector.load %arg10[%c4_128, %c0_129, %c0_130] : memref<7x32x192xbf16, #tpu.memory_space<vmem>>, vector<1x32x192xbf16>
    %149 = vector.shape_cast %148 : vector<1x32x192xbf16> to vector<32x192xbf16>
    %cst_131 = arith.constant dense<0.000000e+00> : vector<64x192xf32>
    %150 = tpu.matmul %147, %149, %cst_131 {dimension_numbers = #tpu.dot_dimension_numbers<[1], [0], [0], [1], [0, 0, 1, 1], [], []>} : vector<64x32xbf16>, vector<32x192xbf16>, vector<64x192xf32> -> vector<64x192xf32>
    %151 = arith.addf %145, %150 : vector<64x192xf32>
    %c10_132 = arith.constant 10 : index
    %c8_133 = arith.constant 8 : index
    %c0_134 = arith.constant 0 : index
    %152 = vector.load %arg26[%c10_132, %c8_133, %c0_134] : memref<24x24x32xbf16, #tpu.memory_space<vmem>>, vector<8x8x32xbf16>
    %153 = vector.shape_cast %152 : vector<8x8x32xbf16> to vector<64x32xbf16>
    %c5_135 = arith.constant 5 : index
    %c0_136 = arith.constant 0 : index
    %c0_137 = arith.constant 0 : index
    %154 = vector.load %arg10[%c5_135, %c0_136, %c0_137] : memref<7x32x192xbf16, #tpu.memory_space<vmem>>, vector<1x32x192xbf16>
    %155 = vector.shape_cast %154 : vector<1x32x192xbf16> to vector<32x192xbf16>
    %cst_138 = arith.constant dense<0.000000e+00> : vector<64x192xf32>
    %156 = tpu.matmul %153, %155, %cst_138 {dimension_numbers = #tpu.dot_dimension_numbers<[1], [0], [0], [1], [0, 0, 1, 1], [], []>} : vector<64x32xbf16>, vector<32x192xbf16>, vector<64x192xf32> -> vector<64x192xf32>
    %157 = arith.addf %151, %156 : vector<64x192xf32>
    %c11_139 = arith.constant 11 : index
    %c8_140 = arith.constant 8 : index
    %c0_141 = arith.constant 0 : index
    %158 = vector.load %arg26[%c11_139, %c8_140, %c0_141] : memref<24x24x32xbf16, #tpu.memory_space<vmem>>, vector<8x8x32xbf16>
    %159 = vector.shape_cast %158 : vector<8x8x32xbf16> to vector<64x32xbf16>
    %c6_142 = arith.constant 6 : index
    %c0_143 = arith.constant 0 : index
    %c0_144 = arith.constant 0 : index
    %160 = vector.load %arg10[%c6_142, %c0_143, %c0_144] : memref<7x32x192xbf16, #tpu.memory_space<vmem>>, vector<1x32x192xbf16>
    %161 = vector.shape_cast %160 : vector<1x32x192xbf16> to vector<32x192xbf16>
    %cst_145 = arith.constant dense<0.000000e+00> : vector<64x192xf32>
    %162 = tpu.matmul %159, %161, %cst_145 {dimension_numbers = #tpu.dot_dimension_numbers<[1], [0], [0], [1], [0, 0, 1, 1], [], []>} : vector<64x32xbf16>, vector<32x192xbf16>, vector<64x192xf32> -> vector<64x192xf32>
    %163 = arith.addf %157, %162 : vector<64x192xf32>
    %c0_146 = arith.constant 0 : index
    %c0_147 = arith.constant 0 : index
    %164 = vector.load %arg11[%c0_146, %c0_147] : memref<1x192xf32, #tpu.memory_space<vmem>>, vector<1x192xf32>
    %165 = vector.shape_cast %164 : vector<1x192xf32> to vector<192xf32>
    %166 = vector.shape_cast %165 : vector<192xf32> to vector<1x192xf32>
    %167 = vector.broadcast %166 : vector<1x192xf32> to vector<64x192xf32>
    %168 = arith.mulf %163, %167 : vector<64x192xf32>
    %c0_148 = arith.constant 0 : index
    %c0_149 = arith.constant 0 : index
    %169 = vector.load %arg12[%c0_148, %c0_149] : memref<1x192xf32, #tpu.memory_space<vmem>>, vector<1x192xf32>
    %170 = vector.shape_cast %169 : vector<1x192xf32> to vector<192xf32>
    %171 = vector.shape_cast %170 : vector<192xf32> to vector<1x192xf32>
    %172 = vector.broadcast %171 : vector<1x192xf32> to vector<64x192xf32>
    %173 = arith.addf %168, %172 : vector<64x192xf32>
    %cst_150 = arith.constant 0.000000e+00 : f32
    %174 = vector.broadcast %cst_150 : f32 to vector<64x192xf32>
    %175 = arith.maximumf %173, %174 : vector<64x192xf32>
    %176 = vector.shape_cast %175 : vector<64x192xf32> to vector<8x8x192xf32>
    %c0_151 = arith.constant 0 : index
    %c1_152 = arith.constant 1 : index
    %c0_153 = arith.constant 0 : index
    %c0_154 = arith.constant 0 : index
    %c0_155 = arith.constant 0 : index
    %177 = vector.load %arg25[%c0_151, %c1_152, %c0_153, %c0_154, %c0_155] : memref<1x4x8x8x192xf32, #tpu.memory_space<vmem>>, vector<1x1x8x8x192xf32>
    %178 = vector.shape_cast %177 : vector<1x1x8x8x192xf32> to vector<8x8x192xf32>
    %179 = vector.shape_cast %176 : vector<8x8x192xf32> to vector<1x1x8x8x192xf32>
    tpu.vector_store %arg25[%c0_151, %c1_152, %c0_153, %c0_154, %c0_155], %179 {strides = array<i32>} : memref<1x4x8x8x192xf32, #tpu.memory_space<vmem>>, vector<1x1x8x8x192xf32>,
    %180 = vector.extract_strided_slice %21 {offsets = [0, 32], sizes = [64, 32], strides = [1, 1]} : vector<64x256xf32> to vector<64x32xf32>
    %181 = vector.shape_cast %180 : vector<64x32xf32> to vector<8x8x32xf32>
    %182 = arith.truncf %181 : vector<8x8x32xf32> to vector<8x8x32xbf16>
    %c8_156 = arith.constant 8 : index
    %c8_157 = arith.constant 8 : index
    %c0_158 = arith.constant 0 : index
    %183 = vector.load %arg26[%c8_156, %c8_157, %c0_158] : memref<24x24x32xbf16, #tpu.memory_space<vmem>>, vector<8x8x32xbf16>
    tpu.vector_store %arg26[%c8_156, %c8_157, %c0_158], %182 {strides = array<i32>} : memref<24x24x32xbf16, #tpu.memory_space<vmem>>, vector<8x8x32xbf16>,
    %cst_159 = arith.constant 0.000000e+00 : f32
    %184 = vector.broadcast %cst_159 : f32 to vector<64x32xf32>
    %c5_160 = arith.constant 5 : index
    %c8_161 = arith.constant 8 : index
    %c0_162 = arith.constant 0 : index
    %185 = vector.load %arg26[%c5_160, %c8_161, %c0_162] : memref<24x24x32xbf16, #tpu.memory_space<vmem>>, vector<8x8x32xbf16>
    %186 = vector.shape_cast %185 : vector<8x8x32xbf16> to vector<64x32xbf16>
    %c0_163 = arith.constant 0 : index
    %c0_164 = arith.constant 0 : index
    %c0_165 = arith.constant 0 : index
    %187 = vector.load %arg13[%c0_163, %c0_164, %c0_165] : memref<7x32x32xbf16, #tpu.memory_space<vmem>>, vector<1x32x32xbf16>
    %188 = vector.shape_cast %187 : vector<1x32x32xbf16> to vector<32x32xbf16>
    %cst_166 = arith.constant dense<0.000000e+00> : vector<64x32xf32>
    %189 = tpu.matmul %186, %188, %cst_166 {dimension_numbers = #tpu.dot_dimension_numbers<[1], [0], [0], [1], [0, 0, 1, 1], [], []>} : vector<64x32xbf16>, vector<32x32xbf16>, vector<64x32xf32> -> vector<64x32xf32>
    %190 = arith.addf %184, %189 : vector<64x32xf32>
    %c6_167 = arith.constant 6 : index
    %c8_168 = arith.constant 8 : index
    %c0_169 = arith.constant 0 : index
    %191 = vector.load %arg26[%c6_167, %c8_168, %c0_169] : memref<24x24x32xbf16, #tpu.memory_space<vmem>>, vector<8x8x32xbf16>
    %192 = vector.shape_cast %191 : vector<8x8x32xbf16> to vector<64x32xbf16>
    %c1_170 = arith.constant 1 : index
    %c0_171 = arith.constant 0 : index
    %c0_172 = arith.constant 0 : index
    %193 = vector.load %arg13[%c1_170, %c0_171, %c0_172] : memref<7x32x32xbf16, #tpu.memory_space<vmem>>, vector<1x32x32xbf16>
    %194 = vector.shape_cast %193 : vector<1x32x32xbf16> to vector<32x32xbf16>
    %cst_173 = arith.constant dense<0.000000e+00> : vector<64x32xf32>
    %195 = tpu.matmul %192, %194, %cst_173 {dimension_numbers = #tpu.dot_dimension_numbers<[1], [0], [0], [1], [0, 0, 1, 1], [], []>} : vector<64x32xbf16>, vector<32x32xbf16>, vector<64x32xf32> -> vector<64x32xf32>
    %196 = arith.addf %190, %195 : vector<64x32xf32>
    %c7_174 = arith.constant 7 : index
    %c8_175 = arith.constant 8 : index
    %c0_176 = arith.constant 0 : index
    %197 = vector.load %arg26[%c7_174, %c8_175, %c0_176] : memref<24x24x32xbf16, #tpu.memory_space<vmem>>, vector<8x8x32xbf16>
    %198 = vector.shape_cast %197 : vector<8x8x32xbf16> to vector<64x32xbf16>
    %c2_177 = arith.constant 2 : index
    %c0_178 = arith.constant 0 : index
    %c0_179 = arith.constant 0 : index
    %199 = vector.load %arg13[%c2_177, %c0_178, %c0_179] : memref<7x32x32xbf16, #tpu.memory_space<vmem>>, vector<1x32x32xbf16>
    %200 = vector.shape_cast %199 : vector<1x32x32xbf16> to vector<32x32xbf16>
    %cst_180 = arith.constant dense<0.000000e+00> : vector<64x32xf32>
    %201 = tpu.matmul %198, %200, %cst_180 {dimension_numbers = #tpu.dot_dimension_numbers<[1], [0], [0], [1], [0, 0, 1, 1], [], []>} : vector<64x32xbf16>, vector<32x32xbf16>, vector<64x32xf32> -> vector<64x32xf32>
    %202 = arith.addf %196, %201 : vector<64x32xf32>
    %c8_181 = arith.constant 8 : index
    %c8_182 = arith.constant 8 : index
    %c0_183 = arith.constant 0 : index
    %203 = vector.load %arg26[%c8_181, %c8_182, %c0_183] : memref<24x24x32xbf16, #tpu.memory_space<vmem>>, vector<8x8x32xbf16>
    %204 = vector.shape_cast %203 : vector<8x8x32xbf16> to vector<64x32xbf16>
    %c3_184 = arith.constant 3 : index
    %c0_185 = arith.constant 0 : index
    %c0_186 = arith.constant 0 : index
    %205 = vector.load %arg13[%c3_184, %c0_185, %c0_186] : memref<7x32x32xbf16, #tpu.memory_space<vmem>>, vector<1x32x32xbf16>
    %206 = vector.shape_cast %205 : vector<1x32x32xbf16> to vector<32x32xbf16>
    %cst_187 = arith.constant dense<0.000000e+00> : vector<64x32xf32>
    %207 = tpu.matmul %204, %206, %cst_187 {dimension_numbers = #tpu.dot_dimension_numbers<[1], [0], [0], [1], [0, 0, 1, 1], [], []>} : vector<64x32xbf16>, vector<32x32xbf16>, vector<64x32xf32> -> vector<64x32xf32>
    %208 = arith.addf %202, %207 : vector<64x32xf32>
    %c9_188 = arith.constant 9 : index
    %c8_189 = arith.constant 8 : index
    %c0_190 = arith.constant 0 : index
    %209 = vector.load %arg26[%c9_188, %c8_189, %c0_190] : memref<24x24x32xbf16, #tpu.memory_space<vmem>>, vector<8x8x32xbf16>
    %210 = vector.shape_cast %209 : vector<8x8x32xbf16> to vector<64x32xbf16>
    %c4_191 = arith.constant 4 : index
    %c0_192 = arith.constant 0 : index
    %c0_193 = arith.constant 0 : index
    %211 = vector.load %arg13[%c4_191, %c0_192, %c0_193] : memref<7x32x32xbf16, #tpu.memory_space<vmem>>, vector<1x32x32xbf16>
    %212 = vector.shape_cast %211 : vector<1x32x32xbf16> to vector<32x32xbf16>
    %cst_194 = arith.constant dense<0.000000e+00> : vector<64x32xf32>
    %213 = tpu.matmul %210, %212, %cst_194 {dimension_numbers = #tpu.dot_dimension_numbers<[1], [0], [0], [1], [0, 0, 1, 1], [], []>} : vector<64x32xbf16>, vector<32x32xbf16>, vector<64x32xf32> -> vector<64x32xf32>
    %214 = arith.addf %208, %213 : vector<64x32xf32>
    %c10_195 = arith.constant 10 : index
    %c8_196 = arith.constant 8 : index
    %c0_197 = arith.constant 0 : index
    %215 = vector.load %arg26[%c10_195, %c8_196, %c0_197] : memref<24x24x32xbf16, #tpu.memory_space<vmem>>, vector<8x8x32xbf16>
    %216 = vector.shape_cast %215 : vector<8x8x32xbf16> to vector<64x32xbf16>
    %c5_198 = arith.constant 5 : index
    %c0_199 = arith.constant 0 : index
    %c0_200 = arith.constant 0 : index
    %217 = vector.load %arg13[%c5_198, %c0_199, %c0_200] : memref<7x32x32xbf16, #tpu.memory_space<vmem>>, vector<1x32x32xbf16>
    %218 = vector.shape_cast %217 : vector<1x32x32xbf16> to vector<32x32xbf16>
    %cst_201 = arith.constant dense<0.000000e+00> : vector<64x32xf32>
    %219 = tpu.matmul %216, %218, %cst_201 {dimension_numbers = #tpu.dot_dimension_numbers<[1], [0], [0], [1], [0, 0, 1, 1], [], []>} : vector<64x32xbf16>, vector<32x32xbf16>, vector<64x32xf32> -> vector<64x32xf32>
    %220 = arith.addf %214, %219 : vector<64x32xf32>
    %c11_202 = arith.constant 11 : index
    %c8_203 = arith.constant 8 : index
    %c0_204 = arith.constant 0 : index
    %221 = vector.load %arg26[%c11_202, %c8_203, %c0_204] : memref<24x24x32xbf16, #tpu.memory_space<vmem>>, vector<8x8x32xbf16>
    %222 = vector.shape_cast %221 : vector<8x8x32xbf16> to vector<64x32xbf16>
    %c6_205 = arith.constant 6 : index
    %c0_206 = arith.constant 0 : index
    %c0_207 = arith.constant 0 : index
    %223 = vector.load %arg13[%c6_205, %c0_206, %c0_207] : memref<7x32x32xbf16, #tpu.memory_space<vmem>>, vector<1x32x32xbf16>
    %224 = vector.shape_cast %223 : vector<1x32x32xbf16> to vector<32x32xbf16>
    %cst_208 = arith.constant dense<0.000000e+00> : vector<64x32xf32>
    %225 = tpu.matmul %222, %224, %cst_208 {dimension_numbers = #tpu.dot_dimension_numbers<[1], [0], [0], [1], [0, 0, 1, 1], [], []>} : vector<64x32xbf16>, vector<32x32xbf16>, vector<64x32xf32> -> vector<64x32xf32>
    %226 = arith.addf %220, %225 : vector<64x32xf32>
    %c0_209 = arith.constant 0 : index
    %c0_210 = arith.constant 0 : index
    %227 = vector.load %arg14[%c0_209, %c0_210] : memref<1x32xf32, #tpu.memory_space<vmem>>, vector<1x32xf32>
    %228 = vector.shape_cast %227 : vector<1x32xf32> to vector<32xf32>
    %229 = vector.shape_cast %228 : vector<32xf32> to vector<1x32xf32>
    %230 = vector.broadcast %229 : vector<1x32xf32> to vector<64x32xf32>
    %231 = arith.mulf %226, %230 : vector<64x32xf32>
    %c0_211 = arith.constant 0 : index
    %c0_212 = arith.constant 0 : index
    %232 = vector.load %arg15[%c0_211, %c0_212] : memref<1x32xf32, #tpu.memory_space<vmem>>, vector<1x32xf32>
    %233 = vector.shape_cast %232 : vector<1x32xf32> to vector<32xf32>
    %234 = vector.shape_cast %233 : vector<32xf32> to vector<1x32xf32>
    %235 = vector.broadcast %234 : vector<1x32xf32> to vector<64x32xf32>
    %236 = arith.addf %231, %235 : vector<64x32xf32>
    %cst_213 = arith.constant 0.000000e+00 : f32
    %237 = vector.broadcast %cst_213 : f32 to vector<64x32xf32>
    %238 = arith.maximumf %236, %237 : vector<64x32xf32>
    %239 = vector.shape_cast %238 : vector<64x32xf32> to vector<8x8x32xf32>
    %240 = arith.truncf %239 : vector<8x8x32xf32> to vector<8x8x32xbf16>
    %c8_214 = arith.constant 8 : index
    %c8_215 = arith.constant 8 : index
    %c0_216 = arith.constant 0 : index
    %241 = vector.load %arg26[%c8_214, %c8_215, %c0_216] : memref<24x24x32xbf16, #tpu.memory_space<vmem>>, vector<8x8x32xbf16>
    tpu.vector_store %arg26[%c8_214, %c8_215, %c0_216], %240 {strides = array<i32>} : memref<24x24x32xbf16, #tpu.memory_space<vmem>>, vector<8x8x32xbf16>,
    %cst_217 = arith.constant 0.000000e+00 : f32
    %242 = vector.broadcast %cst_217 : f32 to vector<64x32xf32>
    %c8_218 = arith.constant 8 : index
    %c5_219 = arith.constant 5 : index
    %c0_220 = arith.constant 0 : index
    %243 = vector.load %arg26[%c8_218, %c5_219, %c0_220] : memref<24x24x32xbf16, #tpu.memory_space<vmem>>, vector<8x8x32xbf16>
    %244 = vector.shape_cast %243 : vector<8x8x32xbf16> to vector<64x32xbf16>
    %c0_221 = arith.constant 0 : index
    %c0_222 = arith.constant 0 : index
    %c0_223 = arith.constant 0 : index
    %245 = vector.load %arg16[%c0_221, %c0_222, %c0_223] : memref<7x32x32xbf16, #tpu.memory_space<vmem>>, vector<1x32x32xbf16>
    %246 = vector.shape_cast %245 : vector<1x32x32xbf16> to vector<32x32xbf16>
    %cst_224 = arith.constant dense<0.000000e+00> : vector<64x32xf32>
    %247 = tpu.matmul %244, %246, %cst_224 {dimension_numbers = #tpu.dot_dimension_numbers<[1], [0], [0], [1], [0, 0, 1, 1], [], []>} : vector<64x32xbf16>, vector<32x32xbf16>, vector<64x32xf32> -> vector<64x32xf32>
    %248 = arith.addf %242, %247 : vector<64x32xf32>
    %c8_225 = arith.constant 8 : index
    %c6_226 = arith.constant 6 : index
    %c0_227 = arith.constant 0 : index
    %249 = vector.load %arg26[%c8_225, %c6_226, %c0_227] : memref<24x24x32xbf16, #tpu.memory_space<vmem>>, vector<8x8x32xbf16>
    %250 = vector.shape_cast %249 : vector<8x8x32xbf16> to vector<64x32xbf16>
    %c1_228 = arith.constant 1 : index
    %c0_229 = arith.constant 0 : index
    %c0_230 = arith.constant 0 : index
    %251 = vector.load %arg16[%c1_228, %c0_229, %c0_230] : memref<7x32x32xbf16, #tpu.memory_space<vmem>>, vector<1x32x32xbf16>
    %252 = vector.shape_cast %251 : vector<1x32x32xbf16> to vector<32x32xbf16>
    %cst_231 = arith.constant dense<0.000000e+00> : vector<64x32xf32>
    %253 = tpu.matmul %250, %252, %cst_231 {dimension_numbers = #tpu.dot_dimension_numbers<[1], [0], [0], [1], [0, 0, 1, 1], [], []>} : vector<64x32xbf16>, vector<32x32xbf16>, vector<64x32xf32> -> vector<64x32xf32>
    %254 = arith.addf %248, %253 : vector<64x32xf32>
    %c8_232 = arith.constant 8 : index
    %c7_233 = arith.constant 7 : index
    %c0_234 = arith.constant 0 : index
    %255 = vector.load %arg26[%c8_232, %c7_233, %c0_234] : memref<24x24x32xbf16, #tpu.memory_space<vmem>>, vector<8x8x32xbf16>
    %256 = vector.shape_cast %255 : vector<8x8x32xbf16> to vector<64x32xbf16>
    %c2_235 = arith.constant 2 : index
    %c0_236 = arith.constant 0 : index
    %c0_237 = arith.constant 0 : index
    %257 = vector.load %arg16[%c2_235, %c0_236, %c0_237] : memref<7x32x32xbf16, #tpu.memory_space<vmem>>, vector<1x32x32xbf16>
    %258 = vector.shape_cast %257 : vector<1x32x32xbf16> to vector<32x32xbf16>
    %cst_238 = arith.constant dense<0.000000e+00> : vector<64x32xf32>
    %259 = tpu.matmul %256, %258, %cst_238 {dimension_numbers = #tpu.dot_dimension_numbers<[1], [0], [0], [1], [0, 0, 1, 1], [], []>} : vector<64x32xbf16>, vector<32x32xbf16>, vector<64x32xf32> -> vector<64x32xf32>
    %260 = arith.addf %254, %259 : vector<64x32xf32>
    %c8_239 = arith.constant 8 : index
    %c8_240 = arith.constant 8 : index
    %c0_241 = arith.constant 0 : index
    %261 = vector.load %arg26[%c8_239, %c8_240, %c0_241] : memref<24x24x32xbf16, #tpu.memory_space<vmem>>, vector<8x8x32xbf16>
    %262 = vector.shape_cast %261 : vector<8x8x32xbf16> to vector<64x32xbf16>
    %c3_242 = arith.constant 3 : index
    %c0_243 = arith.constant 0 : index
    %c0_244 = arith.constant 0 : index
    %263 = vector.load %arg16[%c3_242, %c0_243, %c0_244] : memref<7x32x32xbf16, #tpu.memory_space<vmem>>, vector<1x32x32xbf16>
    %264 = vector.shape_cast %263 : vector<1x32x32xbf16> to vector<32x32xbf16>
    %cst_245 = arith.constant dense<0.000000e+00> : vector<64x32xf32>
    %265 = tpu.matmul %262, %264, %cst_245 {dimension_numbers = #tpu.dot_dimension_numbers<[1], [0], [0], [1], [0, 0, 1, 1], [], []>} : vector<64x32xbf16>, vector<32x32xbf16>, vector<64x32xf32> -> vector<64x32xf32>
    %266 = arith.addf %260, %265 : vector<64x32xf32>
    %c8_246 = arith.constant 8 : index
    %c9_247 = arith.constant 9 : index
    %c0_248 = arith.constant 0 : index
    %267 = vector.load %arg26[%c8_246, %c9_247, %c0_248] : memref<24x24x32xbf16, #tpu.memory_space<vmem>>, vector<8x8x32xbf16>
    %268 = vector.shape_cast %267 : vector<8x8x32xbf16> to vector<64x32xbf16>
    %c4_249 = arith.constant 4 : index
    %c0_250 = arith.constant 0 : index
    %c0_251 = arith.constant 0 : index
    %269 = vector.load %arg16[%c4_249, %c0_250, %c0_251] : memref<7x32x32xbf16, #tpu.memory_space<vmem>>, vector<1x32x32xbf16>
    %270 = vector.shape_cast %269 : vector<1x32x32xbf16> to vector<32x32xbf16>
    %cst_252 = arith.constant dense<0.000000e+00> : vector<64x32xf32>
    %271 = tpu.matmul %268, %270, %cst_252 {dimension_numbers = #tpu.dot_dimension_numbers<[1], [0], [0], [1], [0, 0, 1, 1], [], []>} : vector<64x32xbf16>, vector<32x32xbf16>, vector<64x32xf32> -> vector<64x32xf32>
    %272 = arith.addf %266, %271 : vector<64x32xf32>
    %c8_253 = arith.constant 8 : index
    %c10_254 = arith.constant 10 : index
    %c0_255 = arith.constant 0 : index
    %273 = vector.load %arg26[%c8_253, %c10_254, %c0_255] : memref<24x24x32xbf16, #tpu.memory_space<vmem>>, vector<8x8x32xbf16>
    %274 = vector.shape_cast %273 : vector<8x8x32xbf16> to vector<64x32xbf16>
    %c5_256 = arith.constant 5 : index
    %c0_257 = arith.constant 0 : index
    %c0_258 = arith.constant 0 : index
    %275 = vector.load %arg16[%c5_256, %c0_257, %c0_258] : memref<7x32x32xbf16, #tpu.memory_space<vmem>>, vector<1x32x32xbf16>
    %276 = vector.shape_cast %275 : vector<1x32x32xbf16> to vector<32x32xbf16>
    %cst_259 = arith.constant dense<0.000000e+00> : vector<64x32xf32>
    %277 = tpu.matmul %274, %276, %cst_259 {dimension_numbers = #tpu.dot_dimension_numbers<[1], [0], [0], [1], [0, 0, 1, 1], [], []>} : vector<64x32xbf16>, vector<32x32xbf16>, vector<64x32xf32> -> vector<64x32xf32>
    %278 = arith.addf %272, %277 : vector<64x32xf32>
    %c8_260 = arith.constant 8 : index
    %c11_261 = arith.constant 11 : index
    %c0_262 = arith.constant 0 : index
    %279 = vector.load %arg26[%c8_260, %c11_261, %c0_262] : memref<24x24x32xbf16, #tpu.memory_space<vmem>>, vector<8x8x32xbf16>
    %280 = vector.shape_cast %279 : vector<8x8x32xbf16> to vector<64x32xbf16>
    %c6_263 = arith.constant 6 : index
    %c0_264 = arith.constant 0 : index
    %c0_265 = arith.constant 0 : index
    %281 = vector.load %arg16[%c6_263, %c0_264, %c0_265] : memref<7x32x32xbf16, #tpu.memory_space<vmem>>, vector<1x32x32xbf16>
    %282 = vector.shape_cast %281 : vector<1x32x32xbf16> to vector<32x32xbf16>
    %cst_266 = arith.constant dense<0.000000e+00> : vector<64x32xf32>
    %283 = tpu.matmul %280, %282, %cst_266 {dimension_numbers = #tpu.dot_dimension_numbers<[1], [0], [0], [1], [0, 0, 1, 1], [], []>} : vector<64x32xbf16>, vector<32x32xbf16>, vector<64x32xf32> -> vector<64x32xf32>
    %284 = arith.addf %278, %283 : vector<64x32xf32>
    %c0_267 = arith.constant 0 : index
    %c0_268 = arith.constant 0 : index
    %285 = vector.load %arg17[%c0_267, %c0_268] : memref<1x32xf32, #tpu.memory_space<vmem>>, vector<1x32xf32>
    %286 = vector.shape_cast %285 : vector<1x32xf32> to vector<32xf32>
    %287 = vector.shape_cast %286 : vector<32xf32> to vector<1x32xf32>
    %288 = vector.broadcast %287 : vector<1x32xf32> to vector<64x32xf32>
    %289 = arith.mulf %284, %288 : vector<64x32xf32>
    %c0_269 = arith.constant 0 : index
    %c0_270 = arith.constant 0 : index
    %290 = vector.load %arg18[%c0_269, %c0_270] : memref<1x32xf32, #tpu.memory_space<vmem>>, vector<1x32xf32>
    %291 = vector.shape_cast %290 : vector<1x32xf32> to vector<32xf32>
    %292 = vector.shape_cast %291 : vector<32xf32> to vector<1x32xf32>
    %293 = vector.broadcast %292 : vector<1x32xf32> to vector<64x32xf32>
    %294 = arith.addf %289, %293 : vector<64x32xf32>
    %cst_271 = arith.constant 0.000000e+00 : f32
    %295 = vector.broadcast %cst_271 : f32 to vector<64x32xf32>
    %296 = arith.maximumf %294, %295 : vector<64x32xf32>
    %297 = vector.shape_cast %296 : vector<64x32xf32> to vector<8x8x32xf32>
    %298 = arith.truncf %297 : vector<8x8x32xf32> to vector<8x8x32xbf16>
    %c8_272 = arith.constant 8 : index
    %c8_273 = arith.constant 8 : index
    %c0_274 = arith.constant 0 : index
    %299 = vector.load %arg26[%c8_272, %c8_273, %c0_274] : memref<24x24x32xbf16, #tpu.memory_space<vmem>>, vector<8x8x32xbf16>
    tpu.vector_store %arg26[%c8_272, %c8_273, %c0_274], %298 {strides = array<i32>} : memref<24x24x32xbf16, #tpu.memory_space<vmem>>, vector<8x8x32xbf16>,
    %cst_275 = arith.constant 0.000000e+00 : f32
    %300 = vector.broadcast %cst_275 : f32 to vector<64x32xf32>
    %c5_276 = arith.constant 5 : index
    %c8_277 = arith.constant 8 : index
    %c0_278 = arith.constant 0 : index
    %301 = vector.load %arg26[%c5_276, %c8_277, %c0_278] : memref<24x24x32xbf16, #tpu.memory_space<vmem>>, vector<8x8x32xbf16>
    %302 = vector.shape_cast %301 : vector<8x8x32xbf16> to vector<64x32xbf16>
    %c0_279 = arith.constant 0 : index
    %c0_280 = arith.constant 0 : index
    %c0_281 = arith.constant 0 : index
    %303 = vector.load %arg19[%c0_279, %c0_280, %c0_281] : memref<7x32x32xbf16, #tpu.memory_space<vmem>>, vector<1x32x32xbf16>
    %304 = vector.shape_cast %303 : vector<1x32x32xbf16> to vector<32x32xbf16>
    %cst_282 = arith.constant dense<0.000000e+00> : vector<64x32xf32>
    %305 = tpu.matmul %302, %304, %cst_282 {dimension_numbers = #tpu.dot_dimension_numbers<[1], [0], [0], [1], [0, 0, 1, 1], [], []>} : vector<64x32xbf16>, vector<32x32xbf16>, vector<64x32xf32> -> vector<64x32xf32>
    %306 = arith.addf %300, %305 : vector<64x32xf32>
    %c6_283 = arith.constant 6 : index
    %c8_284 = arith.constant 8 : index
    %c0_285 = arith.constant 0 : index
    %307 = vector.load %arg26[%c6_283, %c8_284, %c0_285] : memref<24x24x32xbf16, #tpu.memory_space<vmem>>, vector<8x8x32xbf16>
    %308 = vector.shape_cast %307 : vector<8x8x32xbf16> to vector<64x32xbf16>
    %c1_286 = arith.constant 1 : index
    %c0_287 = arith.constant 0 : index
    %c0_288 = arith.constant 0 : index
    %309 = vector.load %arg19[%c1_286, %c0_287, %c0_288] : memref<7x32x32xbf16, #tpu.memory_space<vmem>>, vector<1x32x32xbf16>
    %310 = vector.shape_cast %309 : vector<1x32x32xbf16> to vector<32x32xbf16>
    %cst_289 = arith.constant dense<0.000000e+00> : vector<64x32xf32>
    %311 = tpu.matmul %308, %310, %cst_289 {dimension_numbers = #tpu.dot_dimension_numbers<[1], [0], [0], [1], [0, 0, 1, 1], [], []>} : vector<64x32xbf16>, vector<32x32xbf16>, vector<64x32xf32> -> vector<64x32xf32>
    %312 = arith.addf %306, %311 : vector<64x32xf32>
    %c7_290 = arith.constant 7 : index
    %c8_291 = arith.constant 8 : index
    %c0_292 = arith.constant 0 : index
    %313 = vector.load %arg26[%c7_290, %c8_291, %c0_292] : memref<24x24x32xbf16, #tpu.memory_space<vmem>>, vector<8x8x32xbf16>
    %314 = vector.shape_cast %313 : vector<8x8x32xbf16> to vector<64x32xbf16>
    %c2_293 = arith.constant 2 : index
    %c0_294 = arith.constant 0 : index
    %c0_295 = arith.constant 0 : index
    %315 = vector.load %arg19[%c2_293, %c0_294, %c0_295] : memref<7x32x32xbf16, #tpu.memory_space<vmem>>, vector<1x32x32xbf16>
    %316 = vector.shape_cast %315 : vector<1x32x32xbf16> to vector<32x32xbf16>
    %cst_296 = arith.constant dense<0.000000e+00> : vector<64x32xf32>
    %317 = tpu.matmul %314, %316, %cst_296 {dimension_numbers = #tpu.dot_dimension_numbers<[1], [0], [0], [1], [0, 0, 1, 1], [], []>} : vector<64x32xbf16>, vector<32x32xbf16>, vector<64x32xf32> -> vector<64x32xf32>
    %318 = arith.addf %312, %317 : vector<64x32xf32>
    %c8_297 = arith.constant 8 : index
    %c8_298 = arith.constant 8 : index
    %c0_299 = arith.constant 0 : index
    %319 = vector.load %arg26[%c8_297, %c8_298, %c0_299] : memref<24x24x32xbf16, #tpu.memory_space<vmem>>, vector<8x8x32xbf16>
    %320 = vector.shape_cast %319 : vector<8x8x32xbf16> to vector<64x32xbf16>
    %c3_300 = arith.constant 3 : index
    %c0_301 = arith.constant 0 : index
    %c0_302 = arith.constant 0 : index
    %321 = vector.load %arg19[%c3_300, %c0_301, %c0_302] : memref<7x32x32xbf16, #tpu.memory_space<vmem>>, vector<1x32x32xbf16>
    %322 = vector.shape_cast %321 : vector<1x32x32xbf16> to vector<32x32xbf16>
    %cst_303 = arith.constant dense<0.000000e+00> : vector<64x32xf32>
    %323 = tpu.matmul %320, %322, %cst_303 {dimension_numbers = #tpu.dot_dimension_numbers<[1], [0], [0], [1], [0, 0, 1, 1], [], []>} : vector<64x32xbf16>, vector<32x32xbf16>, vector<64x32xf32> -> vector<64x32xf32>
    %324 = arith.addf %318, %323 : vector<64x32xf32>
    %c9_304 = arith.constant 9 : index
    %c8_305 = arith.constant 8 : index
    %c0_306 = arith.constant 0 : index
    %325 = vector.load %arg26[%c9_304, %c8_305, %c0_306] : memref<24x24x32xbf16, #tpu.memory_space<vmem>>, vector<8x8x32xbf16>
    %326 = vector.shape_cast %325 : vector<8x8x32xbf16> to vector<64x32xbf16>
    %c4_307 = arith.constant 4 : index
    %c0_308 = arith.constant 0 : index
    %c0_309 = arith.constant 0 : index
    %327 = vector.load %arg19[%c4_307, %c0_308, %c0_309] : memref<7x32x32xbf16, #tpu.memory_space<vmem>>, vector<1x32x32xbf16>
    %328 = vector.shape_cast %327 : vector<1x32x32xbf16> to vector<32x32xbf16>
    %cst_310 = arith.constant dense<0.000000e+00> : vector<64x32xf32>
    %329 = tpu.matmul %326, %328, %cst_310 {dimension_numbers = #tpu.dot_dimension_numbers<[1], [0], [0], [1], [0, 0, 1, 1], [], []>} : vector<64x32xbf16>, vector<32x32xbf16>, vector<64x32xf32> -> vector<64x32xf32>
    %330 = arith.addf %324, %329 : vector<64x32xf32>
    %c10_311 = arith.constant 10 : index
    %c8_312 = arith.constant 8 : index
    %c0_313 = arith.constant 0 : index
    %331 = vector.load %arg26[%c10_311, %c8_312, %c0_313] : memref<24x24x32xbf16, #tpu.memory_space<vmem>>, vector<8x8x32xbf16>
    %332 = vector.shape_cast %331 : vector<8x8x32xbf16> to vector<64x32xbf16>
    %c5_314 = arith.constant 5 : index
    %c0_315 = arith.constant 0 : index
    %c0_316 = arith.constant 0 : index
    %333 = vector.load %arg19[%c5_314, %c0_315, %c0_316] : memref<7x32x32xbf16, #tpu.memory_space<vmem>>, vector<1x32x32xbf16>
    %334 = vector.shape_cast %333 : vector<1x32x32xbf16> to vector<32x32xbf16>
    %cst_317 = arith.constant dense<0.000000e+00> : vector<64x32xf32>
    %335 = tpu.matmul %332, %334, %cst_317 {dimension_numbers = #tpu.dot_dimension_numbers<[1], [0], [0], [1], [0, 0, 1, 1], [], []>} : vector<64x32xbf16>, vector<32x32xbf16>, vector<64x32xf32> -> vector<64x32xf32>
    %336 = arith.addf %330, %335 : vector<64x32xf32>
    %c11_318 = arith.constant 11 : index
    %c8_319 = arith.constant 8 : index
    %c0_320 = arith.constant 0 : index
    %337 = vector.load %arg26[%c11_318, %c8_319, %c0_320] : memref<24x24x32xbf16, #tpu.memory_space<vmem>>, vector<8x8x32xbf16>
    %338 = vector.shape_cast %337 : vector<8x8x32xbf16> to vector<64x32xbf16>
    %c6_321 = arith.constant 6 : index
    %c0_322 = arith.constant 0 : index
    %c0_323 = arith.constant 0 : index
    %339 = vector.load %arg19[%c6_321, %c0_322, %c0_323] : memref<7x32x32xbf16, #tpu.memory_space<vmem>>, vector<1x32x32xbf16>
    %340 = vector.shape_cast %339 : vector<1x32x32xbf16> to vector<32x32xbf16>
    %cst_324 = arith.constant dense<0.000000e+00> : vector<64x32xf32>
    %341 = tpu.matmul %338, %340, %cst_324 {dimension_numbers = #tpu.dot_dimension_numbers<[1], [0], [0], [1], [0, 0, 1, 1], [], []>} : vector<64x32xbf16>, vector<32x32xbf16>, vector<64x32xf32> -> vector<64x32xf32>
    %342 = arith.addf %336, %341 : vector<64x32xf32>
    %c0_325 = arith.constant 0 : index
    %c0_326 = arith.constant 0 : index
    %343 = vector.load %arg20[%c0_325, %c0_326] : memref<1x32xf32, #tpu.memory_space<vmem>>, vector<1x32xf32>
    %344 = vector.shape_cast %343 : vector<1x32xf32> to vector<32xf32>
    %345 = vector.shape_cast %344 : vector<32xf32> to vector<1x32xf32>
    %346 = vector.broadcast %345 : vector<1x32xf32> to vector<64x32xf32>
    %347 = arith.mulf %342, %346 : vector<64x32xf32>
    %c0_327 = arith.constant 0 : index
    %c0_328 = arith.constant 0 : index
    %348 = vector.load %arg21[%c0_327, %c0_328] : memref<1x32xf32, #tpu.memory_space<vmem>>, vector<1x32xf32>
    %349 = vector.shape_cast %348 : vector<1x32xf32> to vector<32xf32>
    %350 = vector.shape_cast %349 : vector<32xf32> to vector<1x32xf32>
    %351 = vector.broadcast %350 : vector<1x32xf32> to vector<64x32xf32>
    %352 = arith.addf %347, %351 : vector<64x32xf32>
    %cst_329 = arith.constant 0.000000e+00 : f32
    %353 = vector.broadcast %cst_329 : f32 to vector<64x32xf32>
    %354 = arith.maximumf %352, %353 : vector<64x32xf32>
    %355 = vector.shape_cast %354 : vector<64x32xf32> to vector<8x8x32xf32>
    %356 = arith.truncf %355 : vector<8x8x32xf32> to vector<8x8x32xbf16>
    %c8_330 = arith.constant 8 : index
    %c8_331 = arith.constant 8 : index
    %c0_332 = arith.constant 0 : index
    %357 = vector.load %arg26[%c8_330, %c8_331, %c0_332] : memref<24x24x32xbf16, #tpu.memory_space<vmem>>, vector<8x8x32xbf16>
    tpu.vector_store %arg26[%c8_330, %c8_331, %c0_332], %356 {strides = array<i32>} : memref<24x24x32xbf16, #tpu.memory_space<vmem>>, vector<8x8x32xbf16>,
    %cst_333 = arith.constant 0.000000e+00 : f32
    %358 = vector.broadcast %cst_333 : f32 to vector<64x192xf32>
    %c8_334 = arith.constant 8 : index
    %c5_335 = arith.constant 5 : index
    %c0_336 = arith.constant 0 : index
    %359 = vector.load %arg26[%c8_334, %c5_335, %c0_336] : memref<24x24x32xbf16, #tpu.memory_space<vmem>>, vector<8x8x32xbf16>
    %360 = vector.shape_cast %359 : vector<8x8x32xbf16> to vector<64x32xbf16>
    %c0_337 = arith.constant 0 : index
    %c0_338 = arith.constant 0 : index
    %c0_339 = arith.constant 0 : index
    %361 = vector.load %arg22[%c0_337, %c0_338, %c0_339] : memref<7x32x192xbf16, #tpu.memory_space<vmem>>, vector<1x32x192xbf16>
    %362 = vector.shape_cast %361 : vector<1x32x192xbf16> to vector<32x192xbf16>
    %cst_340 = arith.constant dense<0.000000e+00> : vector<64x192xf32>
    %363 = tpu.matmul %360, %362, %cst_340 {dimension_numbers = #tpu.dot_dimension_numbers<[1], [0], [0], [1], [0, 0, 1, 1], [], []>} : vector<64x32xbf16>, vector<32x192xbf16>, vector<64x192xf32> -> vector<64x192xf32>
    %364 = arith.addf %358, %363 : vector<64x192xf32>
    %c8_341 = arith.constant 8 : index
    %c6_342 = arith.constant 6 : index
    %c0_343 = arith.constant 0 : index
    %365 = vector.load %arg26[%c8_341, %c6_342, %c0_343] : memref<24x24x32xbf16, #tpu.memory_space<vmem>>, vector<8x8x32xbf16>
    %366 = vector.shape_cast %365 : vector<8x8x32xbf16> to vector<64x32xbf16>
    %c1_344 = arith.constant 1 : index
    %c0_345 = arith.constant 0 : index
    %c0_346 = arith.constant 0 : index
    %367 = vector.load %arg22[%c1_344, %c0_345, %c0_346] : memref<7x32x192xbf16, #tpu.memory_space<vmem>>, vector<1x32x192xbf16>
    %368 = vector.shape_cast %367 : vector<1x32x192xbf16> to vector<32x192xbf16>
    %cst_347 = arith.constant dense<0.000000e+00> : vector<64x192xf32>
    %369 = tpu.matmul %366, %368, %cst_347 {dimension_numbers = #tpu.dot_dimension_numbers<[1], [0], [0], [1], [0, 0, 1, 1], [], []>} : vector<64x32xbf16>, vector<32x192xbf16>, vector<64x192xf32> -> vector<64x192xf32>
    %370 = arith.addf %364, %369 : vector<64x192xf32>
    %c8_348 = arith.constant 8 : index
    %c7_349 = arith.constant 7 : index
    %c0_350 = arith.constant 0 : index
    %371 = vector.load %arg26[%c8_348, %c7_349, %c0_350] : memref<24x24x32xbf16, #tpu.memory_space<vmem>>, vector<8x8x32xbf16>
    %372 = vector.shape_cast %371 : vector<8x8x32xbf16> to vector<64x32xbf16>
    %c2_351 = arith.constant 2 : index
    %c0_352 = arith.constant 0 : index
    %c0_353 = arith.constant 0 : index
    %373 = vector.load %arg22[%c2_351, %c0_352, %c0_353] : memref<7x32x192xbf16, #tpu.memory_space<vmem>>, vector<1x32x192xbf16>
    %374 = vector.shape_cast %373 : vector<1x32x192xbf16> to vector<32x192xbf16>
    %cst_354 = arith.constant dense<0.000000e+00> : vector<64x192xf32>
    %375 = tpu.matmul %372, %374, %cst_354 {dimension_numbers = #tpu.dot_dimension_numbers<[1], [0], [0], [1], [0, 0, 1, 1], [], []>} : vector<64x32xbf16>, vector<32x192xbf16>, vector<64x192xf32> -> vector<64x192xf32>
    %376 = arith.addf %370, %375 : vector<64x192xf32>
    %c8_355 = arith.constant 8 : index
    %c8_356 = arith.constant 8 : index
    %c0_357 = arith.constant 0 : index
    %377 = vector.load %arg26[%c8_355, %c8_356, %c0_357] : memref<24x24x32xbf16, #tpu.memory_space<vmem>>, vector<8x8x32xbf16>
    %378 = vector.shape_cast %377 : vector<8x8x32xbf16> to vector<64x32xbf16>
    %c3_358 = arith.constant 3 : index
    %c0_359 = arith.constant 0 : index
    %c0_360 = arith.constant 0 : index
    %379 = vector.load %arg22[%c3_358, %c0_359, %c0_360] : memref<7x32x192xbf16, #tpu.memory_space<vmem>>, vector<1x32x192xbf16>
    %380 = vector.shape_cast %379 : vector<1x32x192xbf16> to vector<32x192xbf16>
    %cst_361 = arith.constant dense<0.000000e+00> : vector<64x192xf32>
    %381 = tpu.matmul %378, %380, %cst_361 {dimension_numbers = #tpu.dot_dimension_numbers<[1], [0], [0], [1], [0, 0, 1, 1], [], []>} : vector<64x32xbf16>, vector<32x192xbf16>, vector<64x192xf32> -> vector<64x192xf32>
    %382 = arith.addf %376, %381 : vector<64x192xf32>
    %c8_362 = arith.constant 8 : index
    %c9_363 = arith.constant 9 : index
    %c0_364 = arith.constant 0 : index
    %383 = vector.load %arg26[%c8_362, %c9_363, %c0_364] : memref<24x24x32xbf16, #tpu.memory_space<vmem>>, vector<8x8x32xbf16>
    %384 = vector.shape_cast %383 : vector<8x8x32xbf16> to vector<64x32xbf16>
    %c4_365 = arith.constant 4 : index
    %c0_366 = arith.constant 0 : index
    %c0_367 = arith.constant 0 : index
    %385 = vector.load %arg22[%c4_365, %c0_366, %c0_367] : memref<7x32x192xbf16, #tpu.memory_space<vmem>>, vector<1x32x192xbf16>
    %386 = vector.shape_cast %385 : vector<1x32x192xbf16> to vector<32x192xbf16>
    %cst_368 = arith.constant dense<0.000000e+00> : vector<64x192xf32>
    %387 = tpu.matmul %384, %386, %cst_368 {dimension_numbers = #tpu.dot_dimension_numbers<[1], [0], [0], [1], [0, 0, 1, 1], [], []>} : vector<64x32xbf16>, vector<32x192xbf16>, vector<64x192xf32> -> vector<64x192xf32>
    %388 = arith.addf %382, %387 : vector<64x192xf32>
    %c8_369 = arith.constant 8 : index
    %c10_370 = arith.constant 10 : index
    %c0_371 = arith.constant 0 : index
    %389 = vector.load %arg26[%c8_369, %c10_370, %c0_371] : memref<24x24x32xbf16, #tpu.memory_space<vmem>>, vector<8x8x32xbf16>
    %390 = vector.shape_cast %389 : vector<8x8x32xbf16> to vector<64x32xbf16>
    %c5_372 = arith.constant 5 : index
    %c0_373 = arith.constant 0 : index
    %c0_374 = arith.constant 0 : index
    %391 = vector.load %arg22[%c5_372, %c0_373, %c0_374] : memref<7x32x192xbf16, #tpu.memory_space<vmem>>, vector<1x32x192xbf16>
    %392 = vector.shape_cast %391 : vector<1x32x192xbf16> to vector<32x192xbf16>
    %cst_375 = arith.constant dense<0.000000e+00> : vector<64x192xf32>
    %393 = tpu.matmul %390, %392, %cst_375 {dimension_numbers = #tpu.dot_dimension_numbers<[1], [0], [0], [1], [0, 0, 1, 1], [], []>} : vector<64x32xbf16>, vector<32x192xbf16>, vector<64x192xf32> -> vector<64x192xf32>
    %394 = arith.addf %388, %393 : vector<64x192xf32>
    %c8_376 = arith.constant 8 : index
    %c11_377 = arith.constant 11 : index
    %c0_378 = arith.constant 0 : index
    %395 = vector.load %arg26[%c8_376, %c11_377, %c0_378] : memref<24x24x32xbf16, #tpu.memory_space<vmem>>, vector<8x8x32xbf16>
    %396 = vector.shape_cast %395 : vector<8x8x32xbf16> to vector<64x32xbf16>
    %c6_379 = arith.constant 6 : index
    %c0_380 = arith.constant 0 : index
    %c0_381 = arith.constant 0 : index
    %397 = vector.load %arg22[%c6_379, %c0_380, %c0_381] : memref<7x32x192xbf16, #tpu.memory_space<vmem>>, vector<1x32x192xbf16>
    %398 = vector.shape_cast %397 : vector<1x32x192xbf16> to vector<32x192xbf16>
    %cst_382 = arith.constant dense<0.000000e+00> : vector<64x192xf32>
    %399 = tpu.matmul %396, %398, %cst_382 {dimension_numbers = #tpu.dot_dimension_numbers<[1], [0], [0], [1], [0, 0, 1, 1], [], []>} : vector<64x32xbf16>, vector<32x192xbf16>, vector<64x192xf32> -> vector<64x192xf32>
    %400 = arith.addf %394, %399 : vector<64x192xf32>
    %c0_383 = arith.constant 0 : index
    %c0_384 = arith.constant 0 : index
    %401 = vector.load %arg23[%c0_383, %c0_384] : memref<1x192xf32, #tpu.memory_space<vmem>>, vector<1x192xf32>
    %402 = vector.shape_cast %401 : vector<1x192xf32> to vector<192xf32>
    %403 = vector.shape_cast %402 : vector<192xf32> to vector<1x192xf32>
    %404 = vector.broadcast %403 : vector<1x192xf32> to vector<64x192xf32>
    %405 = arith.mulf %400, %404 : vector<64x192xf32>
    %c0_385 = arith.constant 0 : index
    %c0_386 = arith.constant 0 : index
    %406 = vector.load %arg24[%c0_385, %c0_386] : memref<1x192xf32, #tpu.memory_space<vmem>>, vector<1x192xf32>
    %407 = vector.shape_cast %406 : vector<1x192xf32> to vector<192xf32>
    %408 = vector.shape_cast %407 : vector<192xf32> to vector<1x192xf32>
    %409 = vector.broadcast %408 : vector<1x192xf32> to vector<64x192xf32>
    %410 = arith.addf %405, %409 : vector<64x192xf32>
    %cst_387 = arith.constant 0.000000e+00 : f32
    %411 = vector.broadcast %cst_387 : f32 to vector<64x192xf32>
    %412 = arith.maximumf %410, %411 : vector<64x192xf32>
    %413 = vector.shape_cast %412 : vector<64x192xf32> to vector<8x8x192xf32>
    %c0_388 = arith.constant 0 : index
    %c2_389 = arith.constant 2 : index
    %c0_390 = arith.constant 0 : index
    %c0_391 = arith.constant 0 : index
    %c0_392 = arith.constant 0 : index
    %414 = vector.load %arg25[%c0_388, %c2_389, %c0_390, %c0_391, %c0_392] : memref<1x4x8x8x192xf32, #tpu.memory_space<vmem>>, vector<1x1x8x8x192xf32>
    %415 = vector.shape_cast %414 : vector<1x1x8x8x192xf32> to vector<8x8x192xf32>
    %416 = vector.shape_cast %413 : vector<8x8x192xf32> to vector<1x1x8x8x192xf32>
    tpu.vector_store %arg25[%c0_388, %c2_389, %c0_390, %c0_391, %c0_392], %416 {strides = array<i32>} : memref<1x4x8x8x192xf32, #tpu.memory_space<vmem>>, vector<1x1x8x8x192xf32>,
    return
  }
  func.func @transform_0(%arg0: i32) -> (i32, i32, i32, i32) {
    %c0_i32 = arith.constant 0 : i32
    %c0_i32_0 = arith.constant 0 : i32
    %c0_i32_1 = arith.constant 0 : i32
    %c0_i32_2 = arith.constant 0 : i32
    return %arg0, %c0_i32, %c0_i32_0, %c0_i32_1 : i32, i32, i32, i32
  }
  func.func @transform_1(%arg0: i32) -> (i32, i32) {
    %c0_i32 = arith.constant 0 : i32
    %c0_i32_0 = arith.constant 0 : i32
    %c0_i32_1 = arith.constant 0 : i32
    return %c0_i32, %c0_i32_0 : i32, i32
  }
  func.func @transform_2(%arg0: i32) -> (i32, i32) {
    %c0_i32 = arith.constant 0 : i32
    %c0_i32_0 = arith.constant 0 : i32
    %c0_i32_1 = arith.constant 0 : i32
    return %c0_i32, %c0_i32_0 : i32, i32
  }
  func.func @transform_3(%arg0: i32) -> (i32, i32) {
    %c0_i32 = arith.constant 0 : i32
    %c0_i32_0 = arith.constant 0 : i32
    %c0_i32_1 = arith.constant 0 : i32
    return %c0_i32, %c0_i32_0 : i32, i32
  }
  func.func @transform_4(%arg0: i32) -> (i32, i32) {
    %c0_i32 = arith.constant 0 : i32
    %c0_i32_0 = arith.constant 0 : i32
    %c0_i32_1 = arith.constant 0 : i32
    return %c0_i32, %c0_i32_0 : i32, i32
  }
  func.func @transform_5(%arg0: i32) -> (i32, i32) {
    %c0_i32 = arith.constant 0 : i32
    %c0_i32_0 = arith.constant 0 : i32
    %c0_i32_1 = arith.constant 0 : i32
    return %c0_i32, %c0_i32_0 : i32, i32
  }
  func.func @transform_6(%arg0: i32) -> (i32, i32, i32) {
    %c0_i32 = arith.constant 0 : i32
    %c0_i32_0 = arith.constant 0 : i32
    %c0_i32_1 = arith.constant 0 : i32
    %c0_i32_2 = arith.constant 0 : i32
    return %c0_i32, %c0_i32_0, %c0_i32_1 : i32, i32, i32
  }
  func.func @transform_7(%arg0: i32) -> (i32, i32) {
    %c0_i32 = arith.constant 0 : i32
    %c0_i32_0 = arith.constant 0 : i32
    %c0_i32_1 = arith.constant 0 : i32
    return %c0_i32, %c0_i32_0 : i32, i32
  }
  func.func @transform_8(%arg0: i32) -> (i32, i32) {
    %c0_i32 = arith.constant 0 : i32
    %c0_i32_0 = arith.constant 0 : i32
    %c0_i32_1 = arith.constant 0 : i32
    return %c0_i32, %c0_i32_0 : i32, i32
  }
  func.func @transform_9(%arg0: i32) -> (i32, i32, i32) {
    %c0_i32 = arith.constant 0 : i32
    %c0_i32_0 = arith.constant 0 : i32
    %c0_i32_1 = arith.constant 0 : i32
    %c0_i32_2 = arith.constant 0 : i32
    return %c0_i32, %c0_i32_0, %c0_i32_1 : i32, i32, i32
  }
  func.func @transform_10(%arg0: i32) -> (i32, i32) {
    %c0_i32 = arith.constant 0 : i32
    %c0_i32_0 = arith.constant 0 : i32
    %c0_i32_1 = arith.constant 0 : i32
    return %c0_i32, %c0_i32_0 : i32, i32
  }
  func.func @transform_11(%arg0: i32) -> (i32, i32) {
    %c0_i32 = arith.constant 0 : i32
    %c0_i32_0 = arith.constant 0 : i32
    %c0_i32_1 = arith.constant 0 : i32
    return %c0_i32, %c0_i32_0 : i32, i32
  }
  func.func @transform_12(%arg0: i32) -> (i32, i32, i32) {
    %c0_i32 = arith.constant 0 : i32
    %c0_i32_0 = arith.constant 0 : i32
    %c0_i32_1 = arith.constant 0 : i32
    %c0_i32_2 = arith.constant 0 : i32
    return %c0_i32, %c0_i32_0, %c0_i32_1 : i32, i32, i32
  }
  func.func @transform_13(%arg0: i32) -> (i32, i32) {
    %c0_i32 = arith.constant 0 : i32
    %c0_i32_0 = arith.constant 0 : i32
    %c0_i32_1 = arith.constant 0 : i32
    return %c0_i32, %c0_i32_0 : i32, i32
  }
  func.func @transform_14(%arg0: i32) -> (i32, i32) {
    %c0_i32 = arith.constant 0 : i32
    %c0_i32_0 = arith.constant 0 : i32
    %c0_i32_1 = arith.constant 0 : i32
    return %c0_i32, %c0_i32_0 : i32, i32
  }
  func.func @transform_15(%arg0: i32) -> (i32, i32, i32) {
    %c0_i32 = arith.constant 0 : i32
    %c0_i32_0 = arith.constant 0 : i32
    %c0_i32_1 = arith.constant 0 : i32
    %c0_i32_2 = arith.constant 0 : i32
    return %c0_i32, %c0_i32_0, %c0_i32_1 : i32, i32, i32
  }
  func.func @transform_16(%arg0: i32) -> (i32, i32) {
    %c0_i32 = arith.constant 0 : i32
    %c0_i32_0 = arith.constant 0 : i32
    %c0_i32_1 = arith.constant 0 : i32
    return %c0_i32, %c0_i32_0 : i32, i32
  }
  func.func @transform_17(%arg0: i32) -> (i32, i32) {
    %c0_i32 = arith.constant 0 : i32
    %c0_i32_0 = arith.constant 0 : i32
    %c0_i32_1 = arith.constant 0 : i32
    return %c0_i32, %c0_i32_0 : i32, i32
  }
  func.func @transform_18(%arg0: i32) -> (i32, i32, i32) {
    %c0_i32 = arith.constant 0 : i32
    %c0_i32_0 = arith.constant 0 : i32
    %c0_i32_1 = arith.constant 0 : i32
    %c0_i32_2 = arith.constant 0 : i32
    return %c0_i32, %c0_i32_0, %c0_i32_1 : i32, i32, i32
  }
  func.func @transform_19(%arg0: i32) -> (i32, i32) {
    %c0_i32 = arith.constant 0 : i32
    %c0_i32_0 = arith.constant 0 : i32
    %c0_i32_1 = arith.constant 0 : i32
    return %c0_i32, %c0_i32_0 : i32, i32
  }
  func.func @transform_20(%arg0: i32) -> (i32, i32) {
    %c0_i32 = arith.constant 0 : i32
    %c0_i32_0 = arith.constant 0 : i32
    %c0_i32_1 = arith.constant 0 : i32
    return %c0_i32, %c0_i32_0 : i32, i32
  }
  func.func @transform_21(%arg0: i32) -> (i32, i32, i32) {
    %c0_i32 = arith.constant 0 : i32
    %c0_i32_0 = arith.constant 0 : i32
    %c0_i32_1 = arith.constant 0 : i32
    %c0_i32_2 = arith.constant 0 : i32
    return %c0_i32, %c0_i32_0, %c0_i32_1 : i32, i32, i32
  }
  func.func @transform_22(%arg0: i32) -> (i32, i32) {
    %c0_i32 = arith.constant 0 : i32
    %c0_i32_0 = arith.constant 0 : i32
    %c0_i32_1 = arith.constant 0 : i32
    return %c0_i32, %c0_i32_0 : i32, i32
  }
  func.func @transform_23(%arg0: i32) -> (i32, i32) {
    %c0_i32 = arith.constant 0 : i32
    %c0_i32_0 = arith.constant 0 : i32
    %c0_i32_1 = arith.constant 0 : i32
    return %c0_i32, %c0_i32_0 : i32, i32
  }
  func.func @transform_24(%arg0: i32) -> (i32, i32, i32, i32, i32) {
    %c0_i32 = arith.constant 0 : i32
    %c0_i32_0 = arith.constant 0 : i32
    %c0_i32_1 = arith.constant 0 : i32
    %c0_i32_2 = arith.constant 0 : i32
    %c0_i32_3 = arith.constant 0 : i32
    return %arg0, %c0_i32, %c0_i32_0, %c0_i32_1, %c0_i32_2 : i32, i32, i32, i32, i32
  }
}

</mosaic_0001>

<bundles_post_ra>
// kernel: inception_c_forward.1
= control target key start
LH: loop header
LB: loop body
LE: loop exit
PB: predicated region body
PF: predicated region fallthrough
CT: control target
= control target key end

     0   :  { %s15343_s0 = inlined_call_operand.vmem [shape: bf16[2,8,8,32], index: 0, kind: input, shape index: {}]   ;;  %s15344_s1 = inlined_call_operand.vmem [shape: bf16[32,448], index: 1, kind: input, shape index: {}]   ;;  %s15345_s2 = inlined_call_operand.vmem [shape: f32[1,256], index: 2, kind: input, shape index: {}]   ;;  %s15346_s3 = inlined_call_operand.vmem [shape: f32[1,256], index: 3, kind: input, shape index: {}]   ;;  %s15347_s4 = inlined_call_operand.vmem [shape: f32[1,192], index: 4, kind: input, shape index: {}]   ;;  %s15348_s5 = inlined_call_operand.vmem [shape: f32[1,192], index: 5, kind: input, shape index: {}]   ;;  %s15349_s6 = inlined_call_operand.hbm [shape: bf16[7,32,32], index: 6, kind: input, shape index: {}]   ;;  %s15350_s7 = inlined_call_operand.hbm [shape: f32[1,32], index: 7, kind: input, shape index: {}]   ;;  %s15351_s8 = inlined_call_operand.hbm [shape: f32[1,32], index: 8, kind: input, shape index: {}]   ;;  %s15352_s9 = inlined_call_operand.vmem [shape: bf16[7,32,192], index: 9, kind: input, shape index: {}]   ;;  %s15353_s10 = inlined_call_operand.hbm [shape: f32[1,192], index: 10, kind: input, shape index: {}]   ;;  %s15354_s11 = inlined_call_operand.hbm [shape: f32[1,192], index: 11, kind: input, shape index: {}]   ;;  %s15355_s12 = inlined_call_operand.hbm [shape: bf16[7,32,32], index: 12, kind: input, shape index: {}]   ;;  %s15356_s13 = inlined_call_operand.vmem [shape: f32[1,32], index: 13, kind: input, shape index: {}]   ;;  %s15357_s14 = inlined_call_operand.vmem [shape: f32[1,32], index: 14, kind: input, shape index: {}]   ;;  %s15358_s15 = inlined_call_operand.hbm [shape: bf16[7,32,32], index: 15, kind: input, shape index: {}]   ;;  %s15359_s16 = inlined_call_operand.vmem [shape: f32[1,32], index: 16, kind: input, shape index: {}]   ;;  %s15360_s17 = inlined_call_operand.vmem [shape: f32[1,32], index: 17, kind: input, shape index: {}]   ;;  %s15361_s18 = inlined_call_operand.hbm [shape: bf16[7,32,32], index: 18, kind: input, shape index: {}]   ;;  %s15362_s19 = inlined_call_operand.vmem [shape: f32[1,32], index: 19, kind: input, shape index: {}]   ;;  %s15363_s20 = inlined_call_operand.vmem [shape: f32[1,32], index: 20, kind: input, shape index: {}]   ;;  %s15364_s21 = inlined_call_operand.vmem [shape: bf16[7,32,192], index: 21, kind: input, shape index: {}]   ;;  %s15365_s22 = inlined_call_operand.vmem [shape: f32[1,192], index: 22, kind: input, shape index: {}]   ;;  %s15366_s23 = inlined_call_operand.vmem [shape: f32[1,192], index: 23, kind: input, shape index: {}]   ;;  %s15367_s24 = inlined_call_operand.vmem [shape: f32[2,4,8,8,192], index: 24, kind: output, shape index: {}]  }
   0x1   :  { %15428 = sst [smem:[#allocation61_spill]] %s15343_s0 }
   0x2   :  { %15429 = sst [smem:[#allocation62_spill]] %s15344_s1 }
   0x3   :  { %15430 = sst [smem:[#allocation63_spill]] %s15345_s2 }
   0x4   :  { %15431 = sst [smem:[#allocation64_spill]] %s15346_s3 }
   0x5   :  { %15432 = sst [smem:[#allocation65_spill]] %s15347_s4 }
   0x6   :  { %15433 = sst [smem:[#allocation66_spill]] %s15348_s5 }
   0x7   :  { %15434 = sst [smem:[#allocation67_spill]] %s15349_s6 }
   0x8   :  { %15435 = sst [smem:[#allocation68_spill]] %s15350_s7 }
   0x9   :  { %15436 = sst [smem:[#allocation69_spill]] %s15351_s8 }
   0xa   :  { %15437 = sst [smem:[#allocation70_spill]] %s15353_s10 }
   0xb   :  { %15438 = sst [smem:[#allocation71_spill]] %s15355_s12 }
   0xc   :  { %15439 = sst [smem:[#allocation72_spill]] %s15362_s19 }
   0xd   :  { %15440 = sst [smem:[#allocation73_spill]] %s15363_s20 }
   0xe   :  { %15441 = sst [smem:[#allocation74_spill]] %s15365_s22 }
   0xf   :  { %15442 = sst [smem:[#allocation75_spill]] %s15366_s23 }
  0x10   :  { %29 = vsyncpa [#allocation5], 0 }
  0x11   :  { %30 = vsyncpa [#allocation7], 0 }
  0x12   :  { %31 = vsyncpa [#allocation10], 0 }
  0x13   :  { %32 = vsyncpa [#allocation13], 0 }
  0x14   :  { %33 = vsyncpa [#allocation16], 0  ;;  %s12318_s5 = smov 0  }
  0x15 LB: > { %15443 = sst [smem:[#allocation22_spill]] %s12177_s5  ;;  %s12179_s26 = smov [#allocation6]   ;;  %s12177_s5 = sphi %s12318_s5, %s39_s5  }
  0x16   : > { %s620_s27 = sshll.u32 %s12179_s26, 4  ;;  %s12324_s28 = sadd.s32 4294967295, %s12177_s5   ;;  %s12329_s27 = int_to_ptr.vmem [resolvable:$true] %s620_s27 }
  0x17   : > { %p10026_p0 = scmp.ge.s32.totalorder %s12177_s5, 1  ;;  %p579_p1 = scmp.lt.s32.totalorder %s12177_s5, 3 }
  0x18   : > { %p15374_p2 = scmp.eq.s32.totalorder %s12324_s28, 0  ;;  %s12180_s2 = smov [#allocation9]  }
  0x19   : > { %p12331_p3 = pnand %p10026_p0, %p579_p1  ;;  %s645_s29 = sshll.u32 %s12180_s2, 4  ;;  %s12337_s29 = int_to_ptr.vmem [resolvable:$true] %s645_s29 }
  0x1a   : > { %s12181_s7 = smov [#allocation12]   ;;  %s12182_s3 = smov [#allocation4]  }
  0x1b   : > { %s15444_s6 = scalar_select %p12331_p3, 1, 0 }
  0x1c   : > { %p11633_p4 = pneg %p12331_p3  ;;  %s666_s30 = sshll.u32 %s12181_s7, 4  ;;  %s12345_s30 = int_to_ptr.vmem [resolvable:$true] %s666_s30 }
  0x1d   : > { %s12347_s25 = sshll.u32 %s12182_s3, 4  ;;  %s15446_s1 = sld [smem:[#allocation68_spill]]  ;;  %s607_s25 = int_to_ptr.vmem [resolvable:$true] %s12347_s25 }
  0x1e   : > { %p12341_p5 = pnand %p15374_p2, %p11633_p4 }
  0x20   : > { %p12357_p7 = pneg %p12341_p5 }
  0x23   : > { %s11927_s26 = scalar_lea.hbm %s15446_s1, 16 }
  0x24   : > { %p11928_p6 = scmp.ne.s32.totalorder %s15446_s1, %s11927_s26  ;;  %p11934_p10 = scmp.lt.u32.totalorder %s11927_s26, %s15446_s1 }
  0x26   : > { %p11930_p8 = pnand %p12357_p7, %p11928_p6 }
  0x28   : > { %p11931_p9 = pneg %p11930_p8 }
  0x2a   : > { %p11936_p11 = pnand %p11934_p10, %p11931_p9 }
  0x2c   : > { %11939 = shalt.err (!%p11936_p11)
}
  0x2d   : > { %s11940_s5 = scalar_lea.vmem %s12329_s27, 16  ;;  %s11947_s8 = scalar_lea.vmem %s12329_s27, 32 }
  0x2e   : > { %p11941_p12 = scmp.ne.s32.totalorder %s12329_s27, %s11940_s5  ;;  %p11948_p1 = scmp.lt.s32.totalorder %s12329_s27, %s12329_s27 }
  0x2f   : > { %p11949_p4 = scmp.lt.s32.totalorder %s11947_s8, %s11940_s5 }
  0x30   : > { %p11943_p13 = pnand %p11941_p12, %p12357_p7 }
  0x31   : > { %p11950_p6 = por %p11949_p4, %p11948_p1 }
  0x32   : > { %p11944_p0 = pneg %p11943_p13 }
  0x34   : > { %p11951_p8 = pnand %p11950_p6, %p11944_p0 }
  0x36   : > { %11954 = shalt.err (!%p11951_p8)
}
  0x37   : > { %11639 = dma.hbm_to_vmem [thread:$0]  (!%p12341_p5), %s15446_s1, 16, %s12329_s27, [#allocation7]  }
  0x38   : > { %s15448_s10 = sld [smem:[#allocation70_spill]] }
  0x3e   : > { %s11955_s3 = scalar_lea.hbm %s15448_s10, 32 }
  0x3f   : > { %p11956_p9 = scmp.ne.s32.totalorder %s15448_s10, %s11955_s3  ;;  %p11962_p12 = scmp.lt.u32.totalorder %s11955_s3, %s15448_s10 }
  0x41   : > { %p11958_p10 = pnand %p11956_p9, %p12357_p7 }
  0x43   : > { %p11959_p11 = pneg %p11958_p10 }
  0x45   : > { %p11964_p13 = pnand %p11962_p12, %p11959_p11 }
  0x47   : > { %11967 = shalt.err (!%p11964_p13)
}
  0x48   : > { %s11968_s27 = scalar_lea.vmem %s12337_s29, 32  ;;  %p11976_p6 = scmp.lt.s32.totalorder %s12337_s29, %s12337_s29 }
  0x49   : > { %p11969_p0 = scmp.ne.s32.totalorder %s12337_s29, %s11968_s27  ;;  %p11977_p8 = scmp.lt.s32.totalorder %s11968_s27, %s11968_s27 }
  0x4b   : > { %p11971_p1 = pnand %p11969_p0, %p12357_p7  ;;  %p11978_p9 = por %p11977_p8, %p11976_p6 }
  0x4d   : > { %p11972_p4 = pneg %p11971_p1 }
  0x4f   : > { %p11979_p10 = pnand %p11978_p9, %p11972_p4 }
  0x51   : > { %11982 = shalt.err (!%p11979_p10)
}
  0x52   : > { %11645 = dma.hbm_to_vmem [thread:$0]  (!%p12341_p5), %s15448_s10, 32, %s12337_s29, [#allocation10]  }
  0x53   : > { %s15449_s12 = sld [smem:[#allocation71_spill]] }
  0x59   : > { %s11983_s2 = scalar_lea.hbm %s15449_s12, 1792 }
  0x5a   : > { %p11984_p11 = scmp.ne.s32.totalorder %s15449_s12, %s11983_s2  ;;  %p11990_p0 = scmp.lt.u32.totalorder %s11983_s2, %s15449_s12 }
  0x5c   : > { %p11986_p12 = pnand %p11984_p11, %p12357_p7 }
  0x5e   : > { %p11987_p13 = pneg %p11986_p12 }
  0x60   : > { %p11992_p1 = pnand %p11990_p0, %p11987_p13 }
  0x62   : > { %11995 = shalt.err (!%p11992_p1)
}
  0x63   : > { %s11996_s29 = scalar_lea.vmem %s12345_s30, 1792  ;;  %p12004_p9 = scmp.lt.s32.totalorder %s12345_s30, %s12345_s30 }
  0x64   : > { %p11997_p4 = scmp.ne.s32.totalorder %s12345_s30, %s11996_s29  ;;  %p12005_p10 = scmp.lt.s32.totalorder %s11996_s29, %s11996_s29 }
  0x66   : > { %p11999_p6 = pnand %p11997_p4, %p12357_p7  ;;  %p12006_p11 = por %p12005_p10, %p12004_p9 }
  0x68   : > { %p12000_p8 = pneg %p11999_p6 }
  0x6a   : > { %p12007_p12 = pnand %p12006_p11, %p12000_p8 }
  0x6c   : > { %12010 = shalt.err (!%p12007_p12)
}
  0x6d   : > { %s12183_s27 = smov 64   ;;  %s12184_s20 = smov 4  }
  0x6e   : > { %11651 = dma.hbm_to_vmem [thread:$0]  (!%p12341_p5), %s15449_s12, 1792, %s12345_s30, [#allocation13], %s12183_s27, %s12183_s27, %s12184_s20  }
  0x6f   : > { %s15450_s7 = sld [smem:[#allocation67_spill]] }
  0x75   : > { %s12011_s3 = scalar_lea.hbm %s15450_s7, 1792 }
  0x76   : > { %p12012_p13 = scmp.ne.s32.totalorder %s15450_s7, %s12011_s3  ;;  %p12018_p4 = scmp.lt.u32.totalorder %s12011_s3, %s15450_s7 }
  0x78   : > { %p12014_p0 = pnand %p12012_p13, %p12357_p7 }
  0x7a   : > { %p12015_p1 = pneg %p12014_p0 }
  0x7c   : > { %p12020_p6 = pnand %p12018_p4, %p12015_p1 }
  0x7e   : > { %12023 = shalt.err (!%p12020_p6)
}
  0x7f   : > { %s12024_s22 = scalar_lea.vmem %s607_s25, 1792  ;;  %p12032_p11 = scmp.lt.s32.totalorder %s607_s25, %s607_s25 }
  0x80   : > { %p12025_p8 = scmp.ne.s32.totalorder %s607_s25, %s12024_s22  ;;  %p12033_p12 = scmp.lt.s32.totalorder %s12024_s22, %s12024_s22 }
  0x82   : > { %p12027_p9 = pnand %p12025_p8, %p12357_p7  ;;  %p12034_p2 = por %p12033_p12, %p12032_p11 }
  0x84   : > { %p12028_p10 = pneg %p12027_p9 }
  0x86   : > { %p12035_p3 = pnand %p12034_p2, %p12028_p10 }
  0x88   : > { %12038 = shalt.err (!%p12035_p3)
}
  0x89   : > { %11636 = dma.hbm_to_vmem [thread:$0]  (!%p12341_p5), %s15450_s7, 1792, %s607_s25, [#allocation5], %s12183_s27, %s12183_s27, %s12184_s20  }
  0x8a   : > { %s12185_s4 = smov [#allocation8]   ;;  %s12186_s2 = smov [#allocation11]  }
  0x8b   : > { %s631_s26 = sshll.u32 %s12185_s4, 4  ;;  %s656_s3 = sshll.u32 %s12186_s2, 4  ;;  %s632_s26 = int_to_ptr.vmem [resolvable:$true] %s631_s26  ;;  %s657_s3 = int_to_ptr.vmem [resolvable:$true] %s656_s3 }
  0x8c   : > { %s15451_s29 = sld [smem:[#allocation69_spill]] }
  0x92   : > { %s12039_s22 = scalar_lea.hbm %s15451_s29, 16 }
  0x93   : > { %p12040_p2 = scmp.ne.s32.totalorder %s15451_s29, %s12039_s22  ;;  %p12046_p0 = scmp.lt.u32.totalorder %s12039_s22, %s15451_s29 }
  0x95   : > { %p12042_p3 = pnand %p12040_p2, %p12357_p7 }
  0x97   : > { %p12043_p13 = pneg %p12042_p3 }
  0x99   : > { %p12048_p1 = pnand %p12046_p0, %p12043_p13 }
  0x9b   : > { %12051 = shalt.err (!%p12048_p1)
}
  0x9c   : > { %s12052_s25 = scalar_lea.vmem %s632_s26, 16  ;;  %s12059_s1 = scalar_lea.vmem %s632_s26, 32 }
  0x9d   : > { %p12053_p4 = scmp.ne.s32.totalorder %s632_s26, %s12052_s25  ;;  %p12060_p9 = scmp.lt.s32.totalorder %s632_s26, %s632_s26 }
  0x9e   : > { %p12061_p10 = scmp.lt.s32.totalorder %s12059_s1, %s12052_s25 }
  0x9f   : > { %p12055_p6 = pnand %p12053_p4, %p12357_p7 }
  0xa0   : > { %p12062_p11 = por %p12061_p10, %p12060_p9 }
  0xa1   : > { %p12056_p8 = pneg %p12055_p6 }
  0xa3   : > { %p12063_p12 = pnand %p12062_p11, %p12056_p8 }
  0xa5   : > { %12066 = shalt.err (!%p12063_p12)
}
  0xa6   : > { %11642 = dma.hbm_to_vmem [thread:$0]  (!%p12341_p5), %s15451_s29, 16, %s632_s26, [#allocation7]  }
  0xa7   : > { %s12067_s2 = scalar_lea.hbm %s15354_s11, 32 }
  0xa8   : > { %p12068_p2 = scmp.ne.s32.totalorder %s15354_s11, %s12067_s2  ;;  %p12074_p0 = scmp.lt.u32.totalorder %s12067_s2, %s15354_s11 }
  0xaa   : > { %p12070_p3 = pnand %p12068_p2, %p12357_p7 }
  0xac   : > { %p12071_p13 = pneg %p12070_p3 }
  0xae   : > { %p12076_p1 = pnand %p12074_p0, %p12071_p13 }
  0xb0   : > { %12079 = shalt.err (!%p12076_p1)
}
  0xb1   : > { %s12080_s25 = scalar_lea.vmem %s657_s3, 32  ;;  %p12088_p9 = scmp.lt.s32.totalorder %s657_s3, %s657_s3 }
  0xb2   : > { %p12081_p4 = scmp.ne.s32.totalorder %s657_s3, %s12080_s25  ;;  %p12089_p10 = scmp.lt.s32.totalorder %s12080_s25, %s12080_s25 }
  0xb4   : > { %p12083_p6 = pnand %p12081_p4, %p12357_p7  ;;  %p12090_p11 = por %p12089_p10, %p12088_p9 }
  0xb6   : > { %p12084_p8 = pneg %p12083_p6 }
  0xb8   : > { %p12091_p12 = pnand %p12090_p11, %p12084_p8 }
  0xba   : > { %12094 = shalt.err (!%p12091_p12)
}
  0xbb   : > { %11648 = dma.hbm_to_vmem [thread:$0]  (!%p12341_p5), %s15354_s11, 32, %s657_s3, [#allocation10]  }
  0xbc   : > { %s12187_s10 = smov [#allocation14]   ;;  %s12188_s19 = smov [#allocation15]  }
  0xbd   : > { %s685_s12 = sshll.u32 %s12187_s10, 4  ;;  %s704_s4 = sshll.u32 %s12188_s19, 4  ;;  %s686_s12 = int_to_ptr.vmem [resolvable:$true] %s685_s12  ;;  %s705_s4 = int_to_ptr.vmem [resolvable:$true] %s704_s4 }
  0xbe   : > { %s12095_s8 = scalar_lea.hbm %s15358_s15, 1792 }
  0xbf   : > { %p12096_p2 = scmp.ne.s32.totalorder %s15358_s15, %s12095_s8  ;;  %p12102_p0 = scmp.lt.u32.totalorder %s12095_s8, %s15358_s15 }
  0xc1   : > { %p12098_p3 = pnand %p12096_p2, %p12357_p7 }
  0xc3   : > { %p12099_p13 = pneg %p12098_p3 }
  0xc5   : > { %p12104_p1 = pnand %p12102_p0, %p12099_p13 }
  0xc7   : > { %12107 = shalt.err (!%p12104_p1)
}
  0xc8   : > { %s12108_s3 = scalar_lea.vmem %s686_s12, 1792  ;;  %p12116_p9 = scmp.lt.s32.totalorder %s686_s12, %s686_s12 }
  0xc9   : > { %p12109_p4 = scmp.ne.s32.totalorder %s686_s12, %s12108_s3  ;;  %p12117_p10 = scmp.lt.s32.totalorder %s12108_s3, %s12108_s3 }
  0xcb   : > { %p12111_p6 = pnand %p12109_p4, %p12357_p7  ;;  %p12118_p11 = por %p12117_p10, %p12116_p9 }
  0xcd   : > { %p12112_p8 = pneg %p12111_p6 }
  0xcf   : > { %p12119_p12 = pnand %p12118_p11, %p12112_p8 }
  0xd1   : > { %12122 = shalt.err (!%p12119_p12)
}
  0xd2   : > { %11654 = dma.hbm_to_vmem [thread:$0]  (!%p12341_p5), %s15358_s15, 1792, %s686_s12, [#allocation13], %s12183_s27, %s12183_s27, %s12184_s20  }
  0xd3   : > { %s12123_s5 = scalar_lea.hbm %s15361_s18, 1792 }
  0xd4   : > { %p12124_p2 = scmp.ne.s32.totalorder %s15361_s18, %s12123_s5  ;;  %p12130_p0 = scmp.lt.u32.totalorder %s12123_s5, %s15361_s18 }
  0xd6   : > { %p12126_p3 = pnand %p12124_p2, %p12357_p7 }
  0xd8   : > { %p12127_p13 = pneg %p12126_p3 }
  0xda   : > { %p12132_p1 = pnand %p12130_p0, %p12127_p13 }
  0xdc   : > { %12135 = shalt.err (!%p12132_p1)
}
  0xdd   : > { %s12136_s26 = scalar_lea.vmem %s705_s4, 1792  ;;  %p12144_p9 = scmp.lt.s32.totalorder %s705_s4, %s705_s4 }
  0xde   : > { %p12137_p4 = scmp.ne.s32.totalorder %s705_s4, %s12136_s26  ;;  %p12145_p10 = scmp.lt.s32.totalorder %s12136_s26, %s12136_s26 }
  0xe0   : > { %p12139_p6 = pnand %p12137_p4, %p12357_p7  ;;  %p12146_p11 = por %p12145_p10, %p12144_p9 }
  0xe2   : > { %p12140_p8 = pneg %p12139_p6 }
  0xe4   : > { %p12147_p12 = pnand %p12146_p11, %p12140_p8 }
  0xe6   : > { %12150 = shalt.err (!%p12147_p12)
}
  0xe7   : > { %11657 = dma.hbm_to_vmem [thread:$0]  (!%p12341_p5), %s15361_s18, 1792, %s705_s4, [#allocation16], %s12183_s27, %s12183_s27, %s12184_s20  }
  0xe8   : > { %p15452_p2 = scmp.ne.s32.totalorder %s15444_s6, 0 }
  0xea   : > { %743 = sbr.rel (%p15452_p2) target bundleno = 2267 (0x8db), region = 116 }
  0xf1   : > { %p15453_p7 = scmp.eq.s32.totalorder %s12324_s28, 0 }
  0xf3   : > { %12156 = dma.done.wait (%p15453_p7), [#allocation5], 1792   ;;  %p15454_p3 = pmov %p15453_p7 }
  0xf5   : > { %12158 = vsyncadd (%p15454_p3), [#allocation5], 4294965504  ;;  %p15455_p13 = pmov %p15454_p3 }
  0xf6   : > { %p15456_p0 = pmov %p15454_p3 }
  0xf7   : > { %12160 = dma.done.wait (%p15455_p13), [#allocation7], 32  }
  0xf8   : > { %12162 = vsyncadd (%p15456_p0), [#allocation7], 4294967264  ;;  %p15457_p1 = pmov %p15456_p0 }
  0xf9   : > { %p15458_p5 = pmov %p15456_p0 }
  0xfa   : > { %12164 = dma.done.wait (%p15457_p1), [#allocation10], 64  }
  0xfb   : > { %12166 = vsyncadd (%p15458_p5), [#allocation10], 4294967232  ;;  %p15459_p4 = pmov %p15456_p0 }
  0xfc   : > { %p15460_p6 = pmov %p15456_p0 }
  0xfd   : > { %12168 = dma.done.wait (%p15459_p4), [#allocation13], 3584  }
  0xfe   : > { %12170 = vsyncadd (%p15460_p6), [#allocation13], 4294963712  ;;  %p15461_p8 = pmov %p15456_p0 }
  0xff   : > { %p15462_p9 = pmov %p15456_p0 }
 0x100   : > { %12172 = dma.done.wait (%p15461_p8), [#allocation16], 1792  }
 0x101   : > { %12174 = vsyncadd (%p15462_p9), [#allocation16], 4294965504  ;;  %vm848_vm0 = vcmask 257024   ;;  %p837_p10 = scmp.lt.s32.totalorder %s12324_s28, 1  ;;  %v15376_v0 = vmov 0   ;;  %s15463_s27 = sld [smem:[#allocation62_spill]]  ;;  %v1219_v18 = vlaneseq }
 0x102   : > { %865 = vst.msk [vmem:[#allocation2 + $0x40] sm:$0xf] %vm848_vm0, %v15376_v0  ;;  %868 = vst.msk [vmem:[#allocation2 + $0x4c] sm:$0xf] %vm848_vm0, %v15376_v0  ;;  %1103 = vmatprep.mubr.bf16.mxu1 %v15376_v0  ;;  %s15464_s19 = sld [smem:[#allocation61_spill]]  ;;  %vm1058_vm1 = vcmask 261120  }
 0x103   : > { %871 = vst.msk [vmem:[#allocation2 + $0x58] sm:$0xf] %vm848_vm0, %v15376_v0  ;;  %873 = vst.msk [vmem:[#allocation2 + $0x60] sm:$0xf] %vm848_vm0, %v15376_v0  ;;  %s15647_s28 = smov (!%p837_p10, %s12324_s28), 1  ;;  %v11712_v13 = vld [vmem:[#allocation4 + $0x10] sm:$0xff]  }
 0x104   : > { %874 = vst.msk [vmem:[#allocation2 + $0x64] sm:$0xf] %vm848_vm0, %v15376_v0  ;;  %875 = vst.msk [vmem:[#allocation2 + $0x68] sm:$0xf] %vm848_vm0, %v15376_v0  ;;  %s10703_s23 = sshll.u32 %s15647_s28, 5  ;;  %v11713_v14 = vld [vmem:[#allocation4 + $0x18] sm:$0xff]  }
 0x105   : > { %876 = vst.msk [vmem:[#allocation2 + $0x6c] sm:$0xf] %vm848_vm0, %v15376_v0  ;;  %877 = vst.msk [vmem:[#allocation2 + $0x70] sm:$0xf] %vm848_vm0, %v15376_v0  ;;  %v11714_v15 = vld [vmem:[#allocation4] sm:$0xff]   ;;  %v11715_v16 = vld [vmem:[#allocation4 + $0x8] sm:$0xff]  }
 0x106   : > { %878 = vst.msk [vmem:[#allocation2 + $0x74] sm:$0xf] %vm848_vm0, %v15376_v0  ;;  %879 = vst.msk [vmem:[#allocation2 + $0x78] sm:$0xf] %vm848_vm0, %v15376_v0  ;;  %10893 = vmatprep.subr.bf16.mxu0 %v11714_v15  ;;  %v12660_v17 = vld [vmem:[#allocation4 + $0x20] sm:$0xff]   ;;  %v1220_v23 = vshrl.u32 %v1219_v18, 7 }
 0x107   : > { %880 = vst.msk [vmem:[#allocation2 + $0x7c] sm:$0xf] %vm848_vm0, %v15376_v0  ;;  %881 = vst.msk [vmem:[#allocation2 + $0x80] sm:$0xf] %vm848_vm0, %v15376_v0  ;;  %v11696_v1 = vld [vmem:[%s15463_s27 + $0x4] ss:$16 sps:$4 sm:$0xff]   ;;  %10894 = vmatpush3.bf16.msra.mxu0 %v11714_v15 }
 0x108   : > { %882 = vst.msk [vmem:[#allocation2 + $0x84] sm:$0xf] %vm848_vm0, %v15376_v0  ;;  %883 = vst.msk [vmem:[#allocation2 + $0x88] sm:$0xf] %vm848_vm0, %v15376_v0  ;;  %v11698_v2 = vld [vmem:[%s15463_s27] ss:$16 sps:$4 sm:$0xff]   ;;  %s841_s2 = scalar_lea.vmem %s15464_s19, %s10703_s23  ;;  %1071 = vmatprep.subr.bf16.mxu1 %v11696_v1  ;;  %10895 = vmatprep.subr.bf16.mxu0 %v11715_v16 }
 0x109   : > { %884 = vst.msk [vmem:[#allocation2 + $0x8c] sm:$0xf] %vm848_vm0, %v15376_v0  ;;  %885 = vst.msk [vmem:[#allocation2 + $0x90] sm:$0xf] %vm848_vm0, %v15376_v0  ;;  %v11699_v3 = vld [vmem:[%s15463_s27 + $0x24] ss:$16 sps:$4 sm:$0xff]   ;;  %1072 = vmatpush1.bf16.msra.mxu1 %v11698_v2 }
 0x10a   : > { %886 = vst.msk [vmem:[#allocation2 + $0x94] sm:$0xf] %vm848_vm0, %v15376_v0  ;;  %887 = vst.msk [vmem:[#allocation2 + $0x98] sm:$0xf] %vm848_vm0, %v15376_v0  ;;  %v11701_v4 = vld [vmem:[%s15463_s27 + $0x20] ss:$16 sps:$4 sm:$0xff]   ;;  %1073 = vmatprep.subr.bf16.mxu1 %v11699_v3 }
 0x10b   : > { %888 = vst.msk [vmem:[#allocation2 + $0x9c] sm:$0xf] %vm848_vm0, %v15376_v0  ;;  %889 = vst.msk [vmem:[#allocation2 + $0xa0] sm:$0xf] %vm848_vm0, %v15376_v0  ;;  %v11702_v5 = vld [vmem:[%s841_s2] sm:$0xff]   ;;  %v11703_v10 = vld [vmem:[%s841_s2 + $0x8] sm:$0xff]   ;;  %10896 = vmatpush3.bf16.msra.mxu0 %v11715_v16 }
 0x10c   : > { %890 = vst.msk [vmem:[#allocation2 + $0xa4] sm:$0xf] %vm848_vm0, %v15376_v0  ;;  %891 = vst.msk [vmem:[#allocation2 + $0xa8] sm:$0xf] %vm848_vm0, %v15376_v0  ;;  %v11706_v6 = vld [vmem:[%s15463_s27 + $0x8] ss:$16 sps:$4 sm:$0xff]   ;;  %10905 = vmatprep.subr.bf16.mxu0 %v12660_v17 }
 0x10d   : > { %892 = vst.msk [vmem:[#allocation2 + $0xac] sm:$0xf] %vm848_vm0, %v15376_v0  ;;  %893 = vst.msk [vmem:[#allocation2 + $0xb0] sm:$0xf] %vm848_vm0, %v15376_v0  ;;  %1074 = vmatpush1.bf16.msra.mxu1 %v11701_v4  ;;  %v11708_v7 = vld [vmem:[%s15463_s27 + $0xc] ss:$16 sps:$4 sm:$0xff]  }
 0x10e   : > { %894 = vst.msk [vmem:[#allocation2 + $0xb4] sm:$0xf] %vm848_vm0, %v15376_v0  ;;  %895 = vst.msk [vmem:[#allocation2 + $0xb8] sm:$0xf] %vm848_vm0, %v15376_v0  ;;  %1144 = vmatprep.subr.bf16.mxu1 %v11708_v7  ;;  %v11709_v8 = vld [vmem:[%s15463_s27 + $0x28] ss:$16 sps:$4 sm:$0xff]  }
 0x10f   : > { %896 = vst.msk [vmem:[#allocation2 + $0xbc] sm:$0xf] %vm848_vm0, %v15376_v0  ;;  %898 = vst.msk [vmem:[#allocation2 + $0xc4] sm:$0xf] %vm848_vm0, %v15376_v0  ;;  %v11711_v9 = vld [vmem:[%s15463_s27 + $0x2c] ss:$16 sps:$4 sm:$0xff]  }
 0x110   : > { %901 = vst.msk [vmem:[#allocation2 + $0xd0] sm:$0xf] %vm848_vm0, %v15376_v0  ;;  %904 = vst.msk [vmem:[#allocation2 + $0xdc] sm:$0xf] %vm848_vm0, %v15376_v0  ;;  %10061 = vmatmul.mubr.msk.bf16.vlgmr.msra.gmra.mrb[0].mxu1 %vm1058_vm1, %v11702_v5  ;;  %v11704_v11 = vld [vmem:[%s841_s2 + $0x10] sm:$0xff]   ;;  %v11705_v12 = vld [vmem:[%s841_s2 + $0x18] sm:$0xff]  }
 0x111   : > { %1113 = vmatprep.mubr.bf16.mxu1 %v15376_v0  ;;  %1145 = vmatpush1.bf16.msra.mxu1 %v11706_v6  ;;  %v2074_v19 = vld [vmem:[#allocation2 + $0x60] sm:$0xc]  ;;  %v2076_v20 = vld [vmem:[#allocation2 + $0x6c] sm:$0xc]  ;;  %v2078_v24 = vld [vmem:[#allocation2 + $0x78] sm:$0xc] }
 0x112   : > { %1146 = vmatprep.subr.bf16.mxu1 %v11711_v9  ;;  %v2094_v21 = vshrl.u32 %v2074_v19, 16  ;;  %v2097_v22 = vshll.u32 %v2074_v19, 16  ;;  %v2112_v25 = vshrl.u32 %v2076_v20, 16  ;;  %v2115_v26 = vshll.u32 %v2076_v20, 16  ;;  %v2080_v29 = vld [vmem:[#allocation2 + $0x84] sm:$0xc] }
 0x113   : > { %v12663_v30 = vsub.s32 0, %v1220_v23  ;;  %v2130_v31 = vshrl.u32 %v2078_v24, 16  ;;  %v2133_v32 = vshll.u32 %v2078_v24, 16  ;;  %v2082_v33 = vld [vmem:[#allocation2 + $0x90] sm:$0xc]  ;;  %v2148_v39 = vshrl.u32 %v2080_v29, 16 }
 0x114   : > { %v2096_v27 = vrot.slane %v2094_v21, 6  ;;  %v2099_v28 = vrot.slane %v2097_v22, 7  ;;  %v12665_v34 = vld [vmem:[#allocation2 + $0x60] sm:$0x8]  ;;  %v12667_v35 = vld [vmem:[#allocation2 + $0x6c] sm:$0x8] }
 0x115   : > { %1147 = vmatpush1.bf16.msra.mxu1 %v11709_v8  ;;  %15465 = vst [vmem:[#allocation23_spill] sm:$0xff] %v12663_v30  ;;  %v2084_v36 = vld [vmem:[#allocation2 + $0x9c] sm:$0xc]  ;;  %v2114_v37 = vrot.slane %v2112_v25, 6  ;;  %v2117_v38 = vrot.slane %v2115_v26, 7  ;;  %v2151_v40 = vshll.u32 %v2080_v29, 16 }
 0x116   : > { %10881 = vmatprep.subr.bf16.mxu1 %v11712_v13  ;;  %v2086_v41 = vld [vmem:[#allocation2 + $0xa8] sm:$0xc]  ;;  %v12669_v42 = vsub.s32 1, %v1220_v23  ;;  %v2100_v43 = vor.u32 %v2099_v28, %v2096_v27  ;;  %v2166_v44 = vshrl.u32 %v2082_v33, 16  ;;  %v2169_v45 = vshll.u32 %v2082_v33, 16  ;;  %s15469_s10 = sld [smem:[#allocation63_spill]] }
 0x117   : > { %v2132_v46 = vrot.slane %v2130_v31, 6  ;;  %v2135_v47 = vrot.slane %v2133_v32, 7  ;;  %v2184_v48 = vshrl.u32 %v2084_v36, 16  ;;  %v2187_v49 = vshll.u32 %v2084_v36, 16  ;;  %v2088_v50 = vld [vmem:[#allocation2 + $0xb4] sm:$0xc] }
 0x118   : > { %10062 = vmatmul.mubr.msk.bf16.gmra.mrb[4].mxu1 %vm1058_vm1, %v11703_v10  ;;  %15466 = vst [vmem:[#allocation24_spill] sm:$0xff] %v12669_v42  ;;  %v2202_v53 = vshrl.u32 %v2086_v41, 16  ;;  %v2205_v54 = vshll.u32 %v2086_v41, 16  ;;  %v2118_v55 = vor.u32 %v2117_v38, %v2114_v37  ;;  %v2150_v56 = vrot.slane %v2148_v39, 6  ;;  %v12676_v4 = vld [vmem:[#allocation2 + $0x78] sm:$0x8] }
 0x119   : > { %1123 = vmatprep.mubr.bf16.mxu1 %v15376_v0  ;;  %v2153_v57 = vrot.slane %v2151_v40, 7  ;;  %v2519_v58 = vshrl.u32 %v12665_v34, 16  ;;  %v2168_v59 = vrot.slane %v2166_v44, 6  ;;  %v2171_v60 = vrot.slane %v2169_v45, 7  ;;  %v12693_v22 = vld [vmem:[#allocation2 + $0xa8] sm:$0x8] }
 0x11a   : > { %v2220_v61 = vshrl.u32 %v2088_v50, 16  ;;  %v2223_v62 = vshll.u32 %v2088_v50, 16  ;;  %v12674_v63 = vrot.slane %v2100_v43, 4  ;;  %v2136_v1 = vor.u32 %v2135_v47, %v2132_v46  ;;  %v12695_v23 = vld [vmem:[#allocation2 + $0xb4] sm:$0x8]  ;;  %s15470_s5 = sld [smem:[#allocation64_spill]] }
 0x11b   : > { %v2186_v2 = vrot.slane %v2184_v48, 6  ;;  %v2189_v3 = vrot.slane %v2187_v49, 7  ;;  %v2204_v6 = vrot.slane %v2202_v53, 6  ;;  %v2207_v7 = vrot.slane %v2205_v54, 7  ;;  %v12709_v38 = vld [vmem:[#allocation2 + $0x68] sm:$0x1] }
 0x11c   : > { %v12680_v8 = vrot.slane %v2118_v55, 4  ;;  %v2154_v9 = vor.u32 %v2153_v57, %v2150_v56  ;;  %v2222_v15 = vrot.slane %v2220_v61, 6  ;;  %v2225_v16 = vrot.slane %v2223_v62, 7  ;;  %15467 = vst [vmem:[#allocation25_spill] sm:$0xff] %v12709_v38  ;;  %v12715_v43 = vld [vmem:[#allocation2 + $0x74] sm:$0x1] }
 0x11d   : > { %v12691_v20 = vrot.slane %v2136_v1, 4  ;;  %v2190_v21 = vor.u32 %v2189_v3, %v2186_v2  ;;  %v2208_v24 = vor.u32 %v2207_v7, %v2204_v6  ;;  %v2545_v25 = vshrl.u32 %v12676_v4, 16  ;;  %15468 = vst [vmem:[#allocation26_spill] sm:$0xff] %v12715_v43  ;;  %v1217_v45 = vld [vmem:[%s15469_s10] sm:$0x3]  ;;  %s12190_s8 = smov 96  }
 0x11e   : > { %v12699_v27 = vrot.slane %v2154_v9, 4  ;;  %v2226_v33 = vor.u32 %v2225_v16, %v2222_v15  ;;  %v2887_v44 = vshll.u32 %v12709_v38, 16  ;;  %v2901_v50 = vshll.u32 %v12715_v43, 16  ;;  %v3276_v53 = vld [vmem:[#allocation2 + $0x68] sm:$0x3]  ;;  %s12191_s22 = smov 64  }
 0x11f   : > { %v12711_v39 = vrot.slane %v2190_v21, 4  ;;  %v12724_v47 = vrot.slane %v2208_v24, 4  ;;  %v12726_v48 = vrot.slane %v2545_v25, 11  ;;  %v2597_v54 = vshrl.u32 %v12693_v22, 16  ;;  %v12733_v56 = vld [vmem:[#allocation2 + $0x80] sm:$0x1] }
 0x120   : > { %10063 = vmatmul.mubr.msk.bf16.gmra.mrb[8].mxu1 %vm1058_vm1, %v11704_v11  ;;  %v1245_v46 = vld [vmem:[%s15470_s5] sm:$0x3]  ;;  %v2610_v55 = vshrl.u32 %v12695_v23, 16  ;;  %15471 = vst [vmem:[#allocation27_spill] sm:$0xff] %v12733_v56  ;;  %v3277_v57 = vld [vmem:[#allocation2 + $0x74] sm:$0x3]  ;;  %v12753_v16 = vrot.slane %v1217_v45, %v12663_v30 }
 0x121   : > { %1133 = vmatprep.mubr.bf16.mxu1 %v15376_v0  ;;  %v12741_v61 = vld [vmem:[#allocation2 + $0x8c] sm:$0x1]  ;;  %v2915_v62 = vshll.u32 %v12733_v56, 16  ;;  %v12744_v1 = vrot.slane %v2887_v44, 5  ;;  %v12747_v3 = vld [vmem:[#allocation2 + $0x98] sm:$0x1]  ;;  %v12756_v21 = vrot.slane %v1245_v46, %v12663_v30 }
 0x122   : > { %15472 = vst [vmem:[#allocation28_spill] sm:$0xff] %v12741_v61  ;;  %v2929_v2 = vshll.u32 %v12741_v61, 16  ;;  %15474 = vst [vmem:[#allocation30_spill] sm:$0xff] %v12747_v3  ;;  %v3297_v6 = vshrl.u32 %v3276_v53, 16  ;;  %v3300_v7 = vshll.u32 %v3276_v53, 16  ;;  %v12749_v9 = vrot.slane %v2901_v50, 5 }
 0x123   : > { %15473 = vst [vmem:[#allocation29_spill] sm:$0xff] %v12744_v1  ;;  %v3318_v15 = vshll.u32 %v3277_v57, 16  ;;  %v12758_v24 = vrot.slane %v2597_v54, 11  ;;  %v12760_v25 = vrot.slane %v2610_v55, 11  ;;  %v12786_v50 = vld [vmem:[#allocation2 + $0xb0] sm:$0x1] }
 0x124   : > { %v12769_v53 = vrot.slane %v2929_v2, 5  ;;  %v12774_v54 = vrot.slane %v3300_v7, 6  ;;  %v12784_v2 = vrot.slane %v1217_v45, %v12669_v42  ;;  %15483 = vst [vmem:[#allocation39_spill] sm:$0xff] %v12786_v50  ;;  %v12789_v7 = vrot.slane %v1245_v46, %v12669_v42  ;;  %v3281_v42 = vld [vmem:[#allocation2 + $0xa4] sm:$0x3]  ;;  %s15578_s26 = sld [smem:[#allocation65_spill]] }
 0x125   : > { %v3282_v61 = vld [vmem:[#allocation2 + $0xb0] sm:$0x3]  ;;  %vm1903_vm2 = vcmask 1040384   ;;  %vm2266_vm3 = vcmask 1044484   ;;  %v3390_v38 = vshll.u32 %v3281_v42, 16  ;;  %vm3127_vm13 = vcmask 1042432  }
 0x126   : > { %15477 = vst [vmem:[#allocation33_spill] sm:$0xff] %v12769_v53  ;;  %15479 = vst [vmem:[#allocation35_spill] sm:$0xff] %v12774_v54  ;;  %v3405_v30 = vshrl.u32 %v3282_v61, 16  ;;  %vm2090_vm4 = vsmask.f32 1280  ;;  %vm3128_vm14 = vcmask 1046532  }
 0x127   : > { %vm2091_vm5 = vsmask.f32 5392  ;;  %vm12877_vm6 = vmor %vm1903_vm2, %vm2266_vm3  ;;  %vm2515_vm8 = vsmask.f32 256  ;;  %vm2516_vm9 = vsmask.f32 4368 }
 0x128   : > { %10064 = vmatmul.mubr.msk.bf16.gmra.mrb[12].mxu1 %vm1058_vm1, %v11705_v12  ;;  %vm12938_vm7 = vmor %vm2090_vm4, %vm2091_vm5  ;;  %vm2874_vm11 = vsmask.f32 3328  ;;  %vm2875_vm12 = vsmask.f32 7440  ;;  %vm3284_vm4 = vsmask.f32 2304 }
 0x129   : > { %1176 = vmatprep.mubr.bf16.mxu1 %v15376_v0  ;;  %vm13043_vm10 = vmor %vm2515_vm8, %vm2516_vm9  ;;  %vm3285_vm5 = vsmask.f32 6416  ;;  %vm922_vm9 = vcmask 523264   ;;  %s15579_s23 = sld [smem:[#allocation66_spill]]  ;;  %s10704_s6 = sshll.u32 %s15647_s28, 9 }
 0x12a   : > { %vm13178_vm15 = vmor %vm2874_vm11, %vm2875_vm12  ;;  %vm1634_vm11 = vcmask 1045504   ;;  %s13704_s20 = scalar_lea.vmem %s15367_s24, %s10704_s6  ;;  %s15640_s1 = sld [smem:[#allocation72_spill]] }
 0x12b   : > { %vm13218_vm3 = vmor %vm3127_vm13, %vm3128_vm14  ;;  %s15641_s2 = sld [smem:[#allocation73_spill]]  ;;  %s15642_s25 = sld [smem:[#allocation74_spill]] }
 0x12c   : > { %vm13356_vm8 = vmor %vm3284_vm4, %vm3285_vm5  ;;  %s15643_s3 = sld [smem:[#allocation75_spill]] }
 0x130   : > { %10065 = vmatmul.mubr.msk.bf16.vlgmr.msra.gmra.mrb[16].mxu1 %vm1058_vm1, %v11702_v5  ;;  %v12678_v5 = vld [vmem:[#allocation2 + $0x84] sm:$0x8] }
 0x131   : > { %1186 = vmatprep.mubr.bf16.mxu1 %v15376_v0  ;;  %10882 = vmatpush3.bf16.msra.mxu1 %v11712_v13  ;;  %v12687_v13 = vld [vmem:[#allocation2 + $0x9c] sm:$0x8]  ;;  %v2558_v26 = vshrl.u32 %v12678_v5, 16 }
 0x132   : > { %10883 = vmatprep.subr.bf16.mxu1 %v11713_v14  ;;  %v2584_v37 = vshrl.u32 %v12687_v13, 16 }
 0x133   : > { %v12728_v49 = vrot.slane %v2558_v26, 11  ;;  %v12762_v26 = vld [vmem:[#allocation2 + $0xa4] sm:$0x1] }
 0x134   : > { %15475 = vst [vmem:[#allocation31_spill] sm:$0xff] %v12762_v26 }
 0x135   : > { %10884 = vmatpush3.bf16.msra.mxu1 %v11713_v14  ;;  %v2172_v14 = vor.u32 %v2171_v60, %v2168_v59  ;;  %v12739_v60 = vrot.slane %v2584_v37, 11  ;;  %v2957_v37 = vshll.u32 %v12762_v26, 16 }
 0x137   : > { %v12705_v32 = vrot.slane %v2172_v14, 4  ;;  %v3315_v14 = vshrl.u32 %v3277_v57, 16  ;;  %v12791_v19 = vrot.slane %v2957_v37, 5 }
 0x138   : > { %10066 = vmatmul.mubr.msk.bf16.gmra.mrb[20].mxu1 %vm1058_vm1, %v11703_v10  ;;  %v12682_v10 = vrot.slane %v2519_v58, 11  ;;  %v12735_v58 = vrot.slane %v2226_v33, 4  ;;  %v3278_v33 = vld [vmem:[#allocation2 + $0x80] sm:$0x3] }
 0x139   : > { %1196 = vmatprep.mubr.bf16.mxu1 %v15376_v0  ;;  %v12778_v40 = vrot.slane %v3315_v14, 5  ;;  %v3333_v29 = vshrl.u32 %v3278_v33, 16  ;;  %v3336_v57 = vshll.u32 %v3278_v33, 16  ;;  %15484 = vst [vmem:[#allocation40_spill] sm:$0xff] %v12791_v19  ;;  %v12793_v14 = vld [vmem:[#allocation2 + $0xbc] sm:$0x1] }
 0x13a   : > { %15485 = vst [vmem:[#allocation41_spill] sm:$0xff] %v12793_v14  ;;  %v3280_v33 = vld [vmem:[#allocation2 + $0x98] sm:$0x3]  ;;  %v2985_v37 = vshll.u32 %v12793_v14, 16 }
 0x13b   : > { %15481 = vst [vmem:[#allocation37_spill] sm:$0xff] %v12778_v40  ;;  %v12805_v56 = vrot.slane %v3333_v29, 5  ;;  %v12810_v51 = vrot.slane %v3336_v57, 6  ;;  %v3372_v54 = vshll.u32 %v3280_v33, 16  ;;  %v3408_v40 = vshll.u32 %v3282_v61, 16 }
 0x13d   : > { %15486 = vst [vmem:[#allocation42_spill] sm:$0xff] %v12805_v56  ;;  %15487 = vst [vmem:[#allocation43_spill] sm:$0xff] %v12810_v51  ;;  %v12834_v57 = vrot.slane %v3372_v54, 6 }
 0x13f   : > { %15493 = vst [vmem:[#allocation49_spill] sm:$0xff] %v12834_v57 }
 0x140   : > { %10067 = vmatmul.mubr.msk.bf16.gmra.mrb[24].mxu1 %vm1058_vm1, %v11704_v11  ;;  %v2532_v11 = vshrl.u32 %v12667_v35, 16 }
 0x141   : > { %1206 = vmatprep.mubr.bf16.mxu1 %v15376_v0  ;;  %v12772_v0 = vrot.slane %v3297_v6, 5  ;;  %v3279_v6 = vld [vmem:[#allocation2 + $0x8c] sm:$0x3] }
 0x142   : > { %v12703_v31 = vrot.slane %v2532_v11, 11  ;;  %v2943_v11 = vshll.u32 %v12747_v3, 16  ;;  %v3354_v46 = vshll.u32 %v3279_v6, 16  ;;  %v3387_v3 = vshrl.u32 %v3281_v42, 16 }
 0x143   : > { %15478 = vst [vmem:[#allocation34_spill] sm:$0xff] %v12772_v0  ;;  %v3369_v0 = vshrl.u32 %v3280_v33, 16 }
 0x144   : > { %v12776_v41 = vrot.slane %v2943_v11, 5  ;;  %v12830_v33 = vrot.slane %v3354_v46, 6  ;;  %v12845_v46 = vrot.slane %v3408_v40, 6 }
 0x146   : > { %15480 = vst [vmem:[#allocation36_spill] sm:$0xff] %v12776_v41  ;;  %15491 = vst [vmem:[#allocation47_spill] sm:$0xff] %v12830_v33 }
 0x147   : > { %15497 = vst [vmem:[#allocation53_spill] sm:$0xff] %v12845_v46 }
 0x148   : > { %10068 = vmatmul.mubr.msk.bf16.gmra.mrb[28].mxu1 %vm1058_vm1, %v11705_v12  ;;  %v12685_v12 = vld [vmem:[#allocation2 + $0x90] sm:$0x8] }
 0x149   : > { %v2571_v36 = vshrl.u32 %v12685_v12, 16 }
 0x14b   : > { %v12737_v59 = vrot.slane %v2571_v36, 11  ;;  %v12764_v36 = vrot.slane %v2915_v62, 5  ;;  %v12780_v62 = vrot.slane %v3318_v15, 6  ;;  %v2971_v15 = vshll.u32 %v12786_v50, 16 }
 0x14d   : > { %15476 = vst [vmem:[#allocation32_spill] sm:$0xff] %v12764_v36  ;;  %15482 = vst [vmem:[#allocation38_spill] sm:$0xff] %v12780_v62  ;;  %v12816_v62 = vrot.slane %v2971_v15, 5  ;;  %v12843_v15 = vrot.slane %v3405_v30, 5 }
 0x14f   : > { %15488 = vst [vmem:[#allocation44_spill] sm:$0xff] %v12816_v62  ;;  %15496 = vst [vmem:[#allocation52_spill] sm:$0xff] %v12843_v15 }
 0x1e3   : > { %v1105_v55 = vpop.f32.mrb[0].mxu1 }
 0x1e4   : > { %v1229_v44 = vmul.f32 %v12753_v16, %v1105_v55  ;;  %v1107_v28 = vpop.f32.mrb[1].mxu1  ;;  %v3351_v55 = vshrl.u32 %v3279_v6, 16 }
 0x1e5   : > { %v1109_v11 = vpop.f32.mrb[2].mxu1 }
 0x1e6   : > { %v1257_v18 = vadd.f32 %v12756_v21, %v1229_v44  ;;  %v1231_v45 = vmul.f32 %v12753_v16, %v1109_v11  ;;  %v1111_v52 = vpop.f32.mrb[3].mxu1  ;;  %v12821_v43 = vrot.slane %v3351_v55, 5  ;;  %v12832_v55 = vrot.slane %v3369_v0, 5 }
 0x1e7   : > { %v1230_v0 = vmul.f32 %v12784_v2, %v1107_v28  ;;  %v1232_v54 = vmul.f32 %v12784_v2, %v1111_v52 }
 0x1e8   : > { %v12807_v44 = vmax.f32 %v1257_v18, 0.0  ;;  %v1259_v11 = vadd.f32 %v12756_v21, %v1231_v45  ;;  %v12818_v45 = vrot.slane %v2985_v37, 5  ;;  %15490 = vst [vmem:[#allocation46_spill] sm:$0xff] %v12821_v43  ;;  %v3283_v37 = vld [vmem:[#allocation2 + $0xbc] sm:$0x3]  ;;  %15492 = vst [vmem:[#allocation48_spill] sm:$0xff] %v12832_v55 }
 0x1e9   : > { %v3423_v56 = vshrl.u32 %v3283_v37, 16  ;;  %v15503_v43 = vrot.slane %v12665_v34, 11 }
 0x1ea   : > { %v12812_v41 = vmax.f32 %v1259_v11, 0.0  ;;  %v2057_v29 = vpack.c.bf16 %v12807_v44, %v12807_v44  ;;  %15489 = vst [vmem:[#allocation45_spill] sm:$0xff] %v12818_v45  ;;  %v12838_v45 = vrot.slane %v3390_v38, 6 }
 0x1eb   : > { %v1115_v18 = vpop.f32.mrb[4].mxu1  ;;  %v12881_v28 = vrot.slane %v3423_v56, 5 }
 0x1ec   : > { %v1233_v6 = vmul.f32 %v12753_v16, %v1115_v18  ;;  %4763 = vrot.lane.b32.xlu0 %v2057_v29, %s12190_s8  ;;  %2066 = vst.msk [vmem:[#allocation2 + $0x64] sm:$0xf] %vm848_vm0, %v2057_v29  ;;  %v1117_v42 = vpop.f32.mrb[5].mxu1  ;;  %v2058_v61 = vpack.c.bf16 %v12812_v41, %v12812_v41  ;;  %v12836_v18 = vrot.slane %v3387_v3, 5  ;;  %15495 = vst [vmem:[#allocation51_spill] sm:$0xff] %v12838_v45  ;;  %v3426_v3 = vshll.u32 %v3283_v37, 16 }
 0x1ed   : > { %v1119_v11 = vpop.f32.mrb[6].mxu1  ;;  %v1234_v40 = vmul.f32 %v12784_v2, %v1117_v42  ;;  %15501 = vst [vmem:[#allocation55_spill] sm:$0xff] %v12881_v28 }
 0x1ee   : > { %15494 = vst [vmem:[#allocation50_spill] sm:$0xff] %v12836_v18  ;;  %v1261_v29 = vadd.f32 %v12756_v21, %v1233_v6  ;;  %v1235_v26 = vmul.f32 %v12753_v16, %v1119_v11  ;;  %v1121_v62 = vpop.f32.mrb[7].mxu1  ;;  %2067 = vst.msk [vmem:[#allocation2 + $0x70] sm:$0xf] %vm848_vm0, %v2058_v61 }
 0x1ef   : > { %v1236_v11 = vmul.f32 %v12784_v2, %v1121_v62  ;;  %v12870_v62 = vadd.f32 %v12789_v7, %v1230_v0  ;;  %v12891_v46 = vadd.f32 %v12789_v7, %v1234_v40 }
 0x1f0   : > { %v12849_v51 = vmax.f32 %v1261_v29, 0.0  ;;  %v1263_v38 = vadd.f32 %v12756_v21, %v1235_v26  ;;  %4765 = vrot.lane.b32.xlu0 %v2058_v61, %s12190_s8  ;;  %v12873_v29 = vadd.f32 %v12789_v7, %v1232_v54  ;;  %v12883_v61 = vrot.slane %v3426_v3, 6 }
 0x1f1   : > { %v12894_v56 = vadd.f32 %v12789_v7, %v1236_v11 }
 0x1f2   : > { %v12861_v37 = vmax.f32 %v1263_v38, 0.0  ;;  %v2059_v26 = vpack.c.bf16 %v12849_v51, %v12849_v51  ;;  %v15498_v38 = vmov 0  ;;  %15502 = vst [vmem:[#allocation56_spill] sm:$0xff] %v12883_v61 }
 0x1f3   : > { %v1125_v30 = vpop.f32.mrb[8].mxu1  ;;  %v2075_v52 = vld [vmem:[#allocation2 + $0x64] sm:$0x7]  ;;  %v15499_v38 = vsel %vm12877_vm6, 4294967295, %v15498_v38 }
 0x1f4   : > { %15500 = vst [vmem:[#allocation54_spill] sm:$0xff] %v15499_v38  ;;  %v1237_v42 = vmul.f32 %v12753_v16, %v1125_v30  ;;  %4767 = vrot.lane.b32.xlu1 %v2059_v26, %s12190_s8  ;;  %2068 = vst.msk [vmem:[#allocation2 + $0x7c] sm:$0xf] %vm848_vm0, %v2059_v26  ;;  %v1127_v0 = vpop.f32.mrb[9].mxu1  ;;  %v2060_v54 = vpack.c.bf16 %v12861_v37, %v12861_v37  ;;  %v2270_v6 = vrot.slane %v2075_v52, 7  ;;  %v2103_v15 = vshrl.u32 %v2075_v52, 16 }
 0x1f5   : > { %v1238_v3 = vmul.f32 %v12784_v2, %v1127_v0  ;;  %v1129_v55 = vpop.f32.mrb[10].mxu1  ;;  %v2077_v30 = vld [vmem:[#allocation2 + $0x70] sm:$0x7]  ;;  %v2106_v57 = vshll.u32 %v2075_v52, 16 }
 0x1f6   : > { %v1265_v18 = vadd.f32 %v12756_v21, %v1237_v42  ;;  %v1239_v26 = vmul.f32 %v12753_v16, %v1129_v55  ;;  %v1131_v45 = vpop.f32.mrb[11].mxu1  ;;  %2069 = vst.msk [vmem:[#allocation2 + $0x88] sm:$0xf] %vm848_vm0, %v2060_v54  ;;  %v2271_v40 = vsel %vm12877_vm6, %v15503_v43, %v2270_v6  ;;  %v2274_v33 = vrot.slane %v2077_v30, 7 }
 0x1f7   : > { %v12905_v11 = vadd.f32 %v12789_v7, %v1238_v3  ;;  %v1240_v0 = vmul.f32 %v12784_v2, %v1131_v45  ;;  %v2105_v14 = vrot.slane %v2103_v15, 6  ;;  %v2108_v52 = vrot.slane %v2106_v57, 7 }
 0x1f8   : > { %v12908_v50 = vmax.f32 %v1265_v18, 0.0  ;;  %v1267_v55 = vadd.f32 %v12756_v21, %v1239_v26  ;;  %4769 = vrot.lane.b32.xlu1 %v2060_v54, %s12190_s8  ;;  %v15504_v42 = vrot.slane %v12667_v35, 11  ;;  %v2121_v43 = vshrl.u32 %v2077_v30, 16 }
 0x1f9   : > { %v12918_v3 = vadd.f32 %v12789_v7, %v1240_v0  ;;  %v2124_v35 = vshll.u32 %v2077_v30, 16  ;;  %v15505_v57 = vmov 0 }
 0x1fa   : > { %v2275_v34 = vsel %vm12877_vm6, %v15504_v42, %v2274_v33  ;;  %v12922_v15 = vmax.f32 %v1267_v55, 0.0  ;;  %v2061_v18 = vpack.c.bf16 %v12908_v50, %v12908_v50  ;;  %v2123_v54 = vrot.slane %v2121_v43, 6 }
 0x1fb   : > { %v10093_v45 = vcombine.low %v2271_v40, %v2275_v34  ;;  %v1135_v6 = vpop.f32.mrb[12].mxu1  ;;  %v2109_v40 = vor.u32 %v2108_v52, %v2105_v14  ;;  %v2079_v0 = vld [vmem:[#allocation2 + $0x7c] sm:$0x7]  ;;  %v15506_v57 = vsel %vm12938_vm7, 4294967295, %v15505_v57  ;;  %v2126_v14 = vrot.slane %v2124_v35, 7 }
 0x1fc   : > { %v1241_v55 = vmul.f32 %v12753_v16, %v1135_v6  ;;  %4771 = vrot.lane.b32.xlu0 %v2061_v18, %s12190_s8  ;;  %2070 = vst.msk [vmem:[#allocation2 + $0x94] sm:$0xf] %vm848_vm0, %v2061_v18  ;;  %v1137_v30 = vpop.f32.mrb[13].mxu1  ;;  %v2062_v43 = vpack.c.bf16 %v12922_v15, %v12922_v15  ;;  %15507 = vst [vmem:[#allocation57_spill] sm:$0xff] %v15506_v57  ;;  %v12942_v52 = vld [vmem:[#allocation2 + $0x64] sm:$0xf] }
 0x1fd   : > { %10885 = vmatprep.mubr.msk.bf16.mxu1 %vm1058_vm1, %v10093_v45  ;;  %v1242_v45 = vmul.f32 %v12784_v2, %v1137_v30  ;;  %v1139_v6 = vpop.f32.mrb[14].mxu1  ;;  %v2081_v34 = vld [vmem:[#allocation2 + $0x88] sm:$0x7]  ;;  %v2278_v42 = vrot.slane %v2079_v0, 7  ;;  %v2139_v33 = vshrl.u32 %v2079_v0, 16  ;;  %v2142_v18 = vshll.u32 %v2079_v0, 16 }
 0x1fe   : > { %v1284_v26 = vmax.f32 %v12918_v3, 0.0  ;;  %v1269_v28 = vadd.f32 %v12756_v21, %v1241_v55  ;;  %v1243_v61 = vmul.f32 %v12753_v16, %v1139_v6  ;;  %4773 = vrot.lane.b32.xlu1 %v2062_v43, %s12190_s8  ;;  %2071 = vst.msk [vmem:[#allocation2 + $0xa0] sm:$0xf] %vm848_vm0, %v2062_v43  ;;  %v1141_v35 = vpop.f32.mrb[15].mxu1  ;;  %v2127_v19 = vor.u32 %v2126_v14, %v2123_v54 }
 0x1ff   : > { %v2110_v30 = vsel %vm12938_vm7, %v12674_v63, %v2109_v40  ;;  %v2282_v36 = vrot.slane %v2081_v34, 7  ;;  %v2141_v1 = vrot.slane %v2139_v33, 6  ;;  %v2524_v0 = vshrl.u32 %v12942_v52, 16 }
 0x200   : > { %v12954_v53 = vmax.f32 %v1269_v28, 0.0  ;;  %v1271_v55 = vadd.f32 %v12756_v21, %v1243_v61  ;;  %v2128_v16 = vsel %vm12938_vm7, %v12680_v8, %v2127_v19  ;;  %v2144_v6 = vrot.slane %v2142_v18, 7 }
 0x201   : > { %v12961_v43 = vadd.f32 %v12789_v7, %v1242_v45  ;;  %v10103_v54 = vcombine.low %v2110_v30, %v2128_v16  ;;  %v15508_v14 = vrot.slane %v12676_v4, 11  ;;  %v15509_v33 = vrot.slane %v12678_v5, 11 }
 0x202   : > { %v12971_v21 = vmax.f32 %v1271_v55, 0.0  ;;  %v2063_v8 = vpack.c.bf16 %v12954_v53, %v12954_v53  ;;  %v2145_v19 = vor.u32 %v2144_v6, %v2141_v1  ;;  %v2157_v40 = vshrl.u32 %v2081_v34, 16  ;;  %v12983_v55 = vld [vmem:[#allocation2 + $0x70] sm:$0xf] }
 0x203   : > { %v2279_v63 = vsel %vm12877_vm6, %v15508_v14, %v2278_v42  ;;  %v2283_v28 = vsel %vm12877_vm6, %v15509_v33, %v2282_v36  ;;  %10897 = vmatprep.mubr.msk.bf16.mxu0 %vm1058_vm1, %v10103_v54  ;;  %v2160_v45 = vshll.u32 %v2081_v34, 16  ;;  %v2083_v4 = vld [vmem:[#allocation2 + $0x94] sm:$0x7]  ;;  %v2526_v18 = vrot.slane %v2524_v0, 7  ;;  %v12985_v34 = vld [vmem:[#allocation2 + $0x7c] sm:$0xf] }
 0x204   : > { %v10094_v61 = vcombine.low %v2279_v63, %v2283_v28  ;;  %v2527_v42 = vshll.u32 %v12942_v52, 16  ;;  %v1244_v5 = vmul.f32 %v12784_v2, %v1141_v35  ;;  %4775 = vrot.lane.b32.xlu0 %v2063_v8, %s12190_s8  ;;  %2072 = vst.msk [vmem:[#allocation2 + $0xac] sm:$0xf] %vm848_vm0, %v2063_v8  ;;  %v2064_v36 = vpack.c.bf16 %v12971_v21, %v12971_v21 }
 0x205   : > { %v2286_v1 = vrot.slane %v2083_v4, 7  ;;  %v2175_v30 = vshrl.u32 %v2083_v4, 16  ;;  %v2159_v2 = vrot.slane %v2157_v40, 6  ;;  %v2162_v35 = vrot.slane %v2160_v45, 7  ;;  %v2085_v16 = vld [vmem:[#allocation2 + $0xa0] sm:$0x7] }
 0x206   : > { %10886 = vmatmul.mubr.msk.bf16.vlgmr.msra.gmra.mrb[32].mxu1 %vm1058_vm1, %v10094_v61  ;;  %v2178_v6 = vshll.u32 %v2083_v4, 16  ;;  %4777 = vrot.lane.b32.xlu1 %v2064_v36, %s12190_s8  ;;  %2073 = vst.msk [vmem:[#allocation2 + $0xb8] sm:$0xf] %vm848_vm0, %v2064_v36  ;;  %v2146_v54 = vsel %vm12938_vm7, %v12691_v20, %v2145_v19  ;;  %v2290_v14 = vrot.slane %v2085_v16, 7  ;;  %v2193_v33 = vshrl.u32 %v2085_v16, 16 }
 0x207   : > { %v2177_v63 = vrot.slane %v2175_v30, 6  ;;  %v2163_v28 = vor.u32 %v2162_v35, %v2159_v2  ;;  %v2196_v8 = vshll.u32 %v2085_v16, 16  ;;  %v2537_v0 = vshrl.u32 %v12983_v55, 16  ;;  %v13004_v36 = vld [vmem:[#allocation2 + $0x88] sm:$0xf] }
 0x208   : > { %v2180_v61 = vrot.slane %v2178_v6, 7  ;;  %1305 = vrot.lane.b32.xlu0 %v12807_v44, %s12191_s22  ;;  %v15510_v40 = vrot.slane %v12685_v12, 11  ;;  %v15511_v4 = vrot.slane %v12687_v13, 11  ;;  %v2195_v19 = vrot.slane %v2193_v33, 6  ;;  %v11717_v6 = vld [vmem:[#allocation4 + $0x28] sm:$0xff]  }
 0x209   : > { %v2550_v30 = vshrl.u32 %v12985_v34, 16  ;;  %v2164_v2 = vsel %vm12938_vm7, %v12699_v27, %v2163_v28  ;;  %v2198_v12 = vrot.slane %v2196_v8, 7  ;;  %v13011_v16 = vadd.f32 %v12789_v7, %v1244_v5 }
 0x20a   : > { %v2287_v45 = vsel %vm12877_vm6, %v15510_v40, %v2286_v1  ;;  %v2291_v20 = vsel %vm12877_vm6, %v15511_v4, %v2290_v14  ;;  %v2181_v35 = vor.u32 %v2180_v61, %v2177_v63  ;;  %v10104_v1 = vcombine.low %v2146_v54, %v2164_v2  ;;  %v13019_v40 = vld [vmem:[#allocation2 + $0x94] sm:$0xf] }
 0x20b   : > { %v10095_v44 = vcombine.low %v2287_v45, %v2291_v20  ;;  %v15512_v13 = vmax.f32 %v12870_v62, 0.0  ;;  %v13016_v14 = vor.u32 %v2527_v42, %v2526_v18  ;;  %v2540_v33 = vshll.u32 %v12983_v55, 16  ;;  %v2087_v63 = vld [vmem:[#allocation2 + $0xac] sm:$0x7] }
 0x20c   : > { %v2199_v27 = vor.u32 %v2198_v12, %v2195_v19  ;;  %v2539_v28 = vrot.slane %v2537_v0, 7  ;;  %v2552_v61 = vrot.slane %v2550_v30, 7  ;;  %v2563_v7 = vshrl.u32 %v13004_v36, 16  ;;  %10898 = vmatmul.mubr.msk.bf16.vlgmr.msra.gmra.mrb[0].mxu0 %vm1058_vm1, %v10104_v1  ;;  %1309 = vrot.lane.b32.xlu0 %v12812_v41, %s12191_s22  ;;  %v13047_v1 = vld [vmem:[#allocation2 + $0xa0] sm:$0xf] }
 0x20d   : > { %1307 = vrot.lane.b32.xlu1 %v15512_v13, %s12191_s22  ;;  %10889 = vmatprep.mubr.msk.bf16.mxu1 %vm1058_vm1, %v10095_v44  ;;  %v2294_v62 = vrot.slane %v2087_v63, 7  ;;  %v2211_v18 = vshrl.u32 %v2087_v63, 16  ;;  %v2214_v42 = vshll.u32 %v2087_v63, 16  ;;  %v2553_v5 = vshll.u32 %v12985_v34, 16  ;;  %v2089_v8 = vld [vmem:[#allocation2 + $0xb8] sm:$0x7] }
 0x20e   : > { %v2182_v54 = vsel %vm12938_vm7, %v12705_v32, %v2181_v35  ;;  %v2200_v0 = vsel %vm12938_vm7, %v12711_v39, %v2199_v27  ;;  %10906 = vmatpush3.bf16.msra.mxu0 %v12660_v17  ;;  %v2566_v45 = vshll.u32 %v13004_v36, 16  ;;  %v2576_v41 = vshrl.u32 %v13019_v40, 16  ;;  %v13039_v32 = vld [vmem:[#allocation4 + $0x30] sm:$0xff]  }
 0x20f   : > { %v15513_v4 = vmax.f32 %v12873_v29, 0.0  ;;  %v10105_v20 = vcombine.low %v2182_v54, %v2200_v0  ;;  %v2298_v19 = vrot.slane %v2089_v8, 7  ;;  %10907 = vmatprep.subr.bf16.mxu0 %v11717_v6  ;;  %v2213_v30 = vrot.slane %v2211_v18, 6 }
 0x210   : > { %v2565_v2 = vrot.slane %v2563_v7, 7  ;;  %v2216_v44 = vrot.slane %v2214_v42, 7  ;;  %v2229_v39 = vshrl.u32 %v2089_v8, 16  ;;  %v2232_v35 = vshll.u32 %v2089_v8, 16  ;;  %1313 = vrot.lane.b32.xlu0 %v12849_v51, %s12191_s22  ;;  %v13062_v51 = vld [vmem:[#allocation2 + $0xb8] sm:$0xf] }
 0x211   : > { %1311 = vrot.lane.b32.xlu1 %v15513_v4, %s12191_s22  ;;  %v15514_v17 = vmov 0  ;;  %v2542_v12 = vor.u32 %v2540_v33, %v2539_v28  ;;  %10901 = vmatprep.mubr.msk.bf16.mxu0 %vm1058_vm1, %v10105_v20  ;;  %v15517_v29 = vrot.slane %v12693_v22, 11  ;;  %v15518_v27 = vrot.slane %v12695_v23, 11  ;;  %v13060_v33 = vld [vmem:[#allocation2 + $0xac] sm:$0xf] }
 0x212   : > { %v15515_v17 = vsel %vm13043_vm10, 4294967295, %v15514_v17  ;;  %v2555_v7 = vor.u32 %v2553_v5, %v2552_v61  ;;  %v2578_v18 = vrot.slane %v2576_v41, 7  ;;  %v2217_v42 = vor.u32 %v2216_v44, %v2213_v30  ;;  %10908 = vmatpush3.bf16.msra.mxu0 %v11717_v6 }
 0x213   : > { %15516 = vst [vmem:[#allocation58_spill] sm:$0xff] %v15515_v17  ;;  %v2295_v13 = vsel %vm12877_vm6, %v15517_v29, %v2294_v62  ;;  %v2299_v63 = vsel %vm12877_vm6, %v15518_v27, %v2298_v19  ;;  %v2231_v54 = vrot.slane %v2229_v39, 6  ;;  %v2234_v0 = vrot.slane %v2232_v35, 7  ;;  %10917 = vmatprep.subr.bf16.mxu0 %v13039_v32 }
 0x214   : > { %v10096_v28 = vcombine.low %v2295_v13, %v2299_v63  ;;  %v15519_v22 = vmax.f32 %v12891_v46, 0.0  ;;  %v2530_v23 = vsel %vm13043_vm10, %v12682_v10, %v13016_v14  ;;  %v2568_v61 = vor.u32 %v2566_v45, %v2565_v2  ;;  %1317 = vrot.lane.b32.xlu0 %v12861_v37, %s12191_s22  ;;  %v2862_v63 = vld [vmem:[#allocation2 + $0x7c] sm:$0xf] }
 0x215   : > { %v2579_v62 = vshll.u32 %v13019_v40, 16  ;;  %v2589_v5 = vshrl.u32 %v13047_v1, 16  ;;  %v2235_v6 = vor.u32 %v2234_v0, %v2231_v54  ;;  %v2543_v46 = vsel %vm13043_vm10, %v12703_v31, %v2542_v12  ;;  %v2864_v0 = vld [vmem:[#allocation2 + $0x88] sm:$0xf] }
 0x216   : > { %1315 = vrot.lane.b32.xlu1 %v15519_v22, %s12191_s22  ;;  %10890 = vmatmul.mubr.msk.bf16.gmra.mrb[36].mxu1 %vm1058_vm1, %v10096_v28  ;;  %v2592_v8 = vshll.u32 %v13047_v1, 16  ;;  %v2602_v41 = vshrl.u32 %v13060_v33, 16  ;;  %v2569_v10 = vsel %vm13043_vm10, %v12728_v49, %v2568_v61  ;;  %v2615_v4 = vshrl.u32 %v13062_v51, 16  ;;  %v2858_v49 = vld [vmem:[#allocation2 + $0x64] sm:$0xf] }
 0x217   : > { %v2581_v14 = vor.u32 %v2579_v62, %v2578_v18  ;;  %v2591_v45 = vrot.slane %v2589_v5, 7  ;;  %v15520_v20 = vmov 0   ;;  %v2218_v31 = vsel %vm12938_vm7, %v12724_v47, %v2217_v42  ;;  %v2860_v47 = vld [vmem:[#allocation2 + $0x70] sm:$0xf]  ;;  %v2868_v5 = vld [vmem:[#allocation2 + $0xa0] sm:$0xf] }
 0x218   : > { %3710 = vmatprep.mubr.bf16.mxu1 %v15520_v20  ;;  %v2236_v19 = vsel %vm12938_vm7, %v12735_v58, %v2235_v6  ;;  %v2556_v37 = vsel %vm13043_vm10, %v12726_v48, %v2555_v7  ;;  %v2604_v30 = vrot.slane %v2602_v41, 7  ;;  %v15521_v2 = vmax.f32 %v12894_v56, 0.0  ;;  %1321 = vrot.lane.b32.xlu0 %v12908_v50, %s12191_s22  ;;  %v13123_v6 = vpop.f32.mrb[16].mxu1 }
 0x219   : > { %v10106_v44 = vcombine.low %v2218_v31, %v2236_v19  ;;  %v2594_v39 = vor.u32 %v2592_v8, %v2591_v45  ;;  %v2605_v35 = vshll.u32 %v13060_v33, 16  ;;  %v2617_v12 = vrot.slane %v2615_v4, 7  ;;  %1378 = vst [vmem:[#allocation3 + $0x40] sm:$0xff] %v13123_v6 }
 0x21a   : > { %1319 = vrot.lane.b32.xlu1 %v15521_v2, %s12191_s22  ;;  %v1288_v29 = vmax.f32 %v13011_v16, 0.0  ;;  %v10121_v13 = vcombine.low %v2530_v23, %v2543_v46  ;;  %v10122_v58 = vcombine.low %v2556_v37, %v2569_v10  ;;  %v2618_v27 = vshll.u32 %v13062_v51, 16  ;;  %v11719_v37 = vld [vmem:[#allocation4 + $0x38] sm:$0xff]  }
 0x21b   : > { %10902 = vmatmul.mubr.msk.bf16.gmra.mrb[4].mxu0 %vm1058_vm1, %v10106_v44  ;;  %v2582_v48 = vsel %vm13043_vm10, %v12737_v59, %v2581_v14  ;;  %v2595_v56 = vsel %vm13043_vm10, %v12739_v60, %v2594_v39  ;;  %v13111_v7 = vor.u32 %v2605_v35, %v2604_v30  ;;  %v2878_v18 = vshrl.u32 %v2858_v49, 16  ;;  %v2866_v59 = vld [vmem:[#allocation2 + $0x94] sm:$0xf]  ;;  %v13126_v14 = vpop.f32.mrb[17].mxu1 }
 0x21c   : > { %10909 = vmatprep.mubr.msk.bf16.mxu0 %vm1058_vm1, %v10121_v13  ;;  %v13114_v28 = vor.u32 %v2618_v27, %v2617_v12  ;;  %v10131_v50 = vcombine.low %v12942_v52, %v12983_v55  ;;  %v2881_v42 = vshll.u32 %v2858_v49, 16  ;;  %v2892_v54 = vshrl.u32 %v2860_v47, 16  ;;  %1325 = vrot.lane.b32.xlu0 %v12922_v15, %s12191_s22  ;;  %v13130_v19 = vpop.f32.mrb[18].mxu1  ;;  %v2870_v13 = vld [vmem:[#allocation2 + $0xac] sm:$0xf]  ;;  %v15541_v55 = vld [vmem:[#allocation28_spill] sm:$0xff] }
 0x21d   : > { %v15522_v22 = vmax.f32 %v12905_v11, 0.0  ;;  %v10123_v60 = vcombine.low %v2582_v48, %v2595_v56  ;;  %v10132_v23 = vcombine.low %v12985_v34, %v13004_v36  ;;  %v2895_v61 = vshll.u32 %v2860_v47, 16  ;;  %1380 = vst [vmem:[#allocation3 + $0x70] sm:$0xff] %v13130_v19  ;;  %v13137_v15 = vpop.f32.mrb[19].mxu1 }
 0x21e   : > { %v2906_v62 = vshrl.u32 %v2862_v63, 16  ;;  %v2880_v46 = vrot.slane %v2878_v18, 4  ;;  %v2883_v8 = vrot.slane %v2881_v42, 5  ;;  %v2894_v41 = vrot.slane %v2892_v54, 4  ;;  %v13142_v27 = vpop.f32.mrb[20].mxu1 }
 0x21f   : > { %1323 = vrot.lane.b32.xlu1 %v15522_v22, %s12191_s22  ;;  %v2909_v10 = vshll.u32 %v2862_v63, 16  ;;  %v2897_v11 = vrot.slane %v2895_v61, 5  ;;  %v2920_v4 = vshrl.u32 %v2864_v0, 16  ;;  %v2923_v31 = vshll.u32 %v2864_v0, 16  ;;  %1382 = vst [vmem:[#allocation3 + $0xa0] sm:$0xff] %v13142_v27  ;;  %v13145_v18 = vpop.f32.mrb[21].mxu1 }
 0x220   : > { %v2908_v45 = vrot.slane %v2906_v62, 4  ;;  %v2621_v30 = vsel %vm13043_vm10, %v12760_v25, %v13114_v28  ;;  %v2934_v2 = vshrl.u32 %v2866_v59, 16  ;;  %v2937_v44 = vshll.u32 %v2866_v59, 16  ;;  %1329 = vrot.lane.b32.xlu0 %v12954_v53, %s12191_s22  ;;  %v13152_v54 = vpop.f32.mrb[22].mxu1  ;;  %v13156_v0 = vld [vmem:[#allocation4 + $0x40] sm:$0xff]  }
 0x221   : > { %v2911_v49 = vrot.slane %v2909_v10, 5  ;;  %v2898_v39 = vor.u32 %v2897_v11, %v2894_v41  ;;  %v2922_v35 = vrot.slane %v2920_v4, 4  ;;  %v2925_v12 = vrot.slane %v2923_v31, 5  ;;  %v2872_v22 = vld [vmem:[#allocation2 + $0xb8] sm:$0xf]  ;;  %1384 = vst [vmem:[#allocation3 + $0xd0] sm:$0xff] %v13152_v54 }
 0x222   : > { %v2948_v47 = vshrl.u32 %v2868_v5, 16  ;;  %v2884_v63 = vor.u32 %v2883_v8, %v2880_v46  ;;  %v2936_v48 = vrot.slane %v2934_v2, 4  ;;  %v2939_v56 = vrot.slane %v2937_v44, 5  ;;  %v13163_v62 = vpop.f32.mrb[23].mxu1  ;;  %v13172_v41 = vld [vmem:[#allocation2 + $0x64] sm:$0xe] }
 0x223   : > { %1327 = vrot.lane.b32.xlu1 %v1284_v26, %s12191_s22  ;;  %v2912_v25 = vor.u32 %v2911_v49, %v2908_v45  ;;  %10910 = vmatmul.mubr.msk.bf16.vlgmr.msra.gmra.mrb[0].mxu0 %vm1058_vm1, %v10122_v58  ;;  %v13150_v3 = vrot.slane %v2898_v39, 4  ;;  %v2926_v26 = vor.u32 %v2925_v12, %v2922_v35  ;;  %v2951_v42 = vshll.u32 %v2868_v5, 16  ;;  %v13174_v10 = vpop.f32.mrb[24].mxu1  ;;  %v13182_v49 = vld [vmem:[#allocation2 + $0x70] sm:$0xe]  ;;  %v15527_v12 = vld [vmem:[#allocation33_spill] sm:$0xff] }
 0x224   : > { %v2950_v28 = vrot.slane %v2948_v47, 4  ;;  %10918 = vmatpush3.bf16.msra.mxu0 %v13039_v32  ;;  %10913 = vmatprep.mubr.msk.bf16.mxu0 %vm1058_vm1, %v10123_v60  ;;  %v10133_v59 = vcombine.low %v13019_v40, %v13047_v1  ;;  %v2940_v53 = vor.u32 %v2939_v56, %v2936_v48  ;;  %v2962_v61 = vshrl.u32 %v2870_v13, 16  ;;  %1386 = vst [vmem:[#allocation3 + $0x100] sm:$0xff] %v13174_v10  ;;  %v13193_v39 = vld [vmem:[#allocation2 + $0x7c] sm:$0xe]  ;;  %v15551_v40 = vld [vmem:[#allocation39_spill] sm:$0xff] }
 0x225   : > { %v15523_v32 = vmax.f32 %v12961_v43, 0.0  ;;  %10919 = vmatprep.subr.bf16.mxu0 %v11719_v37  ;;  %v2608_v60 = vsel %vm13043_vm10, %v12758_v24, %v13111_v7  ;;  %v2927_v5 = vrot.slane %v2926_v26, 4  ;;  %v2953_v46 = vrot.slane %v2951_v42, 5  ;;  %v13185_v24 = vpop.f32.mrb[25].mxu1  ;;  %1333 = vrot.lane.b32.xlu0 %v12971_v21, %s12191_s22  ;;  %v13195_v35 = vld [vmem:[#allocation2 + $0x88] sm:$0xe] }
 0x226   : > { %v2965_v8 = vshll.u32 %v2870_v13, 16  ;;  %v10124_v11 = vcombine.low %v2608_v60, %v2621_v30  ;;  %v15524_v45 = vmov 0  ;;  %v2885_v43 = vrot.slane %v2884_v63, 4  ;;  %v15534_v60 = vld [vmem:[#allocation32_spill] sm:$0xff] }
 0x227   : > { %1331 = vrot.lane.b32.xlu1 %v15523_v32, %s12191_s22  ;;  %v15525_v45 = vsel %vm13178_vm15, 4294967295, %v15524_v45  ;;  %v2913_v4 = vrot.slane %v2912_v25, 4  ;;  %v2964_v31 = vrot.slane %v2962_v61, 4  ;;  %v2904_v7 = vsel %vm13178_vm15, %v13150_v3, %v12749_v9  ;;  %v13201_v25 = vpop.f32.mrb[26].mxu1  ;;  %v13208_v3 = vld [vmem:[#allocation2 + $0x94] sm:$0xe] }
 0x228   : > { %15526 = vst [vmem:[#allocation59_spill] sm:$0xff] %v15525_v45  ;;  %v2954_v30 = vor.u32 %v2953_v46, %v2950_v28  ;;  %v2967_v2 = vrot.slane %v2965_v8, 5  ;;  %v2976_v44 = vshrl.u32 %v2872_v22, 16  ;;  %10920 = vmatpush3.bf16.msra.mxu0 %v11719_v37  ;;  %v2932_v47 = vsel %vm13178_vm15, %v2927_v5, %v15527_v12  ;;  %15528 = vst [vmem:[#allocation33_spill] sm:$0xff] %v13201_v25  ;;  %v13211_v26 = vpop.f32.mrb[27].mxu1  ;;  %v15529_v28 = vld [vmem:[#allocation29_spill] sm:$0xff] }
 0x229   : > { %v2941_v13 = vrot.slane %v2940_v53, 4  ;;  %v2979_v63 = vshll.u32 %v2872_v22, 16  ;;  %v10151_v21 = vrot.slane %v13172_v41, 9  ;;  %10929 = vmatprep.subr.bf16.mxu0 %v13156_v0  ;;  %v10152_v37 = vrot.slane %v13182_v49, 9  ;;  %1388 = vst [vmem:[#allocation3 + $0x130] sm:$0xff] %v13201_v25  ;;  %v13226_v32 = vpop.f32.mrb[28].mxu1 }
 0x22a   : > { %v2955_v9 = vrot.slane %v2954_v30, 4  ;;  %v2968_v48 = vor.u32 %v2967_v2, %v2964_v31  ;;  %v2978_v56 = vrot.slane %v2976_v44, 4  ;;  %v2890_v42 = vsel %vm13178_vm15, %v2885_v43, %v15529_v28  ;;  %v13224_v61 = vld [vmem:[#allocation2 + $0xa0] sm:$0xe]  ;;  %15533 = vst [vmem:[#allocation60_spill] sm:$0xff] %v13226_v32  ;;  %v15535_v46 = vld [vmem:[#allocation40_spill] sm:$0xff] }
 0x22b   : > { %1335 = vrot.lane.b32.xlu1 %v1288_v29, %s12191_s22  ;;  %v2981_v53 = vrot.slane %v2979_v63, 5  ;;  %v15530_v16 = vmov 0  ;;  %v10153_v29 = vrot.slane %v13193_v39, 9  ;;  %v10154_v22 = vrot.slane %v13195_v35, 9  ;;  %10914 = vmatmul.mubr.msk.bf16.gmra.mrb[4].mxu0 %vm1058_vm1, %v10124_v11  ;;  %v15536_v31 = vld [vmem:[#allocation26_spill] sm:$0xff]  ;;  %1390 = vst [vmem:[#allocation3 + $0x160] sm:$0xff] %v13226_v32 }
 0x22c   : > { %v15531_v16 = vsel %vm13218_vm3, 4294967295, %v15530_v16  ;;  %v2918_v5 = vsel %vm13178_vm15, %v2913_v4, %v15534_v60  ;;  %v2960_v8 = vsel %vm13178_vm15, %v2955_v9, %v15535_v46  ;;  %v13235_v43 = vrot.slane %v2968_v48, 4  ;;  %10921 = vmatprep.mubr.msk.bf16.mxu0 %vm1058_vm1, %v10131_v50  ;;  %v13253_v63 = vpop.f32.mrb[29].mxu1  ;;  %v15538_v9 = vld [vmem:[#allocation36_spill] sm:$0xff] }
 0x22d   : > { %15532 = vst [vmem:[#allocation29_spill] sm:$0xff] %v15531_v16  ;;  %v15537_v30 = vrot.slane %v15536_v31, 5  ;;  %v13248_v11 = vcombine.low %v2890_v42, %v2904_v7  ;;  %v13250_v4 = vcombine.low %v2918_v5, %v2932_v47  ;;  %v2982_v44 = vor.u32 %v2981_v53, %v2978_v56  ;;  %v13271_v56 = vld [vmem:[#allocation2 + $0xac] sm:$0xe]  ;;  %v1212_v42 = vpop.f32.mrb[30].mxu1 }
 0x22e   : > { %v10155_v12 = vrot.slane %v13208_v3, 9  ;;  %v2946_v48 = vsel %vm13178_vm15, %v2941_v13, %v15538_v9  ;;  %v15542_v50 = vrot.slane %v15541_v55, 5  ;;  %v10156_v47 = vrot.slane %v13224_v61, 9  ;;  %v15543_v5 = vld [vmem:[#allocation27_spill] sm:$0xff]  ;;  %v13283_v31 = vld [vmem:[#allocation2 + $0xb8] sm:$0xe] }
 0x22f   : > { %v13241_v2 = vsel %vm13218_vm3, %v10152_v37, %v15537_v30  ;;  %v15539_v37 = vld [vmem:[#allocation25_spill] sm:$0xff]  ;;  %v13273_v53 = vcombine.low %v2946_v48, %v2960_v8  ;;  %v2983_v13 = vrot.slane %v2982_v44, 4  ;;  %1392 = vst [vmem:[#allocation3 + $0x190] sm:$0xff] %v1212_v42  ;;  %v15545_v30 = vld [vmem:[#allocation44_spill] sm:$0xff]  ;;  %v3288_v44 = vshrl.u32 %v13172_v41, 16 }
 0x230   : > { %v15540_v28 = vrot.slane %v15539_v37, 5  ;;  %v13268_v7 = vsel %vm13218_vm3, %v10154_v22, %v15542_v50  ;;  %v13285_v22 = vpop.f32.mrb[31].mxu1  ;;  %v2974_v8 = vsel %vm13178_vm15, %v13235_v43, %v15545_v30  ;;  %v3291_v9 = vshll.u32 %v13172_v41, 16  ;;  %v15546_v37 = vld [vmem:[#allocation30_spill] sm:$0xff]  ;;  %v15548_v50 = vld [vmem:[#allocation31_spill] sm:$0xff] }
 0x231   : > { %v3306_v48 = vshrl.u32 %v13182_v49, 16  ;;  %v15549_v42 = vrot.slane %v15548_v50, 5  ;;  %v11724_v41 = vld [vmem:[#allocation4 + $0x48] sm:$0xff]   ;;  %v3327_v50 = vshll.u32 %v13193_v39, 16  ;;  %v3378_v17 = vshrl.u32 %v13224_v61, 16 }
 0x232   : > { %v13262_v52 = vsel %vm13218_vm3, %v10151_v21, %v15540_v28  ;;  %v15544_v21 = vrot.slane %v15543_v5, 5  ;;  %v15547_v28 = vrot.slane %v15546_v37, 5  ;;  %v10157_v5 = vrot.slane %v13271_v56, 9 }
 0x233   : > { %v13306_v43 = vsel %vm13218_vm3, %v10156_v47, %v15549_v42  ;;  %v3290_v37 = vrot.slane %v3288_v44, 5  ;;  %v3293_v60 = vrot.slane %v3291_v9, 6  ;;  %v3308_v58 = vrot.slane %v3306_v48, 5  ;;  %10922 = vmatmul.mubr.msk.bf16.vlgmr.msra.gmra.mrb[0].mxu0 %vm1058_vm1, %v10132_v23 }
 0x234   : > { %v13281_v46 = vsel %vm13218_vm3, %v10153_v29, %v15544_v21  ;;  %v13300_v55 = vsel %vm13218_vm3, %v10155_v12, %v15547_v28  ;;  %v15550_v21 = vld [vmem:[#allocation45_spill] sm:$0xff]  ;;  %v10158_v29 = vrot.slane %v13283_v31, 9  ;;  %v3309_v12 = vshll.u32 %v13182_v49, 16  ;;  %10930 = vmatpush3.bf16.msra.mxu0 %v13156_v0  ;;  %10925 = vmatprep.mubr.msk.bf16.mxu0 %vm1058_vm1, %v10133_v59 }
 0x235   : > { %v2988_v30 = vsel %vm13178_vm15, %v2983_v13, %v15550_v21  ;;  %v3324_v28 = vshrl.u32 %v13193_v39, 16  ;;  %v3342_v13 = vshrl.u32 %v13195_v35, 16  ;;  %v3345_v44 = vshll.u32 %v13195_v35, 16  ;;  %10931 = vmatprep.subr.bf16.mxu0 %v11724_v41  ;;  %v13331_v39 = vld [vmem:[#allocation4 + $0x50] sm:$0xff]  }
 0x236   : > { %v3360_v9 = vshrl.u32 %v13208_v3, 16  ;;  %v3311_v49 = vrot.slane %v3309_v12, 6  ;;  %v3329_v36 = vrot.slane %v3327_v50, 6  ;;  %v3363_v23 = vshll.u32 %v13208_v3, 16 }
 0x237   : > { %v3326_v34 = vrot.slane %v3324_v28, 5  ;;  %v3294_v48 = vor.u32 %v3293_v60, %v3290_v37  ;;  %v3344_v42 = vrot.slane %v3342_v13, 5  ;;  %v3347_v35 = vrot.slane %v3345_v44, 6  ;;  %v15553_v60 = vld [vmem:[#allocation41_spill] sm:$0xff] }
 0x238   : > { %v3362_v21 = vrot.slane %v3360_v9, 5  ;;  %v3312_v47 = vor.u32 %v3311_v49, %v3308_v58  ;;  %v3365_v0 = vrot.slane %v3363_v23, 6  ;;  %v15552_v1 = vrot.slane %v15551_v40, 5  ;;  %10932 = vmatpush3.bf16.msra.mxu0 %v11724_v41 }
 0x239   : > { %v3330_v45 = vor.u32 %v3329_v36, %v3326_v34  ;;  %v3348_v12 = vor.u32 %v3347_v35, %v3344_v42  ;;  %v3381_v3 = vshll.u32 %v13224_v61, 16  ;;  %v3396_v28 = vshrl.u32 %v13271_v56, 16  ;;  %10941 = vmatprep.subr.bf16.mxu0 %v13331_v39 }
 0x23a   : > { %v13338_v59 = vsel %vm13218_vm3, %v10157_v5, %v15552_v1  ;;  %v15554_v37 = vrot.slane %v15553_v60, 5  ;;  %v3313_v50 = vrot.slane %v3312_v47, 4  ;;  %v3366_v13 = vor.u32 %v3365_v0, %v3362_v21 }
 0x23b   : > { %v3380_v44 = vrot.slane %v3378_v17, 5  ;;  %v3349_v9 = vrot.slane %v3348_v12, 4  ;;  %v3383_v5 = vrot.slane %v3381_v3, 6  ;;  %v13349_v49 = vrot.slane %v3396_v28, 5  ;;  %v15566_v28 = vld [vmem:[#allocation34_spill] sm:$0xff] }
 0x23c   : > { %v13346_v58 = vsel %vm13218_vm3, %v10158_v29, %v15554_v37  ;;  %v3399_v61 = vshll.u32 %v13271_v56, 16  ;;  %v13352_v34 = vcombine.low %v2974_v8, %v2988_v30  ;;  %v15555_v41 = vmov 0  ;;  %v15559_v8 = vld [vmem:[#allocation38_spill] sm:$0xff]  ;;  %v15560_v30 = vld [vmem:[#allocation37_spill] sm:$0xff] }
 0x23d   : > { %v15556_v41 = vsel %vm13356_vm8, 4294967295, %v15555_v41  ;;  %v3295_v29 = vrot.slane %v3294_v48, 4  ;;  %v3331_v47 = vrot.slane %v3330_v45, 4  ;;  %v3414_v17 = vshrl.u32 %v13283_v31, 16  ;;  %v15562_v45 = vld [vmem:[#allocation47_spill] sm:$0xff] }
 0x23e   : > { %15557 = vst [vmem:[#allocation32_spill] sm:$0xff] %v15556_v41  ;;  %v15558_v36 = vcombine.low %v13060_v33, %v13062_v51  ;;  %v15561_v23 = vor.u32 %v15559_v8, %v15560_v30  ;;  %v3384_v35 = vor.u32 %v3383_v5, %v3380_v44  ;;  %v13374_v48 = vrot.slane %v3399_v61, 6  ;;  %v15563_v33 = vld [vmem:[#allocation46_spill] sm:$0xff] }
 0x23f   : > { %v15564_v51 = vor.u32 %v15562_v45, %v15563_v33  ;;  %v13385_v0 = vrot.slane %v3366_v13, 4  ;;  %v13387_v40 = vrot.slane %v3414_v17, 5  ;;  %v3417_v1 = vshll.u32 %v13283_v31, 16  ;;  %v15569_v13 = vld [vmem:[#allocation42_spill] sm:$0xff]  ;;  %v1404_v45 = vld [vmem:[#allocation3 + $0x70] sm:$0x7f] }
 0x240   : > { %10926 = vmatmul.mubr.msk.bf16.gmra.mrb[4].mxu0 %vm1058_vm1, %v15558_v36  ;;  %v13372_v42 = vsel %vm13356_vm8, %v3313_v50, %v15561_v23  ;;  %v13390_v12 = vrot.slane %v3384_v35, 4  ;;  %v3402_v3 = vor.u32 %v13374_v48, %v13349_v49  ;;  %v15568_v50 = vld [vmem:[#allocation43_spill] sm:$0xff]  ;;  %v12192_v5 = vmov 0.0   ;;  %v13415_v61 = vld [vmem:[#allocation3 + $0x40] sm:$0x7f]  ;;  %v15575_v49 = vld [vmem:[#allocation48_spill] sm:$0xff] }
 0x241   : > { %10933 = vmatprep.mubr.msk.bf16.mxu0 %vm1058_vm1, %v13248_v11  ;;  %v13383_v21 = vsel %vm13356_vm8, %v3349_v9, %v15564_v51  ;;  %v15565_v11 = vld [vmem:[#allocation35_spill] sm:$0xff]  ;;  %v15570_v44 = vor.u32 %v15568_v50, %v15569_v13  ;;  %v13408_v31 = vrot.slane %v3417_v1, 6  ;;  %921 = vst [vmem:[#allocation3] sm:$0xff] %v12192_v5  ;;  %924 = vst [vmem:[#allocation3 + $0x10] sm:$0xff] %v12192_v5  ;;  %v13418_v17 = vld [vmem:[#allocation3 + $0x40] sm:$0xfe] }
 0x242   : > { %v15567_v60 = vor.u32 %v15565_v11, %v15566_v28  ;;  %926 = vst [vmem:[#allocation3 + $0x20] sm:$0xff] %v12192_v5  ;;  %928 = vst [vmem:[#allocation3 + $0x30] sm:$0xff] %v12192_v5  ;;  %v15571_v36 = vld [vmem:[#allocation51_spill] sm:$0xff]  ;;  %v15572_v8 = vld [vmem:[#allocation50_spill] sm:$0xff]  ;;  %v3403_v35 = vrot.slane %v3402_v3, 4  ;;  %v15410_v33 = vrot.slane %v13130_v19, 1 }
 0x243   : > { %v13406_v9 = vsel %vm13356_vm8, %v3331_v47, %v15570_v44  ;;  %932 = vst [vmem:[#allocation3 + $0x50] sm:$0xff] %v12192_v5  ;;  %923 = vst.msk [vmem:[#allocation3 + $0x8] sm:$0xff] %vm922_vm9, %v12192_v5  ;;  %v15573_v30 = vor.u32 %v15571_v36, %v15572_v8  ;;  %v13513_v51 = vld [vmem:[#allocation3 + $0x70] sm:$0xfe]  ;;  %v1996_v3 = vld [vmem:[%s15579_s23] sm:$0x3] }
 0x244   : > { %v13399_v37 = vsel %vm13356_vm8, %v3295_v29, %v15567_v60  ;;  %v1476_v29 = vrot.slane %v13123_v6, 1  ;;  %925 = vst.msk [vmem:[#allocation3 + $0x18] sm:$0xff] %vm922_vm9, %v12192_v5  ;;  %927 = vst.msk [vmem:[#allocation3 + $0x28] sm:$0xff] %vm922_vm9, %v12192_v5  ;;  %v13549_v1 = vld [vmem:[#allocation3 + $0xd0] sm:$0xfe]  ;;  %v15580_v28 = vld [vmem:[#allocation53_spill] sm:$0xff] }
 0x245   : > { %929 = vst.msk [vmem:[#allocation3 + $0x38] sm:$0xff] %vm922_vm9, %v12192_v5  ;;  %931 = vst.msk [vmem:[#allocation3 + $0x48] sm:$0xff] %vm922_vm9, %v12192_v5  ;;  %v13505_v23 = vsel %vm13356_vm8, %v13390_v12, %v15573_v30  ;;  %v13562_v11 = vld [vmem:[#allocation3 + $0x100] sm:$0xfe]  ;;  %v15581_v60 = vld [vmem:[#allocation52_spill] sm:$0xff] }
 0x246   : > { %933 = vst.msk [vmem:[#allocation3 + $0x58] sm:$0xff] %vm922_vm9, %v12192_v5  ;;  %934 = vst [vmem:[#allocation3 + $0x60] sm:$0xff] %v12192_v5  ;;  %v15582_v50 = vor.u32 %v15580_v28, %v15581_v60  ;;  %v1412_v8 = vld [vmem:[#allocation3 + $0xd0] sm:$0x7f] }
 0x247   : > { %935 = vst.msk [vmem:[#allocation3 + $0x68] sm:$0xff] %vm922_vm9, %v12192_v5  ;;  %937 = vst.msk [vmem:[#allocation3 + $0x78] sm:$0xff] %vm922_vm9, %v12192_v5 }
 0x248   : > { %938 = vst [vmem:[#allocation3 + $0x80] sm:$0xff] %v12192_v5  ;;  %939 = vst.msk [vmem:[#allocation3 + $0x88] sm:$0xff] %vm922_vm9, %v12192_v5  ;;  %v13569_v13 = vsel %vm13356_vm8, %v3403_v35, %v15582_v50  ;;  %10934 = vmatmul.mubr.msk.bf16.vlgmr.msra.gmra.mrb[0].mxu0 %vm1058_vm1, %v13250_v4  ;;  %v15583_v4 = vld [vmem:[#allocation56_spill] sm:$0xff]  ;;  %v15587_v35 = vld [vmem:[#allocation23_spill] sm:$0xff] }
 0x249   : > { %940 = vst [vmem:[#allocation3 + $0x90] sm:$0xff] %v12192_v5  ;;  %941 = vst.msk [vmem:[#allocation3 + $0x98] sm:$0xff] %vm922_vm9, %v12192_v5  ;;  %10942 = vmatpush3.bf16.msra.mxu0 %v13331_v39  ;;  %10937 = vmatprep.mubr.msk.bf16.mxu0 %vm1058_vm1, %v13273_v53  ;;  %v1420_v50 = vld [vmem:[#allocation3 + $0x130] sm:$0x7f]  ;;  %v1394_v39 = vld [vmem:[#allocation3] sm:$0x80] }
 0x24a   : > { %943 = vst.msk [vmem:[#allocation3 + $0xa8] sm:$0xff] %vm922_vm9, %v12192_v5  ;;  %944 = vst [vmem:[#allocation3 + $0xb0] sm:$0xff] %v12192_v5  ;;  %v1398_v53 = vld [vmem:[#allocation3 + $0x30] sm:$0x80]  ;;  %v1560_v12 = vld [vmem:[#allocation3 + $0x50] sm:$0x1] }
 0x24b   : > { %945 = vst.msk [vmem:[#allocation3 + $0xb8] sm:$0xff] %vm922_vm9, %v12192_v5  ;;  %946 = vst [vmem:[#allocation3 + $0xc0] sm:$0xff] %v12192_v5  ;;  %v1518_v36 = vadd.f32 %v1476_v29, %v1398_v53  ;;  %v1643_v41 = vrot.slane %v1560_v12, 2  ;;  %v1395_v16 = vld [vmem:[#allocation3 + $0x8] sm:$0x80]  ;;  %v15589_v53 = vrot.slane %v13152_v54, 1 }
 0x24c   : > { %947 = vst.msk [vmem:[#allocation3 + $0xc8] sm:$0xff] %vm922_vm9, %v12192_v5  ;;  %949 = vst.msk [vmem:[#allocation3 + $0xd8] sm:$0xff] %vm922_vm9, %v12192_v5  ;;  %v1399_v6 = vld [vmem:[#allocation3 + $0x38] sm:$0x80] }
 0x24d   : > { %950 = vst [vmem:[#allocation3 + $0xe0] sm:$0xff] %v12192_v5  ;;  %951 = vst.msk [vmem:[#allocation3 + $0xe8] sm:$0xff] %vm922_vm9, %v12192_v5  ;;  %v1555_v38 = vld [vmem:[#allocation3 + $0x18] sm:$0xfe] }
 0x24e   : > { %952 = vst [vmem:[#allocation3 + $0xf0] sm:$0xff] %v12192_v5  ;;  %953 = vst.msk [vmem:[#allocation3 + $0xf8] sm:$0xff] %vm922_vm9, %v12192_v5  ;;  %v1636_v32 = vrot.slane %v1555_v38, 2  ;;  %v1403_v38 = vld [vmem:[#allocation3 + $0x68] sm:$0x80] }
 0x24f   : > { %955 = vst.msk [vmem:[#allocation3 + $0x108] sm:$0xff] %vm922_vm9, %v12192_v5  ;;  %956 = vst [vmem:[#allocation3 + $0x110] sm:$0xff] %v12192_v5 }
 0x250   : > { %957 = vst.msk [vmem:[#allocation3 + $0x118] sm:$0xff] %vm922_vm9, %v12192_v5  ;;  %958 = vst [vmem:[#allocation3 + $0x120] sm:$0xff] %v12192_v5  ;;  %10938 = vmatmul.mubr.msk.bf16.gmra.mrb[4].mxu0 %vm1058_vm1, %v13352_v34 }
 0x251   : > { %959 = vst.msk [vmem:[#allocation3 + $0x128] sm:$0xff] %vm922_vm9, %v12192_v5  ;;  %961 = vst.msk [vmem:[#allocation3 + $0x138] sm:$0xff] %vm922_vm9, %v12192_v5 }
 0x252   : > { %962 = vst [vmem:[#allocation3 + $0x140] sm:$0xff] %v12192_v5  ;;  %963 = vst.msk [vmem:[#allocation3 + $0x148] sm:$0xff] %vm922_vm9, %v12192_v5 }
 0x253   : > { %964 = vst [vmem:[#allocation3 + $0x150] sm:$0xff] %v12192_v5  ;;  %965 = vst.msk [vmem:[#allocation3 + $0x158] sm:$0xff] %vm922_vm9, %v12192_v5 }
 0x254   : > { %967 = vst.msk [vmem:[#allocation3 + $0x168] sm:$0xff] %vm922_vm9, %v12192_v5  ;;  %968 = vst [vmem:[#allocation3 + $0x170] sm:$0xff] %v12192_v5 }
 0x255   : > { %969 = vst.msk [vmem:[#allocation3 + $0x178] sm:$0xff] %vm922_vm9, %v12192_v5  ;;  %970 = vst [vmem:[#allocation3 + $0x180] sm:$0xff] %v12192_v5 }
 0x256   : > { %971 = vst.msk [vmem:[#allocation3 + $0x188] sm:$0xff] %vm922_vm9, %v12192_v5  ;;  %973 = vst.msk [vmem:[#allocation3 + $0x198] sm:$0xff] %vm922_vm9, %v12192_v5 }
 0x257   : > { %974 = vst [vmem:[#allocation3 + $0x1a0] sm:$0xff] %v12192_v5  ;;  %975 = vst.msk [vmem:[#allocation3 + $0x1a8] sm:$0xff] %vm922_vm9, %v12192_v5 }
 0x258   : > { %976 = vst [vmem:[#allocation3 + $0x1b0] sm:$0xff] %v12192_v5  ;;  %977 = vst.msk [vmem:[#allocation3 + $0x1b8] sm:$0xff] %vm922_vm9, %v12192_v5 }
 0x259   : > { %978 = vst [vmem:[#allocation3 + $0x1c0] sm:$0xff] %v12192_v5  ;;  %979 = vst.msk [vmem:[#allocation3 + $0x1c8] sm:$0xff] %vm922_vm9, %v12192_v5 }
 0x25a   : > { %980 = vst [vmem:[#allocation3 + $0x1d0] sm:$0xff] %v12192_v5  ;;  %981 = vst.msk [vmem:[#allocation3 + $0x1d8] sm:$0xff] %vm922_vm9, %v12192_v5 }
 0x25b   : > { %1379 = vst.msk [vmem:[#allocation3 + $0x48] sm:$0xff] %vm922_vm9, %v13126_v14  ;;  %1381 = vst.msk [vmem:[#allocation3 + $0x78] sm:$0xff] %vm922_vm9, %v13137_v15  ;;  %v11727_v14 = vld [vmem:[#allocation4 + $0x58] sm:$0xff]   ;;  %v1396_v15 = vld [vmem:[#allocation3 + $0x10] sm:$0x7f] }
 0x25c   : > { %1383 = vst.msk [vmem:[#allocation3 + $0xa8] sm:$0xff] %vm922_vm9, %v13145_v18  ;;  %1385 = vst.msk [vmem:[#allocation3 + $0xd8] sm:$0xff] %vm922_vm9, %v13163_v62  ;;  %v15574_v18 = vld [vmem:[#allocation49_spill] sm:$0xff]  ;;  %10943 = vmatprep.subr.bf16.mxu0 %v11727_v14 }
 0x25d   : > { %1387 = vst.msk [vmem:[#allocation3 + $0x108] sm:$0xff] %vm922_vm9, %v13185_v24  ;;  %1389 = vst.msk [vmem:[#allocation3 + $0x138] sm:$0xff] %vm922_vm9, %v13211_v26  ;;  %v15576_v48 = vor.u32 %v15574_v18, %v15575_v49  ;;  %v3420_v24 = vor.u32 %v13408_v31, %v13387_v40  ;;  %v13542_v26 = vrot.slane %v12192_v5, 1  ;;  %v1641_v40 = vrot.slane %v13418_v17, 2  ;;  %v1408_v5 = vld [vmem:[#allocation3 + $0xa0] sm:$0x7f]  ;;  %10944 = vmatpush3.bf16.msra.mxu0 %v11727_v14 }
 0x25e   : > { %1391 = vst.msk [vmem:[#allocation3 + $0x168] sm:$0xff] %vm922_vm9, %v13253_v63  ;;  %1393 = vst.msk [vmem:[#allocation3 + $0x198] sm:$0xff] %vm922_vm9, %v13285_v22  ;;  %v1968_v63 = vld [vmem:[%s15578_s26] sm:$0x3]  ;;  %v13577_v17 = vadd.f32 %v15410_v33, %v1404_v45  ;;  %v1554_v31 = vld [vmem:[#allocation3 + $0x10] sm:$0xfe] }
 0x25f   : > { %v13537_v62 = vsel %vm13356_vm8, %v13385_v0, %v15576_v48  ;;  %15577 = vst [vmem:[#allocation40_spill] sm:$0xff] %v13542_v26  ;;  %v13547_v22 = vld [vmem:[#allocation3 + $0xa0] sm:$0xfe]  ;;  %v13556_v0 = vadd.f32 %v1476_v29, %v13415_v61  ;;  %v3421_v44 = vrot.slane %v3420_v24, 4  ;;  %v15417_v61 = vrot.slane %v13142_v27, 1  ;;  %v15584_v48 = vld [vmem:[#allocation55_spill] sm:$0xff] }
 0x260   : > { %v1416_v18 = vld [vmem:[#allocation3 + $0x100] sm:$0x7f]  ;;  %v15585_v24 = vor.u32 %v15583_v4, %v15584_v48  ;;  %v13598_v47 = vrot.slane %v1968_v63, %v15587_v35  ;;  %v13601_v4 = vrot.slane %v1996_v3, %v15587_v35  ;;  %v15588_v48 = vld [vmem:[#allocation24_spill] sm:$0xff]  ;;  %v1514_v60 = vadd.f32 %v13542_v26, %v1394_v39  ;;  %v1435_v39 = vld [vmem:[#allocation3 + $0x18] sm:$0xff] }
 0x261   : > { %v13585_v49 = vld [vmem:[#allocation4 + $0x60] sm:$0xff]   ;;  %v1516_v56 = vadd.f32 %v13542_v26, %v1396_v15  ;;  %v13615_v28 = vadd.f32 %v15417_v61, %v1408_v5  ;;  %v1635_v30 = vrot.slane %v1554_v31, 2  ;;  %v1739_v15 = vadd.f32 %v1641_v40, %v1518_v36  ;;  %v1561_v26 = vld [vmem:[#allocation3 + $0x58] sm:$0x1] }
 0x262   : > { %v13592_v45 = vsel %vm13356_vm8, %v3421_v44, %v15585_v24  ;;  %v13604_v44 = vrot.slane %v1968_v63, %v15588_v48  ;;  %v13607_v24 = vrot.slane %v1996_v3, %v15588_v48  ;;  %v1556_v33 = vld [vmem:[#allocation3 + $0x20] sm:$0x1]  ;;  %v1397_v48 = vld [vmem:[#allocation3 + $0x18] sm:$0x7f]  ;;  %v1401_v29 = vld [vmem:[#allocation3 + $0x48] sm:$0x7f]  ;;  %v13621_v35 = vadd.f32 %v15589_v53, %v1412_v8  ;;  %10953 = vmatprep.subr.bf16.mxu0 %v13585_v49 }
 0x263   : > { %15586 = vst [vmem:[#allocation26_spill] sm:$0xff] %v13592_v45  ;;  %v1637_v3 = vrot.slane %v1556_v33, 2  ;;  %v15590_v5 = vrot.slane %v13174_v10, 1  ;;  %v15591_v63 = vrot.slane %v13201_v25, 1  ;;  %v1644_v14 = vsel %vm1634_vm11, %v1641_v40, %v1643_v41  ;;  %v1437_v36 = vld [vmem:[#allocation3 + $0x48] sm:$0xff] }
 0x264   : > { %v1735_v12 = vadd.f32 %v1635_v30, %v1514_v60  ;;  %v1475_v57 = vrot.slane %v1435_v39, 1  ;;  %v1557_v8 = vld [vmem:[#allocation3 + $0x28] sm:$0x1]  ;;  %v1741_v20 = vadd.f32 %v1644_v14, %v13556_v0  ;;  %v1402_v41 = vld [vmem:[#allocation3 + $0x60] sm:$0x80]  ;;  %v15593_v60 = vcombine.low %v13262_v52, %v13241_v2 }
 0x265   : > { %v13625_v61 = vadd.f32 %v15590_v5, %v1416_v18  ;;  %v13629_v31 = vadd.f32 %v15591_v63, %v1420_v50  ;;  %v1638_v33 = vsel %vm1634_vm11, %v1635_v30, %v1637_v3  ;;  %v1477_v18 = vrot.slane %v1437_v36, 1  ;;  %v1559_v5 = vld [vmem:[#allocation3 + $0x48] sm:$0xfe]  ;;  %v1564_v40 = vld [vmem:[#allocation3 + $0x80] sm:$0x1]  ;;  %v1439_v30 = vld [vmem:[#allocation3 + $0x78] sm:$0xff] }
 0x266   : > { %v1737_v53 = vadd.f32 %v1638_v33, %v1516_v56  ;;  %v1775_v50 = vadd.f32 %v1739_v15, %v1735_v12  ;;  %v1515_v63 = vadd.f32 %v1475_v57, %v1395_v16  ;;  %v1517_v3 = vadd.f32 %v1475_v57, %v1397_v48  ;;  %10945 = vmatprep.mubr.msk.bf16.mxu0 %vm1058_vm1, %v15593_v60  ;;  %v1563_v48 = vld [vmem:[#allocation3 + $0x78] sm:$0xfe]  ;;  %v1565_v36 = vld [vmem:[#allocation3 + $0x88] sm:$0x1] }
 0x267   : > { %15592 = vst [vmem:[#allocation36_spill] sm:$0xff] %v13629_v31  ;;  %v1639_v31 = vrot.slane %v1557_v8, 2  ;;  %v1519_v0 = vadd.f32 %v1477_v18, %v1399_v6  ;;  %v1521_v39 = vadd.f32 %v1477_v18, %v1401_v29  ;;  %v1642_v33 = vrot.slane %v1559_v5, 2  ;;  %v1405_v2 = vld [vmem:[#allocation3 + $0x78] sm:$0x7f] }
 0x268   : > { %v1777_v56 = vadd.f32 %v1741_v20, %v1737_v53  ;;  %v1645_v34 = vrot.slane %v1561_v26, 2  ;;  %v1736_v12 = vadd.f32 %v1636_v32, %v1515_v63  ;;  %v15594_v57 = vrot.slane %v13130_v19, 1 }
 0x269   : > { %v1640_v14 = vsel %vm1634_vm11, %v1636_v32, %v1639_v31  ;;  %v1740_v25 = vadd.f32 %v1642_v33, %v1519_v0  ;;  %v1649_v45 = vrot.slane %v1564_v40, 2  ;;  %v1479_v52 = vrot.slane %v1439_v30, 1  ;;  %v1406_v31 = vld [vmem:[#allocation3 + $0x90] sm:$0x80] }
 0x26a   : > { %v1522_v16 = vadd.f32 %v15594_v57, %v1402_v41  ;;  %v1738_v8 = vadd.f32 %v1640_v14, %v1517_v3  ;;  %v1646_v53 = vsel %vm1634_vm11, %v1642_v33, %v1645_v34  ;;  %v15595_v6 = vrot.slane %v13513_v51, 2  ;;  %v11729_v3 = vld [vmem:[#allocation4 + $0x68] sm:$0xff]   ;;  %v1568_v33 = vld [vmem:[#allocation3 + $0xb0] sm:$0x1] }
 0x26b   : > { %v1648_v18 = vrot.slane %v1563_v48, 2  ;;  %v1651_v5 = vrot.slane %v1565_v36, 2  ;;  %v1742_v26 = vadd.f32 %v1646_v53, %v1521_v39  ;;  %v1776_v32 = vadd.f32 %v1740_v25, %v1736_v12 }
 0x26c   : > { %v1743_v29 = vadd.f32 %v15595_v6, %v1522_v16  ;;  %v15596_v19 = vmov %v15595_v6  ;;  %v1523_v41 = vadd.f32 %v1479_v52, %v1403_v38  ;;  %v1525_v0 = vadd.f32 %v1479_v52, %v1405_v2  ;;  %v1569_v52 = vld [vmem:[#allocation3 + $0xb8] sm:$0x1] }
 0x26d   : > { %v1650_v63 = vsel %vm1634_vm11, %v15596_v19, %v1649_v45  ;;  %v1778_v14 = vadd.f32 %v1742_v26, %v1738_v8  ;;  %v1652_v34 = vsel %vm1634_vm11, %v1648_v18, %v1651_v5  ;;  %v15597_v39 = vrot.slane %v13142_v27, 1  ;;  %v1409_v5 = vld [vmem:[#allocation3 + $0xa8] sm:$0x7f] }
 0x26e   : > { %v1745_v40 = vadd.f32 %v1650_v63, %v13577_v17  ;;  %v1779_v60 = vadd.f32 %v1743_v29, %v1739_v15  ;;  %v1807_v30 = vadd.f32 %v1775_v50, %v1743_v29  ;;  %v13652_v57 = vadd.f32 %v1648_v18, %v1523_v41  ;;  %v1407_v18 = vld [vmem:[#allocation3 + $0x98] sm:$0x80]  ;;  %v1410_v41 = vld [vmem:[#allocation3 + $0xc0] sm:$0x80] }
 0x26f   : > { %v1526_v12 = vadd.f32 %v15597_v39, %v1406_v31  ;;  %v15598_v51 = vcombine.low %v13281_v46, %v13268_v7  ;;  %v1746_v15 = vadd.f32 %v1652_v34, %v1525_v0  ;;  %v15599_v50 = vcombine.low %v13300_v55, %v13306_v43 }
 0x270   : > { %v1781_v45 = vadd.f32 %v1745_v40, %v1741_v20  ;;  %v1809_v38 = vadd.f32 %v1777_v56, %v1745_v40  ;;  %v1839_v17 = vmul.f32 0.11111111, %v1807_v30  ;;  %v1780_v16 = vadd.f32 %v13652_v57, %v1740_v25  ;;  %v1441_v20 = vld [vmem:[#allocation3 + $0xa8] sm:$0xff] }
 0x271   : > { %10946 = vmatmul.mubr.msk.bf16.vlgmr.msra.gmra.mrb[0].mxu0 %vm1058_vm1, %v15598_v51  ;;  %v1808_v27 = vadd.f32 %v1776_v32, %v13652_v57  ;;  %v1655_v48 = vrot.slane %v1568_v33, 2  ;;  %v15600_v7 = vrot.slane %v13547_v22, 2  ;;  %v1567_v56 = vld [vmem:[#allocation3 + $0xa8] sm:$0xfe]  ;;  %v1810_v2 = vadd.f32 %v1778_v14, %v1746_v15 }
 0x272   : > { %10954 = vmatpush3.bf16.msra.mxu0 %v13585_v49  ;;  %10949 = vmatprep.mubr.msk.bf16.mxu0 %vm1058_vm1, %v15599_v50  ;;  %v1841_v36 = vmul.f32 0.11111111, %v1809_v38  ;;  %v1904_v8 = vrot.slane %v1839_v17, 7  ;;  %v1782_v49 = vadd.f32 %v1746_v15, %v1742_v26  ;;  %v1481_v63 = vrot.slane %v1441_v20, 1  ;;  %v1572_v38 = vld [vmem:[#allocation3 + $0xe0] sm:$0x1] }
 0x273   : > { %v13669_v46 = vadd.f32 %v15600_v7, %v1526_v12  ;;  %10955 = vmatprep.subr.bf16.mxu0 %v11729_v3  ;;  %v1840_v55 = vmul.f32 0.11111111, %v1808_v27  ;;  %v15601_v43 = vmov %v15600_v7  ;;  %v1842_v32 = vmul.f32 0.11111111, %v1810_v2 }
 0x274   : > { %v1656_v25 = vsel %vm1634_vm11, %v15601_v43, %v1655_v48  ;;  %v1905_v31 = vrot.slane %v1841_v36, 7  ;;  %v1654_v0 = vrot.slane %v1567_v56, 2  ;;  %v1657_v33 = vrot.slane %v1569_v52, 2  ;;  %v1411_v43 = vld [vmem:[#allocation3 + $0xc8] sm:$0x80] }
 0x275   : > { %v1783_v53 = vadd.f32 %v13669_v46, %v1743_v29  ;;  %v1811_v6 = vadd.f32 %v1779_v60, %v13669_v46  ;;  %v1749_v19 = vadd.f32 %v1656_v25, %v13615_v28  ;;  %v1907_v26 = vrot.slane %v1840_v55, 7  ;;  %v1443_v28 = vld [vmem:[#allocation3 + $0xd8] sm:$0xff] }
 0x276   : > { %10956 = vmatpush3.bf16.msra.mxu0 %v11729_v3  ;;  %v1906_v22 = vsel %vm1903_vm2, %v1904_v8, %v1905_v31  ;;  %v1908_v14 = vrot.slane %v1842_v32, 7  ;;  %v1527_v12 = vadd.f32 %v1481_v63, %v1407_v18  ;;  %v1529_v51 = vadd.f32 %v1481_v63, %v1409_v5 }
 0x277   : > { %v1843_v30 = vmul.f32 0.11111111, %v1811_v6  ;;  %v1785_v29 = vadd.f32 %v1749_v19, %v1745_v40  ;;  %v1813_v34 = vadd.f32 %v1781_v45, %v1749_v19  ;;  %v1980_v60 = vmul.f32 %v13598_v47, %v1906_v22 }
 0x278   : > { %v15602_v3 = vcombine.low %v13338_v59, %v13346_v58  ;;  %v1909_v17 = vsel %vm1903_vm2, %v1907_v26, %v1908_v14  ;;  %v1658_v27 = vsel %vm1634_vm11, %v1654_v0, %v1657_v33  ;;  %v15603_v40 = vrot.slane %v13152_v54, 1  ;;  %v1571_v26 = vld [vmem:[#allocation3 + $0xd8] sm:$0xfe] }
 0x279   : > { %v1910_v39 = vrot.slane %v1843_v30, 7  ;;  %v1845_v50 = vmul.f32 0.11111111, %v1813_v34  ;;  %v15604_v48 = vcombine.low %v13399_v37, %v13372_v42  ;;  %v2008_v7 = vadd.f32 %v13601_v4, %v1980_v60  ;;  %v1573_v30 = vld [vmem:[#allocation3 + $0xe8] sm:$0x1] }
 0x27a   : > { %10950 = vmatmul.mubr.msk.bf16.gmra.mrb[4].mxu0 %vm1058_vm1, %v15602_v3  ;;  %v1530_v45 = vadd.f32 %v15603_v40, %v1410_v41  ;;  %v1981_v59 = vmul.f32 %v13604_v44, %v1909_v17  ;;  %v1748_v58 = vadd.f32 %v1654_v0, %v1527_v12  ;;  %v13694_v20 = vadd.f32 %v1658_v27, %v1529_v51 }
 0x27b   : > { %10957 = vmatprep.mubr.msk.bf16.mxu0 %vm1058_vm1, %v15604_v48  ;;  %v1911_v56 = vrot.slane %v1845_v50, 7  ;;  %v1661_v36 = vrot.slane %v1572_v38, 2  ;;  %v15605_v8 = vrot.slane %v13549_v1, 2  ;;  %v1483_v54 = vrot.slane %v1443_v28, 1 }
 0x27c   : > { %v2024_v52 = vmax.f32 %v2008_v7, 0.0  ;;  %v2009_v55 = vadd.f32 %v13607_v24, %v1981_v59  ;;  %v1784_v42 = vadd.f32 %v1748_v58, %v13652_v57  ;;  %v1786_v37 = vadd.f32 %v13694_v20, %v1746_v15  ;;  %v1413_v57 = vld [vmem:[#allocation3 + $0xd8] sm:$0x7f] }
 0x27d   : > { %v1751_v2 = vadd.f32 %v15605_v8, %v1530_v45  ;;  %v1912_v25 = vsel %vm1903_vm2, %v1910_v39, %v1911_v56  ;;  %v1812_v6 = vadd.f32 %v1780_v16, %v1748_v58  ;;  %v1814_v18 = vadd.f32 %v1782_v49, %v13694_v20  ;;  %v1414_v49 = vld [vmem:[#allocation3 + $0xf0] sm:$0x80]  ;;  %v1576_v39 = vld [vmem:[#allocation3 + $0x110] sm:$0x1] }
 0x27e   : > { %v15606_v5 = vmov %v15605_v8  ;;  %10069 = vst [vmem:[%s13704_s20 + $0x180] sm:$0xff] %v2024_v52  ;;  %v2025_v15 = vmax.f32 %v2009_v55, 0.0  ;;  %v1982_v32 = vmul.f32 %v13598_v47, %v1912_v25  ;;  %v1531_v22 = vadd.f32 %v1483_v54, %v1411_v43  ;;  %v1445_v43 = vld [vmem:[#allocation3 + $0x108] sm:$0xff] }
 0x27f   : > { %v1662_v31 = vsel %vm1634_vm11, %v15606_v5, %v1661_v36  ;;  %v1787_v41 = vadd.f32 %v1751_v2, %v13669_v46  ;;  %v1844_v0 = vmul.f32 0.11111111, %v1812_v6  ;;  %v1846_v16 = vmul.f32 0.11111111, %v1814_v18  ;;  %v1577_v18 = vld [vmem:[#allocation3 + $0x118] sm:$0x1] }
 0x280   : > { %v1753_v63 = vadd.f32 %v1662_v31, %v13621_v35  ;;  %v1815_v33 = vadd.f32 %v1783_v53, %v1751_v2  ;;  %10070 = vst.msk [vmem:[%s13704_s20 + $0x188] sm:$0xff] %vm922_vm9, %v2025_v15  ;;  %v2010_v1 = vadd.f32 %v13601_v4, %v1982_v32  ;;  %v1533_v60 = vadd.f32 %v1483_v54, %v1413_v57  ;;  %v1417_v15 = vld [vmem:[#allocation3 + $0x108] sm:$0x7f]  ;;  %v1578_v32 = vld [vmem:[#allocation3 + $0x130] sm:$0xfe] }
 0x281   : > { %v15607_v35 = vcombine.low %v13406_v9, %v13383_v21  ;;  %v1913_v46 = vrot.slane %v1844_v0, 7  ;;  %v1914_v12 = vrot.slane %v1846_v16, 7  ;;  %v1660_v53 = vrot.slane %v1571_v26, 2  ;;  %v13758_v26 = vpop.permute.xlu0 %4763 }
 0x282   : > { %v1789_v14 = vadd.f32 %v1753_v63, %v1749_v19  ;;  %v1817_v34 = vadd.f32 %v1785_v29, %v1753_v63  ;;  %v1847_v51 = vmul.f32 0.11111111, %v1815_v33  ;;  %v15608_v38 = vcombine.low %v13537_v62, %v13505_v23  ;;  %v1418_v33 = vld [vmem:[#allocation3 + $0x120] sm:$0x80] }
 0x283   : > { %10958 = vmatmul.mubr.msk.bf16.vlgmr.msra.gmra.mrb[0].mxu0 %vm1058_vm1, %v15607_v35  ;;  %v2026_v28 = vmax.f32 %v2010_v1, 0.0  ;;  %v1663_v29 = vrot.slane %v1573_v30, 2  ;;  %v15609_v3 = vrot.slane %v13174_v10, 1  ;;  %v1915_v50 = vsel %vm1903_vm2, %v1913_v46, %v1914_v12  ;;  %v1580_v35 = vld [vmem:[#allocation3 + $0x140] sm:$0x1]  ;;  %v1447_v46 = vld [vmem:[#allocation3 + $0x138] sm:$0xff] }
 0x284   : > { %10961 = vmatprep.mubr.msk.bf16.mxu0 %vm1058_vm1, %v15608_v38  ;;  %v1849_v19 = vmul.f32 0.11111111, %v1817_v34  ;;  %v1916_v21 = vrot.slane %v1847_v51, 7  ;;  %v13729_v9 = vadd.f32 %v1660_v53, %v1531_v22  ;;  %v1667_v27 = vrot.slane %v1576_v39, 2  ;;  %v15614_v38 = vld [vmem:[#allocation33_spill] sm:$0xff] }
 0x285   : > { %v1534_v17 = vadd.f32 %v15609_v3, %v1414_v49  ;;  %10071 = vst [vmem:[%s13704_s20 + $0x190] sm:$0xff] %v2026_v28  ;;  %v1983_v40 = vmul.f32 %v13604_v44, %v1915_v50  ;;  %v1664_v23 = vsel %vm1634_vm11, %v1660_v53, %v1663_v29  ;;  %v15610_v62 = vrot.slane %v13562_v11, 2  ;;  %v1575_v11 = vld [vmem:[#allocation3 + $0x108] sm:$0xfe] }
 0x286   : > { %v1917_v45 = vrot.slane %v1849_v19, 7  ;;  %v1754_v7 = vadd.f32 %v1664_v23, %v1533_v60  ;;  %v1788_v10 = vadd.f32 %v13729_v9, %v1748_v58  ;;  %v1816_v59 = vadd.f32 %v1784_v42, %v13729_v9 }
 0x287   : > { %v13736_v48 = vadd.f32 %v15610_v62, %v1534_v17  ;;  %v15611_v56 = vmov %v15610_v62  ;;  %v2011_v8 = vadd.f32 %v13607_v24, %v1983_v40  ;;  %v1666_v49 = vrot.slane %v1575_v11, 2  ;;  %v13778_v62 = vpop.permute.xlu0 %4765 }
 0x288   : > { %v1668_v36 = vsel %vm1634_vm11, %v15611_v56, %v1667_v27  ;;  %v1918_v54 = vsel %vm1903_vm2, %v1916_v21, %v1917_v45  ;;  %v1790_v58 = vadd.f32 %v1754_v7, %v13694_v20  ;;  %v1818_v42 = vadd.f32 %v1786_v37, %v1754_v7  ;;  %v15612_v20 = vld [vmem:[#allocation26_spill] sm:$0xff]  ;;  %v1419_v45 = vld [vmem:[#allocation3 + $0x128] sm:$0x80] }
 0x289   : > { %v13746_v52 = vadd.f32 %v1668_v36, %v13625_v61  ;;  %v13749_v55 = vadd.f32 %v13736_v48, %v1751_v2  ;;  %v1984_v25 = vmul.f32 %v13598_v47, %v1918_v54  ;;  %v1848_v6 = vmul.f32 0.11111111, %v1816_v59  ;;  %v1415_v2 = vld [vmem:[#allocation3 + $0xf8] sm:$0x80] }
 0x28a   : > { %v2027_v5 = vmax.f32 %v2011_v8, 0.0  ;;  %v1819_v61 = vadd.f32 %v1787_v41, %v13736_v48  ;;  %v15613_v37 = vcombine.low %v13569_v13, %v15612_v20  ;;  %v1850_v0 = vmul.f32 0.11111111, %v1818_v42  ;;  %v1581_v20 = vld [vmem:[#allocation3 + $0x148] sm:$0x1] }
 0x28b   : > { %v13754_v31 = vadd.f32 %v13746_v52, %v1753_v63  ;;  %v1821_v57 = vadd.f32 %v1789_v14, %v13746_v52  ;;  %v2012_v30 = vadd.f32 %v13601_v4, %v1984_v25  ;;  %v1919_v16 = vrot.slane %v1848_v6, 7  ;;  %v13767_v14 = vpop.permute.xlu1 %4767  ;;  %v1582_v6 = vld [vmem:[#allocation3 + $0x160] sm:$0xfe] }
 0x28c   : > { %10962 = vmatmul.mubr.msk.bf16.gmra.mrb[4].mxu0 %vm1058_vm1, %v15613_v37  ;;  %v1485_v63 = vrot.slane %v1445_v43, 1  ;;  %10072 = vst.msk [vmem:[%s13704_s20 + $0x198] sm:$0xff] %vm922_vm9, %v2027_v5  ;;  %v1851_v41 = vmul.f32 0.11111111, %v1819_v61  ;;  %v1669_v1 = vrot.slane %v1577_v18, 2  ;;  %v1920_v60 = vrot.slane %v1850_v0, 7  ;;  %v13798_v37 = vpop.permute.xlu0 %4771 }
 0x28d   : > { %v1853_v22 = vmul.f32 0.11111111, %v1821_v57  ;;  %v2028_v34 = vmax.f32 %v2012_v30, 0.0  ;;  %v15615_v28 = vrot.slane %v15614_v38, 1  ;;  %v1671_v50 = vrot.slane %v1578_v32, 2  ;;  %v15616_v61 = vld [vmem:[#allocation36_spill] sm:$0xff] }
 0x28e   : > { %v1535_v13 = vadd.f32 %v1485_v63, %v1415_v2  ;;  %v1537_v39 = vadd.f32 %v1485_v63, %v1417_v15  ;;  %v1922_v12 = vrot.slane %v1851_v41, 7  ;;  %v1670_v53 = vsel %vm1634_vm11, %v1666_v49, %v1669_v1  ;;  %v1584_v41 = vld [vmem:[#allocation3 + $0x170] sm:$0x1]  ;;  %v1422_v1 = vld [vmem:[#allocation3 + $0x150] sm:$0x80] }
 0x28f   : > { %v1923_v51 = vrot.slane %v1853_v22, 7  ;;  %v1538_v19 = vadd.f32 %v15615_v28, %v1418_v33  ;;  %10073 = vst [vmem:[%s13704_s20 + $0x1a0] sm:$0xff] %v2028_v34  ;;  %v1921_v29 = vsel %vm1903_vm2, %v1919_v16, %v1920_v60  ;;  %v1673_v40 = vrot.slane %v1580_v35, 2  ;;  %v13788_v11 = vpop.permute.xlu1 %4769  ;;  %v1424_v33 = vld [vmem:[#allocation3 + $0x160] sm:$0x7f] }
 0x290   : > { %v1756_v3 = vadd.f32 %v1666_v49, %v1535_v13  ;;  %v13774_v17 = vadd.f32 %v1670_v53, %v1537_v39  ;;  %v1985_v21 = vmul.f32 %v13604_v44, %v1921_v29  ;;  %v1487_v23 = vrot.slane %v1447_v46, 1  ;;  %v15617_v39 = vld [vmem:[#allocation60_spill] sm:$0xff]  ;;  %v13813_v53 = vpop.permute.xlu0 %4775 }
 0x291   : > { %v1924_v27 = vsel %vm1903_vm2, %v1922_v12, %v1923_v51  ;;  %v1674_v25 = vsel %vm1634_vm11, %v1671_v50, %v1673_v40  ;;  %v13786_v42 = vadd.f32 %v1671_v50, %v1538_v19  ;;  %v1675_v13 = vrot.slane %v1581_v20, 2 }
 0x292   : > { %v1986_v59 = vmul.f32 %v13598_v47, %v1924_v27  ;;  %v1792_v56 = vadd.f32 %v1756_v3, %v13729_v9  ;;  %v1794_v36 = vadd.f32 %v13774_v17, %v1754_v7  ;;  %v1820_v8 = vadd.f32 %v1788_v10, %v1756_v3  ;;  %v1421_v9 = vld [vmem:[#allocation3 + $0x138] sm:$0x7f] }
 0x293   : > { %v2013_v54 = vadd.f32 %v13607_v24, %v1985_v21  ;;  %v1822_v43 = vadd.f32 %v1790_v58, %v13774_v17  ;;  %v13792_v57 = vadd.f32 %v1674_v25, %v15616_v61  ;;  %v1539_v7 = vadd.f32 %v1487_v23, %v1419_v45  ;;  %v1579_v10 = vld [vmem:[#allocation3 + $0x138] sm:$0xfe]  ;;  %v13806_v34 = vpop.permute.xlu1 %4773  ;;  %v1449_v45 = vld [vmem:[#allocation3 + $0x168] sm:$0xff] }
 0x294   : > { %v2014_v18 = vadd.f32 %v13601_v4, %v1986_v59  ;;  %v1852_v5 = vmul.f32 0.11111111, %v1820_v8  ;;  %v1795_v58 = vadd.f32 %v13786_v42, %v13736_v48  ;;  %v1823_v32 = vadd.f32 %v13749_v55, %v13786_v42  ;;  %v1583_v25 = vld [vmem:[#allocation3 + $0x168] sm:$0xfe] }
 0x295   : > { %v2029_v2 = vmax.f32 %v2013_v54, 0.0  ;;  %v1854_v15 = vmul.f32 0.11111111, %v1822_v43  ;;  %v1797_v16 = vadd.f32 %v13792_v57, %v13746_v52  ;;  %v1825_v63 = vadd.f32 %v13754_v31, %v13792_v57  ;;  %v1425_v61 = vld [vmem:[#allocation3 + $0x168] sm:$0x7f] }
 0x296   : > { %v2030_v30 = vmax.f32 %v2014_v18, 0.0  ;;  %v1925_v0 = vrot.slane %v1852_v5, 7  ;;  %v1855_v22 = vmul.f32 0.11111111, %v1823_v32  ;;  %v1541_v49 = vadd.f32 %v1487_v23, %v1421_v9  ;;  %v1423_v5 = vld [vmem:[#allocation3 + $0x158] sm:$0x80]  ;;  %v1306_v9 = vpop.permute.xlu0 %1305 }
 0x297   : > { %10074 = vst.msk [vmem:[%s13704_s20 + $0x1a8] sm:$0xff] %vm922_vm9, %v2029_v2  ;;  %v1926_v48 = vrot.slane %v1854_v15, 7  ;;  %v1672_v55 = vrot.slane %v1579_v10, 2  ;;  %v1857_v60 = vmul.f32 0.11111111, %v1825_v63  ;;  %v1488_v35 = vrot.slane %v15617_v39, 1  ;;  %v13821_v23 = vpop.permute.xlu1 %4777 }
 0x298   : > { %10075 = vst [vmem:[%s13704_s20 + $0x1b0] sm:$0xff] %v2030_v30  ;;  %v1677_v52 = vrot.slane %v1582_v6, 2  ;;  %v1928_v31 = vrot.slane %v1855_v22, 7  ;;  %v1679_v51 = vrot.slane %v1584_v41, 2  ;;  %v1489_v15 = vrot.slane %v1449_v45, 1 }
 0x299   : > { %v1927_v46 = vsel %vm1903_vm2, %v1925_v0, %v1926_v48  ;;  %v13811_v12 = vadd.f32 %v1672_v55, %v1539_v7  ;;  %v1929_v28 = vrot.slane %v1857_v60, 7  ;;  %v1676_v19 = vsel %vm1634_vm11, %v1672_v55, %v1675_v13  ;;  %v1585_v32 = vld [vmem:[#allocation3 + $0x178] sm:$0x1]  ;;  %v1428_v22 = vld [vmem:[#allocation3 + $0x190] sm:$0x7f] }
 0x29a   : > { %v1987_v38 = vmul.f32 %v13604_v44, %v1927_v46  ;;  %v1542_v29 = vadd.f32 %v1488_v35, %v1422_v1  ;;  %v13817_v50 = vadd.f32 %v1676_v19, %v1541_v49  ;;  %v1544_v40 = vadd.f32 %v1488_v35, %v1424_v33  ;;  %v1430_v49 = vld [vmem:[#allocation3 + $0x1b0] sm:$0x80]  ;;  %v1310_v35 = vpop.permute.xlu0 %1309  ;;  %v1588_v45 = vld [vmem:[#allocation3 + $0x1a0] sm:$0x1] }
 0x29b   : > { %v1796_v21 = vadd.f32 %v13811_v12, %v1756_v3  ;;  %v1824_v27 = vadd.f32 %v1792_v56, %v13811_v12  ;;  %v1930_v8 = vsel %vm1903_vm2, %v1928_v31, %v1929_v28  ;;  %v1680_v54 = vsel %vm1634_vm11, %v1677_v52, %v1679_v51  ;;  %v1308_v63 = vpop.permute.xlu1 %1307  ;;  %v1586_v39 = vld [vmem:[#allocation3 + $0x190] sm:$0xfe]  ;;  %v1426_v31 = vld [vmem:[#allocation3 + $0x180] sm:$0x80] }
 0x29c   : > { %v2015_v59 = vadd.f32 %v13607_v24, %v1987_v38  ;;  %v13826_v43 = vadd.f32 %v1677_v52, %v1542_v29  ;;  %v1988_v6 = vmul.f32 %v13598_v47, %v1930_v8  ;;  %v1798_v3 = vadd.f32 %v13817_v50, %v13774_v17  ;;  %1362 = vst.msk [vmem:[%s13704_s20 + $0x8] sm:$0xff] %vm922_vm9, %v1308_v63  ;;  %v11926_v51 = vld [vmem:[#allocation3 + $0x190] sm:$0xff] }
 0x29d   : > { %v1826_v56 = vadd.f32 %v1794_v36, %v13817_v50  ;;  %v1856_v18 = vmul.f32 0.11111111, %v1824_v27  ;;  %v13832_v10 = vadd.f32 %v1680_v54, %v1544_v40  ;;  %v1678_v17 = vrot.slane %v1583_v25, 2  ;;  %v15618_v29 = vld [vmem:[#allocation40_spill] sm:$0xff] }
 0x29e   : > { %v2031_v7 = vmax.f32 %v2015_v59, 0.0  ;;  %v1827_v2 = vadd.f32 %v1795_v58, %v13826_v43  ;;  %v2016_v20 = vadd.f32 %v13601_v4, %v1988_v6  ;;  %v1543_v41 = vadd.f32 %v1489_v15, %v1423_v5  ;;  %v1432_v58 = vld [vmem:[#allocation3 + $0x1c0] sm:$0x7f] }
 0x29f   : > { %v1858_v30 = vmul.f32 0.11111111, %v1826_v56  ;;  %v1931_v0 = vrot.slane %v1856_v18, 7  ;;  %v1829_v36 = vadd.f32 %v1797_v16, %v13832_v10  ;;  %v1545_v48 = vadd.f32 %v1489_v15, %v1425_v61  ;;  %v1312_v59 = vpop.permute.xlu1 %1311  ;;  %v1590_v56 = vld [vmem:[#allocation3 + $0x1c0] sm:$0xfe] }
 0x2a0   : > { %10076 = vst.msk [vmem:[%s13704_s20 + $0x1b8] sm:$0xff] %vm922_vm9, %v2031_v7  ;;  %v1859_v33 = vmul.f32 0.11111111, %v1827_v2  ;;  %v1337_v55 = vsel %vm922_vm9, %v1306_v9, %v1308_v63  ;;  %v2032_v1 = vmax.f32 %v2016_v20, 0.0  ;;  %v1681_v13 = vrot.slane %v1585_v32, 2  ;;  %1364 = vst.msk [vmem:[%s13704_s20 + $0x18] sm:$0xff] %vm922_vm9, %v1312_v59  ;;  %v1314_v2 = vpop.permute.xlu0 %1313 }
 0x2a1   : > { %v1932_v60 = vrot.slane %v1858_v30, 7  ;;  %1361 = vst [vmem:[%s13704_s20] sm:$0xff] %v1337_v55  ;;  %v1861_v52 = vmul.f32 0.11111111, %v1829_v36  ;;  %v13843_v16 = vadd.f32 %v1678_v17, %v1543_v41  ;;  %v1490_v38 = vrot.slane %v11926_v51, 1  ;;  %v1592_v18 = vld [vmem:[#allocation3 + $0x1d0] sm:$0x1] }
 0x2a2   : > { %v1934_v46 = vrot.slane %v1859_v33, 7  ;;  %10077 = vst [vmem:[%s13704_s20 + $0x1c0] sm:$0xff] %v2032_v1  ;;  %v1682_v19 = vsel %vm1634_vm11, %v1678_v17, %v1681_v13  ;;  %v1550_v27 = vadd.f32 %v15618_v29, %v1430_v49  ;;  %v1552_v40 = vadd.f32 %v15618_v29, %v1432_v58  ;;  %v1451_v1 = vld [vmem:[#allocation3 + $0x198] sm:$0xff] }
 0x2a3   : > { %v1933_v28 = vsel %vm1903_vm2, %v1931_v0, %v1932_v60  ;;  %v1935_v54 = vrot.slane %v1861_v52, 7  ;;  %v13851_v25 = vadd.f32 %v1682_v19, %v1545_v48  ;;  %v1828_v6 = vadd.f32 %v1796_v21, %v13843_v16  ;;  %v1316_v36 = vpop.permute.xlu1 %1315  ;;  %v1453_v60 = vld [vmem:[#allocation3 + $0x1c8] sm:$0xff]  ;;  %v1429_v29 = vld [vmem:[#allocation3 + $0x198] sm:$0x7f] }
 0x2a4   : > { %v1989_v8 = vmul.f32 %v13604_v44, %v1933_v28  ;;  %v1338_v5 = vsel %vm922_vm9, %v1310_v35, %v1312_v59  ;;  %v1546_v61 = vadd.f32 %v1490_v38, %v1426_v31  ;;  %v1548_v9 = vadd.f32 %v1490_v38, %v1428_v22  ;;  %1366 = vst.msk [vmem:[%s13704_s20 + $0x28] sm:$0xff] %vm922_vm9, %v1316_v36  ;;  %v1318_v13 = vpop.permute.xlu0 %1317  ;;  %v1427_v19 = vld [vmem:[#allocation3 + $0x188] sm:$0x80] }
 0x2a5   : > { %v1683_v7 = vrot.slane %v1586_v39, 2  ;;  %1363 = vst [vmem:[%s13704_s20 + $0x10] sm:$0xff] %v1338_v5  ;;  %v1936_v32 = vsel %vm1903_vm2, %v1934_v46, %v1935_v54  ;;  %v1830_v20 = vadd.f32 %v1798_v3, %v13851_v25  ;;  %v1860_v30 = vmul.f32 0.11111111, %v1828_v6 }
 0x2a6   : > { %v2017_v15 = vadd.f32 %v13607_v24, %v1989_v8  ;;  %v1990_v21 = vmul.f32 %v13598_v47, %v1936_v32  ;;  %v1685_v0 = vrot.slane %v1588_v45, 2  ;;  %v1689_v17 = vrot.slane %v1590_v56, 2  ;;  %v1433_v56 = vld [vmem:[#allocation3 + $0x1c8] sm:$0x7f] }
 0x2a7   : > { %v1691_v63 = vrot.slane %v1592_v18, 2  ;;  %v1862_v41 = vmul.f32 0.11111111, %v1830_v20  ;;  %v1937_v48 = vrot.slane %v1860_v30, 7  ;;  %v1767_v22 = vadd.f32 %v1683_v7, %v1546_v61  ;;  %v1320_v45 = vpop.permute.xlu1 %1319  ;;  %v1587_v18 = vld [vmem:[#allocation3 + $0x198] sm:$0xfe] }
 0x2a8   : > { %v2033_v33 = vmax.f32 %v2017_v15, 0.0  ;;  %v1339_v49 = vsel %vm922_vm9, %v1314_v2, %v1316_v36  ;;  %v2018_v58 = vadd.f32 %v13601_v4, %v1990_v21  ;;  %v1686_v3 = vsel %vm1634_vm11, %v1683_v7, %v1685_v0  ;;  %1368 = vst.msk [vmem:[%s13704_s20 + $0x38] sm:$0xff] %vm922_vm9, %v1320_v45  ;;  %v1322_v5 = vpop.permute.xlu0 %1321  ;;  %v1589_v2 = vld [vmem:[#allocation3 + $0x1a8] sm:$0x1]  ;;  %v1591_v15 = vld [vmem:[#allocation3 + $0x1c8] sm:$0xfe] }
 0x2a9   : > { %v1692_v55 = vsel %vm1634_vm11, %v1689_v17, %v1691_v63  ;;  %1365 = vst [vmem:[%s13704_s20 + $0x20] sm:$0xff] %v1339_v49  ;;  %v1938_v39 = vrot.slane %v1862_v41, 7  ;;  %v1769_v35 = vadd.f32 %v1686_v3, %v1548_v9  ;;  %v1771_v52 = vadd.f32 %v1689_v17, %v1550_v27  ;;  %v1431_v27 = vld [vmem:[#allocation3 + $0x1b8] sm:$0x80]  ;;  %v1593_v0 = vld [vmem:[#allocation3 + $0x1d8] sm:$0x1] }
 0x2aa   : > { %10078 = vst.msk [vmem:[%s13704_s20 + $0x1c8] sm:$0xff] %vm922_vm9, %v2033_v33  ;;  %v1773_v46 = vadd.f32 %v1692_v55, %v1552_v40  ;;  %v2034_v31 = vmax.f32 %v2018_v58, 0.0  ;;  %v1799_v51 = vadd.f32 %v13826_v43, %v13786_v42  ;;  %v1801_v38 = vadd.f32 %v13832_v10, %v13792_v57 }
 0x2ab   : > { %v1803_v28 = vadd.f32 %v1767_v22, %v13826_v43  ;;  %v1939_v59 = vsel %vm1903_vm2, %v1937_v48, %v1938_v39  ;;  %v1805_v8 = vadd.f32 %v1769_v35, %v13832_v10  ;;  %v1491_v54 = vrot.slane %v1451_v1, 1  ;;  %v1324_v17 = vpop.permute.xlu1 %1323 }
 0x2ac   : > { %v1493_v40 = vrot.slane %v1453_v60, 1  ;;  %v1340_v6 = vsel %vm922_vm9, %v1318_v13, %v1320_v45  ;;  %10079 = vst [vmem:[%s13704_s20 + $0x1d0] sm:$0xff] %v2034_v31  ;;  %v1991_v42 = vmul.f32 %v13604_v44, %v1939_v59  ;;  %v1831_v57 = vadd.f32 %v1799_v51, %v1767_v22  ;;  %1370 = vst.msk [vmem:[%s13704_s20 + $0x48] sm:$0xff] %vm922_vm9, %v1324_v17  ;;  %v1326_v3 = vpop.permute.xlu0 %1325 }
 0x2ad   : > { %v1833_v43 = vadd.f32 %v1801_v38, %v1769_v35  ;;  %1367 = vst [vmem:[%s13704_s20 + $0x30] sm:$0xff] %v1340_v6  ;;  %v1835_v61 = vadd.f32 %v1803_v28, %v1771_v52  ;;  %v1837_v9 = vadd.f32 %v1805_v8, %v1773_v46  ;;  %v1547_v10 = vadd.f32 %v1491_v54, %v1427_v19 }
 0x2ae   : > { %v1549_v7 = vadd.f32 %v1491_v54, %v1429_v29  ;;  %v2019_v32 = vadd.f32 %v13607_v24, %v1991_v42  ;;  %v1863_v20 = vmul.f32 0.11111111, %v1831_v57  ;;  %v1551_v21 = vadd.f32 %v1493_v40, %v1431_v27 }
 0x2af   : > { %v1865_v30 = vmul.f32 0.11111111, %v1833_v43  ;;  %v1867_v63 = vmul.f32 0.11111111, %v1835_v61  ;;  %v1869_v36 = vmul.f32 0.11111111, %v1837_v9  ;;  %v1553_v33 = vadd.f32 %v1493_v40, %v1433_v56  ;;  %v1328_v31 = vpop.permute.xlu1 %1327 }
 0x2b0   : > { %v1684_v41 = vrot.slane %v1587_v18, 2  ;;  %v1341_v48 = vsel %vm922_vm9, %v1322_v5, %v1324_v17  ;;  %v2035_v22 = vmax.f32 %v2019_v32, 0.0  ;;  %v1940_v49 = vrot.slane %v1863_v20, 7  ;;  %1372 = vst.msk [vmem:[%s13704_s20 + $0x58] sm:$0xff] %vm922_vm9, %v1328_v31 }
 0x2b1   : > { %v1941_v58 = vrot.slane %v1865_v30, 7  ;;  %1369 = vst [vmem:[%s13704_s20 + $0x40] sm:$0xff] %v1341_v48  ;;  %v1946_v55 = vrot.slane %v1867_v63, 7  ;;  %v1947_v1 = vrot.slane %v1869_v36, 7  ;;  %v1687_v60 = vrot.slane %v1589_v2, 2 }
 0x2b2   : > { %v1690_v13 = vrot.slane %v1591_v15, 2  ;;  %10080 = vst.msk [vmem:[%s13704_s20 + $0x1d8] sm:$0xff] %vm922_vm9, %v2035_v22  ;;  %v1693_v35 = vrot.slane %v1593_v0, 2  ;;  %v1768_v52 = vadd.f32 %v1684_v41, %v1547_v10  ;;  %v1800_v46 = vadd.f32 %v13843_v16, %v13811_v12  ;;  %v1330_v12 = vpop.permute.xlu0 %1329 }
 0x2b3   : > { %v1942_v39 = vsel %vm1903_vm2, %v1940_v49, %v1941_v58  ;;  %v1948_v51 = vsel %vm1903_vm2, %v1946_v55, %v1947_v1  ;;  %v1688_v28 = vsel %vm1634_vm11, %v1684_v41, %v1687_v60  ;;  %v1342_v29 = vsel %vm922_vm9, %v1326_v3, %v1328_v31  ;;  %v1332_v43 = vpop.permute.xlu1 %1331  ;;  %v11730_v49 = vld [vmem:[%s15352_s9 + $0x20] ss:$8 sps:$4 sm:$0xff]   ;;  %v11732_v58 = vld [vmem:[%s15352_s9 + $0x24] ss:$8 sps:$4 sm:$0xff]   ;;  %v11735_v3 = vld [vmem:[%s15352_s9 + $0x34] ss:$8 sps:$4 sm:$0xff]  }
 0x2b4   : > { %v1992_v38 = vmul.f32 %v13598_v47, %v1942_v39  ;;  %v1772_v19 = vadd.f32 %v1690_v13, %v1551_v21  ;;  %v1994_v45 = vmul.f32 %v13598_v47, %v1948_v51  ;;  %v1694_v59 = vsel %vm1634_vm11, %v1690_v13, %v1693_v35  ;;  %1371 = vst [vmem:[%s13704_s20 + $0x50] sm:$0xff] %v1342_v29  ;;  %v11736_v55 = vld [vmem:[#allocation12 + $0x10] sm:$0xff]   ;;  %v11738_v60 = vld [vmem:[#allocation12 + $0x18] sm:$0xff]  }
 0x2b5   : > { %v1770_v8 = vadd.f32 %v1688_v28, %v1549_v7  ;;  %v1774_v54 = vadd.f32 %v1694_v59, %v1553_v33  ;;  %v1802_v40 = vadd.f32 %v13851_v25, %v13817_v50  ;;  %v1804_v6 = vadd.f32 %v1768_v52, %v13843_v16  ;;  %1374 = vst.msk [vmem:[%s13704_s20 + $0x68] sm:$0xff] %vm922_vm9, %v1332_v43  ;;  %v11740_v13 = vld [vmem:[#allocation2 + $0x4c] ss:$12 sps:$4 sm:$0xff]   ;;  %v11747_v51 = vld [vmem:[%s15352_s9] ss:$8 sps:$4 sm:$0xff]  }
 0x2b6   : > { %v2020_v27 = vadd.f32 %v13601_v4, %v1992_v38  ;;  %v2022_v42 = vadd.f32 %v13601_v4, %v1994_v45  ;;  %v1832_v57 = vadd.f32 %v1800_v46, %v1768_v52  ;;  %v1343_v61 = vsel %vm922_vm9, %v1330_v12, %v1332_v43  ;;  %v1334_v2 = vpop.permute.xlu0 %1333  ;;  %3678 = vmatprep.subr.bf16.mxu1 %v11732_v58  ;;  %v11737_v35 = vld [vmem:[#allocation2 + $0x4c] ss:$12 sps:$4 sm:$0xff]  }
 0x2b7   : > { %v1806_v47 = vadd.f32 %v1770_v8, %v13851_v25  ;;  %v1834_v18 = vadd.f32 %v1802_v40, %v1770_v8  ;;  %v1836_v5 = vadd.f32 %v1804_v6, %v1772_v19  ;;  %1373 = vst [vmem:[%s13704_s20 + $0x60] sm:$0xff] %v1343_v61  ;;  %v1336_v15 = vpop.permute.xlu1 %1335  ;;  %3679 = vmatpush1.bf16.msra.mxu1 %v11730_v49  ;;  %v13942_v46 = vld [vmem:[#allocation12] sm:$0xff]   ;;  %v15619_v31 = vmov 0   ;;  %v11749_v38 = vld [vmem:[%s15352_s9 + $0x4] ss:$8 sps:$4 sm:$0xff]  }
 0x2b8   : > { %v2036_v56 = vmax.f32 %v2020_v27, 0.0  ;;  %v2038_v9 = vmax.f32 %v2022_v42, 0.0  ;;  %v1864_v50 = vmul.f32 0.11111111, %v1832_v57  ;;  %v1344_v30 = vsel %vm922_vm9, %v1334_v2, %v1336_v15  ;;  %1376 = vst.msk [vmem:[%s13704_s20 + $0x78] sm:$0xff] %vm922_vm9, %v1336_v15  ;;  %3680 = vmatprep.subr.bf16.mxu1 %v11735_v3  ;;  %10965 = vmatprep.subr.bf16.mxu0 %v11736_v55 }
 0x2b9   : > { %v1838_v10 = vadd.f32 %v1806_v47, %v1774_v54  ;;  %v1866_v4 = vmul.f32 0.11111111, %v1834_v18  ;;  %v1868_v16 = vmul.f32 0.11111111, %v1836_v5  ;;  %1375 = vst [vmem:[%s13704_s20 + $0x70] sm:$0xff] %v1344_v30  ;;  %10966 = vmatpush3.bf16.msra.mxu0 %v11736_v55  ;;  %10969 = vmatprep.mubr.msk.bf16.mxu0 %vm1058_vm1, %v11740_v13 }
 0x2ba   : > { %10081 = vst [vmem:[%s13704_s20 + $0x1e0] sm:$0xff] %v2036_v56  ;;  %10083 = vst [vmem:[%s13704_s20 + $0x1f0] sm:$0xff] %v2038_v9  ;;  %v1943_v7 = vrot.slane %v1864_v50, 7  ;;  %10967 = vmatprep.subr.bf16.mxu0 %v11738_v60  ;;  %v11751_v28 = vld [vmem:[%s15352_s9 + $0x10] ss:$8 sps:$4 sm:$0xff]  }
 0x2bb   : > { %v1870_v25 = vmul.f32 0.11111111, %v1838_v10  ;;  %v1944_v32 = vrot.slane %v1866_v4, 7  ;;  %v1949_v20 = vrot.slane %v1868_v16, 7  ;;  %v11753_v19 = vld [vmem:[%s15352_s9 + $0x14] ss:$8 sps:$4 sm:$0xff]  }
 0x2bc   : > { %v11768_v12 = vld [vmem:[%s15352_s9 + $0x44] ss:$8 sps:$4 sm:$0xff]   ;;  %v10179_v54 = vld [vmem:[#allocation6] ss:$0 sm:$0xff]  ;;  %v10180_v42 = vld [vmem:[#allocation8] ss:$0 sm:$0xff] }
 0x2bd   : > { %v1950_v21 = vrot.slane %v1870_v25, 7  ;;  %v1945_v0 = vsel %vm1903_vm2, %v1943_v7, %v1944_v32  ;;  %10968 = vmatpush3.bf16.msra.mxu0 %v11738_v60 }
 0x2be   : > { %v1993_v63 = vmul.f32 %v13604_v44, %v1945_v0  ;;  %10977 = vmatprep.subr.bf16.mxu0 %v13942_v46 }
 0x2bf   : > { %v1951_v17 = vsel %vm1903_vm2, %v1949_v20, %v1950_v21 }
 0x2c0   : > { %v1995_v36 = vmul.f32 %v13604_v44, %v1951_v17  ;;  %v2021_v33 = vadd.f32 %v13607_v24, %v1993_v63 }
 0x2c2   : > { %v2023_v41 = vadd.f32 %v13607_v24, %v1995_v36  ;;  %v2037_v48 = vmax.f32 %v2021_v33, 0.0  ;;  %v11733_v24 = vld [vmem:[%s15352_s9 + $0x30] ss:$8 sps:$4 sm:$0xff]  }
 0x2c3   : > { %3681 = vmatpush1.bf16.msra.mxu1 %v11733_v24 }
 0x2c4   : > { %v2039_v22 = vmax.f32 %v2023_v41, 0.0  ;;  %10082 = vst.msk [vmem:[%s13704_s20 + $0x1e8] sm:$0xff] %vm922_vm9, %v2037_v48  ;;  %3803 = vmatprep.subr.bf16.mxu1 %v11749_v38 }
 0x2c6   : > { %10084 = vst.msk [vmem:[%s13704_s20 + $0x1f8] sm:$0xff] %vm922_vm9, %v2039_v22  ;;  %10193 = vmatmul.mubr.msk.bf16.vlgmr.msra.gmra.mrb[40].mxu1 %vm1058_vm1, %v11737_v35 }
 0x2c7   : > { %3720 = vmatprep.mubr.bf16.mxu1 %v15619_v31  ;;  %3804 = vmatpush1.bf16.msra.mxu1 %v11747_v51 }
 0x2c8   : > { %3805 = vmatprep.subr.bf16.mxu1 %v11753_v19 }
 0x2cb   : > { %3806 = vmatpush1.bf16.msra.mxu1 %v11751_v28 }
 0x2cc   : > { %3942 = vmatprep.subr.bf16.mxu1 %v11768_v12 }
 0x2d9   : > { %v10887_v44 = vpop.f32.mrb[32].mxu1 }
 0x2da   : > { %v2375_v1 = vpop.f32.mrb[33].mxu1 }
 0x2db   : > { %v10888_v39 = vpop.f32.mrb[34].mxu1 }
 0x2dc   : > { %v2378_v52 = vpop.f32.mrb[35].mxu1 }
 0x2e9   : > { %v10891_v29 = vpop.f32.mrb[36].mxu1 }
 0x2ea   : > { %v2391_v45 = vpop.f32.mrb[37].mxu1 }
 0x2eb   : > { %v10892_v59 = vpop.f32.mrb[38].mxu1 }
 0x2ec   : > { %v2394_v8 = vpop.f32.mrb[39].mxu1 }
 0x356   : > { %v10959_v27 = vpop.f32.mrb[0].mxu0 }
 0x357   : > { %v11217_v40 = vadd.f32 %v10959_v27, %v10887_v44  ;;  %v3506_v6 = vpop.f32.mrb[1].mxu0 }
 0x358   : > { %v11218_v47 = vadd.f32 %v3506_v6, %v2375_v1  ;;  %v10960_v57 = vpop.f32.mrb[2].mxu0 }
 0x359   : > { %v3554_v43 = vmul.f32 %v11217_v40, %v10179_v54  ;;  %v11219_v56 = vadd.f32 %v10960_v57, %v10888_v39  ;;  %v3509_v18 = vpop.f32.mrb[3].mxu0 }
 0x35a   : > { %v3552_v5 = vmul.f32 %v11218_v47, %v10179_v54  ;;  %v11220_v61 = vadd.f32 %v3509_v18, %v2378_v52 }
 0x35b   : > { %v3569_v9 = vadd.f32 %v10180_v42, %v3554_v43  ;;  %v3555_v10 = vmul.f32 %v11219_v56, %v10179_v54 }
 0x35c   : > { %v3567_v50 = vadd.f32 %v10180_v42, %v3552_v5  ;;  %v3553_v4 = vmul.f32 %v11220_v61, %v10179_v54 }
 0x35d   : > { %v3577_v16 = vmax.f32 %v3569_v9, 0.0  ;;  %v3570_v25 = vadd.f32 %v10180_v42, %v3555_v10 }
 0x35e   : > { %v3575_v7 = vmax.f32 %v3567_v50, 0.0  ;;  %v3568_v2 = vadd.f32 %v10180_v42, %v3553_v4 }
 0x35f   : > { %v10963_v15 = vpop.f32.mrb[4].mxu0  ;;  %v3585_v32 = vpack.c.bf16 %v3577_v16, %v3577_v16  ;;  %v3578_v20 = vmax.f32 %v3570_v25, 0.0 }
 0x360   : > { %v11221_v30 = vadd.f32 %v10963_v15, %v10891_v29  ;;  %v3522_v21 = vpop.f32.mrb[5].mxu0  ;;  %v3583_v0 = vpack.c.bf16 %v3575_v7, %v3575_v7  ;;  %v3576_v17 = vmax.f32 %v3568_v2, 0.0 }
 0x361   : > { %v11222_v63 = vadd.f32 %v3522_v21, %v2391_v45  ;;  %v10964_v36 = vpop.f32.mrb[6].mxu0  ;;  %3593 = vst.msk [vmem:[#allocation2 + $0x7c] sm:$0xf] %vm848_vm0, %v3585_v32  ;;  %v3586_v33 = vpack.c.bf16 %v3578_v20, %v3578_v20  ;;  %v11745_v20 = vld [vmem:[#allocation12 + $0x8] sm:$0xff]  }
 0x362   : > { %v3558_v41 = vmul.f32 %v11221_v30, %v10179_v54  ;;  %v11223_v48 = vadd.f32 %v10964_v36, %v10892_v59  ;;  %v3525_v22 = vpop.f32.mrb[7].mxu0  ;;  %3591 = vst.msk [vmem:[#allocation2 + $0x64] sm:$0xf] %vm848_vm0, %v3583_v0  ;;  %v3584_v49 = vpack.c.bf16 %v3576_v17, %v3576_v17 }
 0x363   : > { %v3556_v58 = vmul.f32 %v11222_v63, %v10179_v54  ;;  %v11224_v44 = vadd.f32 %v3525_v22, %v2394_v8  ;;  %3594 = vst.msk [vmem:[#allocation2 + $0x88] sm:$0xf] %vm848_vm0, %v3586_v33 }
 0x364   : > { %v3573_v24 = vadd.f32 %v10180_v42, %v3558_v41  ;;  %v3559_v3 = vmul.f32 %v11223_v48, %v10179_v54  ;;  %3592 = vst.msk [vmem:[#allocation2 + $0x70] sm:$0xf] %vm848_vm0, %v3584_v49 }
 0x365   : > { %v3571_v55 = vadd.f32 %v10180_v42, %v3556_v58  ;;  %v3557_v39 = vmul.f32 %v11224_v44, %v10179_v54 }
 0x366   : > { %v3581_v1 = vmax.f32 %v3573_v24, 0.0  ;;  %v3574_v60 = vadd.f32 %v10180_v42, %v3559_v3  ;;  %v11756_v24 = vld [vmem:[#allocation2 + $0x40] ss:$12 sps:$4 sm:$0xff]  }
 0x367   : > { %v3579_v13 = vmax.f32 %v3571_v55, 0.0  ;;  %v3572_v28 = vadd.f32 %v10180_v42, %v3557_v39  ;;  %v11759_v3 = vld [vmem:[#allocation12 + $0x28] sm:$0xff]   ;;  %v11771_v55 = vld [vmem:[%s15352_s9 + $0x50] ss:$8 sps:$4 sm:$0xff]  }
 0x368   : > { %v3589_v35 = vpack.c.bf16 %v3581_v1, %v3581_v1  ;;  %v3582_v52 = vmax.f32 %v3574_v60, 0.0  ;;  %v14014_v10 = vld [vmem:[#allocation2 + $0x7c] sm:$0xf]  ;;  %v3602_v1 = vld [vmem:[#allocation2 + $0x58] sm:$0xf] }
 0x369   : > { %v3587_v51 = vpack.c.bf16 %v3579_v13, %v3579_v13  ;;  %v13971_v29 = vld [vmem:[#allocation2 + $0x64] sm:$0xf]  ;;  %v3580_v54 = vmax.f32 %v3572_v28, 0.0  ;;  %v14016_v50 = vld [vmem:[#allocation2 + $0x7c] sm:$0xf] }
 0x36a   : > { %3597 = vst.msk [vmem:[#allocation2 + $0xac] sm:$0xf] %vm848_vm0, %v3589_v35  ;;  %v3590_v38 = vpack.c.bf16 %v3582_v52, %v3582_v52  ;;  %v13973_v45 = vld [vmem:[#allocation2 + $0x64] sm:$0xf]  ;;  %v13993_v43 = vld [vmem:[#allocation2 + $0x88] sm:$0xf]  ;;  %v10198_v35 = vcombine.low %v3602_v1, %v13971_v29 }
 0x36b   : > { %3595 = vst.msk [vmem:[#allocation2 + $0x94] sm:$0xf] %vm848_vm0, %v3587_v51  ;;  %v13969_v19 = vld [vmem:[#allocation2 + $0x70] sm:$0xf]  ;;  %v13975_v59 = vld [vmem:[#allocation2 + $0x64] sm:$0xf]  ;;  %v3588_v57 = vpack.c.bf16 %v3580_v54, %v3580_v54 }
 0x36c   : > { %3598 = vst.msk [vmem:[#allocation2 + $0xb8] sm:$0xf] %vm848_vm0, %v3590_v38  ;;  %v13977_v8 = vld [vmem:[#allocation2 + $0x70] sm:$0xf]  ;;  %v14000_v5 = vld [vmem:[#allocation2 + $0x88] sm:$0xf] }
 0x36d   : > { %v13979_v12 = vld [vmem:[#allocation2 + $0x70] sm:$0xf]  ;;  %v14002_v61 = vld [vmem:[#allocation2 + $0x88] sm:$0xf]  ;;  %3596 = vst.msk [vmem:[#allocation2 + $0xa0] sm:$0xf] %vm848_vm0, %v3588_v57 }
 0x36e   : > { %v13981_v27 = vld [vmem:[#allocation2 + $0x70] sm:$0xf]  ;;  %v14004_v9 = vld [vmem:[#allocation2 + $0x88] sm:$0xf]  ;;  %v14030_v15 = vld [vmem:[#allocation2 + $0x7c] sm:$0xf] }
 0x36f   : > { %v11739_v40 = vld [vmem:[#allocation2 + $0x64] ss:$12 sps:$4 sm:$0xff]   ;;  %v14018_v4 = vld [vmem:[#allocation2 + $0x88] sm:$0xf] }
 0x370   : > { %4787 = vst.msk [vmem:[#allocation2 + $0x64] sm:$0xf] %vm848_vm0, %v13758_v26  ;;  %4788 = vst.msk [vmem:[#allocation2 + $0x70] sm:$0xf] %vm848_vm0, %v13778_v62  ;;  %10194 = vmatmul.mubr.msk.bf16.gmra.mrb[44].mxu1 %vm1058_vm1, %v11739_v40  ;;  %v14010_v26 = vld [vmem:[#allocation2 + $0x7c] sm:$0xf] }
 0x371   : > { %v13983_v6 = vld [vmem:[#allocation2 + $0xac] sm:$0xf]  ;;  %3730 = vmatprep.mubr.bf16.mxu1 %v15619_v31  ;;  %v14012_v62 = vld [vmem:[#allocation2 + $0x7c] sm:$0xf]  ;;  %v14020_v16 = vld [vmem:[#allocation2 + $0x88] sm:$0xf]  ;;  %v10199_v28 = vcombine.low %v13969_v19, %v14010_v26 }
 0x372   : > { %v13985_v42 = vld [vmem:[#allocation2 + $0xac] sm:$0xf]  ;;  %v11742_v32 = vld [vmem:[#allocation2 + $0x7c] ss:$12 sps:$4 sm:$0xff]   ;;  %v14038_v21 = vld [vmem:[#allocation2 + $0x94] sm:$0xf] }
 0x373   : > { %v13987_v47 = vld [vmem:[#allocation2 + $0xac] sm:$0xf]  ;;  %v14022_v25 = vld [vmem:[#allocation2 + $0xb8] sm:$0xf]  ;;  %4789 = vst.msk [vmem:[#allocation2 + $0x7c] sm:$0xf] %vm848_vm0, %v13767_v14  ;;  %v10200_v57 = vcombine.low %v13993_v43, %v14038_v21 }
 0x374   : > { %v13995_v56 = vld [vmem:[#allocation2 + $0xac] sm:$0xf]  ;;  %v14024_v7 = vld [vmem:[#allocation2 + $0xb8] sm:$0xf]  ;;  %4790 = vst.msk [vmem:[#allocation2 + $0x88] sm:$0xf] %vm848_vm0, %v13788_v11 }
 0x375   : > { %v13997_v18 = vld [vmem:[#allocation2 + $0xac] sm:$0xf]  ;;  %v14028_v2 = vld [vmem:[#allocation2 + $0xb8] sm:$0xf]  ;;  %v14040_v0 = vld [vmem:[#allocation2 + $0x94] sm:$0xf] }
 0x376   : > { %4793 = vst.msk [vmem:[#allocation2 + $0xac] sm:$0xf] %vm848_vm0, %v13813_v53  ;;  %v14026_v53 = vld [vmem:[#allocation2 + $0xb8] sm:$0xf]  ;;  %v14042_v17 = vld [vmem:[#allocation2 + $0x94] sm:$0xf] }
 0x377   : > { %4794 = vst.msk [vmem:[#allocation2 + $0xb8] sm:$0xf] %vm848_vm0, %v13821_v23  ;;  %v11743_v30 = vld [vmem:[#allocation2 + $0x64] ss:$12 sps:$4 sm:$0xff]   ;;  %v14044_v63 = vld [vmem:[#allocation2 + $0x94] sm:$0xf] }
 0x378   : > { %v14046_v36 = vld [vmem:[#allocation2 + $0x94] sm:$0xf]  ;;  %v14048_v23 = vld [vmem:[#allocation2 + $0xa0] sm:$0xf]  ;;  %10195 = vmatmul.mubr.msk.bf16.gmra.mrb[48].mxu1 %vm1058_vm1, %v11742_v32  ;;  %10970 = vmatmul.mubr.msk.bf16.vlgmr.msra.gmra.mrb[8].mxu0 %vm1058_vm1, %v11743_v30  ;;  %v11755_v11 = vld [vmem:[#allocation12 + $0x20] sm:$0xff]  }
 0x379   : > { %v14050_v33 = vld [vmem:[#allocation2 + $0xa0] sm:$0xf]  ;;  %10978 = vmatpush3.bf16.msra.mxu0 %v13942_v46  ;;  %3740 = vmatprep.mubr.bf16.mxu1 %v15619_v31  ;;  %v14062_v22 = vld [vmem:[#allocation2 + $0x94] sm:$0xf]  ;;  %v11786_v60 = vld [vmem:[%s15352_s9 + $0x64] ss:$8 sps:$4 sm:$0xff]   ;;  %v10216_v1 = vcombine.low %v14048_v23, %v13983_v6  ;;  %v10229_v6 = vcombine.low %v13975_v59, %v13979_v12  ;;  %v10230_v12 = vcombine.low %v14014_v10, %v14002_v61 }
 0x37a   : > { %v14052_v14 = vld [vmem:[#allocation2 + $0xa0] sm:$0xf]  ;;  %10979 = vmatprep.subr.bf16.mxu0 %v11745_v20  ;;  %v11757_v13 = vld [vmem:[#allocation2 + $0x58] ss:$12 sps:$4 sm:$0xff]   ;;  %v11758_v39 = vld [vmem:[#allocation2 + $0x70] ss:$12 sps:$4 sm:$0xff]  }
 0x37b   : > { %v14056_v41 = vld [vmem:[#allocation2 + $0xa0] sm:$0xf]  ;;  %v11744_v58 = vld [vmem:[#allocation2 + $0x7c] ss:$12 sps:$4 sm:$0xff]   ;;  %v11761_v38 = vld [vmem:[#allocation2 + $0x58] ss:$12 sps:$4 sm:$0xff]  }
 0x37c   : > { %v14058_v48 = vld [vmem:[#allocation2 + $0xa0] sm:$0xf]  ;;  %10973 = vmatprep.mubr.msk.bf16.mxu0 %vm1058_vm1, %v11744_v58  ;;  %v11762_v52 = vld [vmem:[#allocation12 + $0x30] sm:$0xff]   ;;  %v11763_v29 = vld [vmem:[#allocation2 + $0x70] ss:$12 sps:$4 sm:$0xff]  }
 0x37d   : > { %v11746_v49 = vld [vmem:[#allocation2 + $0x94] ss:$12 sps:$4 sm:$0xff]   ;;  %10980 = vmatpush3.bf16.msra.mxu0 %v11745_v20  ;;  %v11774_v32 = vld [vmem:[#allocation12 + $0x40] sm:$0xff]   ;;  %v11770_v26 = vld [vmem:[#allocation2 + $0x64] ss:$12 sps:$4 sm:$0xff]  }
 0x37e   : > { %4791 = vst.msk [vmem:[#allocation2 + $0x94] sm:$0xf] %vm848_vm0, %v13798_v37  ;;  %4792 = vst.msk [vmem:[#allocation2 + $0xa0] sm:$0xf] %vm848_vm0, %v13806_v34  ;;  %10989 = vmatprep.subr.bf16.mxu0 %v11755_v11  ;;  %v11754_v46 = vld [vmem:[#allocation2 + $0x40] ss:$12 sps:$4 sm:$0xff]  }
 0x37f   : > { %v11766_v37 = vld [vmem:[%s15352_s9 + $0x40] ss:$8 sps:$4 sm:$0xff]   ;;  %v11773_v34 = vld [vmem:[%s15352_s9 + $0x54] ss:$8 sps:$4 sm:$0xff]   ;;  %v3877_v20 = vld [vmem:[#allocation2 + $0x58] sm:$0xf] }
 0x380   : > { %10196 = vmatmul.mubr.msk.bf16.gmra.mrb[52].mxu1 %vm1058_vm1, %v11746_v49  ;;  %v11765_v54 = vld [vmem:[#allocation12 + $0x38] sm:$0xff]   ;;  %v11784_v30 = vld [vmem:[%s15352_s9 + $0x60] ss:$8 sps:$4 sm:$0xff]   ;;  %v10213_v43 = vcombine.low %v3877_v20, %v13973_v45  ;;  %v11802_v45 = vld [vmem:[%s15352_s9 + $0x84] ss:$8 sps:$4 sm:$0xff]  }
 0x381   : > { %3835 = vmatprep.mubr.bf16.mxu1 %v15619_v31  ;;  %v11791_v21 = vld [vmem:[%s15352_s9 + $0x74] ss:$8 sps:$4 sm:$0xff]   ;;  %v11777_v49 = vld [vmem:[#allocation12 + $0x48] sm:$0xff]   ;;  %v11789_v58 = vld [vmem:[%s15352_s9 + $0x70] ss:$8 sps:$4 sm:$0xff]  }
 0x382   : > { %v11806_v23 = vld [vmem:[%s15352_s9 + $0x94] ss:$8 sps:$4 sm:$0xff]   ;;  %v11809_v59 = vld [vmem:[%s15352_s9 + $0xa4] ss:$8 sps:$4 sm:$0xff]   ;;  %v14249_v20 = vld [vmem:[%s15357_s14] ss:$0 sm:$0xff] }
 0x383   : > { %v11799_v10 = vld [vmem:[#allocation2 + $0xb8] ss:$12 sps:$4 sm:$0xff]  }
 0x385   : > { %v11750_v44 = vld [vmem:[#allocation2 + $0x94] ss:$12 sps:$4 sm:$0xff]  }
 0x386   : > { %10974 = vmatmul.mubr.msk.bf16.gmra.mrb[12].mxu0 %vm1058_vm1, %v11750_v44  ;;  %v11760_v51 = vld [vmem:[#allocation2 + $0x88] ss:$12 sps:$4 sm:$0xff]   ;;  %v11769_v19 = vld [vmem:[#allocation2 + $0xa0] ss:$12 sps:$4 sm:$0xff]   ;;  %v10214_v44 = vcombine.low %v13977_v8, %v14012_v62 }
 0x387   : > { %10981 = vmatprep.mubr.msk.bf16.mxu0 %vm1058_vm1, %v11754_v46  ;;  %v11764_v40 = vld [vmem:[#allocation2 + $0x88] ss:$12 sps:$4 sm:$0xff]   ;;  %v11798_v61 = vld [vmem:[#allocation2 + $0xa0] ss:$12 sps:$4 sm:$0xff]  }
 0x388   : > { %10205 = vmatmul.mubr.msk.bf16.vlgmr.msra.gmra.mrb[40].mxu1 %vm1058_vm1, %v11756_v24  ;;  %v11776_v46 = vld [vmem:[#allocation2 + $0x94] ss:$12 sps:$4 sm:$0xff]   ;;  %v11780_v24 = vld [vmem:[#allocation12 + $0x50] sm:$0xff]  }
 0x389   : > { %3845 = vmatprep.mubr.bf16.mxu1 %v15619_v31  ;;  %3943 = vmatpush1.bf16.msra.mxu1 %v11766_v37  ;;  %v11778_v37 = vld [vmem:[#allocation2 + $0xac] ss:$12 sps:$4 sm:$0xff]   ;;  %v11781_v8 = vld [vmem:[#allocation2 + $0x88] ss:$12 sps:$4 sm:$0xff]  }
 0x38a   : > { %3944 = vmatprep.subr.bf16.mxu1 %v11773_v34  ;;  %v11779_v34 = vld [vmem:[#allocation2 + $0x70] ss:$12 sps:$4 sm:$0xff]  }
 0x38b   : > { %v11783_v62 = vld [vmem:[#allocation12 + $0x58] sm:$0xff]  }
 0x38d   : > { %3945 = vmatpush1.bf16.msra.mxu1 %v11771_v55  ;;  %v11782_v55 = vld [vmem:[#allocation2 + $0xa0] ss:$12 sps:$4 sm:$0xff]  }
 0x38e   : > { %10982 = vmatmul.mubr.msk.bf16.vlgmr.msra.gmra.mrb[8].mxu0 %vm1058_vm1, %v11757_v13  ;;  %4096 = vmatprep.subr.bf16.mxu1 %v11786_v60  ;;  %v11792_v60 = vld [vmem:[#allocation12 + $0x60] sm:$0xff]   ;;  %v11800_v13 = vld [vmem:[%s15352_s9 + $0x80] ss:$8 sps:$4 sm:$0xff]  }
 0x38f   : > { %10990 = vmatpush3.bf16.msra.mxu0 %v11755_v11  ;;  %10985 = vmatprep.mubr.msk.bf16.mxu0 %vm1058_vm1, %v11758_v39  ;;  %v11775_v11 = vld [vmem:[#allocation2 + $0x7c] ss:$12 sps:$4 sm:$0xff]   ;;  %v11793_v39 = vld [vmem:[#allocation2 + $0x94] ss:$12 sps:$4 sm:$0xff]  }
 0x390   : > { %10991 = vmatprep.subr.bf16.mxu0 %v11759_v3  ;;  %10206 = vmatmul.mubr.msk.bf16.gmra.mrb[44].mxu1 %vm1058_vm1, %v10198_v35  ;;  %v11795_v35 = vld [vmem:[#allocation12 + $0x68] sm:$0xff]  }
 0x391   : > { %3855 = vmatprep.mubr.bf16.mxu1 %v15619_v31 }
 0x393   : > { %10992 = vmatpush3.bf16.msra.mxu0 %v11759_v3  ;;  %v10215_v3 = vcombine.low %v14000_v5, %v14040_v0  ;;  %v11787_v5 = vld [vmem:[#allocation2 + $0xb8] ss:$12 sps:$4 sm:$0xff]   ;;  %v11788_v0 = vld [vmem:[#allocation2 + $0x7c] ss:$12 sps:$4 sm:$0xff]  }
 0x394   : > { %11001 = vmatprep.subr.bf16.mxu0 %v11762_v52 }
 0x396   : > { %10986 = vmatmul.mubr.msk.bf16.gmra.mrb[12].mxu0 %vm1058_vm1, %v11760_v51  ;;  %v11794_v51 = vld [vmem:[#allocation2 + $0xac] ss:$12 sps:$4 sm:$0xff]  }
 0x397   : > { %10993 = vmatprep.mubr.msk.bf16.mxu0 %vm1058_vm1, %v11761_v38  ;;  %v11796_v38 = vld [vmem:[#allocation2 + $0xc4] ss:$12 sps:$4 sm:$0xff]  }
 0x398   : > { %10207 = vmatmul.mubr.msk.bf16.gmra.mrb[48].mxu1 %vm1058_vm1, %v10199_v28  ;;  %v11797_v28 = vld [vmem:[#allocation2 + $0x88] ss:$12 sps:$4 sm:$0xff]  }
 0x399   : > { %3865 = vmatprep.mubr.bf16.mxu1 %v15619_v31 }
 0x39e   : > { %10994 = vmatmul.mubr.msk.bf16.vlgmr.msra.gmra.mrb[8].mxu0 %vm1058_vm1, %v11763_v29  ;;  %v10231_v29 = vcombine.low %v14042_v17, %v14050_v33  ;;  %v11807_v17 = vld [vmem:[%s15352_s9 + $0xa0] ss:$8 sps:$4 sm:$0xff]   ;;  %v10245_v33 = vcombine.low %v13981_v27, %v14016_v50  ;;  %v10246_v27 = vcombine.low %v14004_v9, %v14044_v63  ;;  %v10247_v50 = vcombine.low %v14052_v14, %v13987_v47  ;;  %v11819_v47 = vld [vmem:[%s15352_s9 + $0xd4] ss:$8 sps:$4 sm:$0xff]  }
 0x39f   : > { %11002 = vmatpush3.bf16.msra.mxu0 %v11762_v52  ;;  %10997 = vmatprep.mubr.msk.bf16.mxu0 %vm1058_vm1, %v11764_v40  ;;  %v11804_v52 = vld [vmem:[%s15352_s9 + $0x90] ss:$8 sps:$4 sm:$0xff]   ;;  %v11814_v9 = vld [vmem:[%s15352_s9 + $0xc0] ss:$8 sps:$4 sm:$0xff]   ;;  %v10261_v63 = vcombine.low %v14030_v15, %v14018_v4  ;;  %v10262_v14 = vcombine.low %v14046_v36, %v14056_v41  ;;  %v10263_v4 = vcombine.low %v13995_v56, %v14026_v53  ;;  %v4501_v56 = vld [vmem:[#allocation2 + $0xc4] sm:$0xf] }
 0x3a0   : > { %11003 = vmatprep.subr.bf16.mxu0 %v11765_v54  ;;  %10208 = vmatmul.mubr.msk.bf16.gmra.mrb[52].mxu1 %vm1058_vm1, %v10200_v57  ;;  %v11803_v40 = vld [vmem:[#allocation2 + $0xd0] ss:$12 sps:$4 sm:$0xff]   ;;  %v10278_v36 = vcombine.low %v14058_v48, %v13997_v18  ;;  %v10279_v53 = vcombine.low %v14028_v2, %v4501_v56  ;;  %v14238_v18 = vld [vmem:[#allocation14] sm:$0xff]   ;;  %v5742_v48 = vld [vmem:[#allocation2 + $0x60] sm:$0xc] }
 0x3a1   : > { %3974 = vmatprep.mubr.bf16.mxu1 %v15619_v31  ;;  %v11812_v57 = vld [vmem:[%s15352_s9 + $0xb4] ss:$8 sps:$4 sm:$0xff]   ;;  %v11813_v15 = vld [vmem:[#allocation2 + $0xc4] ss:$12 sps:$4 sm:$0xff]   ;;  %v14244_v2 = vld [vmem:[%s15356_s13] ss:$0 sm:$0xff] }
 0x3a2   : > { %v11820_v41 = vld [vmem:[#allocation2 + $0xd0] ss:$12 sps:$4 sm:$0xff]  }
 0x3a3   : > { %11004 = vmatpush3.bf16.msra.mxu0 %v11765_v54  ;;  %v10232_v54 = vcombine.low %v13985_v42, %v14022_v25  ;;  %v11810_v42 = vld [vmem:[%s15352_s9 + $0xb0] ss:$8 sps:$4 sm:$0xff]   ;;  %v11816_v25 = vld [vmem:[%s15352_s9 + $0xc4] ss:$8 sps:$4 sm:$0xff]  }
 0x3a4   : > { %11013 = vmatprep.subr.bf16.mxu0 %v11774_v32 }
 0x3a6   : > { %10998 = vmatmul.mubr.msk.bf16.gmra.mrb[12].mxu0 %vm1058_vm1, %v11769_v19 }
 0x3a7   : > { %11005 = vmatprep.mubr.msk.bf16.mxu0 %vm1058_vm1, %v11770_v26  ;;  %v10277_v26 = vcombine.low %v14020_v16, %v14062_v22  ;;  %v11821_v16 = vld [vmem:[#allocation14 + $0x10] sm:$0xff]   ;;  %v11822_v22 = vld [vmem:[#allocation14 + $0x18] sm:$0xff]  }
 0x3a8   : > { %10221 = vmatmul.mubr.msk.bf16.vlgmr.msra.gmra.mrb[40].mxu1 %vm1058_vm1, %v10213_v43  ;;  %v14251_v43 = vld [vmem:[#allocation2 + $0x60] sm:$0x8] }
 0x3a9   : > { %3984 = vmatprep.mubr.bf16.mxu1 %v15619_v31  ;;  %4097 = vmatpush1.bf16.msra.mxu1 %v11784_v30  ;;  %v5744_v30 = vld [vmem:[#allocation2 + $0x6c] sm:$0xc] }
 0x3aa   : > { %4098 = vmatprep.subr.bf16.mxu1 %v11791_v21  ;;  %v14253_v21 = vld [vmem:[#allocation2 + $0x6c] sm:$0x8] }
 0x3ad   : > { %4099 = vmatpush1.bf16.msra.mxu1 %v11789_v58  ;;  %v14255_v58 = vld [vmem:[#allocation2 + $0x78] sm:$0x8] }
 0x3ae   : > { %11006 = vmatmul.mubr.msk.bf16.vlgmr.msra.gmra.mrb[8].mxu0 %vm1058_vm1, %v11775_v11  ;;  %4251 = vmatprep.subr.bf16.mxu1 %v11802_v45  ;;  %v5748_v11 = vld [vmem:[#allocation2 + $0x84] sm:$0xc]  ;;  %v5762_v45 = vshll.u32 %v5742_v48, 16 }
 0x3af   : > { %11014 = vmatpush3.bf16.msra.mxu0 %v11774_v32  ;;  %11009 = vmatprep.mubr.msk.bf16.mxu0 %vm1058_vm1, %v11776_v46  ;;  %v4193_v32 = vld [vmem:[#allocation2 + $0xc4] sm:$0xf]  ;;  %v5759_v46 = vshrl.u32 %v5742_v48, 16 }
 0x3b0   : > { %11015 = vmatprep.subr.bf16.mxu0 %v11777_v49  ;;  %10222 = vmatmul.mubr.msk.bf16.gmra.mrb[44].mxu1 %vm1058_vm1, %v10214_v44  ;;  %v10248_v19 = vcombine.low %v14024_v7, %v4193_v32  ;;  %v11817_v7 = vld [vmem:[%s15352_s9 + $0xd0] ss:$8 sps:$4 sm:$0xff]   ;;  %v14276_v32 = vld [vmem:[#allocation2 + $0xa8] sm:$0x8] }
 0x3b1   : > { %3994 = vmatprep.mubr.bf16.mxu1 %v15619_v31 }
 0x3b3   : > { %11016 = vmatpush3.bf16.msra.mxu0 %v11777_v49 }
 0x3b4   : > { %11025 = vmatprep.subr.bf16.mxu0 %v11780_v24 }
 0x3b6   : > { %11010 = vmatmul.mubr.msk.bf16.gmra.mrb[12].mxu0 %vm1058_vm1, %v11778_v37  ;;  %v5777_v37 = vshrl.u32 %v5744_v30, 16 }
 0x3b7   : > { %11017 = vmatprep.mubr.msk.bf16.mxu0 %vm1058_vm1, %v11779_v34  ;;  %v5780_v34 = vshll.u32 %v5744_v30, 16  ;;  %v5750_v30 = vld [vmem:[#allocation2 + $0x90] sm:$0xc] }
 0x3b8   : > { %10223 = vmatmul.mubr.msk.bf16.gmra.mrb[48].mxu1 %vm1058_vm1, %v10215_v3 }
 0x3b9   : > { %4004 = vmatprep.mubr.bf16.mxu1 %v15619_v31 }
 0x3be   : > { %11018 = vmatmul.mubr.msk.bf16.vlgmr.msra.gmra.mrb[8].mxu0 %vm1058_vm1, %v11781_v8 }
 0x3bf   : > { %11026 = vmatpush3.bf16.msra.mxu0 %v11780_v24  ;;  %11021 = vmatprep.mubr.msk.bf16.mxu0 %vm1058_vm1, %v11782_v55  ;;  %v5813_v55 = vshrl.u32 %v5748_v11, 16 }
 0x3c0   : > { %11027 = vmatprep.subr.bf16.mxu0 %v11783_v62  ;;  %10224 = vmatmul.mubr.msk.bf16.gmra.mrb[52].mxu1 %vm1058_vm1, %v10216_v1  ;;  %v5816_v1 = vshll.u32 %v5748_v11, 16 }
 0x3c1   : > { %4128 = vmatprep.mubr.bf16.mxu1 %v15619_v31 }
 0x3c3   : > { %11028 = vmatpush3.bf16.msra.mxu0 %v11783_v62  ;;  %v10385_v62 = vrot.slane %v14251_v43, 11 }
 0x3c4   : > { %11037 = vmatprep.subr.bf16.mxu0 %v11792_v60 }
 0x3c6   : > { %11022 = vmatmul.mubr.msk.bf16.gmra.mrb[12].mxu0 %vm1058_vm1, %v11787_v5 }
 0x3c7   : > { %11029 = vmatprep.mubr.msk.bf16.mxu0 %vm1058_vm1, %v11788_v0 }
 0x3c8   : > { %10237 = vmatmul.mubr.msk.bf16.vlgmr.msra.gmra.mrb[40].mxu1 %vm1058_vm1, %v10229_v6  ;;  %v10386_v6 = vrot.slane %v14253_v21, 11 }
 0x3c9   : > { %4138 = vmatprep.mubr.bf16.mxu1 %v15619_v31  ;;  %4252 = vmatpush1.bf16.msra.mxu1 %v11800_v13 }
 0x3ca   : > { %4253 = vmatprep.subr.bf16.mxu1 %v11806_v23  ;;  %v10387_v23 = vrot.slane %v14255_v58, 11 }
 0x3cd   : > { %4254 = vmatpush1.bf16.msra.mxu1 %v11804_v52  ;;  %v14266_v52 = vld [vmem:[#allocation2 + $0x84] sm:$0x8] }
 0x3ce   : > { %11030 = vmatmul.mubr.msk.bf16.vlgmr.msra.gmra.mrb[8].mxu0 %vm1058_vm1, %v11793_v39  ;;  %4406 = vmatprep.subr.bf16.mxu1 %v11809_v59  ;;  %v5761_v59 = vrot.slane %v5759_v46, 6 }
 0x3cf   : > { %11038 = vmatpush3.bf16.msra.mxu0 %v11792_v60  ;;  %11033 = vmatprep.mubr.msk.bf16.mxu0 %vm1058_vm1, %v11794_v51  ;;  %v11838_v60 = vld [vmem:[#allocation15 + $0x10] sm:$0xff]   ;;  %v14268_v51 = vld [vmem:[#allocation2 + $0x90] sm:$0x8] }
 0x3d0   : > { %11039 = vmatprep.subr.bf16.mxu0 %v11795_v35  ;;  %10238 = vmatmul.mubr.msk.bf16.gmra.mrb[44].mxu1 %vm1058_vm1, %v10230_v12  ;;  %v5764_v12 = vrot.slane %v5762_v45, 7  ;;  %v10391_v45 = vrot.slane %v14276_v32, 11 }
 0x3d1   : > { %4148 = vmatprep.mubr.bf16.mxu1 %v15619_v31 }
 0x3d2   : > { %v5765_v56 = vor.u32 %v5764_v12, %v5761_v59  ;;  %v5754_v59 = vld [vmem:[#allocation2 + $0xa8] sm:$0xc] }
 0x3d3   : > { %11040 = vmatpush3.bf16.msra.mxu0 %v11795_v35 }
 0x3d4   : > { %11049 = vmatprep.subr.bf16.mxu0 %v11821_v16 }
 0x3d6   : > { %11034 = vmatmul.mubr.msk.bf16.gmra.mrb[12].mxu0 %vm1058_vm1, %v11796_v38 }
 0x3d7   : > { %11041 = vmatprep.mubr.msk.bf16.mxu0 %vm1058_vm1, %v11797_v28 }
 0x3d8   : > { %10239 = vmatmul.mubr.msk.bf16.gmra.mrb[48].mxu1 %vm1058_vm1, %v10231_v29  ;;  %v5779_v29 = vrot.slane %v5777_v37, 6 }
 0x3d9   : > { %4158 = vmatprep.mubr.bf16.mxu1 %v15619_v31 }
 0x3de   : > { %11042 = vmatmul.mubr.msk.bf16.vlgmr.msra.gmra.mrb[8].mxu0 %vm1058_vm1, %v11798_v61  ;;  %v5782_v61 = vrot.slane %v5780_v34, 7 }
 0x3df   : > { %11045 = vmatprep.mubr.msk.bf16.mxu0 %vm1058_vm1, %v11799_v10  ;;  %11050 = vmatpush3.bf16.msra.mxu0 %v11821_v16  ;;  %v5746_v10 = vld [vmem:[#allocation2 + $0x78] sm:$0xc] }
 0x3e0   : > { %10240 = vmatmul.mubr.msk.bf16.gmra.mrb[52].mxu1 %vm1058_vm1, %v10232_v54  ;;  %11051 = vmatprep.subr.bf16.mxu0 %v11822_v22 }
 0x3e1   : > { %4283 = vmatprep.mubr.bf16.mxu1 %v15619_v31 }
 0x3e3   : > { %11052 = vmatpush3.bf16.msra.mxu0 %v11822_v22  ;;  %v5783_v22 = vor.u32 %v5782_v61, %v5779_v29 }
 0x3e4   : > { %11061 = vmatprep.subr.bf16.mxu0 %v14238_v18 }
 0x3e6   : > { %11046 = vmatmul.mubr.msk.bf16.gmra.mrb[12].mxu0 %vm1058_vm1, %v11803_v40 }
 0x3e8   : > { %10253 = vmatmul.mubr.msk.bf16.vlgmr.msra.gmra.mrb[40].mxu1 %vm1058_vm1, %v10245_v33  ;;  %v5815_v33 = vrot.slane %v5813_v55, 6 }
 0x3e9   : > { %4293 = vmatprep.mubr.bf16.mxu1 %v15619_v31  ;;  %4407 = vmatpush1.bf16.msra.mxu1 %v11807_v17  ;;  %v14272_v17 = vld [vmem:[#allocation2 + $0x9c] sm:$0x8] }
 0x3ea   : > { %4408 = vmatprep.subr.bf16.mxu1 %v11812_v57  ;;  %v5818_v57 = vrot.slane %v5816_v1, 7 }
 0x3ec   : > { %v5819_v48 = vor.u32 %v5818_v57, %v5815_v33  ;;  %v5756_v33 = vld [vmem:[#allocation2 + $0xb4] sm:$0xc] }
 0x3ed   : > { %4409 = vmatpush1.bf16.msra.mxu1 %v11810_v42 }
 0x3ee   : > { %4561 = vmatprep.subr.bf16.mxu1 %v11816_v25 }
 0x3f0   : > { %10254 = vmatmul.mubr.msk.bf16.gmra.mrb[44].mxu1 %vm1058_vm1, %v10246_v27  ;;  %v10388_v27 = vrot.slane %v14266_v52, 11 }
 0x3f1   : > { %4303 = vmatprep.mubr.bf16.mxu1 %v15619_v31 }
 0x3f8   : > { %10255 = vmatmul.mubr.msk.bf16.gmra.mrb[48].mxu1 %vm1058_vm1, %v10247_v50  ;;  %v10389_v50 = vrot.slane %v14268_v51, 11 }
 0x3f9   : > { %4313 = vmatprep.mubr.bf16.mxu1 %v15619_v31 }
 0x400   : > { %10256 = vmatmul.mubr.msk.bf16.gmra.mrb[52].mxu1 %vm1058_vm1, %v10248_v19 }
 0x401   : > { %4438 = vmatprep.mubr.bf16.mxu1 %v15619_v31 }
 0x408   : > { %10269 = vmatmul.mubr.msk.bf16.vlgmr.msra.gmra.mrb[40].mxu1 %vm1058_vm1, %v10261_v63 }
 0x409   : > { %4448 = vmatprep.mubr.bf16.mxu1 %v15619_v31  ;;  %4562 = vmatpush1.bf16.msra.mxu1 %v11814_v9 }
 0x40a   : > { %4563 = vmatprep.subr.bf16.mxu1 %v11819_v47  ;;  %v14278_v47 = vld [vmem:[#allocation2 + $0xb4] sm:$0x8] }
 0x40d   : > { %4564 = vmatpush1.bf16.msra.mxu1 %v11817_v7  ;;  %v5795_v7 = vshrl.u32 %v5746_v10, 16 }
 0x40e   : > { %11133 = vmatprep.subr.bf16.mxu1 %v11838_v60 }
 0x40f   : > { %v14293_v34 = vrot.slane %v5795_v7, 6 }
 0x410   : > { %10270 = vmatmul.mubr.msk.bf16.gmra.mrb[44].mxu1 %vm1058_vm1, %v10262_v14  ;;  %v5798_v14 = vshll.u32 %v5746_v10, 16 }
 0x411   : > { %4458 = vmatprep.mubr.bf16.mxu1 %v15619_v31 }
 0x418   : > { %10271 = vmatmul.mubr.msk.bf16.gmra.mrb[48].mxu1 %vm1058_vm1, %v10263_v4 }
 0x419   : > { %4468 = vmatprep.mubr.bf16.mxu1 %v15619_v31 }
 0x420   : > { %10272 = vmatmul.mubr.msk.bf16.gmra.mrb[52].mxu1 %vm1058_vm1, %v11813_v15 }
 0x421   : > { %4593 = vmatprep.mubr.bf16.mxu1 %v15619_v31 }
 0x428   : > { %10285 = vmatmul.mubr.msk.bf16.vlgmr.msra.gmra.mrb[40].mxu1 %vm1058_vm1, %v10277_v26 }
 0x429   : > { %4603 = vmatprep.mubr.bf16.mxu1 %v15619_v31  ;;  %11134 = vmatpush3.bf16.msra.mxu1 %v11838_v60  ;;  %v14298_v60 = vrot.slane %v5765_v56, 4 }
 0x430   : > { %10286 = vmatmul.mubr.msk.bf16.gmra.mrb[44].mxu1 %vm1058_vm1, %v10278_v36  ;;  %v10390_v36 = vrot.slane %v14272_v17, 11 }
 0x431   : > { %4613 = vmatprep.mubr.bf16.mxu1 %v15619_v31 }
 0x438   : > { %10287 = vmatmul.mubr.msk.bf16.gmra.mrb[48].mxu1 %vm1058_vm1, %v10279_v53 }
 0x439   : > { %4623 = vmatprep.mubr.bf16.mxu1 %v15619_v31 }
 0x440   : > { %10288 = vmatmul.mubr.msk.bf16.gmra.mrb[52].mxu1 %vm1058_vm1, %v11820_v41 }
 0x4b1   : > { %v11043_v49 = vpop.f32.mrb[8].mxu0 }
 0x4b2   : > { %v5697_v44 = vmul.f32 %v11043_v49, %v14244_v2  ;;  %v5649_v24 = vpop.f32.mrb[9].mxu0 }
 0x4b3   : > { %v5695_v3 = vmul.f32 %v14244_v2, %v5649_v24  ;;  %v11044_v8 = vpop.f32.mrb[10].mxu0 }
 0x4b4   : > { %v5712_v5 = vadd.f32 %v14249_v20, %v5697_v44  ;;  %v5698_v0 = vmul.f32 %v11044_v8, %v14244_v2  ;;  %v5652_v13 = vpop.f32.mrb[11].mxu0  ;;  %v10392_v44 = vrot.slane %v14278_v47, 11  ;;  %v5752_v8 = vld [vmem:[#allocation2 + $0x9c] sm:$0xc] }
 0x4b5   : > { %v5710_v39 = vadd.f32 %v14249_v20, %v5695_v3  ;;  %v5696_v35 = vmul.f32 %v14244_v2, %v5652_v13  ;;  %v14295_v3 = vrot.slane %v5798_v14, 7 }
 0x4b6   : > { %v5720_v38 = vmax.f32 %v5712_v5, 0.0  ;;  %v5713_v28 = vadd.f32 %v14249_v20, %v5698_v0  ;;  %v5831_v5 = vshrl.u32 %v5750_v30, 16 }
 0x4b7   : > { %v5718_v54 = vmax.f32 %v5710_v39, 0.0  ;;  %v5711_v40 = vadd.f32 %v14249_v20, %v5696_v35  ;;  %v14301_v39 = vrot.slane %v5783_v22, 4  ;;  %v14303_v35 = vrot.slane %v5819_v48, 4 }
 0x4b8   : > { %v5728_v42 = vpack.c.bf16 %v5720_v38, %v5720_v38  ;;  %v5721_v25 = vmax.f32 %v5713_v28, 0.0  ;;  %v5834_v38 = vshll.u32 %v5750_v30, 16  ;;  %v5849_v28 = vshrl.u32 %v5752_v8, 16 }
 0x4b9   : > { %v5726_v19 = vpack.c.bf16 %v5718_v54, %v5718_v54  ;;  %v5719_v9 = vmax.f32 %v5711_v40, 0.0  ;;  %v11047_v63 = vpop.f32.mrb[12].mxu0  ;;  %v5801_v54 = vor.u32 %v14295_v3, %v14293_v34  ;;  %v5852_v40 = vshll.u32 %v5752_v8, 16 }
 0x4ba   : > { %5736 = vst.msk [vmem:[#allocation2 + $0x7c] sm:$0xf] %vm848_vm0, %v5728_v42  ;;  %v5729_v4 = vpack.c.bf16 %v5721_v25, %v5721_v25  ;;  %v5701_v15 = vmul.f32 %v11047_v63, %v14244_v2  ;;  %v5665_v26 = vpop.f32.mrb[13].mxu0  ;;  %v14310_v42 = vrot.slane %v5831_v5, 6  ;;  %v5867_v25 = vshrl.u32 %v5754_v59, 16 }
 0x4bb   : > { %5734 = vst.msk [vmem:[#allocation2 + $0x64] sm:$0xf] %vm848_vm0, %v5726_v19  ;;  %v5727_v53 = vpack.c.bf16 %v5719_v9, %v5719_v9  ;;  %v5699_v41 = vmul.f32 %v14244_v2, %v5665_v26  ;;  %v11048_v16 = vpop.f32.mrb[14].mxu0  ;;  %v5870_v19 = vshll.u32 %v5754_v59, 16  ;;  %v14318_v22 = vrot.slane %v5849_v28, 6 }
 0x4bc   : > { %5737 = vst.msk [vmem:[#allocation2 + $0x88] sm:$0xf] %vm848_vm0, %v5729_v4  ;;  %v5716_v11 = vadd.f32 %v14249_v20, %v5701_v15  ;;  %v5702_v49 = vmul.f32 %v11048_v16, %v14244_v2  ;;  %v5668_v46 = vpop.f32.mrb[15].mxu0  ;;  %v14320_v48 = vrot.slane %v5852_v40, 7  ;;  %v5888_v30 = vshll.u32 %v5756_v33, 16 }
 0x4bd   : > { %5735 = vst.msk [vmem:[#allocation2 + $0x70] sm:$0xf] %vm848_vm0, %v5727_v53  ;;  %v5714_v24 = vadd.f32 %v14249_v20, %v5699_v41  ;;  %v5700_v37 = vmul.f32 %v14244_v2, %v5668_v46  ;;  %v14315_v53 = vrot.slane %v5834_v38, 7  ;;  %v5885_v41 = vshrl.u32 %v5756_v33, 16 }
 0x4be   : > { %v5724_v55 = vmax.f32 %v5716_v11, 0.0  ;;  %v5717_v1 = vadd.f32 %v14249_v20, %v5702_v49  ;;  %v14342_v28 = vrot.slane %v5867_v25, 6  ;;  %v14354_v25 = vrot.slane %v5888_v30, 7 }
 0x4bf   : > { %v5722_v0 = vmax.f32 %v5714_v24, 0.0  ;;  %v5715_v13 = vadd.f32 %v14249_v20, %v5700_v37  ;;  %v5837_v40 = vor.u32 %v14315_v53, %v14310_v42  ;;  %v14349_v33 = vrot.slane %v5885_v41, 6 }
 0x4c0   : > { %v5732_v2 = vpack.c.bf16 %v5724_v55, %v5724_v55  ;;  %v5725_v12 = vmax.f32 %v5717_v1, 0.0 }
 0x4c1   : > { %v5730_v29 = vpack.c.bf16 %v5722_v0, %v5722_v0  ;;  %v5723_v61 = vmax.f32 %v5715_v13, 0.0  ;;  %v14305_v10 = vld [vmem:[#allocation2 + $0x7c] sm:$0x7]  ;;  %v5891_v34 = vor.u32 %v14354_v25, %v14349_v33  ;;  %v6204_v33 = vshrl.u32 %v14255_v58, 16 }
 0x4c2   : > { %5740 = vst.msk [vmem:[#allocation2 + $0xac] sm:$0xf] %vm848_vm0, %v5732_v2  ;;  %v5733_v20 = vpack.c.bf16 %v5725_v12, %v5725_v12  ;;  %v5743_v57 = vld [vmem:[#allocation2 + $0x64] sm:$0x7]  ;;  %v5940_v14 = vrot.slane %v14305_v10, 7  ;;  %v5804_v37 = vshrl.u32 %v14305_v10, 16 }
 0x4c3   : > { %5738 = vst.msk [vmem:[#allocation2 + $0x94] sm:$0xf] %vm848_vm0, %v5730_v29  ;;  %v5731_v9 = vpack.c.bf16 %v5723_v61, %v5723_v61  ;;  %v5932_v63 = vrot.slane %v5743_v57, 7  ;;  %v5749_v7 = vld [vmem:[#allocation2 + $0x88] sm:$0x7]  ;;  %v5768_v4 = vshrl.u32 %v5743_v57, 16 }
 0x4c4   : > { %5741 = vst.msk [vmem:[#allocation2 + $0xb8] sm:$0xf] %vm848_vm0, %v5733_v20  ;;  %v5745_v15 = vld [vmem:[#allocation2 + $0x70] sm:$0x7]  ;;  %v5944_v26 = vrot.slane %v5749_v7, 7  ;;  %v5771_v56 = vshll.u32 %v5743_v57, 16  ;;  %v5941_v1 = vsel %vm12877_vm6, %v10387_v23, %v5940_v14 }
 0x4c5   : > { %5739 = vst.msk [vmem:[#allocation2 + $0xa0] sm:$0xf] %vm848_vm0, %v5731_v9  ;;  %v5936_v16 = vrot.slane %v5745_v15, 7  ;;  %v5786_v46 = vshrl.u32 %v5745_v15, 16  ;;  %v5789_v24 = vshll.u32 %v5745_v15, 16  ;;  %v5933_v8 = vsel %vm12877_vm6, %v10385_v62, %v5932_v63  ;;  %v11824_v12 = vld [vmem:[#allocation14 + $0x8] sm:$0xff]  }
 0x4c6   : > { %v5945_v49 = vsel %vm12877_vm6, %v10388_v27, %v5944_v26  ;;  %v5770_v27 = vrot.slane %v5768_v4, 6  ;;  %v5773_v0 = vrot.slane %v5771_v56, 7  ;;  %v5807_v62 = vshll.u32 %v14305_v10, 16  ;;  %v14358_v15 = vld [vmem:[#allocation14 + $0x20] sm:$0xff]  }
 0x4c7   : > { %v5937_v55 = vsel %vm12877_vm6, %v10386_v6, %v5936_v16  ;;  %v5788_v13 = vrot.slane %v5786_v46, 6  ;;  %v5791_v59 = vrot.slane %v5789_v24, 7  ;;  %v10394_v2 = vcombine.low %v5941_v1, %v5945_v49 }
 0x4c8   : > { %v10393_v5 = vcombine.low %v5933_v8, %v5937_v55  ;;  %v14344_v29 = vrot.slane %v5870_v19, 7  ;;  %v5822_v61 = vshrl.u32 %v5749_v7, 16  ;;  %v5825_v23 = vshll.u32 %v5749_v7, 16  ;;  %v14382_v55 = vld [vmem:[#allocation2 + $0x70] sm:$0xf] }
 0x4c9   : > { %v14339_v38 = vld [vmem:[#allocation2 + $0xac] sm:$0x7]  ;;  %v5792_v9 = vor.u32 %v5791_v59, %v5788_v13  ;;  %v5855_v10 = vor.u32 %v14320_v48, %v14318_v22  ;;  %v5774_v14 = vor.u32 %v5773_v0, %v5770_v27  ;;  %v5806_v42 = vrot.slane %v5804_v37, 6  ;;  %v14386_v59 = vld [vmem:[#allocation2 + $0x64] sm:$0xf] }
 0x4ca   : > { %11053 = vmatprep.mubr.msk.bf16.mxu0 %vm1058_vm1, %v10393_v5  ;;  %v5751_v6 = vld [vmem:[#allocation2 + $0x94] sm:$0x7]  ;;  %v5956_v63 = vrot.slane %v14339_v38, 7  ;;  %v5809_v26 = vrot.slane %v5807_v62, 7  ;;  %v5824_v16 = vrot.slane %v5822_v61, 6  ;;  %v6196_v62 = vshrl.u32 %v14382_v55, 16 }
 0x4cb   : > { %11054 = vmatmul.mubr.msk.bf16.vlgmr.msra.gmra.mrb[16].mxu0 %vm1058_vm1, %v10394_v2  ;;  %v5948_v20 = vrot.slane %v5751_v6, 7  ;;  %v5757_v57 = vld [vmem:[#allocation2 + $0xb8] sm:$0x7]  ;;  %v5840_v56 = vshrl.u32 %v5751_v6, 16  ;;  %v5843_v53 = vshll.u32 %v5751_v6, 16  ;;  %v5793_v46 = vsel %vm12938_vm7, %v14301_v39, %v5792_v9 }
 0x4cc   : > { %11062 = vmatpush3.bf16.msra.mxu0 %v14238_v18  ;;  %v5753_v19 = vld [vmem:[#allocation2 + $0xa0] sm:$0x7]  ;;  %v5960_v7 = vrot.slane %v5757_v57, 7  ;;  %v5827_v18 = vrot.slane %v5825_v23, 7  ;;  %v5894_v13 = vshrl.u32 %v5757_v57, 16  ;;  %v5856_v2 = vrot.slane %v5855_v10, 4 }
 0x4cd   : > { %v5952_v4 = vrot.slane %v5753_v19, 7  ;;  %11063 = vmatprep.subr.bf16.mxu0 %v11824_v12  ;;  %v5858_v22 = vshrl.u32 %v5753_v19, 16  ;;  %v5949_v48 = vsel %vm12877_vm6, %v10389_v50, %v5948_v20  ;;  %v5861_v24 = vshll.u32 %v5753_v19, 16 }
 0x4ce   : > { %v5961_v41 = vsel %vm12877_vm6, %v10392_v44, %v5960_v7  ;;  %v5957_v44 = vsel %vm12877_vm6, %v10391_v45, %v5956_v63  ;;  %v5775_v50 = vsel %vm12938_vm7, %v14298_v60, %v5774_v14  ;;  %v5842_v1 = vrot.slane %v5840_v56, 6 }
 0x4cf   : > { %v5953_v30 = vsel %vm12877_vm6, %v10390_v36, %v5952_v4  ;;  %v5860_v8 = vrot.slane %v5858_v22, 6  ;;  %v10396_v36 = vcombine.low %v5957_v44, %v5961_v41  ;;  %v5845_v39 = vrot.slane %v5843_v53, 7  ;;  %v14419_v53 = vld [vmem:[#allocation2 + $0x7c] sm:$0xf]  ;;  %v14422_v22 = vld [vmem:[#allocation2 + $0x94] sm:$0xf] }
 0x4d0   : > { %v10395_v37 = vcombine.low %v5949_v48, %v5953_v30  ;;  %11064 = vmatpush3.bf16.msra.mxu0 %v11824_v12  ;;  %v5863_v27 = vrot.slane %v5861_v24, 7  ;;  %v10403_v5 = vcombine.low %v5775_v50, %v5793_v46  ;;  %v5828_v0 = vor.u32 %v5827_v18, %v5824_v16 }
 0x4d1   : > { %11073 = vmatprep.subr.bf16.mxu0 %v14358_v15  ;;  %v5897_v45 = vshll.u32 %v5757_v57, 16  ;;  %v5802_v60 = vrot.slane %v5801_v54, 4  ;;  %v5810_v6 = vor.u32 %v5809_v26, %v5806_v42  ;;  %v5873_v61 = vor.u32 %v14344_v29, %v14342_v28  ;;  %v14414_v42 = vld [vmem:[#allocation2 + $0xa0] sm:$0xf]  ;;  %v11826_v26 = vld [vmem:[#allocation14 + $0x28] sm:$0xff]  }
 0x4d2   : > { %11057 = vmatprep.mubr.msk.bf16.mxu0 %vm1058_vm1, %v10395_v37  ;;  %v5864_v12 = vor.u32 %v5863_v27, %v5860_v8  ;;  %v5876_v23 = vshrl.u32 %v14339_v38, 16  ;;  %v5879_v20 = vshll.u32 %v14339_v38, 16  ;;  %v5838_v57 = vrot.slane %v5837_v40, 4  ;;  %v14408_v40 = vld [vmem:[#allocation2 + $0x88] sm:$0xf] }
 0x4d3   : > { %11058 = vmatmul.mubr.msk.bf16.gmra.mrb[20].mxu0 %vm1058_vm1, %v10396_v36  ;;  %v5846_v9 = vor.u32 %v5845_v39, %v5842_v1  ;;  %v6183_v3 = vshrl.u32 %v14386_v59, 16  ;;  %v5829_v54 = vsel %vm12938_vm7, %v14303_v35, %v5828_v0  ;;  %v5896_v10 = vrot.slane %v5894_v13, 6  ;;  %v14430_v36 = vld [vmem:[#allocation14 + $0x30] sm:$0xff]  }
 0x4d4   : > { %11065 = vmatprep.mubr.msk.bf16.mxu0 %vm1058_vm1, %v10403_v5  ;;  %v5899_v19 = vrot.slane %v5897_v45, 7  ;;  %v6178_v63 = vshrl.u32 %v14251_v43, 16  ;;  %v5865_v28 = vsel %vm12938_vm7, %v5856_v2, %v5864_v12  ;;  %v6191_v38 = vshrl.u32 %v14253_v21, 16  ;;  %v14439_v12 = vld [vmem:[#allocation2 + $0xb8] sm:$0xf] }
 0x4d5   : > { %v6198_v29 = vrot.slane %v6196_v62, 7  ;;  %v5811_v25 = vsel %vm12938_vm7, %v5802_v60, %v5810_v6  ;;  %v5878_v7 = vrot.slane %v5876_v23, 6  ;;  %v5881_v14 = vrot.slane %v5879_v20, 7 }
 0x4d6   : > { %v6217_v35 = vshrl.u32 %v14266_v52, 16  ;;  %v10404_v43 = vcombine.low %v5811_v25, %v5829_v54  ;;  %v5847_v4 = vsel %vm12938_vm7, %v5838_v57, %v5846_v9  ;;  %v6185_v21 = vrot.slane %v6183_v3, 7 }
 0x4d7   : > { %v6199_v56 = vshll.u32 %v14382_v55, 16  ;;  %v10405_v58 = vcombine.low %v5847_v4, %v5865_v28  ;;  %v5892_v41 = vrot.slane %v5891_v34, 4  ;;  %v5900_v16 = vor.u32 %v5899_v19, %v5896_v10  ;;  %v14450_v34 = vld [vmem:[#allocation2 + $0xac] sm:$0xf]  ;;  %v14454_v19 = vld [vmem:[#allocation2 + $0x68] sm:$0x1] }
 0x4d8   : > { %v6222_v18 = vshrl.u32 %v14408_v40, 16  ;;  %v6186_v52 = vshll.u32 %v14386_v59, 16  ;;  %v10414_v48 = vrot.slane %v6191_v38, 11  ;;  %v6248_v46 = vshrl.u32 %v14414_v42, 16 }
 0x4d9   : > { %v6201_v30 = vor.u32 %v6199_v56, %v6198_v29  ;;  %v5874_v24 = vrot.slane %v5873_v61, 4  ;;  %v5882_v37 = vor.u32 %v5881_v14, %v5878_v7  ;;  %v6209_v44 = vshrl.u32 %v14419_v53, 16  ;;  %v14460_v29 = vld [vmem:[#allocation2 + $0x8c] sm:$0x1]  ;;  %v6930_v56 = vld [vmem:[#allocation2 + $0x74] sm:$0x3] }
 0x4da   : > { %v10413_v50 = vrot.slane %v6178_v63, 11  ;;  %v6188_v8 = vor.u32 %v6186_v52, %v6185_v21  ;;  %v10415_v1 = vrot.slane %v6204_v33, 11  ;;  %v6235_v39 = vshrl.u32 %v14422_v22, 16  ;;  %v6929_v33 = vld [vmem:[#allocation2 + $0x68] sm:$0x3] }
 0x4db   : > { %11066 = vmatmul.mubr.msk.bf16.vlgmr.msra.gmra.mrb[16].mxu0 %vm1058_vm1, %v10404_v43  ;;  %v5901_v27 = vsel %vm12938_vm7, %v5892_v41, %v5900_v16  ;;  %v10416_v5 = vrot.slane %v6217_v35, 11  ;;  %v6224_v0 = vrot.slane %v6222_v18, 7  ;;  %v6202_v45 = vsel %vm13043_vm10, %v10414_v48, %v6201_v30  ;;  %v14472_v16 = vld [vmem:[#allocation2 + $0x74] sm:$0x1] }
 0x4dc   : > { %11074 = vmatpush3.bf16.msra.mxu0 %v14358_v15  ;;  %11069 = vmatprep.mubr.msk.bf16.mxu0 %vm1058_vm1, %v10405_v58  ;;  %v6230_v15 = vshrl.u32 %v14268_v51, 16  ;;  %v6243_v60 = vshrl.u32 %v14272_v17, 16  ;;  %v6250_v2 = vrot.slane %v6248_v46, 7  ;;  %v6256_v62 = vshrl.u32 %v14276_v32, 16  ;;  %v11833_v18 = vld [vmem:[#allocation14 + $0x48] sm:$0xff]  }
 0x4dd   : > { %11075 = vmatprep.subr.bf16.mxu0 %v11826_v26  ;;  %v5883_v6 = vsel %vm12938_vm7, %v5874_v24, %v5882_v37  ;;  %v6211_v61 = vrot.slane %v6209_v44, 7  ;;  %v6225_v23 = vshll.u32 %v14408_v40, 16  ;;  %v6269_v20 = vshrl.u32 %v14278_v47, 16  ;;  %v14456_v47 = vld [vmem:[#allocation2 + $0x80] sm:$0x1] }
 0x4de   : > { %v10406_v51 = vcombine.low %v5883_v6, %v5901_v27  ;;  %v6189_v57 = vsel %vm13043_vm10, %v10413_v50, %v6188_v8  ;;  %v6237_v17 = vrot.slane %v6235_v39, 7  ;;  %v6251_v9 = vshll.u32 %v14414_v42, 16  ;;  %v14482_v39 = vld [vmem:[#allocation2 + $0x80] sm:$0x3]  ;;  %v14489_v6 = vld [vmem:[#allocation2 + $0xb0] sm:$0x1] }
 0x4df   : > { %v10421_v32 = vcombine.low %v6189_v57, %v6202_v45  ;;  %v6212_v3 = vshll.u32 %v14419_v53, 16  ;;  %v6227_v54 = vor.u32 %v6225_v23, %v6224_v0  ;;  %v6274_v10 = vshrl.u32 %v14439_v12, 16  ;;  %v11828_v0 = vld [vmem:[#allocation14 + $0x38] sm:$0xff]   ;;  %v6519_v23 = vld [vmem:[#allocation2 + $0x70] sm:$0xf] }
 0x4e0   : > { %11076 = vmatpush3.bf16.msra.mxu0 %v11826_v26  ;;  %v6238_v63 = vshll.u32 %v14422_v22, 16  ;;  %v10418_v28 = vrot.slane %v6243_v60, 11  ;;  %v6253_v38 = vor.u32 %v6251_v9, %v6250_v2  ;;  %v10417_v7 = vrot.slane %v6230_v15, 11 }
 0x4e1   : > { %11085 = vmatprep.subr.bf16.mxu0 %v14430_v36  ;;  %v6214_v25 = vor.u32 %v6212_v3, %v6211_v61  ;;  %v14463_v14 = vrot.slane %v6256_v62, 11  ;;  %v6261_v35 = vshrl.u32 %v14450_v34, 16  ;;  %v14466_v4 = vrot.slane %v6269_v20, 11  ;;  %v14500_v3 = vld [vmem:[#allocation14 + $0x40] sm:$0xff]  }
 0x4e2   : > { %v6240_v43 = vor.u32 %v6238_v63, %v6237_v17  ;;  %v6228_v58 = vsel %vm13043_vm10, %v10416_v5, %v6227_v54  ;;  %v6276_v41 = vrot.slane %v6274_v10, 7  ;;  %v6947_v52 = vshrl.u32 %v6929_v33, 16  ;;  %v6932_v17 = vld [vmem:[#allocation2 + $0x8c] sm:$0x3]  ;;  %v14506_v63 = vld [vmem:[#allocation2 + $0x98] sm:$0x1] }
 0x4e3   : > { %11070 = vmatmul.mubr.msk.bf16.gmra.mrb[20].mxu0 %vm1058_vm1, %v10406_v51  ;;  %v6254_v48 = vsel %vm13043_vm10, %v10418_v28, %v6253_v38  ;;  %v6543_v30 = vshll.u32 %v14454_v19, 16  ;;  %v6571_v46 = vshll.u32 %v14456_v47, 16  ;;  %v6950_v24 = vshll.u32 %v6929_v33, 16 }
 0x4e4   : > { %11077 = vmatprep.mubr.msk.bf16.mxu0 %vm1058_vm1, %v10421_v32  ;;  %v6215_v37 = vsel %vm13043_vm10, %v10415_v1, %v6214_v25  ;;  %v6263_v44 = vrot.slane %v6261_v35, 7  ;;  %v6277_v50 = vshll.u32 %v14439_v12, 16  ;;  %v6965_v8 = vshrl.u32 %v6930_v56, 16  ;;  %v6517_v1 = vld [vmem:[#allocation2 + $0x64] sm:$0xf] }
 0x4e5   : > { %v10422_v27 = vcombine.low %v6215_v37, %v6228_v58  ;;  %v6241_v5 = vsel %vm13043_vm10, %v10417_v7, %v6240_v43  ;;  %v6585_v15 = vshll.u32 %v14460_v29, 16  ;;  %v6264_v2 = vshll.u32 %v14450_v34, 16  ;;  %v14512_v7 = vld [vmem:[#allocation2 + $0xbc] sm:$0x1]  ;;  %v14529_v37 = vld [vmem:[#allocation2 + $0xa4] sm:$0x1] }
 0x4e6   : > { %v10423_v60 = vcombine.low %v6241_v5, %v6254_v48  ;;  %v6279_v62 = vor.u32 %v6277_v50, %v6276_v41  ;;  %v6968_v61 = vshll.u32 %v6930_v56, 16  ;;  %v6557_v20 = vshll.u32 %v14472_v16, 16 }
 0x4e7   : > { %v14493_v51 = vrot.slane %v6947_v52, 5  ;;  %v14495_v57 = vrot.slane %v6950_v24, 6  ;;  %v6983_v9 = vshrl.u32 %v14482_v39, 16  ;;  %v6266_v32 = vor.u32 %v6264_v2, %v6263_v44  ;;  %v6521_v24 = vld [vmem:[#allocation2 + $0x7c] sm:$0xf] }
 0x4e8   : > { %v14502_v54 = vrot.slane %v6543_v30, 5  ;;  %v14504_v10 = vrot.slane %v6571_v46, 5  ;;  %v14508_v28 = vrot.slane %v6965_v8, 5  ;;  %v6534_v38 = vshrl.u32 %v6517_v1, 16 }
 0x4e9   : > { %v6537_v33 = vshll.u32 %v6517_v1, 16  ;;  %v14510_v25 = vrot.slane %v6585_v15, 5  ;;  %v6280_v35 = vsel %vm13043_vm10, %v14466_v4, %v6279_v62  ;;  %v6548_v43 = vshrl.u32 %v6519_v23, 16  ;;  %v4678_v1 = vld [vmem:[#allocation11] sm:$0x3] }
 0x4ea   : > { %v6551_v56 = vshll.u32 %v6519_v23, 16  ;;  %v14518_v58 = vrot.slane %v6968_v61, 6  ;;  %v14520_v41 = vrot.slane %v6557_v20, 5  ;;  %v14523_v48 = vrot.slane %v6983_v9, 5  ;;  %v14559_v4 = vld [vmem:[#allocation2 + $0x98] sm:$0x3] }
 0x4eb   : > { %11078 = vmatmul.mubr.msk.bf16.vlgmr.msra.gmra.mrb[16].mxu0 %vm1058_vm1, %v10422_v27  ;;  %v6986_v30 = vshll.u32 %v14482_v39, 16  ;;  %v6267_v46 = vsel %vm13043_vm10, %v14463_v14, %v6266_v32  ;;  %v7001_v50 = vshrl.u32 %v6932_v17, 16  ;;  %v6536_v27 = vrot.slane %v6534_v38, 4  ;;  %v6523_v39 = vld [vmem:[#allocation2 + $0x88] sm:$0xf] }
 0x4ec   : > { %11086 = vmatpush3.bf16.msra.mxu0 %v14430_v36  ;;  %11081 = vmatprep.mubr.msk.bf16.mxu0 %vm1058_vm1, %v10423_v60  ;;  %v10424_v8 = vcombine.low %v6267_v46, %v6280_v35  ;;  %v6539_v5 = vrot.slane %v6537_v33, 5  ;;  %v7004_v15 = vshll.u32 %v6932_v17, 16  ;;  %v10431_v14 = vcombine.low %v14386_v59, %v14382_v55  ;;  %v6527_v55 = vld [vmem:[#allocation2 + $0xa0] sm:$0xf]  ;;  %v15623_v33 = vld [vmem:[#allocation23_spill] sm:$0xff] }
 0x4ed   : > { %11087 = vmatprep.subr.bf16.mxu0 %v11828_v0  ;;  %v6550_v60 = vrot.slane %v6548_v43, 4  ;;  %v6553_v2 = vrot.slane %v6551_v56, 5  ;;  %v6627_v62 = vshll.u32 %v14489_v6, 16  ;;  %v6562_v61 = vshrl.u32 %v6521_v24, 16  ;;  %v6525_v56 = vld [vmem:[#allocation2 + $0x94] sm:$0xf] }
 0x4ee   : > { %v6565_v23 = vshll.u32 %v6521_v24, 16  ;;  %v6576_v17 = vshrl.u32 %v6523_v39, 16  ;;  %v6579_v32 = vshll.u32 %v6523_v39, 16  ;;  %v14543_v59 = vrot.slane %v6986_v30, 6 }
 0x4ef   : > { %v14545_v38 = vrot.slane %v7001_v50, 5  ;;  %v6540_v43 = vor.u32 %v6539_v5, %v6536_v27  ;;  %v6599_v46 = vshll.u32 %v14506_v63, 16  ;;  %v14551_v24 = vrot.slane %v7004_v15, 6 }
 0x4f0   : > { %11088 = vmatpush3.bf16.msra.mxu0 %v11828_v0  ;;  %v4650_v0 = vld [vmem:[#allocation9] sm:$0x3]  ;;  %v6613_v39 = vshll.u32 %v14529_v37, 16  ;;  %v14557_v44 = vrot.slane %v6627_v62, 5  ;;  %v6564_v30 = vrot.slane %v6562_v61, 4  ;;  %v6567_v50 = vrot.slane %v6565_v23, 5 }
 0x4f1   : > { %11097 = vmatprep.subr.bf16.mxu0 %v14500_v3  ;;  %v14548_v35 = vrot.slane %v4650_v0, %v15623_v33  ;;  %v6604_v36 = vshrl.u32 %v6527_v55, 16  ;;  %v6607_v9 = vshll.u32 %v6527_v55, 16  ;;  %v6578_v27 = vrot.slane %v6576_v17, 4  ;;  %v6529_v23 = vld [vmem:[#allocation2 + $0xac] sm:$0xf] }
 0x4f2   : > { %v6581_v5 = vrot.slane %v6579_v32, 5  ;;  %v6590_v52 = vshrl.u32 %v6525_v56, 16  ;;  %v6593_v20 = vshll.u32 %v6525_v56, 16  ;;  %v10432_v15 = vcombine.low %v14419_v53, %v14408_v40  ;;  %v15624_v32 = vld [vmem:[#allocation24_spill] sm:$0xff] }
 0x4f3   : > { %11082 = vmatmul.mubr.msk.bf16.gmra.mrb[20].mxu0 %vm1058_vm1, %v10424_v8  ;;  %v14554_v8 = vrot.slane %v4678_v1, %v15623_v33  ;;  %v6541_v21 = vrot.slane %v6540_v43, 4  ;;  %v10433_v62 = vcombine.low %v14422_v22, %v14414_v42  ;;  %v14572_v56 = vrot.slane %v4650_v0, %v15624_v32 }
 0x4f4   : > { %11089 = vmatprep.mubr.msk.bf16.mxu0 %vm1058_vm1, %v10431_v14  ;;  %v6554_v14 = vor.u32 %v6553_v2, %v6550_v60  ;;  %v14563_v60 = vrot.slane %v6599_v46, 5  ;;  %v6641_v2 = vshll.u32 %v14512_v7, 16  ;;  %v6568_v40 = vor.u32 %v6567_v50, %v6564_v30  ;;  %v6531_v46 = vld [vmem:[#allocation2 + $0xb8] sm:$0xf] }
 0x4f5   : > { %v6606_v53 = vrot.slane %v6604_v36, 4  ;;  %v6609_v43 = vrot.slane %v6607_v9, 5  ;;  %v6582_v42 = vor.u32 %v6581_v5, %v6578_v27  ;;  %v6592_v22 = vrot.slane %v6590_v52, 4  ;;  %v11920_v36 = vld [vmem:[%s15364_s21 + $0xc0] ss:$8 sps:$4 sm:$0xff]  }
 0x4f6   : > { %v6555_v61 = vrot.slane %v6554_v14, 4  ;;  %v6595_v14 = vrot.slane %v6593_v20, 5  ;;  %v14576_v26 = vrot.slane %v6613_v39, 5  ;;  %v14579_v17 = vrot.slane %v4678_v1, %v15624_v32 }
 0x4f7   : > { %v10434_v0 = vcombine.low %v14450_v34, %v14439_v12  ;;  %v6546_v9 = vsel %vm13178_vm15, %v6541_v21, %v14502_v54  ;;  %v6618_v30 = vshrl.u32 %v6529_v23, 16  ;;  %v6632_v1 = vshrl.u32 %v6531_v46, 16 }
 0x4f8   : > { %v6560_v39 = vsel %vm13178_vm15, %v6555_v61, %v14520_v41  ;;  %v6635_v50 = vshll.u32 %v6531_v46, 16  ;;  %v6569_v12 = vrot.slane %v6568_v40, 4  ;;  %v6610_v34 = vor.u32 %v6609_v43, %v6606_v53 }
 0x4f9   : > { %v6596_v55 = vor.u32 %v6595_v14, %v6592_v22  ;;  %v10441_v61 = vcombine.low %v6546_v9, %v6560_v39  ;;  %v6620_v46 = vrot.slane %v6618_v30, 4  ;;  %v6634_v53 = vrot.slane %v6632_v1, 4  ;;  %v14612_v1 = vld [vmem:[#allocation2 + $0x64] sm:$0xe] }
 0x4fa   : > { %v6637_v43 = vrot.slane %v6635_v50, 5  ;;  %v6611_v22 = vrot.slane %v6610_v34, 4  ;;  %v14608_v39 = vrot.slane %v6641_v2, 5 }
 0x4fb   : > { %11090 = vmatmul.mubr.msk.bf16.vlgmr.msra.gmra.mrb[16].mxu0 %vm1058_vm1, %v10432_v15  ;;  %v4595_v45 = vpop.f32.mrb[40].mxu1  ;;  %v6621_v15 = vshll.u32 %v6529_v23, 16 }
 0x4fc   : > { %11098 = vmatpush3.bf16.msra.mxu0 %v14500_v3  ;;  %11093 = vmatprep.mubr.msk.bf16.mxu0 %vm1058_vm1, %v10433_v62  ;;  %v14586_v3 = vld [vmem:[#allocation14 + $0x50] sm:$0xff]   ;;  %v4662_v52 = vmul.f32 %v14548_v35, %v4595_v45  ;;  %v4597_v20 = vpop.f32.mrb[41].mxu1  ;;  %v6583_v45 = vrot.slane %v6582_v42, 4 }
 0x4fd   : > { %11099 = vmatprep.subr.bf16.mxu0 %v11833_v18  ;;  %v4663_v27 = vmul.f32 %v14572_v56, %v4597_v20  ;;  %v4599_v5 = vpop.f32.mrb[42].mxu1  ;;  %v6623_v14 = vrot.slane %v6621_v15, 5  ;;  %v6597_v20 = vrot.slane %v6596_v55, 4  ;;  %v6574_v55 = vsel %vm13178_vm15, %v6569_v12, %v14504_v10 }
 0x4fe   : > { %v4690_v21 = vadd.f32 %v14554_v8, %v4662_v52  ;;  %v4664_v54 = vmul.f32 %v14548_v35, %v4599_v5  ;;  %v4601_v62 = vpop.f32.mrb[43].mxu1  ;;  %v14599_v52 = vld [vmem:[#allocation2 + $0x70] sm:$0xe]  ;;  %v6588_v30 = vsel %vm13178_vm15, %v6583_v45, %v14510_v25  ;;  %v15626_v5 = vshrl.u32 %v14559_v4, 16 }
 0x4ff   : > { %v4691_v32 = vadd.f32 %v14579_v17, %v4663_v27  ;;  %v4665_v41 = vmul.f32 %v14572_v56, %v4601_v62  ;;  %v10452_v50 = vrot.slane %v14599_v52, 9  ;;  %v7007_v27 = vor.u32 %v14551_v24, %v14545_v38 }
 0x500   : > { %11100 = vmatpush3.bf16.msra.mxu0 %v11833_v18  ;;  %v4706_v40 = vmax.f32 %v4690_v21, 0.0  ;;  %v4692_v23 = vadd.f32 %v14554_v8, %v4664_v54  ;;  %v14619_v34 = vrot.slane %v15626_v5, 5  ;;  %v6638_v15 = vor.u32 %v6637_v43, %v6634_v53  ;;  %v14626_v21 = vld [vmem:[#allocation2 + $0x7c] sm:$0xe] }
 0x501   : > { %11109 = vmatprep.subr.bf16.mxu0 %v14586_v3  ;;  %v4707_v18 = vmax.f32 %v4691_v32, 0.0  ;;  %v4693_v42 = vadd.f32 %v14579_v17, %v4665_v41  ;;  %v15627_v54 = vshll.u32 %v14559_v4, 16  ;;  %v6602_v4 = vsel %vm13178_vm15, %v6597_v20, %v14563_v60 }
 0x502   : > { %10289 = vst [vmem:[%s13704_s20 + $0x80] sm:$0xff] %v4706_v40  ;;  %v4708_v9 = vmax.f32 %v4692_v23, 0.0  ;;  %v6616_v40 = vsel %vm13178_vm15, %v6611_v22, %v14576_v26  ;;  %v6624_v23 = vor.u32 %v6623_v14, %v6620_v46  ;;  %v10451_v43 = vrot.slane %v14612_v1, 9  ;;  %v11835_v26 = vld [vmem:[#allocation14 + $0x58] sm:$0xff]  }
 0x503   : > { %11094 = vmatmul.mubr.msk.bf16.gmra.mrb[20].mxu0 %vm1058_vm1, %v10434_v0  ;;  %10290 = vst.msk [vmem:[%s13704_s20 + $0x88] sm:$0xff] %vm922_vm9, %v4707_v18  ;;  %v4709_v32 = vmax.f32 %v4693_v42, 0.0  ;;  %v4605_v0 = vpop.f32.mrb[44].mxu1  ;;  %v14630_v62 = vrot.slane %v15627_v54, 6  ;;  %v14644_v18 = vld [vmem:[#allocation2 + $0x88] sm:$0xe] }
 0x504   : > { %11101 = vmatprep.mubr.msk.bf16.mxu0 %vm1058_vm1, %v10441_v61  ;;  %10291 = vst [vmem:[%s13704_s20 + $0x90] sm:$0xff] %v4708_v9  ;;  %v4666_v25 = vmul.f32 %v14548_v35, %v4605_v0  ;;  %v4607_v2 = vpop.f32.mrb[45].mxu1  ;;  %v10442_v61 = vcombine.low %v6574_v55, %v6588_v30  ;;  %v15628_v46 = vrot.slane %v14472_v16, 5  ;;  %v10453_v30 = vrot.slane %v14626_v21, 9 }
 0x505   : > { %10292 = vst.msk [vmem:[%s13704_s20 + $0x98] sm:$0xff] %vm922_vm9, %v4709_v32  ;;  %v4667_v45 = vmul.f32 %v14572_v56, %v4607_v2  ;;  %v4609_v41 = vpop.f32.mrb[46].mxu1  ;;  %v14655_v32 = vld [vmem:[#allocation2 + $0xa4] sm:$0x3]  ;;  %v10443_v0 = vcombine.low %v6602_v4, %v6616_v40  ;;  %v6639_v5 = vrot.slane %v6638_v15, 4  ;;  %v10454_v54 = vrot.slane %v14644_v18, 9 }
 0x506   : > { %v4694_v10 = vadd.f32 %v14554_v8, %v4666_v25  ;;  %v4668_v12 = vmul.f32 %v14548_v35, %v4609_v41  ;;  %v4611_v53 = vpop.f32.mrb[47].mxu1  ;;  %v14652_v14 = vsel %vm13218_vm3, %v10452_v50, %v15628_v46  ;;  %v14658_v25 = vld [vmem:[#allocation2 + $0x94] sm:$0xe]  ;;  %v14660_v2 = vld [vmem:[#allocation2 + $0xa0] sm:$0xe]  ;;  %v6625_v50 = vrot.slane %v6624_v23, 4 }
 0x507   : > { %v4695_v42 = vadd.f32 %v14579_v17, %v4667_v45  ;;  %v4669_v9 = vmul.f32 %v14572_v56, %v4611_v53  ;;  %v15630_v15 = vrot.slane %v14454_v19, 5  ;;  %v7037_v40 = vshrl.u32 %v14655_v32, 16 }
 0x508   : > { %v4710_v60 = vmax.f32 %v4694_v10, 0.0  ;;  %v4696_v20 = vadd.f32 %v14554_v8, %v4668_v12  ;;  %v10455_v53 = vrot.slane %v14658_v25, 9  ;;  %v10456_v19 = vrot.slane %v14660_v2, 9 }
 0x509   : > { %v4711_v55 = vmax.f32 %v4695_v42, 0.0  ;;  %v4697_v16 = vadd.f32 %v14579_v17, %v4669_v9  ;;  %v6786_v41 = vsel %vm13218_vm3, %v10451_v43, %v15630_v15  ;;  %v6644_v42 = vsel %vm13178_vm15, %v6639_v5, %v14608_v39 }
 0x50a   : > { %10293 = vst [vmem:[%s13704_s20 + $0xa0] sm:$0xff] %v4710_v60  ;;  %v4712_v45 = vmax.f32 %v4696_v20, 0.0  ;;  %v10459_v12 = vcombine.low %v6786_v41, %v14652_v14  ;;  %v6956_v9 = vshrl.u32 %v14599_v52, 16  ;;  %v6959_v46 = vshll.u32 %v14599_v52, 16 }
 0x50b   : > { %11102 = vmatmul.mubr.msk.bf16.vlgmr.msra.gmra.mrb[16].mxu0 %vm1058_vm1, %v10442_v61  ;;  %v7040_v61 = vshll.u32 %v14655_v32, 16  ;;  %10294 = vst.msk [vmem:[%s13704_s20 + $0xa8] sm:$0xff] %vm922_vm9, %v4711_v55  ;;  %v4713_v23 = vmax.f32 %v4697_v16, 0.0  ;;  %v4615_v10 = vpop.f32.mrb[48].mxu1  ;;  %v6630_v20 = vsel %vm13178_vm15, %v6625_v50, %v14557_v44  ;;  %v15632_v39 = vrot.slane %v14460_v29, 5 }
 0x50c   : > { %11110 = vmatpush3.bf16.msra.mxu0 %v14586_v3  ;;  %11105 = vmatprep.mubr.msk.bf16.mxu0 %vm1058_vm1, %v10443_v0  ;;  %v14677_v3 = vld [vmem:[#allocation14 + $0x60] sm:$0xff]   ;;  %10295 = vst [vmem:[%s13704_s20 + $0xb0] sm:$0xff] %v4712_v45  ;;  %v4670_v4 = vmul.f32 %v14548_v35, %v4615_v10  ;;  %v4617_v43 = vpop.f32.mrb[49].mxu1  ;;  %v15631_v0 = vrot.slane %v14456_v47, 5  ;;  %v6938_v44 = vshrl.u32 %v14612_v1, 16  ;;  %v6941_v47 = vshll.u32 %v14612_v1, 16 }
 0x50d   : > { %11111 = vmatprep.subr.bf16.mxu0 %v11835_v26  ;;  %10296 = vst.msk [vmem:[%s13704_s20 + $0xb8] sm:$0xff] %vm922_vm9, %v4713_v23  ;;  %v4671_v14 = vmul.f32 %v14572_v56, %v4617_v43  ;;  %v4619_v60 = vpop.f32.mrb[50].mxu1  ;;  %v14704_v52 = vsel %vm13218_vm3, %v10454_v54, %v15632_v39  ;;  %v10444_v50 = vcombine.low %v6630_v20, %v6644_v42  ;;  %v15633_v54 = vrot.slane %v14529_v37, 5  ;;  %v14718_v23 = vld [vmem:[#allocation2 + $0xb8] sm:$0xe] }
 0x50e   : > { %v14698_v55 = vsel %vm13218_vm3, %v10453_v30, %v15631_v0  ;;  %v4698_v5 = vadd.f32 %v14554_v8, %v4670_v4  ;;  %v4672_v16 = vmul.f32 %v14548_v35, %v4619_v60  ;;  %v4621_v45 = vpop.f32.mrb[51].mxu1  ;;  %v6958_v1 = vrot.slane %v6956_v9, 5 }
 0x50f   : > { %v4699_v30 = vadd.f32 %v14579_v17, %v4671_v14  ;;  %v4673_v29 = vmul.f32 %v14572_v56, %v4621_v45  ;;  %v6806_v15 = vsel %vm13218_vm3, %v10456_v19, %v15633_v54  ;;  %v6961_v10 = vrot.slane %v6959_v46, 6 }
 0x510   : > { %11112 = vmatpush3.bf16.msra.mxu0 %v11835_v26  ;;  %v4714_v41 = vmax.f32 %v4698_v5, 0.0  ;;  %v4700_v26 = vadd.f32 %v14554_v8, %v4672_v16  ;;  %v10460_v37 = vcombine.low %v14698_v55, %v14704_v52  ;;  %v14724_v42 = vrot.slane %v7037_v40, 5 }
 0x511   : > { %11121 = vmatprep.subr.bf16.mxu0 %v14677_v3  ;;  %v4715_v4 = vmax.f32 %v4699_v30, 0.0  ;;  %v4701_v43 = vadd.f32 %v14579_v17, %v4673_v29  ;;  %v15634_v14 = vrot.slane %v14506_v63, 5  ;;  %v6940_v46 = vrot.slane %v6938_v44, 5 }
 0x512   : > { %10297 = vst [vmem:[%s13704_s20 + $0xc0] sm:$0xff] %v4714_v41  ;;  %v4716_v19 = vmax.f32 %v4700_v26, 0.0  ;;  %v6943_v60 = vrot.slane %v6941_v47, 6  ;;  %v10458_v40 = vrot.slane %v14718_v23, 9  ;;  %v6992_v55 = vshrl.u32 %v14644_v18, 16 }
 0x513   : > { %11106 = vmatmul.mubr.msk.bf16.gmra.mrb[20].mxu0 %vm1058_vm1, %v10444_v50  ;;  %v6802_v9 = vsel %vm13218_vm3, %v10455_v53, %v15634_v14  ;;  %10298 = vst.msk [vmem:[%s13704_s20 + $0xc8] sm:$0xff] %vm922_vm9, %v4715_v4  ;;  %v4717_v20 = vmax.f32 %v4701_v43, 0.0  ;;  %v4625_v0 = vpop.f32.mrb[52].mxu1  ;;  %v6962_v63 = vor.u32 %v6961_v10, %v6958_v1  ;;  %v6974_v5 = vshrl.u32 %v14626_v21, 16  ;;  %v11837_v1 = vld [vmem:[#allocation14 + $0x68] sm:$0xff]  }
 0x514   : > { %11113 = vmatprep.mubr.msk.bf16.mxu0 %vm1058_vm1, %v10459_v12  ;;  %v10461_v39 = vcombine.low %v6802_v9, %v6806_v15  ;;  %10299 = vst [vmem:[%s13704_s20 + $0xd0] sm:$0xff] %v4716_v19  ;;  %v4674_v12 = vmul.f32 %v14548_v35, %v4625_v0  ;;  %v4627_v52 = vpop.f32.mrb[53].mxu1  ;;  %v6995_v53 = vshll.u32 %v14644_v18, 16  ;;  %v6977_v44 = vshll.u32 %v14626_v21, 16  ;;  %v6765_v10 = vld [vmem:[#allocation2 + $0xac] sm:$0xe] }
 0x515   : > { %10300 = vst.msk [vmem:[%s13704_s20 + $0xd8] sm:$0xff] %vm922_vm9, %v4717_v20  ;;  %v4675_v16 = vmul.f32 %v14572_v56, %v4627_v52  ;;  %v4629_v45 = vpop.f32.mrb[54].mxu1  ;;  %v7028_v47 = vshrl.u32 %v14660_v2, 16  ;;  %v7031_v30 = vshll.u32 %v14660_v2, 16  ;;  %v6944_v15 = vor.u32 %v6943_v60, %v6940_v46  ;;  %v6936_v0 = vld [vmem:[#allocation2 + $0xbc] sm:$0x3] }
 0x516   : > { %v4702_v50 = vadd.f32 %v14554_v8, %v4674_v12  ;;  %v4676_v29 = vmul.f32 %v14548_v35, %v4629_v45  ;;  %v4631_v54 = vpop.f32.mrb[55].mxu1  ;;  %v7010_v41 = vshrl.u32 %v14658_v25, 16  ;;  %v6994_v21 = vrot.slane %v6992_v55, 5 }
 0x517   : > { %v4703_v18 = vadd.f32 %v14579_v17, %v4675_v16  ;;  %v4677_v26 = vmul.f32 %v14572_v56, %v4631_v54  ;;  %v7013_v4 = vshll.u32 %v14658_v25, 16  ;;  %v6963_v19 = vrot.slane %v6962_v63, 4 }
 0x518   : > { %v4718_v43 = vmax.f32 %v4702_v50, 0.0  ;;  %v4704_v2 = vadd.f32 %v14554_v8, %v4676_v29  ;;  %v6997_v35 = vrot.slane %v6995_v53, 6  ;;  %v7030_v46 = vrot.slane %v7028_v47, 5  ;;  %v6935_v50 = vld [vmem:[#allocation2 + $0xb0] sm:$0x3] }
 0x519   : > { %v4719_v14 = vmax.f32 %v4703_v18, 0.0  ;;  %v4705_v9 = vadd.f32 %v14579_v17, %v4677_v26  ;;  %v7033_v60 = vrot.slane %v7031_v30, 6  ;;  %v10457_v25 = vrot.slane %v6765_v10, 9 }
 0x51a   : > { %10301 = vst [vmem:[%s13704_s20 + $0xe0] sm:$0xff] %v4718_v43  ;;  %v4720_v56 = vmax.f32 %v4704_v2, 0.0  ;;  %v6976_v8 = vrot.slane %v6974_v5, 5  ;;  %v6979_v20 = vrot.slane %v6977_v44, 6  ;;  %v7012_v17 = vrot.slane %v7010_v41, 5 }
 0x51b   : > { %11114 = vmatmul.mubr.msk.bf16.vlgmr.msra.gmra.mrb[16].mxu0 %vm1058_vm1, %v10460_v37  ;;  %10302 = vst.msk [vmem:[%s13704_s20 + $0xe8] sm:$0xff] %vm922_vm9, %v4719_v14  ;;  %v4721_v55 = vmax.f32 %v4705_v9, 0.0  ;;  %v6945_v37 = vrot.slane %v6944_v15, 4  ;;  %v7015_v12 = vrot.slane %v7013_v4, 6  ;;  %v15635_v52 = vrot.slane %v14512_v7, 5 }
 0x51c   : > { %11122 = vmatpush3.bf16.msra.mxu0 %v14677_v3  ;;  %11117 = vmatprep.mubr.msk.bf16.mxu0 %vm1058_vm1, %v10461_v39  ;;  %10303 = vst [vmem:[%s13704_s20 + $0xf0] sm:$0xff] %v4720_v56  ;;  %v6998_v63 = vor.u32 %v6997_v35, %v6994_v21  ;;  %v7064_v39 = vshrl.u32 %v14718_v23, 16  ;;  %v7067_v5 = vshll.u32 %v14718_v23, 16  ;;  %v15636_v53 = vor.u32 %v14518_v58, %v14508_v28 }
 0x51d   : > { %11123 = vmatprep.subr.bf16.mxu0 %v11837_v1  ;;  %v6814_v3 = vsel %vm13218_vm3, %v10458_v40, %v15635_v52  ;;  %10304 = vst.msk [vmem:[%s13704_s20 + $0xf8] sm:$0xff] %vm922_vm9, %v4721_v55  ;;  %v7034_v44 = vor.u32 %v7033_v60, %v7030_v46  ;;  %v7042_v7 = vrot.slane %v7040_v61, 6  ;;  %v7073_v47 = vshrl.u32 %v6936_v0, 16  ;;  %v11841_v52 = vld [vmem:[#allocation15] sm:$0xff]  }
 0x51e   : > { %v6972_v45 = vsel %vm13356_vm8, %v6963_v19, %v15636_v53  ;;  %v15638_v40 = vrot.slane %v14489_v6, 5  ;;  %v6980_v23 = vor.u32 %v6979_v20, %v6976_v8  ;;  %v7046_v29 = vshrl.u32 %v6765_v10, 16 }
 0x51f   : > { %v7049_v54 = vshll.u32 %v6765_v10, 16  ;;  %v15639_v28 = vor.u32 %v14495_v57, %v14493_v51  ;;  %v7016_v32 = vor.u32 %v7015_v12, %v7012_v17  ;;  %v7076_v61 = vshll.u32 %v6936_v0, 16  ;;  %v11839_v17 = vld [vmem:[#allocation15 + $0x18] sm:$0xff]   ;;  %v11840_v12 = vld [vmem:[#allocation2 + $0x4c] ss:$12 sps:$4 sm:$0xff]  }
 0x520   : > { %v6810_v30 = vsel %vm13218_vm3, %v10457_v25, %v15638_v40  ;;  %11124 = vmatpush3.bf16.msra.mxu0 %v11837_v1  ;;  %v6999_v18 = vrot.slane %v6998_v63, 4  ;;  %v7066_v6 = vrot.slane %v7064_v39, 5  ;;  %v7069_v26 = vrot.slane %v7067_v5, 6  ;;  %11135 = vmatprep.subr.bf16.mxu1 %v11839_v17  ;;  %v10480_v39 = vld [vmem:[%s15360_s17] ss:$0 sm:$0xff] }
 0x521   : > { %v10462_v15 = vcombine.low %v6810_v30, %v6814_v3  ;;  %v6954_v58 = vsel %vm13356_vm8, %v6945_v37, %v15639_v28  ;;  %v6989_v1 = vor.u32 %v14543_v59, %v14523_v48  ;;  %v7035_v21 = vrot.slane %v7034_v44, 4  ;;  %11136 = vmatpush3.bf16.msra.mxu1 %v11839_v17  ;;  %11137 = vmatprep.mubr.msk.bf16.mxu1 %vm1058_vm1, %v11840_v12  ;;  %v10479_v3 = vld [vmem:[%s15359_s16] ss:$0 sm:$0xff] }
 0x522   : > { %v10469_v41 = vcombine.low %v6954_v58, %v6972_v45  ;;  %v7043_v10 = vor.u32 %v7042_v7, %v14724_v42  ;;  %v7055_v4 = vshrl.u32 %v6935_v50, 16  ;;  %v6981_v51 = vrot.slane %v6980_v23, 4  ;;  %11145 = vmatprep.subr.bf16.mxu1 %v11841_v52 }
 0x523   : > { %11118 = vmatmul.mubr.msk.bf16.gmra.mrb[20].mxu0 %vm1058_vm1, %v10462_v15  ;;  %v7048_v57 = vrot.slane %v7046_v29, 5  ;;  %v7051_v43 = vrot.slane %v7049_v54, 6  ;;  %v7058_v2 = vshll.u32 %v6935_v50, 16  ;;  %v7017_v19 = vrot.slane %v7016_v32, 4 }
 0x524   : > { %11125 = vmatprep.mubr.msk.bf16.mxu0 %vm1058_vm1, %v10469_v41  ;;  %v7025_v35 = vor.u32 %v14630_v62, %v14619_v34  ;;  %v7008_v48 = vsel %vm13356_vm8, %v6999_v18, %v7007_v27  ;;  %v7070_v59 = vor.u32 %v7069_v26, %v7066_v6  ;;  %v7075_v14 = vrot.slane %v7073_v47, 5 }
 0x525   : > { %v7078_v42 = vrot.slane %v7076_v61, 6  ;;  %v7044_v9 = vsel %vm13356_vm8, %v7035_v21, %v7043_v10  ;;  %v6990_v46 = vsel %vm13356_vm8, %v6981_v51, %v6989_v1  ;;  %v7052_v60 = vor.u32 %v7051_v43, %v7048_v57 }
 0x526   : > { %v7057_v56 = vrot.slane %v7055_v4, 5  ;;  %v7060_v25 = vrot.slane %v7058_v2, 6  ;;  %v10470_v8 = vcombine.low %v6990_v46, %v7008_v48  ;;  %v7026_v34 = vsel %vm13356_vm8, %v7017_v19, %v7025_v35 }
 0x527   : > { %v10471_v38 = vcombine.low %v7026_v34, %v7044_v9  ;;  %v7071_v24 = vrot.slane %v7070_v59, 4  ;;  %v7079_v62 = vor.u32 %v7078_v42, %v7075_v14  ;;  %v7053_v27 = vrot.slane %v7052_v60, 4 }
 0x528   : > { %v7061_v20 = vor.u32 %v7060_v25, %v7057_v56  ;;  %v11844_v25 = vld [vmem:[#allocation15 + $0x8] sm:$0xff]  }
 0x529   : > { %v7080_v0 = vsel %vm13356_vm8, %v7071_v24, %v7079_v62  ;;  %v11846_v24 = vld [vmem:[#allocation2 + $0x40] ss:$12 sps:$4 sm:$0xff]  }
 0x52a   : > { %v7062_v55 = vsel %vm13356_vm8, %v7053_v27, %v7061_v20  ;;  %v11850_v27 = vld [vmem:[#allocation15 + $0x28] sm:$0xff]  }
 0x52b   : > { %11126 = vmatmul.mubr.msk.bf16.vlgmr.msra.gmra.mrb[16].mxu0 %vm1058_vm1, %v10470_v8  ;;  %v10472_v37 = vcombine.low %v7062_v55, %v7080_v0  ;;  %v11853_v55 = vld [vmem:[#allocation15 + $0x30] sm:$0xff]  }
 0x52c   : > { %11129 = vmatprep.mubr.msk.bf16.mxu0 %vm1058_vm1, %v10471_v38  ;;  %v11847_v38 = vld [vmem:[#allocation15 + $0x20] sm:$0xff]  }
 0x533   : > { %11130 = vmatmul.mubr.msk.bf16.gmra.mrb[20].mxu0 %vm1058_vm1, %v10472_v37 }
 0x534   : > { %8848 = vmatprep.mubr.bf16.mxu0 %v15619_v31 }
 0x5fe   : > { %v11127_v63 = vpop.f32.mrb[16].mxu0 }
 0x5ff   : > { %v7204_v5 = vmul.f32 %v11127_v63, %v10479_v3  ;;  %v7156_v53 = vpop.f32.mrb[17].mxu0  ;;  %v11859_v63 = vld [vmem:[#allocation15 + $0x40] sm:$0xff]  }
 0x600   : > { %v7202_v45 = vmul.f32 %v10479_v3, %v7156_v53  ;;  %v11128_v44 = vpop.f32.mrb[18].mxu0 }
 0x601   : > { %v7219_v7 = vadd.f32 %v10480_v39, %v7204_v5  ;;  %v7205_v47 = vmul.f32 %v11128_v44, %v10479_v3  ;;  %v7159_v40 = vpop.f32.mrb[19].mxu0 }
 0x602   : > { %v7217_v30 = vadd.f32 %v10480_v39, %v7202_v45  ;;  %v7203_v23 = vmul.f32 %v10479_v3, %v7159_v40  ;;  %v11862_v45 = vld [vmem:[#allocation15 + $0x48] sm:$0xff]  }
 0x603   : > { %v7227_v50 = vmax.f32 %v7219_v7, 0.0  ;;  %v7220_v29 = vadd.f32 %v10480_v39, %v7205_v47  ;;  %v11865_v7 = vld [vmem:[#allocation15 + $0x50] sm:$0xff]  }
 0x604   : > { %v7225_v54 = vmax.f32 %v7217_v30, 0.0  ;;  %v7218_v15 = vadd.f32 %v10480_v39, %v7203_v23  ;;  %v11868_v23 = vld [vmem:[#allocation15 + $0x58] sm:$0xff]  }
 0x605   : > { %v7235_v28 = vpack.c.bf16 %v7227_v50, %v7227_v50  ;;  %v7228_v58 = vmax.f32 %v7220_v29, 0.0  ;;  %v11871_v29 = vld [vmem:[#allocation15 + $0x60] sm:$0xff]  }
 0x606   : > { %v7233_v32 = vpack.c.bf16 %v7225_v54, %v7225_v54  ;;  %v7226_v61 = vmax.f32 %v7218_v15, 0.0  ;;  %v11131_v41 = vpop.f32.mrb[20].mxu0 }
 0x607   : > { %7243 = vst.msk [vmem:[#allocation2 + $0x7c] sm:$0xf] %vm848_vm0, %v7235_v28  ;;  %v7236_v18 = vpack.c.bf16 %v7228_v58, %v7228_v58  ;;  %v7208_v6 = vmul.f32 %v11131_v41, %v10479_v3  ;;  %v7172_v26 = vpop.f32.mrb[21].mxu0  ;;  %v11874_v58 = vld [vmem:[#allocation15 + $0x68] sm:$0xff]  }
 0x608   : > { %7241 = vst.msk [vmem:[#allocation2 + $0x64] sm:$0xf] %vm848_vm0, %v7233_v32  ;;  %v7234_v1 = vpack.c.bf16 %v7226_v61, %v7226_v61  ;;  %v7206_v21 = vmul.f32 %v10479_v3, %v7172_v26  ;;  %v11132_v10 = vpop.f32.mrb[22].mxu0  ;;  %v11875_v61 = vld [vmem:[#allocation2 + $0xc4] ss:$12 sps:$4 sm:$0xff]  }
 0x609   : > { %7244 = vst.msk [vmem:[#allocation2 + $0x88] sm:$0xf] %vm848_vm0, %v7236_v18  ;;  %v7223_v4 = vadd.f32 %v10480_v39, %v7208_v6  ;;  %v7209_v51 = vmul.f32 %v11132_v10, %v10479_v3  ;;  %v7175_v57 = vpop.f32.mrb[23].mxu0  ;;  %v11879_v26 = vld [vmem:[#allocation2 + $0xd0] ss:$12 sps:$4 sm:$0xff]  }
 0x60a   : > { %7242 = vst.msk [vmem:[#allocation2 + $0x70] sm:$0xf] %vm848_vm0, %v7234_v1  ;;  %v7221_v43 = vadd.f32 %v10480_v39, %v7206_v21  ;;  %v7207_v2 = vmul.f32 %v10479_v3, %v7175_v57  ;;  %v11880_v1 = vld [vmem:[%s15364_s21 + $0x40] ss:$8 sps:$4 sm:$0xff]   ;;  %v11882_v21 = vld [vmem:[%s15364_s21 + $0x44] ss:$8 sps:$4 sm:$0xff]  }
 0x60b   : > { %v7231_v19 = vmax.f32 %v7223_v4, 0.0  ;;  %v7224_v35 = vadd.f32 %v10480_v39, %v7209_v51  ;;  %v11883_v10 = vld [vmem:[%s15364_s21 + $0x20] ss:$8 sps:$4 sm:$0xff]   ;;  %v11885_v4 = vld [vmem:[%s15364_s21 + $0x24] ss:$8 sps:$4 sm:$0xff]   ;;  %8816 = vmatprep.subr.bf16.mxu0 %v11882_v21 }
 0x60c   : > { %v7229_v48 = vmax.f32 %v7221_v43, 0.0  ;;  %v7222_v59 = vadd.f32 %v10480_v39, %v7207_v2  ;;  %v11888_v51 = vld [vmem:[%s15364_s21 + $0x54] ss:$8 sps:$4 sm:$0xff]   ;;  %8817 = vmatpush1.bf16.msra.mxu0 %v11880_v1  ;;  %v11886_v43 = vld [vmem:[%s15364_s21 + $0x50] ss:$8 sps:$4 sm:$0xff]  }
 0x60d   : > { %v7239_v14 = vpack.c.bf16 %v7231_v19, %v7231_v19  ;;  %v7232_v42 = vmax.f32 %v7224_v35, 0.0  ;;  %v11891_v57 = vld [vmem:[%s15364_s21 + $0x34] ss:$8 sps:$4 sm:$0xff]   ;;  %8818 = vmatprep.subr.bf16.mxu0 %v11888_v51  ;;  %v11889_v2 = vld [vmem:[%s15364_s21 + $0x30] ss:$8 sps:$4 sm:$0xff]  }
 0x60e   : > { %v7237_v9 = vpack.c.bf16 %v7229_v48, %v7229_v48  ;;  %v7230_v46 = vmax.f32 %v7222_v59, 0.0  ;;  %v11894_v19 = vld [vmem:[%s15364_s21 + $0x64] ss:$8 sps:$4 sm:$0xff]   ;;  %v10551_v48 = vld [vmem:[%s15640_s1] ss:$0 sm:$0xff] }
 0x60f   : > { %7247 = vst.msk [vmem:[#allocation2 + $0xac] sm:$0xf] %vm848_vm0, %v7239_v14  ;;  %v7240_v60 = vpack.c.bf16 %v7232_v42, %v7232_v42  ;;  %v11848_v20 = vld [vmem:[#allocation2 + $0x58] ss:$12 sps:$4 sm:$0xff]   ;;  %v10552_v14 = vld [vmem:[%s15641_s2] ss:$0 sm:$0xff] }
 0x610   : > { %7245 = vst.msk [vmem:[#allocation2 + $0x94] sm:$0xf] %vm848_vm0, %v7237_v9  ;;  %v7238_v56 = vpack.c.bf16 %v7230_v46, %v7230_v46  ;;  %v11843_v34 = vld [vmem:[#allocation2 + $0x7c] ss:$12 sps:$4 sm:$0xff]   ;;  %v11852_v17 = vld [vmem:[#allocation2 + $0x58] ss:$12 sps:$4 sm:$0xff]   ;;  %8819 = vmatpush1.bf16.msra.mxu0 %v11886_v43 }
 0x611   : > { %7248 = vst.msk [vmem:[#allocation2 + $0xb8] sm:$0xf] %vm848_vm0, %v7240_v60  ;;  %v11842_v8 = vld [vmem:[#allocation2 + $0x64] ss:$12 sps:$4 sm:$0xff]   ;;  %v11860_v53 = vld [vmem:[#allocation2 + $0x7c] ss:$12 sps:$4 sm:$0xff]   ;;  %8962 = vmatprep.subr.bf16.mxu0 %v11894_v19 }
 0x612   : > { %7246 = vst.msk [vmem:[#allocation2 + $0xa0] sm:$0xf] %vm848_vm0, %v7238_v56  ;;  %11138 = vmatmul.mubr.msk.bf16.vlgmr.msra.gmra.mrb[56].mxu1 %vm1058_vm1, %v11842_v8  ;;  %v11849_v0 = vld [vmem:[#allocation2 + $0x70] ss:$12 sps:$4 sm:$0xff]   ;;  %v11900_v35 = vld [vmem:[%s15364_s21 + $0x4] ss:$8 sps:$4 sm:$0xff]  }
 0x613   : > { %11146 = vmatpush3.bf16.msra.mxu1 %v11841_v52  ;;  %11141 = vmatprep.mubr.msk.bf16.mxu1 %vm1058_vm1, %v11843_v34  ;;  %v11854_v12 = vld [vmem:[#allocation2 + $0x70] ss:$12 sps:$4 sm:$0xff]  }
 0x614   : > { %11147 = vmatprep.subr.bf16.mxu1 %v11844_v25  ;;  %v11856_v52 = vld [vmem:[#allocation15 + $0x38] sm:$0xff]   ;;  %v11870_v15 = vld [vmem:[#allocation2 + $0x7c] ss:$12 sps:$4 sm:$0xff]  }
 0x615   : > { %v11858_v5 = vld [vmem:[#allocation2 + $0x64] ss:$12 sps:$4 sm:$0xff]  }
 0x616   : > { %v11864_v40 = vld [vmem:[#allocation2 + $0x70] ss:$12 sps:$4 sm:$0xff]  }
 0x617   : > { %11148 = vmatpush3.bf16.msra.mxu1 %v11844_v25  ;;  %v11851_v37 = vld [vmem:[#allocation2 + $0x88] ss:$12 sps:$4 sm:$0xff]  }
 0x618   : > { %11157 = vmatprep.subr.bf16.mxu1 %v11847_v38  ;;  %v11855_v3 = vld [vmem:[#allocation2 + $0x88] ss:$12 sps:$4 sm:$0xff]   ;;  %v11863_v47 = vld [vmem:[#allocation2 + $0xac] ss:$12 sps:$4 sm:$0xff]  }
 0x619   : > { %v11845_v62 = vld [vmem:[#allocation2 + $0x94] ss:$12 sps:$4 sm:$0xff]   ;;  %v11869_v54 = vld [vmem:[#allocation2 + $0xb8] ss:$12 sps:$4 sm:$0xff]  }
 0x61a   : > { %11142 = vmatmul.mubr.msk.bf16.gmra.mrb[60].mxu1 %vm1058_vm1, %v11845_v62  ;;  %v11857_v39 = vld [vmem:[#allocation2 + $0xa0] ss:$12 sps:$4 sm:$0xff]   ;;  %v11866_v30 = vld [vmem:[#allocation2 + $0x88] ss:$12 sps:$4 sm:$0xff]   ;;  %v11878_v6 = vld [vmem:[#allocation2 + $0xb8] ss:$12 sps:$4 sm:$0xff]  }
 0x61b   : > { %11149 = vmatprep.mubr.msk.bf16.mxu1 %vm1058_vm1, %v11846_v24  ;;  %v11861_v44 = vld [vmem:[#allocation2 + $0x94] ss:$12 sps:$4 sm:$0xff]   ;;  %v11873_v32 = vld [vmem:[#allocation2 + $0xac] ss:$12 sps:$4 sm:$0xff]  }
 0x61c   : > { %v11867_v50 = vld [vmem:[#allocation2 + $0xa0] ss:$12 sps:$4 sm:$0xff]   ;;  %v11876_v41 = vld [vmem:[#allocation2 + $0x88] ss:$12 sps:$4 sm:$0xff]  }
 0x61d   : > { %v11872_v28 = vld [vmem:[#allocation2 + $0x94] ss:$12 sps:$4 sm:$0xff]  }
 0x61e   : > { %v11877_v18 = vld [vmem:[#allocation2 + $0xa0] ss:$12 sps:$4 sm:$0xff]  }
 0x622   : > { %11150 = vmatmul.mubr.msk.bf16.vlgmr.msra.gmra.mrb[56].mxu1 %vm1058_vm1, %v11848_v20 }
 0x623   : > { %11158 = vmatpush3.bf16.msra.mxu1 %v11847_v38  ;;  %11153 = vmatprep.mubr.msk.bf16.mxu1 %vm1058_vm1, %v11849_v0 }
 0x624   : > { %11159 = vmatprep.subr.bf16.mxu1 %v11850_v27 }
 0x627   : > { %11160 = vmatpush3.bf16.msra.mxu1 %v11850_v27 }
 0x628   : > { %11169 = vmatprep.subr.bf16.mxu1 %v11853_v55 }
 0x62a   : > { %11154 = vmatmul.mubr.msk.bf16.gmra.mrb[60].mxu1 %vm1058_vm1, %v11851_v37 }
 0x62b   : > { %11161 = vmatprep.mubr.msk.bf16.mxu1 %vm1058_vm1, %v11852_v17 }
 0x632   : > { %11162 = vmatmul.mubr.msk.bf16.vlgmr.msra.gmra.mrb[56].mxu1 %vm1058_vm1, %v11854_v12 }
 0x633   : > { %11170 = vmatpush3.bf16.msra.mxu1 %v11853_v55  ;;  %11165 = vmatprep.mubr.msk.bf16.mxu1 %vm1058_vm1, %v11855_v3 }
 0x634   : > { %11171 = vmatprep.subr.bf16.mxu1 %v11856_v52 }
 0x637   : > { %11172 = vmatpush3.bf16.msra.mxu1 %v11856_v52 }
 0x638   : > { %11181 = vmatprep.subr.bf16.mxu1 %v11859_v63 }
 0x63a   : > { %11166 = vmatmul.mubr.msk.bf16.gmra.mrb[60].mxu1 %vm1058_vm1, %v11857_v39 }
 0x63b   : > { %11173 = vmatprep.mubr.msk.bf16.mxu1 %vm1058_vm1, %v11858_v5 }
 0x642   : > { %11174 = vmatmul.mubr.msk.bf16.vlgmr.msra.gmra.mrb[56].mxu1 %vm1058_vm1, %v11860_v53 }
 0x643   : > { %11182 = vmatpush3.bf16.msra.mxu1 %v11859_v63  ;;  %11177 = vmatprep.mubr.msk.bf16.mxu1 %vm1058_vm1, %v11861_v44 }
 0x644   : > { %11183 = vmatprep.subr.bf16.mxu1 %v11862_v45 }
 0x647   : > { %11184 = vmatpush3.bf16.msra.mxu1 %v11862_v45 }
 0x648   : > { %11193 = vmatprep.subr.bf16.mxu1 %v11865_v7 }
 0x64a   : > { %11178 = vmatmul.mubr.msk.bf16.gmra.mrb[60].mxu1 %vm1058_vm1, %v11863_v47 }
 0x64b   : > { %11185 = vmatprep.mubr.msk.bf16.mxu1 %vm1058_vm1, %v11864_v40 }
 0x652   : > { %11186 = vmatmul.mubr.msk.bf16.vlgmr.msra.gmra.mrb[56].mxu1 %vm1058_vm1, %v11866_v30  ;;  %v8360_v30 = vld [vmem:[#allocation2 + $0x60] sm:$0x8] }
 0x653   : > { %11194 = vmatpush3.bf16.msra.mxu1 %v11865_v7  ;;  %11189 = vmatprep.mubr.msk.bf16.mxu1 %vm1058_vm1, %v11867_v50 }
 0x654   : > { %11195 = vmatprep.subr.bf16.mxu1 %v11868_v23 }
 0x657   : > { %11196 = vmatpush3.bf16.msra.mxu1 %v11868_v23 }
 0x658   : > { %11205 = vmatprep.subr.bf16.mxu1 %v11871_v29 }
 0x65a   : > { %11190 = vmatmul.mubr.msk.bf16.gmra.mrb[60].mxu1 %vm1058_vm1, %v11869_v54  ;;  %v8664_v54 = vshrl.u32 %v8360_v30, 16 }
 0x65b   : > { %11197 = vmatprep.mubr.msk.bf16.mxu1 %vm1058_vm1, %v11870_v15 }
 0x662   : > { %11198 = vmatmul.mubr.msk.bf16.vlgmr.msra.gmra.mrb[56].mxu1 %vm1058_vm1, %v11872_v28 }
 0x663   : > { %11206 = vmatpush3.bf16.msra.mxu1 %v11871_v29  ;;  %11201 = vmatprep.mubr.msk.bf16.mxu1 %vm1058_vm1, %v11873_v32  ;;  %v8361_v29 = vld [vmem:[#allocation2 + $0x6c] sm:$0x8] }
 0x664   : > { %11207 = vmatprep.subr.bf16.mxu1 %v11874_v58  ;;  %v10554_v21 = vrot.slane %v8361_v29, 11 }
 0x667   : > { %11208 = vmatpush3.bf16.msra.mxu1 %v11874_v58  ;;  %v8677_v58 = vshrl.u32 %v8361_v29, 16 }
 0x668   : > { %8465 = vmatprep.subr.bf16.mxu1 %v11885_v4  ;;  %v10589_v4 = vrot.slane %v8664_v54, 11 }
 0x66a   : > { %11202 = vmatmul.mubr.msk.bf16.gmra.mrb[60].mxu1 %vm1058_vm1, %v11875_v61 }
 0x66b   : > { %11209 = vmatprep.mubr.msk.bf16.mxu1 %vm1058_vm1, %v11876_v41 }
 0x672   : > { %11210 = vmatmul.mubr.msk.bf16.vlgmr.msra.gmra.mrb[56].mxu1 %vm1058_vm1, %v11877_v18 }
 0x673   : > { %11213 = vmatprep.mubr.msk.bf16.mxu1 %vm1058_vm1, %v11878_v6  ;;  %8466 = vmatpush1.bf16.msra.mxu1 %v11883_v10  ;;  %v10553_v6 = vrot.slane %v8360_v30, 11 }
 0x674   : > { %8467 = vmatprep.subr.bf16.mxu1 %v11891_v57 }
 0x677   : > { %8468 = vmatpush1.bf16.msra.mxu1 %v11889_v2  ;;  %v10590_v2 = vrot.slane %v8677_v58, 11 }
 0x678   : > { %8582 = vmatprep.subr.bf16.mxu1 %v11900_v35 }
 0x67a   : > { %11214 = vmatmul.mubr.msk.bf16.gmra.mrb[60].mxu1 %vm1058_vm1, %v11879_v26 }
 0x67b   : > { %8497 = vmatprep.mubr.bf16.mxu1 %v15619_v31 }
 0x745   : > { %v11211_v59 = vpop.f32.mrb[56].mxu1 }
 0x746   : > { %v8151_v42 = vmul.f32 %v11211_v59, %v10551_v48  ;;  %v8103_v9 = vpop.f32.mrb[57].mxu1  ;;  %v8363_v59 = vld [vmem:[#allocation2 + $0x84] sm:$0x8] }
 0x747   : > { %v8149_v46 = vmul.f32 %v10551_v48, %v8103_v9  ;;  %v11212_v60 = vpop.f32.mrb[58].mxu1 }
 0x748   : > { %v8166_v56 = vadd.f32 %v10552_v14, %v8151_v42  ;;  %v8152_v25 = vmul.f32 %v11212_v60, %v10551_v48  ;;  %v8106_v8 = vpop.f32.mrb[59].mxu1 }
 0x749   : > { %v8164_v34 = vadd.f32 %v10552_v14, %v8149_v46  ;;  %v8150_v38 = vmul.f32 %v10551_v48, %v8106_v8  ;;  %v8362_v8 = vld [vmem:[#allocation2 + $0x78] sm:$0x8] }
 0x74a   : > { %v8174_v24 = vmax.f32 %v8166_v56, 0.0  ;;  %v8167_v62 = vadd.f32 %v10552_v14, %v8152_v25 }
 0x74b   : > { %v8172_v27 = vmax.f32 %v8164_v34, 0.0  ;;  %v8165_v20 = vadd.f32 %v10552_v14, %v8150_v38 }
 0x74c   : > { %v8182_v0 = vpack.c.bf16 %v8174_v24, %v8174_v24  ;;  %v8175_v55 = vmax.f32 %v8167_v62, 0.0 }
 0x74d   : > { %v8180_v37 = vpack.c.bf16 %v8172_v27, %v8172_v27  ;;  %v8173_v17 = vmax.f32 %v8165_v20, 0.0  ;;  %v11215_v12 = vpop.f32.mrb[60].mxu1 }
 0x74e   : > { %8190 = vst.msk [vmem:[#allocation2 + $0x7c] sm:$0xf] %vm848_vm0, %v8182_v0  ;;  %v8183_v52 = vpack.c.bf16 %v8175_v55, %v8175_v55  ;;  %v8155_v3 = vmul.f32 %v11215_v12, %v10551_v48  ;;  %v8119_v63 = vpop.f32.mrb[61].mxu1  ;;  %v11898_v55 = vld [vmem:[%s15364_s21] ss:$8 sps:$4 sm:$0xff]  }
 0x74f   : > { %8188 = vst.msk [vmem:[#allocation2 + $0x64] sm:$0xf] %vm848_vm0, %v8180_v37  ;;  %v8181_v39 = vpack.c.bf16 %v8173_v17, %v8173_v17  ;;  %v8153_v5 = vmul.f32 %v10551_v48, %v8119_v63  ;;  %v11216_v53 = vpop.f32.mrb[62].mxu1  ;;  %v10556_v17 = vrot.slane %v8363_v59, 11  ;;  %v11903_v12 = vld [vmem:[%s15364_s21 + $0x14] ss:$8 sps:$4 sm:$0xff]  }
 0x750   : > { %8191 = vst.msk [vmem:[#allocation2 + $0x88] sm:$0xf] %vm848_vm0, %v8183_v52  ;;  %v8170_v45 = vadd.f32 %v10552_v14, %v8155_v3  ;;  %v8156_v44 = vmul.f32 %v11216_v53, %v10551_v48  ;;  %v8122_v7 = vpop.f32.mrb[63].mxu1  ;;  %v8703_v63 = vshrl.u32 %v8363_v59, 16 }
 0x751   : > { %8189 = vst.msk [vmem:[#allocation2 + $0x70] sm:$0xf] %vm848_vm0, %v8181_v39  ;;  %v8168_v47 = vadd.f32 %v10552_v14, %v8153_v5  ;;  %v8154_v40 = vmul.f32 %v10551_v48, %v8122_v7  ;;  %v10555_v5 = vrot.slane %v8362_v8, 11 }
 0x752   : > { %v8178_v23 = vmax.f32 %v8170_v45, 0.0  ;;  %v8171_v50 = vadd.f32 %v10552_v14, %v8156_v44  ;;  %v8690_v45 = vshrl.u32 %v8362_v8, 16  ;;  %v11892_v44 = vld [vmem:[%s15364_s21 + $0x60] ss:$8 sps:$4 sm:$0xff]   ;;  %v11906_v8 = vld [vmem:[%s15364_s21 + $0x84] ss:$8 sps:$4 sm:$0xff]  }
 0x753   : > { %v8176_v15 = vmax.f32 %v8168_v47, 0.0  ;;  %v8169_v28 = vadd.f32 %v10552_v14, %v8154_v40 }
 0x754   : > { %v8186_v32 = vpack.c.bf16 %v8178_v23, %v8178_v23  ;;  %v8179_v61 = vmax.f32 %v8171_v50, 0.0  ;;  %v11897_v23 = vld [vmem:[%s15364_s21 + $0x74] ss:$8 sps:$4 sm:$0xff]  }
 0x755   : > { %v8184_v41 = vpack.c.bf16 %v8176_v15, %v8176_v15  ;;  %v8177_v18 = vmax.f32 %v8169_v28, 0.0  ;;  %v14902_v19 = vld [vmem:[#allocation2 + $0x7c] sm:$0xf]  ;;  %v11901_v15 = vld [vmem:[%s15364_s21 + $0x10] ss:$8 sps:$4 sm:$0xff]  }
 0x756   : > { %8194 = vst.msk [vmem:[#allocation2 + $0xac] sm:$0xf] %vm848_vm0, %v8186_v32  ;;  %v8187_v26 = vpack.c.bf16 %v8179_v61, %v8179_v61  ;;  %v14895_v1 = vld [vmem:[#allocation2 + $0x64] sm:$0x7]  ;;  %v8695_v34 = vshrl.u32 %v14902_v19, 16  ;;  %v8698_v58 = vshll.u32 %v14902_v19, 16 }
 0x757   : > { %v14897_v10 = vld [vmem:[#allocation2 + $0x64] sm:$0xf]  ;;  %8192 = vst.msk [vmem:[#allocation2 + $0x94] sm:$0xf] %vm848_vm0, %v8184_v41  ;;  %v8185_v51 = vpack.c.bf16 %v8177_v18, %v8177_v18  ;;  %v8386_v57 = vrot.slane %v14895_v1, 7  ;;  %v10592_v32 = vrot.slane %v8703_v63, 11 }
 0x758   : > { %v8669_v43 = vshrl.u32 %v14897_v10, 16  ;;  %8195 = vst.msk [vmem:[#allocation2 + $0xb8] sm:$0xf] %vm848_vm0, %v8187_v26  ;;  %v14905_v35 = vld [vmem:[#allocation2 + $0x70] sm:$0x7]  ;;  %v8672_v9 = vshll.u32 %v14897_v10, 16 }
 0x759   : > { %v14907_v48 = vld [vmem:[#allocation2 + $0x70] sm:$0xf]  ;;  %8193 = vst.msk [vmem:[#allocation2 + $0xa0] sm:$0xf] %vm848_vm0, %v8185_v51  ;;  %v8390_v14 = vrot.slane %v14905_v35, 7  ;;  %v8387_v56 = vsel %vm12877_vm6, %v10553_v6, %v8386_v57  ;;  %v8697_v40 = vrot.slane %v8695_v34, 7 }
 0x75a   : > { %v8671_v42 = vrot.slane %v8669_v43, 7  ;;  %v8682_v46 = vshrl.u32 %v14907_v48, 16  ;;  %v14913_v60 = vld [vmem:[#allocation2 + $0x88] sm:$0xf]  ;;  %v8685_v20 = vshll.u32 %v14907_v48, 16  ;;  %v10591_v57 = vrot.slane %v8690_v45, 11 }
 0x75b   : > { %v14917_v25 = vld [vmem:[#allocation2 + $0x88] sm:$0x7]  ;;  %v8708_v38 = vshrl.u32 %v14913_v60, 16  ;;  %v8391_v24 = vsel %vm12877_vm6, %v10554_v21, %v8390_v14  ;;  %v14924_v0 = vld [vmem:[#allocation2 + $0x7c] sm:$0x7]  ;;  %v8711_v30 = vshll.u32 %v14913_v60, 16  ;;  %v8700_v43 = vor.u32 %v8698_v58, %v8697_v40 }
 0x75c   : > { %v8674_v62 = vor.u32 %v8672_v9, %v8671_v42  ;;  %v8684_v27 = vrot.slane %v8682_v46, 7  ;;  %v10565_v37 = vcombine.low %v8387_v56, %v8391_v24  ;;  %v8398_v3 = vrot.slane %v14917_v25, 7  ;;  %v8364_v41 = vld [vmem:[#allocation2 + $0x90] sm:$0x8]  ;;  %v8365_v18 = vld [vmem:[#allocation2 + $0x9c] sm:$0x8] }
 0x75d   : > { %v8710_v39 = vrot.slane %v8708_v38, 7  ;;  %v8394_v53 = vrot.slane %v14924_v0, 7  ;;  %v8716_v26 = vshrl.u32 %v8364_v41, 16  ;;  %v8729_v21 = vshrl.u32 %v8365_v18, 16  ;;  %v8198_v14 = vld [vmem:[#allocation2 + $0x6c] sm:$0xc] }
 0x75e   : > { %v8687_v52 = vor.u32 %v8685_v20, %v8684_v27  ;;  %10573 = vmatmul.mubr.msk.bf16.vlgmr.msra.gmra.mrb[64].mxu1 %vm1058_vm1, %v10565_v37  ;;  %v8675_v7 = vsel %vm13043_vm10, %v10589_v4, %v8674_v62  ;;  %v14947_v29 = vld [vmem:[#allocation2 + $0x94] sm:$0xf]  ;;  %v8399_v28 = vsel %vm12877_vm6, %v10556_v17, %v8398_v3  ;;  %v10557_v46 = vrot.slane %v8364_v41, 11  ;;  %v14976_v62 = vld [vmem:[#allocation2 + $0xa8] sm:$0x8] }
 0x75f   : > { %8507 = vmatprep.mubr.bf16.mxu1 %v15619_v31  ;;  %8583 = vmatpush1.bf16.msra.mxu1 %v11898_v55  ;;  %v8713_v61 = vor.u32 %v8711_v30, %v8710_v39  ;;  %v8395_v51 = vsel %vm12877_vm6, %v10555_v5, %v8394_v53  ;;  %v8721_v59 = vshrl.u32 %v14947_v29, 16  ;;  %v14968_v9 = vld [vmem:[#allocation2 + $0x94] sm:$0x7]  ;;  %v10558_v56 = vrot.slane %v8365_v18, 11  ;;  %v8196_v27 = vld [vmem:[#allocation2 + $0x60] sm:$0xc] }
 0x760   : > { %v8688_v47 = vsel %vm13043_vm10, %v10590_v2, %v8687_v52  ;;  %v14949_v54 = vld [vmem:[#allocation2 + $0xa0] sm:$0xf]  ;;  %8584 = vmatprep.subr.bf16.mxu1 %v11903_v12  ;;  %v11895_v2 = vld [vmem:[%s15364_s21 + $0x70] ss:$8 sps:$4 sm:$0xff]   ;;  %v10566_v42 = vcombine.low %v8395_v51, %v8399_v28  ;;  %v10593_v20 = vrot.slane %v8716_v26, 11  ;;  %v10594_v55 = vrot.slane %v8729_v21, 11 }
 0x761   : > { %v10601_v50 = vcombine.low %v8675_v7, %v8688_v47  ;;  %v14958_v6 = vld [vmem:[#allocation2 + $0xa0] sm:$0x7]  ;;  %v8734_v4 = vshrl.u32 %v14949_v54, 16  ;;  %v8714_v34 = vsel %vm13043_vm10, %v10592_v32, %v8713_v61  ;;  %v14979_v37 = vld [vmem:[#allocation2 + $0xb8] sm:$0xf]  ;;  %v8231_v17 = vshrl.u32 %v8198_v14, 16 }
 0x762   : > { %v8406_v38 = vrot.slane %v14958_v6, 7  ;;  %v8234_v12 = vshll.u32 %v8198_v14, 16  ;;  %v8701_v52 = vsel %vm13043_vm10, %v10591_v57, %v8700_v43  ;;  %v8402_v3 = vrot.slane %v14968_v9, 7  ;;  %v8367_v5 = vld [vmem:[#allocation2 + $0xb4] sm:$0x8] }
 0x763   : > { %10609 = vmatmul.mubr.msk.bf16.vlgmr.msra.gmra.mrb[24].mxu0 %vm1058_vm1, %v10601_v50  ;;  %8585 = vmatpush1.bf16.msra.mxu1 %v11901_v15  ;;  %v8736_v24 = vrot.slane %v8734_v4, 7  ;;  %v8723_v63 = vrot.slane %v8721_v59, 7  ;;  %v8737_v39 = vshll.u32 %v14949_v54, 16  ;;  %v10602_v53 = vcombine.low %v8701_v52, %v8714_v34  ;;  %v14992_v50 = vld [vmem:[#allocation2 + $0xb8] sm:$0x7] }
 0x764   : > { %8963 = vmatpush1.bf16.msra.mxu0 %v11892_v44  ;;  %8858 = vmatprep.mubr.bf16.mxu0 %v15619_v31  ;;  %v10559_v45 = vrot.slane %v14976_v62, 11  ;;  %v14987_v44 = vld [vmem:[#allocation2 + $0xac] sm:$0xf]  ;;  %v8755_v7 = vshrl.u32 %v8367_v5, 16  ;;  %v8213_v47 = vshrl.u32 %v8196_v27, 16  ;;  %v8407_v40 = vsel %vm12877_vm6, %v10558_v56, %v8406_v38 }
 0x765   : > { %8964 = vmatprep.subr.bf16.mxu0 %v11897_v23  ;;  %v8724_v30 = vshll.u32 %v14947_v29, 16  ;;  %v8739_v23 = vor.u32 %v8737_v39, %v8736_v24  ;;  %v8760_v15 = vshrl.u32 %v14979_v37, 16  ;;  %v10560_v28 = vrot.slane %v8367_v5, 11  ;;  %v15001_v51 = vld [vmem:[#allocation2 + $0xac] sm:$0x7] }
 0x766   : > { %10574 = vmatmul.mubr.msk.bf16.gmra.mrb[68].mxu1 %vm1058_vm1, %v10566_v42  ;;  %v8216_v58 = vshll.u32 %v8196_v27, 16  ;;  %v8233_v32 = vrot.slane %v8231_v17, 6  ;;  %v8236_v61 = vrot.slane %v8234_v12, 7  ;;  %v8403_v41 = vsel %vm12877_vm6, %v10557_v46, %v8402_v3  ;;  %v8202_v56 = vld [vmem:[#allocation2 + $0x84] sm:$0xc] }
 0x767   : > { %8517 = vmatprep.mubr.bf16.mxu1 %v15619_v31  ;;  %v8726_v18 = vor.u32 %v8724_v30, %v8723_v63  ;;  %v8742_v26 = vshrl.u32 %v14976_v62, 16  ;;  %v8747_v21 = vshrl.u32 %v14987_v44, 16  ;;  %v10567_v4 = vcombine.low %v8403_v41, %v8407_v40 }
 0x768   : > { %8965 = vmatpush1.bf16.msra.mxu0 %v11895_v2  ;;  %v8414_v57 = vrot.slane %v14992_v50, 7  ;;  %v10596_v43 = vrot.slane %v8755_v7, 11  ;;  %v8215_v2 = vrot.slane %v8213_v47, 6  ;;  %v8740_v59 = vsel %vm13043_vm10, %v10594_v55, %v8739_v23 }
 0x769   : > { %9228 = vmatprep.subr.bf16.mxu0 %v11906_v8  ;;  %v8762_v14 = vrot.slane %v8760_v15, 7  ;;  %v8240_v42 = vshrl.u32 %v14905_v35, 16  ;;  %v8243_v46 = vshll.u32 %v14905_v35, 16  ;;  %v8218_v8 = vrot.slane %v8216_v58, 7  ;;  %v8200_v35 = vld [vmem:[#allocation2 + $0x78] sm:$0xc] }
 0x76a   : > { %v8222_v34 = vshrl.u32 %v14895_v1, 16  ;;  %v8225_v38 = vshll.u32 %v14895_v1, 16  ;;  %v8237_v24 = vor.u32 %v8236_v61, %v8233_v32  ;;  %v8727_v62 = vsel %vm13043_vm10, %v10593_v20, %v8726_v18 }
 0x76b   : > { %10610 = vmatmul.mubr.msk.bf16.gmra.mrb[28].mxu0 %vm1058_vm1, %v10602_v53  ;;  %v8410_v27 = vrot.slane %v15001_v51, 7  ;;  %v8749_v55 = vrot.slane %v8747_v21, 7  ;;  %v8763_v17 = vshll.u32 %v14979_v37, 16  ;;  %v10603_v12 = vcombine.low %v8727_v62, %v8740_v59 }
 0x76c   : > { %8868 = vmatprep.mubr.bf16.mxu0 %v15619_v31  ;;  %v8415_v52 = vsel %vm12877_vm6, %v10560_v28, %v8414_v57  ;;  %v8267_v3 = vshrl.u32 %v8202_v56, 16  ;;  %v8270_v63 = vshll.u32 %v8202_v56, 16  ;;  %v8750_v1 = vshll.u32 %v14987_v44, 16  ;;  %v8206_v57 = vld [vmem:[#allocation2 + $0x9c] sm:$0xc] }
 0x76d   : > { %v8765_v39 = vor.u32 %v8763_v17, %v8762_v14  ;;  %v8242_v5 = vrot.slane %v8240_v42, 6  ;;  %v8245_v53 = vrot.slane %v8243_v46, 7  ;;  %v10595_v20 = vrot.slane %v8742_v26, 11  ;;  %v8204_v46 = vld [vmem:[#allocation2 + $0x90] sm:$0xc] }
 0x76e   : > { %10575 = vmatmul.mubr.msk.bf16.gmra.mrb[72].mxu1 %vm1058_vm1, %v10567_v4  ;;  %v8219_v7 = vor.u32 %v8218_v8, %v8215_v2  ;;  %v8249_v47 = vshrl.u32 %v8200_v35, 16  ;;  %v8252_v40 = vshll.u32 %v8200_v35, 16  ;;  %v8411_v30 = vsel %vm12877_vm6, %v10559_v45, %v8410_v27 }
 0x76f   : > { %8527 = vmatprep.mubr.bf16.mxu1 %v15619_v31  ;;  %v8752_v23 = vor.u32 %v8750_v1, %v8749_v55  ;;  %v8224_v15 = vrot.slane %v8222_v34, 6  ;;  %v8227_v28 = vrot.slane %v8225_v38, 7  ;;  %v10568_v58 = vcombine.low %v8411_v30, %v8415_v52 }
 0x770   : > { %v8238_v32 = vrot.slane %v8237_v24, 4  ;;  %v8269_v61 = vrot.slane %v8267_v3, 6  ;;  %v8272_v41 = vrot.slane %v8270_v63, 7  ;;  %v8766_v18 = vsel %vm13043_vm10, %v10596_v43, %v8765_v39 }
 0x771   : > { %v8246_v21 = vor.u32 %v8245_v53, %v8242_v5  ;;  %v8276_v26 = vshrl.u32 %v14917_v25, 16  ;;  %v8279_v4 = vshll.u32 %v14917_v25, 16  ;;  %v8220_v11 = vrot.slane %v8219_v7, 4  ;;  %v8210_v53 = vld [vmem:[#allocation2 + $0xb4] sm:$0xc] }
 0x772   : > { %v8251_v45 = vrot.slane %v8249_v47, 6  ;;  %v8254_v2 = vrot.slane %v8252_v40, 7  ;;  %v8753_v59 = vsel %vm13043_vm10, %v10595_v20, %v8752_v23  ;;  %v8228_v14 = vor.u32 %v8227_v28, %v8224_v15  ;;  %v11904_v20 = vld [vmem:[%s15364_s21 + $0x80] ss:$8 sps:$4 sm:$0xff]  }
 0x773   : > { %10611 = vmatmul.mubr.msk.bf16.gmra.mrb[32].mxu0 %vm1058_vm1, %v10603_v12  ;;  %v8258_v42 = vshrl.u32 %v14924_v0, 16  ;;  %v8261_v43 = vshll.u32 %v14924_v0, 16  ;;  %v10604_v56 = vcombine.low %v8753_v59, %v8766_v18  ;;  %v8303_v8 = vshrl.u32 %v8206_v57, 16  ;;  %v8208_v28 = vld [vmem:[#allocation2 + $0xa8] sm:$0xc] }
 0x774   : > { %8878 = vmatprep.mubr.bf16.mxu0 %v15619_v31  ;;  %v8306_v25 = vshll.u32 %v8206_v57, 16  ;;  %v8247_v34 = vsel %vm12938_vm7, %v8238_v32, %v8246_v21  ;;  %v8273_v38 = vor.u32 %v8272_v41, %v8269_v61  ;;  %v8278_v24 = vrot.slane %v8276_v26, 6  ;;  %v11911_v32 = vld [vmem:[%s15364_s21 + $0x94] ss:$8 sps:$4 sm:$0xff]  }
 0x775   : > { %v8281_v62 = vrot.slane %v8279_v4, 7  ;;  %v8285_v13 = vshrl.u32 %v8204_v46, 16  ;;  %v8288_v27 = vshll.u32 %v8204_v46, 16  ;;  %v8229_v55 = vsel %vm12938_vm7, %v8220_v11, %v8228_v14  ;;  %v11909_v11 = vld [vmem:[%s15364_s21 + $0x90] ss:$8 sps:$4 sm:$0xff]  }
 0x776   : > { %10576 = vmatmul.mubr.msk.bf16.gmra.mrb[76].mxu1 %vm1058_vm1, %v10568_v58  ;;  %v8255_v0 = vor.u32 %v8254_v2, %v8251_v45  ;;  %v8260_v17 = vrot.slane %v8258_v42, 6  ;;  %v8263_v35 = vrot.slane %v8261_v43, 7  ;;  %v10577_v12 = vcombine.low %v8229_v55, %v8247_v34  ;;  %v11916_v42 = vld [vmem:[%s15364_s21 + $0xa4] ss:$8 sps:$4 sm:$0xff]  }
 0x777   : > { %8614 = vmatprep.mubr.bf16.mxu1 %v15619_v31  ;;  %v8305_v52 = vrot.slane %v8303_v8, 6  ;;  %v8308_v3 = vrot.slane %v8306_v25, 7  ;;  %v8274_v63 = vrot.slane %v8273_v38, 4  ;;  %v8282_v1 = vor.u32 %v8281_v62, %v8278_v24 }
 0x778   : > { %v8312_v39 = vshrl.u32 %v14958_v6, 16  ;;  %v8315_v5 = vshll.u32 %v14958_v6, 16  ;;  %v8287_v7 = vrot.slane %v8285_v13, 6  ;;  %v8290_v47 = vrot.slane %v8288_v27, 7 }
 0x779   : > { %v8256_v40 = vrot.slane %v8255_v0, 4  ;;  %v8264_v30 = vor.u32 %v8263_v35, %v8260_v17  ;;  %v8294_v23 = vshrl.u32 %v14968_v9, 16  ;;  %v8297_v15 = vshll.u32 %v14968_v9, 16  ;;  %v9053_v35 = vld [vmem:[#allocation2 + $0x70] sm:$0xf] }
 0x77a   : > { %v10617_v6 = vcombine.low %v14897_v10, %v14907_v48  ;;  %v8309_v58 = vor.u32 %v8308_v3, %v8305_v52  ;;  %v8339_v61 = vshrl.u32 %v8210_v53, 16  ;;  %v8283_v41 = vsel %vm12938_vm7, %v8274_v63, %v8282_v1 }
 0x77b   : > { %10612 = vmatmul.mubr.msk.bf16.gmra.mrb[36].mxu0 %vm1058_vm1, %v10604_v56  ;;  %v8314_v18 = vrot.slane %v8312_v39, 6  ;;  %v8317_v21 = vrot.slane %v8315_v5, 7  ;;  %v8342_v26 = vshll.u32 %v8210_v53, 16  ;;  %v8291_v4 = vor.u32 %v8290_v47, %v8287_v7 }
 0x77c   : > { %8994 = vmatprep.mubr.bf16.mxu0 %v15619_v31  ;;  %v8321_v9 = vshrl.u32 %v8208_v28, 16  ;;  %v8265_v10 = vsel %vm12938_vm7, %v8256_v40, %v8264_v30  ;;  %v8296_v48 = vrot.slane %v8294_v23, 6  ;;  %v8299_v57 = vrot.slane %v8297_v15, 7 }
 0x77d   : > { %v8324_v45 = vshll.u32 %v8208_v28, 16  ;;  %v10578_v2 = vcombine.low %v8265_v10, %v8283_v41  ;;  %v8310_v59 = vrot.slane %v8309_v58, 4  ;;  %v8341_v14 = vrot.slane %v8339_v61, 6  ;;  %v9057_v28 = vld [vmem:[#allocation2 + $0x88] sm:$0xf] }
 0x77e   : > { %10585 = vmatmul.mubr.msk.bf16.vlgmr.msra.gmra.mrb[64].mxu1 %vm1058_vm1, %v10577_v12  ;;  %v8318_v43 = vor.u32 %v8317_v21, %v8314_v18  ;;  %v8344_v46 = vrot.slane %v8342_v26, 7  ;;  %v8348_v56 = vshrl.u32 %v14992_v50, 16  ;;  %v8351_v8 = vshll.u32 %v14992_v50, 16  ;;  %v15089_v41 = vld [vmem:[#allocation2 + $0x74] sm:$0x1] }
 0x77f   : > { %8624 = vmatprep.mubr.bf16.mxu1 %v15619_v31  ;;  %v8292_v25 = vrot.slane %v8291_v4, 4  ;;  %v8323_v34 = vrot.slane %v8321_v9, 6  ;;  %v8300_v38 = vor.u32 %v8299_v57, %v8296_v48  ;;  %v8326_v24 = vrot.slane %v8324_v45, 7  ;;  %v9055_v18 = vld [vmem:[#allocation2 + $0x7c] sm:$0xf] }
 0x780   : > { %v8330_v62 = vshrl.u32 %v15001_v51, 16  ;;  %v8333_v13 = vshll.u32 %v15001_v51, 16  ;;  %v10618_v27 = vcombine.low %v14902_v19, %v14913_v60  ;;  %v8319_v50 = vsel %vm12938_vm7, %v8310_v59, %v8318_v43  ;;  %v9051_v19 = vld [vmem:[#allocation2 + $0x64] sm:$0xf]  ;;  %v15093_v4 = vld [vmem:[#allocation2 + $0x68] sm:$0x1] }
 0x781   : > { %v8345_v55 = vor.u32 %v8344_v46, %v8341_v14  ;;  %v8350_v0 = vrot.slane %v8348_v56, 6  ;;  %v8353_v17 = vrot.slane %v8351_v8, 7  ;;  %v8301_v12 = vsel %vm12938_vm7, %v8292_v25, %v8300_v38  ;;  %v9061_v14 = vld [vmem:[#allocation2 + $0xa0] sm:$0xf]  ;;  %v15100_v46 = vld [vmem:[#allocation2 + $0x8c] sm:$0x1] }
 0x782   : > { %v8327_v52 = vor.u32 %v8326_v24, %v8323_v34  ;;  %v8332_v51 = vrot.slane %v8330_v62, 6  ;;  %v8335_v3 = vrot.slane %v8333_v13, 7  ;;  %v10579_v63 = vcombine.low %v8301_v12, %v8319_v50  ;;  %v9059_v34 = vld [vmem:[#allocation2 + $0x94] sm:$0xf] }
 0x783   : > { %10625 = vmatmul.mubr.msk.bf16.vlgmr.msra.gmra.mrb[24].mxu0 %vm1058_vm1, %v10617_v6  ;;  %v8346_v60 = vrot.slane %v8345_v55, 4  ;;  %v8354_v1 = vor.u32 %v8353_v17, %v8350_v0  ;;  %v9082_v39 = vshrl.u32 %v9053_v35, 16  ;;  %v9085_v5 = vshll.u32 %v9053_v35, 16  ;;  %v11919_v12 = vld [vmem:[%s15364_s21 + $0xb4] ss:$8 sps:$4 sm:$0xff]  }
 0x784   : > { %9229 = vmatpush1.bf16.msra.mxu0 %v11904_v20  ;;  %9004 = vmatprep.mubr.bf16.mxu0 %v15619_v31  ;;  %v8328_v53 = vrot.slane %v8327_v52, 4  ;;  %v8336_v20 = vor.u32 %v8335_v3, %v8332_v51  ;;  %v9068_v7 = vshrl.u32 %v9051_v19, 16  ;;  %v9071_v47 = vshll.u32 %v9051_v19, 16  ;;  %v15117_v19 = vld [vmem:[#allocation2 + $0xa4] sm:$0x1] }
 0x785   : > { %9230 = vmatprep.subr.bf16.mxu0 %v11911_v32  ;;  %v10619_v40 = vcombine.low %v14947_v29, %v14949_v54  ;;  %v8355_v30 = vsel %vm12938_vm7, %v8346_v60, %v8354_v1  ;;  %v9084_v23 = vrot.slane %v9082_v39, 4  ;;  %v9087_v15 = vrot.slane %v9085_v5, 5  ;;  %v9065_v60 = vld [vmem:[#allocation2 + $0xb8] sm:$0xf] }
 0x786   : > { %10586 = vmatmul.mubr.msk.bf16.gmra.mrb[68].mxu1 %vm1058_vm1, %v10578_v2  ;;  %v8337_v6 = vsel %vm12938_vm7, %v8328_v53, %v8336_v20  ;;  %v9070_v58 = vrot.slane %v9068_v7, 4  ;;  %v9073_v32 = vrot.slane %v9071_v47, 5  ;;  %v9091_v54 = vshll.u32 %v15089_v41, 16  ;;  %v11917_v5 = vld [vmem:[%s15364_s21 + $0xb0] ss:$8 sps:$4 sm:$0xff]  }
 0x787   : > { %8634 = vmatprep.mubr.bf16.mxu1 %v15619_v31  ;;  %v10580_v61 = vcombine.low %v8337_v6, %v8355_v30  ;;  %v9088_v29 = vor.u32 %v9087_v15, %v9084_v23  ;;  %v9110_v21 = vshrl.u32 %v9057_v28, 16  ;;  %v9113_v26 = vshll.u32 %v9057_v28, 16  ;;  %v9063_v47 = vld [vmem:[#allocation2 + $0xac] sm:$0xf]  ;;  %v15129_v23 = vld [vmem:[#allocation2 + $0x98] sm:$0x1] }
 0x788   : > { %9231 = vmatpush1.bf16.msra.mxu0 %v11909_v11  ;;  %v9074_v9 = vor.u32 %v9073_v32, %v9070_v58  ;;  %v9077_v49 = vshll.u32 %v15093_v4, 16  ;;  %v9096_v10 = vshrl.u32 %v9055_v18, 16  ;;  %v9099_v48 = vshll.u32 %v9055_v18, 16 }
 0x789   : > { %9422 = vmatprep.subr.bf16.mxu0 %v11916_v42  ;;  %v10620_v57 = vcombine.low %v14987_v44, %v14979_v37  ;;  %v9089_v11 = vrot.slane %v9088_v29, 4  ;;  %v9093_v45 = vrot.slane %v9091_v54, 5  ;;  %v9112_v2 = vrot.slane %v9110_v21, 4  ;;  %v15105_v44 = vld [vmem:[#allocation2 + $0x80] sm:$0x1] }
 0x78a   : > { %v9115_v59 = vrot.slane %v9113_v26, 5  ;;  %v9075_v42 = vrot.slane %v9074_v9, 4  ;;  %v9079_v43 = vrot.slane %v9077_v49, 5  ;;  %v9098_v56 = vrot.slane %v9096_v10, 4 }
 0x78b   : > { %10626 = vmatmul.mubr.msk.bf16.gmra.mrb[28].mxu0 %vm1058_vm1, %v10618_v27  ;;  %v9101_v8 = vrot.slane %v9099_v48, 5  ;;  %v9119_v25 = vshll.u32 %v15100_v46, 16  ;;  %v9094_v37 = vsel %vm13178_vm15, %v9089_v11, %v9093_v45  ;;  %v9138_v24 = vshrl.u32 %v9061_v14, 16  ;;  %v11914_v27 = vld [vmem:[%s15364_s21 + $0xa0] ss:$8 sps:$4 sm:$0xff]  }
 0x78c   : > { %9014 = vmatprep.mubr.bf16.mxu0 %v15619_v31  ;;  %v9116_v38 = vor.u32 %v9115_v59, %v9112_v2  ;;  %v9141_v62 = vshll.u32 %v9061_v14, 16  ;;  %v9105_v13 = vshll.u32 %v15105_v44, 16  ;;  %v9080_v50 = vsel %vm13178_vm15, %v9075_v42, %v9079_v43  ;;  %v15136_v45 = vld [vmem:[#allocation2 + $0xbc] sm:$0x1]  ;;  %v15141_v42 = vld [vmem:[#allocation2 + $0xb0] sm:$0x1] }
 0x78d   : > { %v9102_v55 = vor.u32 %v9101_v8, %v9098_v56  ;;  %v9124_v0 = vshrl.u32 %v9059_v34, 16  ;;  %v9127_v17 = vshll.u32 %v9059_v34, 16  ;;  %v10633_v35 = vcombine.low %v9080_v50, %v9094_v37 }
 0x78e   : > { %10587 = vmatmul.mubr.msk.bf16.gmra.mrb[72].mxu1 %vm1058_vm1, %v10579_v63  ;;  %v9117_v52 = vrot.slane %v9116_v38, 4  ;;  %v9121_v51 = vrot.slane %v9119_v25, 5  ;;  %v9140_v3 = vrot.slane %v9138_v24, 4  ;;  %v9143_v63 = vrot.slane %v9141_v62, 5 }
 0x78f   : > { %8644 = vmatprep.mubr.bf16.mxu1 %v15619_v31  ;;  %v9103_v1 = vrot.slane %v9102_v55, 4  ;;  %v9107_v39 = vrot.slane %v9105_v13, 5  ;;  %v9126_v53 = vrot.slane %v9124_v0, 4  ;;  %v9129_v20 = vrot.slane %v9127_v17, 5  ;;  %v9318_v13 = vld [vmem:[#allocation2 + $0x70] sm:$0xe] }
 0x790   : > { %v9147_v7 = vshll.u32 %v15117_v19, 16  ;;  %v9122_v30 = vsel %vm13178_vm15, %v9117_v52, %v9121_v51  ;;  %v9144_v15 = vor.u32 %v9143_v63, %v9140_v3  ;;  %v9166_v28 = vshrl.u32 %v9065_v60, 16  ;;  %v9317_v55 = vld [vmem:[#allocation2 + $0x64] sm:$0xe]  ;;  %v15158_v51 = vld [vmem:[#allocation2 + $0x88] sm:$0xe] }
 0x791   : > { %v9169_v6 = vshll.u32 %v9065_v60, 16  ;;  %v9133_v58 = vshll.u32 %v15129_v23, 16  ;;  %v9108_v32 = vsel %vm13178_vm15, %v9103_v1, %v9107_v39  ;;  %v9152_v18 = vshrl.u32 %v9063_v47, 16  ;;  %v15165_v63 = vld [vmem:[#allocation2 + $0x7c] sm:$0xe] }
 0x792   : > { %v9155_v29 = vshll.u32 %v9063_v47, 16  ;;  %v10634_v54 = vcombine.low %v9108_v32, %v9122_v30  ;;  %v9145_v21 = vrot.slane %v9144_v15, 4  ;;  %v9149_v26 = vrot.slane %v9147_v7, 5  ;;  %v11925_v60 = vld [vmem:[%s15364_s21 + $0xd4] ss:$8 sps:$4 sm:$0xff]  }
 0x793   : > { %10627 = vmatmul.mubr.msk.bf16.gmra.mrb[32].mxu0 %vm1058_vm1, %v10619_v40  ;;  %v11922_v40 = vld [vmem:[%s15364_s21 + $0xc4] ss:$8 sps:$4 sm:$0xff]   ;;  %v9168_v9 = vrot.slane %v9166_v28, 4  ;;  %v9171_v49 = vrot.slane %v9169_v6, 5  ;;  %v9135_v48 = vrot.slane %v9133_v58, 5  ;;  %v9175_v14 = vshll.u32 %v15136_v45, 16 }
 0x794   : > { %9024 = vmatprep.mubr.bf16.mxu0 %v15619_v31  ;;  %v9157_v11 = vrot.slane %v9155_v29, 5  ;;  %v9150_v2 = vsel %vm13178_vm15, %v9145_v21, %v9149_v26  ;;  %v9161_v8 = vshll.u32 %v15141_v42, 16  ;;  %v10646_v0 = vrot.slane %v9318_v13, 9  ;;  %v15181_v7 = vld [vmem:[#allocation2 + $0xa0] sm:$0xe] }
 0x795   : > { %v9172_v59 = vor.u32 %v9171_v49, %v9168_v9  ;;  %v9177_v37 = vrot.slane %v9175_v14, 5  ;;  %v9347_v17 = vrot.slane %v15089_v41, 5  ;;  %v9355_v1 = vrot.slane %v15100_v46, 5  ;;  %v9512_v58 = vld [vmem:[#allocation2 + $0x74] sm:$0x3] }
 0x796   : > { %10588 = vmatmul.mubr.msk.bf16.gmra.mrb[76].mxu1 %vm1058_vm1, %v10580_v61  ;;  %v9130_v61 = vor.u32 %v9129_v20, %v9126_v53  ;;  %v9163_v24 = vrot.slane %v9161_v8, 5  ;;  %v10647_v39 = vrot.slane %v15165_v63, 9  ;;  %v11923_v53 = vld [vmem:[%s15364_s21 + $0xd0] ss:$8 sps:$4 sm:$0xff]   ;;  %v10650_v30 = vrot.slane %v15181_v7, 9 }
 0x797   : > { %v9173_v34 = vrot.slane %v9172_v59, 4  ;;  %v9348_v52 = vsel %vm13218_vm3, %v10646_v0, %v9347_v17  ;;  %v9359_v28 = vrot.slane %v15129_v23, 5  ;;  %v9538_v32 = vshrl.u32 %v9318_v13, 16  ;;  %v15199_v9 = vld [vmem:[#allocation2 + $0xac] sm:$0xe] }
 0x798   : > { %v9131_v10 = vrot.slane %v9130_v61, 4  ;;  %v9541_v61 = vshll.u32 %v9318_v13, 16  ;;  %v9523_v21 = vshll.u32 %v9317_v55, 16  ;;  %v9547_v49 = vshrl.u32 %v9512_v58, 16 }
 0x799   : > { %v9178_v62 = vsel %vm13178_vm15, %v9173_v34, %v9177_v37  ;;  %v10651_v14 = vrot.slane %v15199_v9, 9  ;;  %v9556_v0 = vshrl.u32 %v15165_v63, 16  ;;  %v9559_v17 = vshll.u32 %v15165_v63, 16 }
 0x79a   : > { %v9136_v43 = vsel %vm13178_vm15, %v9131_v10, %v9135_v48  ;;  %v9550_v10 = vshll.u32 %v9512_v58, 16  ;;  %v9371_v48 = vrot.slane %v15136_v45, 5  ;;  %v9525_v8 = vrot.slane %v9523_v21, 6 }
 0x79b   : > { %10628 = vmatmul.mubr.msk.bf16.gmra.mrb[36].mxu0 %vm1058_vm1, %v10620_v57  ;;  %v9154_v57 = vrot.slane %v9152_v18, 4  ;;  %v10635_v25 = vcombine.low %v9136_v43, %v9150_v2  ;;  %v15195_v18 = vld [vmem:[#allocation2 + $0xb8] sm:$0xe]  ;;  %v9367_v43 = vrot.slane %v15141_v42, 5  ;;  %v9513_v42 = vld [vmem:[#allocation2 + $0x80] sm:$0x3] }
 0x79c   : > { %9260 = vmatprep.mubr.bf16.mxu0 %v15619_v31  ;;  %v10652_v23 = vrot.slane %v15195_v18, 9  ;;  %v9552_v34 = vrot.slane %v9550_v10, 6 }
 0x79d   : > { %v9158_v56 = vor.u32 %v9157_v11, %v9154_v57  ;;  %v9540_v57 = vrot.slane %v9538_v32, 5  ;;  %v9543_v11 = vrot.slane %v9541_v61, 6  ;;  %v9515_v32 = vld [vmem:[#allocation2 + $0x98] sm:$0x3] }
 0x79e   : > { %v9372_v37 = vsel %vm13218_vm3, %v10652_v23, %v9371_v48  ;;  %v9604_v48 = vshll.u32 %v9515_v32, 16 }
 0x79f   : > { %v9159_v38 = vrot.slane %v9158_v56, 4  ;;  %v9544_v45 = vor.u32 %v9543_v11, %v9540_v57 }
 0x7a3   : > { %10641 = vmatmul.mubr.msk.bf16.vlgmr.msra.gmra.mrb[24].mxu0 %vm1058_vm1, %v10633_v35  ;;  %v10645_v35 = vrot.slane %v9317_v55, 9 }
 0x7a4   : > { %9423 = vmatpush1.bf16.msra.mxu0 %v11914_v27  ;;  %9270 = vmatprep.mubr.bf16.mxu0 %v15619_v31  ;;  %v9164_v27 = vsel %vm13178_vm15, %v9159_v38, %v9163_v24  ;;  %v9514_v38 = vld [vmem:[#allocation2 + $0x8c] sm:$0x3]  ;;  %v9574_v24 = vshrl.u32 %v15158_v51, 16 }
 0x7a5   : > { %9424 = vmatprep.subr.bf16.mxu0 %v11919_v12  ;;  %v10636_v50 = vcombine.low %v9164_v27, %v9178_v62  ;;  %v9343_v12 = vrot.slane %v15093_v4, 5  ;;  %v10648_v4 = vrot.slane %v15158_v51, 9  ;;  %v9577_v62 = vshll.u32 %v15158_v51, 16 }
 0x7a6   : > { %v9565_v51 = vshrl.u32 %v9513_v42, 16 }
 0x7a7   : > { %v9344_v3 = vsel %vm13218_vm3, %v10645_v35, %v9343_v12  ;;  %v9356_v20 = vsel %vm13218_vm3, %v10648_v4, %v9355_v1  ;;  %v9583_v12 = vshrl.u32 %v9514_v38, 16  ;;  %v9568_v4 = vshll.u32 %v9513_v42, 16 }
 0x7a8   : > { %9425 = vmatpush1.bf16.msra.mxu0 %v11917_v5  ;;  %v10657_v41 = vcombine.low %v9344_v3, %v9348_v52  ;;  %v9351_v5 = vrot.slane %v15105_v44, 5  ;;  %v9363_v44 = vrot.slane %v15117_v19, 5  ;;  %v9511_v19 = vld [vmem:[#allocation2 + $0x68] sm:$0x3]  ;;  %v9586_v52 = vshll.u32 %v9514_v38, 16 }
 0x7a9   : > { %9712 = vmatprep.subr.bf16.mxu0 %v11922_v40  ;;  %v15185_v40 = vld [vmem:[#allocation2 + $0x94] sm:$0xe]  ;;  %v9529_v2 = vshrl.u32 %v9511_v19, 16  ;;  %v9532_v59 = vshll.u32 %v9511_v19, 16 }
 0x7aa   : > { %v9352_v46 = vsel %vm13218_vm3, %v10647_v39, %v9351_v5  ;;  %v10649_v15 = vrot.slane %v15185_v40, 9  ;;  %v9364_v6 = vsel %vm13218_vm3, %v10650_v30, %v9363_v44  ;;  %v9558_v39 = vrot.slane %v9556_v0, 5 }
 0x7ab   : > { %10642 = vmatmul.mubr.msk.bf16.gmra.mrb[28].mxu0 %vm1058_vm1, %v10634_v54  ;;  %v10658_v47 = vcombine.low %v9352_v46, %v9356_v20  ;;  %v9520_v54 = vshrl.u32 %v9317_v55, 16  ;;  %v9531_v13 = vrot.slane %v9529_v2, 5  ;;  %v9534_v27 = vrot.slane %v9532_v59, 6 }
 0x7ac   : > { %9280 = vmatprep.mubr.bf16.mxu0 %v15619_v31  ;;  %v9360_v29 = vsel %vm13218_vm3, %v10649_v15, %v9359_v28  ;;  %v9561_v5 = vrot.slane %v9559_v17, 6  ;;  %v9588_v20 = vrot.slane %v9586_v52, 6  ;;  %v9610_v30 = vshrl.u32 %v15181_v7, 16 }
 0x7ad   : > { %v10659_v26 = vcombine.low %v9360_v29, %v9364_v6  ;;  %v9522_v56 = vrot.slane %v9520_v54, 5  ;;  %v9535_v1 = vor.u32 %v9534_v27, %v9531_v13  ;;  %v9613_v44 = vshll.u32 %v15181_v7, 16 }
 0x7ae   : > { %v9567_v15 = vrot.slane %v9565_v51, 5  ;;  %v9570_v28 = vrot.slane %v9568_v4, 6  ;;  %v9562_v58 = vor.u32 %v9561_v5, %v9558_v39  ;;  %v9592_v61 = vshrl.u32 %v15185_v40, 16 }
 0x7af   : > { %v9526_v55 = vor.u32 %v9525_v8, %v9522_v56  ;;  %v9595_v29 = vshll.u32 %v15185_v40, 16  ;;  %v9612_v10 = vrot.slane %v9610_v30, 5  ;;  %v9615_v23 = vrot.slane %v9613_v44, 6  ;;  %v9518_v8 = vld [vmem:[#allocation2 + $0xbc] sm:$0x3] }
 0x7b0   : > { %v9601_v7 = vshrl.u32 %v9515_v32, 16  ;;  %v9563_v57 = vrot.slane %v9562_v58, 4  ;;  %v9571_v11 = vor.u32 %v9570_v28, %v9567_v15  ;;  %v9594_v2 = vrot.slane %v9592_v61, 5 }
 0x7b1   : > { %v9527_v22 = vrot.slane %v9526_v55, 4  ;;  %v9597_v59 = vrot.slane %v9595_v29, 6  ;;  %v9616_v56 = vor.u32 %v9615_v23, %v9612_v10  ;;  %v9628_v13 = vshrl.u32 %v15199_v9, 16 }
 0x7b2   : > { %v9572_v38 = vsel %vm13356_vm8, %v9563_v57, %v9571_v11  ;;  %v9631_v27 = vshll.u32 %v15199_v9, 16  ;;  %v9655_v55 = vshrl.u32 %v9518_v8, 16  ;;  %v9658_v42 = vshll.u32 %v9518_v8, 16  ;;  %v9801_v57 = vld [vmem:[%s15642_s25] sm:$0x3] }
 0x7b3   : > { %10643 = vmatmul.mubr.msk.bf16.gmra.mrb[32].mxu0 %vm1058_vm1, %v10635_v25  ;;  %v9549_v25 = vrot.slane %v9547_v49, 5  ;;  %v9536_v6 = vsel %vm13356_vm8, %v9527_v22, %v9535_v1  ;;  %v9617_v0 = vrot.slane %v9616_v56, 4  ;;  %v9829_v11 = vld [vmem:[%s15643_s3] sm:$0x3] }
 0x7b4   : > { %9290 = vmatprep.mubr.bf16.mxu0 %v15619_v31  ;;  %v9657_v4 = vrot.slane %v9655_v55, 5  ;;  %v9660_v22 = vrot.slane %v9658_v42, 6  ;;  %v15273_v56 = vrot.slane %v9829_v11, %v15623_v33 }
 0x7b5   : > { %v9553_v3 = vor.u32 %v9552_v34, %v9549_v25  ;;  %v9646_v25 = vshrl.u32 %v15195_v18, 16  ;;  %v9649_v34 = vshll.u32 %v15195_v18, 16 }
 0x7bb   : > { %10644 = vmatmul.mubr.msk.bf16.gmra.mrb[36].mxu0 %vm1058_vm1, %v10636_v50  ;;  %v9368_v50 = vsel %vm13218_vm3, %v10651_v14, %v9367_v43 }
 0x7bc   : > { %9454 = vmatprep.mubr.bf16.mxu0 %v15619_v31  ;;  %v10660_v35 = vcombine.low %v9368_v50, %v9372_v37  ;;  %v9603_v37 = vrot.slane %v9601_v7, 5 }
 0x7c3   : > { %10665 = vmatmul.mubr.msk.bf16.vlgmr.msra.gmra.mrb[24].mxu0 %vm1058_vm1, %v10657_v41  ;;  %v9576_v41 = vrot.slane %v9574_v24, 5  ;;  %v9598_v24 = vor.u32 %v9597_v59, %v9594_v2  ;;  %v15267_v2 = vrot.slane %v9801_v57, %v15623_v33 }
 0x7c4   : > { %9713 = vmatpush1.bf16.msra.mxu0 %v11920_v36  ;;  %9464 = vmatprep.mubr.bf16.mxu0 %v15619_v31  ;;  %v9545_v36 = vrot.slane %v9544_v45, 4  ;;  %v9606_v45 = vrot.slane %v9604_v48, 6 }
 0x7c5   : > { %9714 = vmatprep.subr.bf16.mxu0 %v11925_v60  ;;  %v9579_v60 = vrot.slane %v9577_v62, 6  ;;  %v9517_v62 = vld [vmem:[#allocation2 + $0xb0] sm:$0x3] }
 0x7c6   : > { %v9554_v63 = vsel %vm13356_vm8, %v9545_v36, %v9553_v3  ;;  %v9637_v18 = vshrl.u32 %v9517_v62, 16  ;;  %v9640_v52 = vshll.u32 %v9517_v62, 16  ;;  %v9599_v36 = vrot.slane %v9598_v24, 4 }
 0x7c7   : > { %v9580_v46 = vor.u32 %v9579_v60, %v9576_v41  ;;  %v10673_v19 = vcombine.low %v9536_v6, %v9554_v63  ;;  %v9607_v3 = vor.u32 %v9606_v45, %v9603_v37  ;;  %v9630_v41 = vrot.slane %v9628_v13, 5 }
 0x7c8   : > { %9715 = vmatpush1.bf16.msra.mxu0 %v11923_v53  ;;  %v9585_v53 = vrot.slane %v9583_v12, 5  ;;  %v9651_v12 = vrot.slane %v9649_v34, 6  ;;  %v9633_v60 = vrot.slane %v9631_v27, 6  ;;  %v9639_v5 = vrot.slane %v9637_v18, 5 }
 0x7c9   : > { %v9608_v1 = vsel %vm13356_vm8, %v9599_v36, %v9607_v3 }
 0x7ca   : > { %v9589_v49 = vor.u32 %v9588_v20, %v9585_v53  ;;  %v9634_v39 = vor.u32 %v9633_v60, %v9630_v41  ;;  %v9642_v53 = vrot.slane %v9640_v52, 6 }
 0x7cb   : > { %10666 = vmatmul.mubr.msk.bf16.gmra.mrb[28].mxu0 %vm1058_vm1, %v10658_v47  ;;  %v9516_v47 = vld [vmem:[#allocation2 + $0xa4] sm:$0x3] }
 0x7cc   : > { %9474 = vmatprep.mubr.bf16.mxu0 %v15619_v31  ;;  %v9619_v54 = vshrl.u32 %v9516_v47, 16  ;;  %v9622_v21 = vshll.u32 %v9516_v47, 16  ;;  %v9635_v47 = vrot.slane %v9634_v39, 4  ;;  %v9643_v30 = vor.u32 %v9642_v53, %v9639_v5 }
 0x7ce   : > { %v9621_v14 = vrot.slane %v9619_v54, 5  ;;  %v9624_v43 = vrot.slane %v9622_v21, 6  ;;  %v9644_v15 = vsel %vm13356_vm8, %v9635_v47, %v9643_v30 }
 0x7d0   : > { %v9625_v17 = vor.u32 %v9624_v43, %v9621_v14  ;;  %v15644_v14 = vld [vmem:[#allocation24_spill] sm:$0xff] }
 0x7d1   : > { %v15270_v43 = vrot.slane %v9801_v57, %v15644_v14  ;;  %v15276_v34 = vrot.slane %v9829_v11, %v15644_v14 }
 0x7d2   : > { %v9626_v9 = vsel %vm13356_vm8, %v9617_v0, %v9625_v17 }
 0x7d3   : > { %10667 = vmatmul.mubr.msk.bf16.gmra.mrb[32].mxu0 %vm1058_vm1, %v10659_v26  ;;  %v9581_v26 = vrot.slane %v9580_v46, 4  ;;  %v10675_v20 = vcombine.low %v9608_v1, %v9626_v9  ;;  %v9661_v46 = vor.u32 %v9660_v22, %v9657_v4 }
 0x7d4   : > { %9484 = vmatprep.mubr.bf16.mxu0 %v15619_v31 }
 0x7d5   : > { %v9590_v40 = vsel %vm13356_vm8, %v9581_v26, %v9589_v49 }
 0x7d6   : > { %v10674_v50 = vcombine.low %v9572_v38, %v9590_v40 }
 0x7db   : > { %10668 = vmatmul.mubr.msk.bf16.gmra.mrb[36].mxu0 %vm1058_vm1, %v10660_v35  ;;  %v9648_v35 = vrot.slane %v9646_v25, 5 }
 0x7dc   : > { %9744 = vmatprep.mubr.bf16.mxu0 %v15619_v31 }
 0x7dd   : > { %v9652_v51 = vor.u32 %v9651_v12, %v9648_v35 }
 0x7df   : > { %v9653_v63 = vrot.slane %v9652_v51, 4 }
 0x7e1   : > { %v9662_v44 = vsel %vm13356_vm8, %v9653_v63, %v9661_v46 }
 0x7e2   : > { %v10676_v28 = vcombine.low %v9644_v15, %v9662_v44 }
 0x7e3   : > { %10681 = vmatmul.mubr.msk.bf16.vlgmr.msra.gmra.mrb[24].mxu0 %vm1058_vm1, %v10673_v19 }
 0x7e4   : > { %9754 = vmatprep.mubr.bf16.mxu0 %v15619_v31 }
 0x7eb   : > { %10682 = vmatmul.mubr.msk.bf16.gmra.mrb[28].mxu0 %vm1058_vm1, %v10674_v50 }
 0x7ec   : > { %9764 = vmatprep.mubr.bf16.mxu0 %v15619_v31 }
 0x7f3   : > { %10683 = vmatmul.mubr.msk.bf16.gmra.mrb[32].mxu0 %vm1058_vm1, %v10675_v20 }
 0x7f4   : > { %9774 = vmatprep.mubr.bf16.mxu0 %v15619_v31 }
 0x7fb   : > { %10684 = vmatmul.mubr.msk.bf16.gmra.mrb[36].mxu0 %vm1058_vm1, %v10676_v28 }
 0x851   : > { %v8616_v6 = vpop.f32.mrb[64].mxu1 }
 0x852   : > { %v8618_v58 = vpop.f32.mrb[65].mxu1 }
 0x853   : > { %v8620_v32 = vpop.f32.mrb[66].mxu1 }
 0x854   : > { %v8622_v61 = vpop.f32.mrb[67].mxu1 }
 0x859   : > { %v8626_v29 = vpop.f32.mrb[68].mxu1 }
 0x85a   : > { %v8628_v19 = vpop.f32.mrb[69].mxu1 }
 0x85b   : > { %v8630_v54 = vpop.f32.mrb[70].mxu1 }
 0x85c   : > { %v8632_v21 = vpop.f32.mrb[71].mxu1 }
 0x861   : > { %v8636_v31 = vpop.f32.mrb[72].mxu1 }
 0x862   : > { %v8638_v26 = vpop.f32.mrb[73].mxu1 }
 0x863   : > { %v15248_v49 = vpop.f32.mrb[74].mxu1 }
 0x864   : > { %v15250_v10 = vpop.f32.mrb[75].mxu1 }
 0x869   : > { %v15252_v23 = vpop.f32.mrb[76].mxu1 }
 0x86a   : > { %v15254_v16 = vpop.f32.mrb[77].mxu1 }
 0x86b   : > { %v15256_v7 = vpop.f32.mrb[78].mxu1 }
 0x86c   : > { %v15258_v48 = vpop.f32.mrb[79].mxu1 }
 0x8b6   : > { %v9746_v59 = vpop.f32.mrb[24].mxu0 }
 0x8b7   : > { %v11225_v40 = vadd.f32 %v9746_v59, %v8616_v6  ;;  %v9748_v8 = vpop.f32.mrb[25].mxu0 }
 0x8b8   : > { %v11226_v25 = vadd.f32 %v9748_v8, %v8618_v58  ;;  %v9750_v37 = vpop.f32.mrb[26].mxu0 }
 0x8b9   : > { %v9813_v45 = vmul.f32 %v11225_v40, %v15267_v2  ;;  %v11227_v38 = vadd.f32 %v9750_v37, %v8620_v32  ;;  %v9752_v24 = vpop.f32.mrb[27].mxu0 }
 0x8ba   : > { %v9814_v62 = vmul.f32 %v11226_v25, %v15270_v43  ;;  %v11228_v13 = vadd.f32 %v9752_v24, %v8622_v61 }
 0x8bb   : > { %v9841_v27 = vadd.f32 %v15273_v56, %v9813_v45  ;;  %v9815_v33 = vmul.f32 %v11227_v38, %v15267_v2 }
 0x8bc   : > { %v9842_v50 = vadd.f32 %v15276_v34, %v9814_v62  ;;  %v9816_v55 = vmul.f32 %v11228_v13, %v15270_v43 }
 0x8bd   : > { %v9857_v42 = vmax.f32 %v9841_v27, 0.0  ;;  %v9843_v0 = vadd.f32 %v15273_v56, %v9815_v33 }
 0x8be   : > { %v9858_v17 = vmax.f32 %v9842_v50, 0.0  ;;  %v9844_v35 = vadd.f32 %v15276_v34, %v9816_v55  ;;  %v9756_v12 = vpop.f32.mrb[28].mxu0 }
 0x8bf   : > { %10685 = vst [vmem:[%s13704_s20 + $0x100] sm:$0xff] %v9857_v42  ;;  %v9859_v18 = vmax.f32 %v9843_v0, 0.0  ;;  %v11229_v52 = vadd.f32 %v9756_v12, %v8626_v29  ;;  %v9758_v36 = vpop.f32.mrb[29].mxu0 }
 0x8c0   : > { %10686 = vst.msk [vmem:[%s13704_s20 + $0x108] sm:$0xff] %vm922_vm9, %v9858_v17  ;;  %v9860_v3 = vmax.f32 %v9844_v35, 0.0  ;;  %v11230_v41 = vadd.f32 %v9758_v36, %v8628_v19  ;;  %v9760_v60 = vpop.f32.mrb[30].mxu0 }
 0x8c1   : > { %10687 = vst [vmem:[%s13704_s20 + $0x110] sm:$0xff] %v9859_v18  ;;  %v9817_v9 = vmul.f32 %v11229_v52, %v15267_v2  ;;  %v11231_v51 = vadd.f32 %v9760_v60, %v8630_v54  ;;  %v9762_v4 = vpop.f32.mrb[31].mxu0 }
 0x8c2   : > { %10688 = vst.msk [vmem:[%s13704_s20 + $0x118] sm:$0xff] %vm922_vm9, %v9860_v3  ;;  %v9818_v22 = vmul.f32 %v11230_v41, %v15270_v43  ;;  %v11232_v1 = vadd.f32 %v9762_v4, %v8632_v21 }
 0x8c3   : > { %v9845_v39 = vadd.f32 %v15273_v56, %v9817_v9  ;;  %v9819_v5 = vmul.f32 %v11231_v51, %v15267_v2 }
 0x8c4   : > { %v9846_v53 = vadd.f32 %v15276_v34, %v9818_v22  ;;  %v9820_v20 = vmul.f32 %v11232_v1, %v15270_v43 }
 0x8c5   : > { %v9861_v63 = vmax.f32 %v9845_v39, 0.0  ;;  %v9847_v46 = vadd.f32 %v15273_v56, %v9819_v5 }
 0x8c6   : > { %v9862_v47 = vmax.f32 %v9846_v53, 0.0  ;;  %v9848_v30 = vadd.f32 %v15276_v34, %v9820_v20  ;;  %v9766_v44 = vpop.f32.mrb[32].mxu0 }
 0x8c7   : > { %10689 = vst [vmem:[%s13704_s20 + $0x120] sm:$0xff] %v9861_v63  ;;  %v9863_v15 = vmax.f32 %v9847_v46, 0.0  ;;  %v11233_v28 = vadd.f32 %v9766_v44, %v8636_v31  ;;  %v9768_v6 = vpop.f32.mrb[33].mxu0 }
 0x8c8   : > { %10690 = vst.msk [vmem:[%s13704_s20 + $0x128] sm:$0xff] %vm922_vm9, %v9862_v47  ;;  %v9864_v58 = vmax.f32 %v9848_v30, 0.0  ;;  %v11234_v32 = vadd.f32 %v9768_v6, %v8638_v26  ;;  %v9770_v61 = vpop.f32.mrb[34].mxu0 }
 0x8c9   : > { %10691 = vst [vmem:[%s13704_s20 + $0x130] sm:$0xff] %v9863_v15  ;;  %v9821_v29 = vmul.f32 %v11233_v28, %v15267_v2  ;;  %v11235_v19 = vadd.f32 %v9770_v61, %v15248_v49  ;;  %v9772_v54 = vpop.f32.mrb[35].mxu0 }
 0x8ca   : > { %10692 = vst.msk [vmem:[%s13704_s20 + $0x138] sm:$0xff] %vm922_vm9, %v9864_v58  ;;  %v9822_v21 = vmul.f32 %v11234_v32, %v15270_v43  ;;  %v11236_v31 = vadd.f32 %v9772_v54, %v15250_v10 }
 0x8cb   : > { %v9849_v57 = vadd.f32 %v15273_v56, %v9821_v29  ;;  %v9823_v11 = vmul.f32 %v11235_v19, %v15267_v2 }
 0x8cc   : > { %v9850_v26 = vadd.f32 %v15276_v34, %v9822_v21  ;;  %v9824_v59 = vmul.f32 %v11236_v31, %v15270_v43 }
 0x8cd   : > { %v9865_v14 = vmax.f32 %v9849_v57, 0.0  ;;  %v9851_v49 = vadd.f32 %v15273_v56, %v9823_v11 }
 0x8ce   : > { %v9866_v40 = vmax.f32 %v9850_v26, 0.0  ;;  %v9852_v8 = vadd.f32 %v15276_v34, %v9824_v59  ;;  %v9776_v25 = vpop.f32.mrb[36].mxu0 }
 0x8cf   : > { %10693 = vst [vmem:[%s13704_s20 + $0x140] sm:$0xff] %v9865_v14  ;;  %v9867_v37 = vmax.f32 %v9851_v49, 0.0  ;;  %v11237_v10 = vadd.f32 %v9776_v25, %v15252_v23  ;;  %v9778_v45 = vpop.f32.mrb[37].mxu0 }
 0x8d0   : > { %10694 = vst.msk [vmem:[%s13704_s20 + $0x148] sm:$0xff] %vm922_vm9, %v9866_v40  ;;  %v9868_v38 = vmax.f32 %v9852_v8, 0.0  ;;  %v11238_v24 = vadd.f32 %v9778_v45, %v15254_v16  ;;  %v9780_v62 = vpop.f32.mrb[38].mxu0 }
 0x8d1   : > { %10695 = vst [vmem:[%s13704_s20 + $0x150] sm:$0xff] %v9867_v37  ;;  %v9825_v13 = vmul.f32 %v11237_v10, %v15267_v2  ;;  %v11239_v27 = vadd.f32 %v9780_v62, %v15256_v7  ;;  %v9782_v33 = vpop.f32.mrb[39].mxu0 }
 0x8d2   : > { %10696 = vst.msk [vmem:[%s13704_s20 + $0x158] sm:$0xff] %vm922_vm9, %v9868_v38  ;;  %v9826_v23 = vmul.f32 %v11238_v24, %v15270_v43  ;;  %v11240_v50 = vadd.f32 %v9782_v33, %v15258_v48 }
 0x8d3   : > { %v9853_v55 = vadd.f32 %v15273_v56, %v9825_v13  ;;  %v9827_v16 = vmul.f32 %v11239_v27, %v15267_v2 }
 0x8d4   : > { %v9854_v42 = vadd.f32 %v15276_v34, %v9826_v23  ;;  %v9828_v0 = vmul.f32 %v11240_v50, %v15270_v43 }
 0x8d5   : > { %v9869_v17 = vmax.f32 %v9853_v55, 0.0  ;;  %v9855_v7 = vadd.f32 %v15273_v56, %v9827_v16 }
 0x8d6   : > { %v9870_v35 = vmax.f32 %v9854_v42, 0.0  ;;  %v9856_v12 = vadd.f32 %v15276_v34, %v9828_v0 }
 0x8d7   : > { %10697 = vst [vmem:[%s13704_s20 + $0x160] sm:$0xff] %v9869_v17  ;;  %v9871_v18 = vmax.f32 %v9855_v7, 0.0 }
 0x8d8   : > { %10698 = vst.msk [vmem:[%s13704_s20 + $0x168] sm:$0xff] %vm922_vm9, %v9870_v35  ;;  %v9872_v52 = vmax.f32 %v9856_v12, 0.0 }
 0x8d9   : > { %10699 = vst [vmem:[%s13704_s20 + $0x170] sm:$0xff] %v9871_v18 }
 0x8da   : > { %10700 = vst.msk [vmem:[%s13704_s20 + $0x178] sm:$0xff] %vm922_vm9, %v9872_v52 }
 0x8db PF: > { %s15645_s23 = sld [smem:[#allocation22_spill]] }
 0x8e1   : > { %s39_s5 = sadd.s32 1, %s15645_s23  }
 0x8e2   : > { %p36_p11 = scmp.ge.s32.totalorder %s39_s5, 4  }
 0x8e4   :  { %38 = sbr.rel (!%p36_p11) target bundleno = 21 (0x15), region = 226 }
 0x8eb   :  { %9911 = vsyncpa [#allocation5], 1 }
 0x8ec   :  { %9913 = vsyncpa [#allocation5 + $0x1], 1 }
 0x8ed   :  { %9914 = vsyncpa [#allocation7], 1 }
 0x8ee   :  { %9915 = vsyncpa [#allocation10], 1 }
 0x8ef   :  { %9916 = vsyncpa [#allocation13], 1 }
 0x8f0   :  { %9917 = vsyncpa [#allocation16], 1 }

</bundles_post_ra>
